<compile_context>
chip_gen: v5e
topology: v5e:2x2
jax: 0.10.0
libtpu: 0.0.40
codegen_flags: <defaults>
</compile_context>

<pallas_src>
import numpy as np
import jax
import jax.numpy as jnp
from jax.experimental import pallas as pl
from jax.experimental.pallas import tpu as pltpu

BN_EPS = 1e-5
CIN_ALIGN = 16      # bf16 sublane tile -> tap blocks stay tile-aligned


def _round_up(v, m):
    return (v + m - 1) // m * m


# ----------------------------- fused Pallas kernel -----------------------------

def _make_fused_kernel(offsets, l_out, n_batch, n_phase, cin_pad, n_valid):
    """conv-as-matmul (taps folded into K) + BatchNorm(train) + ReLU, fused."""

    def kernel(xf_ref, w_ref, g_ref, b_ref, mask_ref, o_ref, pat_ref):
        # xf_ref  : (N, Cin_pad, Lpad)       bf16  padded + flattened activations
        # w_ref   : (P, Cout, T*Cin_pad)     bf16  taps folded into contraction dim
        # g_ref/b_ref : (Cout, 1)            f32   BN affine parameters
        # mask_ref: (1, Lout)                f32   1.0 on valid output columns
        # o_ref   : (N, P, Cout, Lout)       f32   lane-dense output (lanes = Lout)
        # pat_ref : (T*Cin_pad, Lout)        bf16  VMEM scratch (stacked taps)
        cout = w_ref.shape[1]
        mask = jnp.broadcast_to(mask_ref[...], (cout, l_out))   # hoisted broadcast
        s1 = jnp.zeros((cout, 1), jnp.float32)
        s2 = jnp.zeros((cout, 1), jnp.float32)

        # Pass 1: one MXU matmul per (sample, phase); stash pre-BN activations in
        # the VMEM-resident output and accumulate masked per-channel sum / sumsq.
        for n in range(n_batch):
            for p in range(n_phase):
                for t, off in enumerate(offsets[p]):
                    pat_ref[t * cin_pad:(t + 1) * cin_pad, :] = \
                        xf_ref[n, :, off:off + l_out]
                y = jnp.dot(w_ref[p], pat_ref[...],
                            preferred_element_type=jnp.float32)   # (Cout, Lout)
                ym = y * mask
                s1 = s1 + jnp.sum(ym, axis=1, keepdims=True)
                s2 = s2 + jnp.sum(ym * ym, axis=1, keepdims=True)
                o_ref[n, p] = y

        # BatchNorm (batch statistics, biased variance) folded into scale/shift.
        inv = 1.0 / float(n_valid)
        mean = s1 * inv
        var = jnp.maximum(s2 * inv - mean * mean, 0.0)
        scale = g_ref[...] * jax.lax.rsqrt(var + BN_EPS)          # (Cout, 1)
        shift = b_ref[...] - mean * scale
        scale_b = jnp.broadcast_to(scale, (cout, l_out))
        shift_b = jnp.broadcast_to(shift, (cout, l_out))

        # Pass 2: affine + ReLU applied in place on the VMEM-resident output.
        for n in range(n_batch):
            for p in range(n_phase):
                o_ref[n, p] = jnp.maximum(o_ref[n, p] * scale_b + shift_b, 0.0)

    return kernel


def _fused_call(xf, wm, gamma, beta, mask, *, offsets, l_out, n_valid):
    n, cin_pad, _ = xf.shape
    p, cout, _ = wm.shape
    n_taps = len(offsets[0])
    kernel = _make_fused_kernel(offsets, l_out, n, p, cin_pad, n_valid)
    return pl.pallas_call(
        kernel,
        out_shape=jax.ShapeDtypeStruct((n, p, cout, l_out), jnp.float32),
        scratch_shapes=[pltpu.VMEM((n_taps * cin_pad, l_out), jnp.bfloat16)],
    )(xf, wm,
      gamma.astype(jnp.float32).reshape(cout, 1),
      beta.astype(jnp.float32).reshape(cout, 1),
      mask)


# ----------------------------- wrappers (layout glue) -----------------------------

def _prep_input(x_nchw, spatial_pad, cin_pad, max_off, l_out):
    """Channel-pad to cin_pad, zero-pad spatially, flatten HxW into the lane dim,
    and add tail padding so every tap slice [off : off + l_out] is in bounds."""
    n, c, h, w = x_nchw.shape
    xp = jnp.pad(x_nchw, ((0, 0), (0, cin_pad - c),
                          (spatial_pad, spatial_pad), (spatial_pad, spatial_pad)))
    hp, wp = h + 2 * spatial_pad, w + 2 * spatial_pad
    xf = xp.reshape(n, cin_pad, hp * wp)
    extra = max(0, max_off + l_out - hp * wp)
    if extra:
        xf = jnp.pad(xf, ((0, 0), (0, 0), (0, extra)))
    return xf.astype(jnp.bfloat16), wp


def _col_mask(h, wp, w_valid):
    m = np.zeros((1, h * wp), np.float32)
    m[0, (np.arange(h * wp) % wp) < w_valid] = 1.0
    return jnp.asarray(m)


def conv_bn_relu(x_nchw, w_pt, gamma, beta):
    """ConvModule: Conv2d(3x3, stride 1, pad 1, bias=False) + BN(train) + ReLU."""
    n, cin, h, w = x_nchw.shape
    cout, _, kh, kw = w_pt.shape
    cin_pad = _round_up(cin, CIN_ALIGN)
    wp = w + 2
    l_out = h * wp
    offsets = (tuple(ky * wp + kx for ky in range(kh) for kx in range(kw)),)
    xf, _ = _prep_input(x_nchw, 1, cin_pad, max(offsets[0]), l_out)
    wpad = jnp.pad(w_pt, ((0, 0), (0, cin_pad - cin), (0, 0), (0, 0)))
    wm = jnp.transpose(wpad, (0, 2, 3, 1)).reshape(cout, kh * kw * cin_pad)
    wm = wm[None].astype(jnp.bfloat16)                       # (1, Cout, T*Cin_pad)
    o = _fused_call(xf, wm, gamma, beta, _col_mask(h, wp, w),
                    offsets=offsets, l_out=l_out, n_valid=n * h * w)
    return o.reshape(n, cout, h, wp)[:, :, :, :w]


def deconv_bn_relu(x_nchw, w_pt, gamma, beta):
    """DeconvModule: ConvTranspose2d(4x4, stride 2, pad 1, bias=False) + BN + ReLU
    via sub-pixel phase decomposition (4 x 2x2 convs on the un-upsampled input)."""
    n, cin, h, w = x_nchw.shape
    cin_w, cout, kh, kw = w_pt.shape
    assert cin_w == cin and (kh, kw) == (4, 4)
    cin_pad = _round_up(cin, CIN_ALIGN)
    wp = w + 2
    l_out = h * wp
    offsets = tuple(                                          # phase = 2*py + px
        tuple((py + a) * wp + (px + b) for a in range(2) for b in range(2))
        for py in range(2) for px in range(2))
    xf, _ = _prep_input(x_nchw, 1, cin_pad, max(max(o) for o in offsets), l_out)
    wpad = jnp.pad(w_pt, ((0, cin_pad - cin), (0, 0), (0, 0), (0, 0)))
    wf = jnp.flip(wpad, axis=(2, 3))                          # flipped kernel
    wf = wf.reshape(cin_pad, cout, 2, 2, 2, 2)                # (Cin, Cout, a, py, b, px)
    wm = jnp.transpose(wf, (3, 5, 1, 2, 4, 0)).reshape(4, cout, 4 * cin_pad)
    wm = wm.astype(jnp.bfloat16)
    o = _fused_call(xf, wm, gamma, beta, _col_mask(h, wp, w),
                    offsets=offsets, l_out=l_out, n_valid=n * 4 * h * w)
    o = o.reshape(n, 2, 2, cout, h, wp)[:, :, :, :, :, :w]    # (N, py, px, C, H, W)
    o = jnp.transpose(o, (0, 3, 4, 1, 5, 2))                  # (N, C, H, py, W, px)
    return o.reshape(n, cout, 2 * h, 2 * w)


# ----------------------------- Neck model -----------------------------

def init_neck_params(key, in_channel, num_deconv_filters, num_deconv_kernels):
    assert len(num_deconv_filters) == len(num_deconv_kernels)
    params = []
    for feat, k in zip(num_deconv_filters, num_deconv_kernels):
        key, k1, k2, k3, k4, k5, k6 = jax.random.split(key, 7)
        params.append(dict(
            conv_w=0.1 * jax.random.normal(k1, (feat, in_channel, 3, 3), jnp.float32),
            bn1_gamma=1.0 + 0.1 * jax.random.normal(k2, (feat,), jnp.float32),
            bn1_beta=0.1 * jax.random.normal(k3, (feat,), jnp.float32),
            deconv_w=0.1 * jax.random.normal(k4, (feat, feat, k, k), jnp.float32),
            bn2_gamma=1.0 + 0.1 * jax.random.normal(k5, (feat,), jnp.float32),
            bn2_beta=0.1 * jax.random.normal(k6, (feat,), jnp.float32),
        ))
        in_channel = feat
    return params


def neck_forward(x_nchw, params):
    x = x_nchw.astype(jnp.float32)
    for layer in params:
        x = conv_bn_relu(x, layer['conv_w'], layer['bn1_gamma'], layer['bn1_beta'])
        x = deconv_bn_relu(x, layer['deconv_w'], layer['bn2_gamma'], layer['bn2_beta'])
    return x


if __name__ == "__main__":
    key = jax.random.PRNGKey(0)
    kx, kp = jax.random.split(key)

    in_channel = 4
    num_deconv_filters = (8, 8)
    num_deconv_kernels = (4, 4)

    x = jax.random.normal(kx, (2, in_channel, 8, 8), jnp.float32)   # NCHW input
    params = init_neck_params(kp, in_channel, num_deconv_filters, num_deconv_kernels)

    out = jax.jit(lambda inp: neck_forward(inp, params))(x)
    out = jax.block_until_ready(out)

    # two 2x-upsampling stages: 8 -> 16 -> 32
    assert out.shape == (2, num_deconv_filters[-1], 32, 32), out.shape
    assert bool(jnp.all(out >= 0.0)), "ReLU output must be non-negative"
    assert bool(jnp.all(jnp.isfinite(out)))
    print("KERNEL_OK")
</pallas_src>

<mosaic_0001>
module attributes {stable_mosaic.version = 11 : i64} {
  func.func @kernel(%arg0: memref<2x16x102xbf16, #tpu.memory_space<vmem>>, %arg1: memref<1x8x144xbf16, #tpu.memory_space<vmem>>, %arg2: memref<8x1xf32, #tpu.memory_space<vmem>>, %arg3: memref<8x1xf32, #tpu.memory_space<vmem>>, %arg4: memref<1x80xf32, #tpu.memory_space<vmem>>, %arg5: memref<2x1x8x80xf32, #tpu.memory_space<vmem>>, %arg6: memref<144x80xbf16, #tpu.memory_space<vmem>>) attributes {dimension_semantics = [], scalar_prefetch = 0 : i64, scratch_operands = 1 : i64, tpu.core_type = #tpu.core_type<tc>} {
    %c0 = arith.constant 0 : index
    %c0_0 = arith.constant 0 : index
    %0 = vector.load %arg4[%c0, %c0_0] : memref<1x80xf32, #tpu.memory_space<vmem>>, vector<1x80xf32>
    %1 = vector.shape_cast %0 : vector<1x80xf32> to vector<1x80xf32>
    %2 = vector.broadcast %1 : vector<1x80xf32> to vector<8x80xf32>
    %cst = arith.constant 0.000000e+00 : f32
    %3 = vector.broadcast %cst : f32 to vector<8x1xf32>
    %cst_1 = arith.constant 0.000000e+00 : f32
    %4 = vector.broadcast %cst_1 : f32 to vector<8x1xf32>
    %c0_2 = arith.constant 0 : index
    %c0_3 = arith.constant 0 : index
    %c0_4 = arith.constant 0 : index
    %5 = vector.load %arg0[%c0_2, %c0_3, %c0_4] : memref<2x16x102xbf16, #tpu.memory_space<vmem>>, vector<1x16x80xbf16>
    %6 = vector.shape_cast %5 : vector<1x16x80xbf16> to vector<16x80xbf16>
    %c0_5 = arith.constant 0 : index
    %c0_6 = arith.constant 0 : index
    %7 = vector.load %arg6[%c0_5, %c0_6] : memref<144x80xbf16, #tpu.memory_space<vmem>>, vector<16x80xbf16>
    tpu.vector_store %arg6[%c0_5, %c0_6], %6 {strides = array<i32>} : memref<144x80xbf16, #tpu.memory_space<vmem>>, vector<16x80xbf16>,
    %c0_7 = arith.constant 0 : index
    %c0_8 = arith.constant 0 : index
    %c1 = arith.constant 1 : index
    %8 = vector.load %arg0[%c0_7, %c0_8, %c1] : memref<2x16x102xbf16, #tpu.memory_space<vmem>>, vector<1x16x80xbf16>
    %9 = vector.shape_cast %8 : vector<1x16x80xbf16> to vector<16x80xbf16>
    %c16 = arith.constant 16 : index
    %c0_9 = arith.constant 0 : index
    %10 = vector.load %arg6[%c16, %c0_9] : memref<144x80xbf16, #tpu.memory_space<vmem>>, vector<16x80xbf16>
    tpu.vector_store %arg6[%c16, %c0_9], %9 {strides = array<i32>} : memref<144x80xbf16, #tpu.memory_space<vmem>>, vector<16x80xbf16>,
    %c0_10 = arith.constant 0 : index
    %c0_11 = arith.constant 0 : index
    %c2 = arith.constant 2 : index
    %11 = vector.load %arg0[%c0_10, %c0_11, %c2] : memref<2x16x102xbf16, #tpu.memory_space<vmem>>, vector<1x16x80xbf16>
    %12 = vector.shape_cast %11 : vector<1x16x80xbf16> to vector<16x80xbf16>
    %c32 = arith.constant 32 : index
    %c0_12 = arith.constant 0 : index
    %13 = vector.load %arg6[%c32, %c0_12] : memref<144x80xbf16, #tpu.memory_space<vmem>>, vector<16x80xbf16>
    tpu.vector_store %arg6[%c32, %c0_12], %12 {strides = array<i32>} : memref<144x80xbf16, #tpu.memory_space<vmem>>, vector<16x80xbf16>,
    %c0_13 = arith.constant 0 : index
    %c0_14 = arith.constant 0 : index
    %c10 = arith.constant 10 : index
    %14 = vector.load %arg0[%c0_13, %c0_14, %c10] : memref<2x16x102xbf16, #tpu.memory_space<vmem>>, vector<1x16x80xbf16>
    %15 = vector.shape_cast %14 : vector<1x16x80xbf16> to vector<16x80xbf16>
    %c48 = arith.constant 48 : index
    %c0_15 = arith.constant 0 : index
    %16 = vector.load %arg6[%c48, %c0_15] : memref<144x80xbf16, #tpu.memory_space<vmem>>, vector<16x80xbf16>
    tpu.vector_store %arg6[%c48, %c0_15], %15 {strides = array<i32>} : memref<144x80xbf16, #tpu.memory_space<vmem>>, vector<16x80xbf16>,
    %c0_16 = arith.constant 0 : index
    %c0_17 = arith.constant 0 : index
    %c11 = arith.constant 11 : index
    %17 = vector.load %arg0[%c0_16, %c0_17, %c11] : memref<2x16x102xbf16, #tpu.memory_space<vmem>>, vector<1x16x80xbf16>
    %18 = vector.shape_cast %17 : vector<1x16x80xbf16> to vector<16x80xbf16>
    %c64 = arith.constant 64 : index
    %c0_18 = arith.constant 0 : index
    %19 = vector.load %arg6[%c64, %c0_18] : memref<144x80xbf16, #tpu.memory_space<vmem>>, vector<16x80xbf16>
    tpu.vector_store %arg6[%c64, %c0_18], %18 {strides = array<i32>} : memref<144x80xbf16, #tpu.memory_space<vmem>>, vector<16x80xbf16>,
    %c0_19 = arith.constant 0 : index
    %c0_20 = arith.constant 0 : index
    %c12 = arith.constant 12 : index
    %20 = vector.load %arg0[%c0_19, %c0_20, %c12] : memref<2x16x102xbf16, #tpu.memory_space<vmem>>, vector<1x16x80xbf16>
    %21 = vector.shape_cast %20 : vector<1x16x80xbf16> to vector<16x80xbf16>
    %c80 = arith.constant 80 : index
    %c0_21 = arith.constant 0 : index
    %22 = vector.load %arg6[%c80, %c0_21] : memref<144x80xbf16, #tpu.memory_space<vmem>>, vector<16x80xbf16>
    tpu.vector_store %arg6[%c80, %c0_21], %21 {strides = array<i32>} : memref<144x80xbf16, #tpu.memory_space<vmem>>, vector<16x80xbf16>,
    %c0_22 = arith.constant 0 : index
    %c0_23 = arith.constant 0 : index
    %c20 = arith.constant 20 : index
    %23 = vector.load %arg0[%c0_22, %c0_23, %c20] : memref<2x16x102xbf16, #tpu.memory_space<vmem>>, vector<1x16x80xbf16>
    %24 = vector.shape_cast %23 : vector<1x16x80xbf16> to vector<16x80xbf16>
    %c96 = arith.constant 96 : index
    %c0_24 = arith.constant 0 : index
    %25 = vector.load %arg6[%c96, %c0_24] : memref<144x80xbf16, #tpu.memory_space<vmem>>, vector<16x80xbf16>
    tpu.vector_store %arg6[%c96, %c0_24], %24 {strides = array<i32>} : memref<144x80xbf16, #tpu.memory_space<vmem>>, vector<16x80xbf16>,
    %c0_25 = arith.constant 0 : index
    %c0_26 = arith.constant 0 : index
    %c21 = arith.constant 21 : index
    %26 = vector.load %arg0[%c0_25, %c0_26, %c21] : memref<2x16x102xbf16, #tpu.memory_space<vmem>>, vector<1x16x80xbf16>
    %27 = vector.shape_cast %26 : vector<1x16x80xbf16> to vector<16x80xbf16>
    %c112 = arith.constant 112 : index
    %c0_27 = arith.constant 0 : index
    %28 = vector.load %arg6[%c112, %c0_27] : memref<144x80xbf16, #tpu.memory_space<vmem>>, vector<16x80xbf16>
    tpu.vector_store %arg6[%c112, %c0_27], %27 {strides = array<i32>} : memref<144x80xbf16, #tpu.memory_space<vmem>>, vector<16x80xbf16>,
    %c0_28 = arith.constant 0 : index
    %c0_29 = arith.constant 0 : index
    %c22 = arith.constant 22 : index
    %29 = vector.load %arg0[%c0_28, %c0_29, %c22] : memref<2x16x102xbf16, #tpu.memory_space<vmem>>, vector<1x16x80xbf16>
    %30 = vector.shape_cast %29 : vector<1x16x80xbf16> to vector<16x80xbf16>
    %c128 = arith.constant 128 : index
    %c0_30 = arith.constant 0 : index
    %31 = vector.load %arg6[%c128, %c0_30] : memref<144x80xbf16, #tpu.memory_space<vmem>>, vector<16x80xbf16>
    tpu.vector_store %arg6[%c128, %c0_30], %30 {strides = array<i32>} : memref<144x80xbf16, #tpu.memory_space<vmem>>, vector<16x80xbf16>,
    %c0_31 = arith.constant 0 : index
    %c0_32 = arith.constant 0 : index
    %c0_33 = arith.constant 0 : index
    %32 = vector.load %arg1[%c0_31, %c0_32, %c0_33] : memref<1x8x144xbf16, #tpu.memory_space<vmem>>, vector<1x8x144xbf16>
    %33 = vector.shape_cast %32 : vector<1x8x144xbf16> to vector<8x144xbf16>
    %c0_34 = arith.constant 0 : index
    %c0_35 = arith.constant 0 : index
    %34 = vector.load %arg6[%c0_34, %c0_35] : memref<144x80xbf16, #tpu.memory_space<vmem>>, vector<144x80xbf16>
    %cst_36 = arith.constant dense<0.000000e+00> : vector<8x80xf32>
    %35 = tpu.matmul %33, %34, %cst_36 {dimension_numbers = #tpu.dot_dimension_numbers<[1], [0], [0], [1], [0, 0, 1, 1], [], []>} : vector<8x144xbf16>, vector<144x80xbf16>, vector<8x80xf32> -> vector<8x80xf32>
    %36 = arith.mulf %35, %2 : vector<8x80xf32>
    %cst_37 = arith.constant dense<0.000000e+00> : vector<8xf32>
    %37 = vector.multi_reduction <add>, %36, %cst_37 [1] : vector<8x80xf32> to vector<8xf32>
    %38 = vector.shape_cast %37 : vector<8xf32> to vector<8x1xf32>
    %39 = arith.addf %3, %38 : vector<8x1xf32>
    %40 = arith.mulf %36, %36 : vector<8x80xf32>
    %cst_38 = arith.constant dense<0.000000e+00> : vector<8xf32>
    %41 = vector.multi_reduction <add>, %40, %cst_38 [1] : vector<8x80xf32> to vector<8xf32>
    %42 = vector.shape_cast %41 : vector<8xf32> to vector<8x1xf32>
    %43 = arith.addf %4, %42 : vector<8x1xf32>
    %c0_39 = arith.constant 0 : index
    %c0_40 = arith.constant 0 : index
    %c0_41 = arith.constant 0 : index
    %c0_42 = arith.constant 0 : index
    %44 = vector.load %arg5[%c0_39, %c0_40, %c0_41, %c0_42] : memref<2x1x8x80xf32, #tpu.memory_space<vmem>>, vector<1x1x8x80xf32>
    %45 = vector.shape_cast %44 : vector<1x1x8x80xf32> to vector<8x80xf32>
    %46 = vector.shape_cast %35 : vector<8x80xf32> to vector<1x1x8x80xf32>
    tpu.vector_store %arg5[%c0_39, %c0_40, %c0_41, %c0_42], %46 {strides = array<i32>} : memref<2x1x8x80xf32, #tpu.memory_space<vmem>>, vector<1x1x8x80xf32>,
    %c1_43 = arith.constant 1 : index
    %c0_44 = arith.constant 0 : index
    %c0_45 = arith.constant 0 : index
    %47 = vector.load %arg0[%c1_43, %c0_44, %c0_45] : memref<2x16x102xbf16, #tpu.memory_space<vmem>>, vector<1x16x80xbf16>
    %48 = vector.shape_cast %47 : vector<1x16x80xbf16> to vector<16x80xbf16>
    %c0_46 = arith.constant 0 : index
    %c0_47 = arith.constant 0 : index
    %49 = vector.load %arg6[%c0_46, %c0_47] : memref<144x80xbf16, #tpu.memory_space<vmem>>, vector<16x80xbf16>
    tpu.vector_store %arg6[%c0_46, %c0_47], %48 {strides = array<i32>} : memref<144x80xbf16, #tpu.memory_space<vmem>>, vector<16x80xbf16>,
    %c1_48 = arith.constant 1 : index
    %c0_49 = arith.constant 0 : index
    %c1_50 = arith.constant 1 : index
    %50 = vector.load %arg0[%c1_48, %c0_49, %c1_50] : memref<2x16x102xbf16, #tpu.memory_space<vmem>>, vector<1x16x80xbf16>
    %51 = vector.shape_cast %50 : vector<1x16x80xbf16> to vector<16x80xbf16>
    %c16_51 = arith.constant 16 : index
    %c0_52 = arith.constant 0 : index
    %52 = vector.load %arg6[%c16_51, %c0_52] : memref<144x80xbf16, #tpu.memory_space<vmem>>, vector<16x80xbf16>
    tpu.vector_store %arg6[%c16_51, %c0_52], %51 {strides = array<i32>} : memref<144x80xbf16, #tpu.memory_space<vmem>>, vector<16x80xbf16>,
    %c1_53 = arith.constant 1 : index
    %c0_54 = arith.constant 0 : index
    %c2_55 = arith.constant 2 : index
    %53 = vector.load %arg0[%c1_53, %c0_54, %c2_55] : memref<2x16x102xbf16, #tpu.memory_space<vmem>>, vector<1x16x80xbf16>
    %54 = vector.shape_cast %53 : vector<1x16x80xbf16> to vector<16x80xbf16>
    %c32_56 = arith.constant 32 : index
    %c0_57 = arith.constant 0 : index
    %55 = vector.load %arg6[%c32_56, %c0_57] : memref<144x80xbf16, #tpu.memory_space<vmem>>, vector<16x80xbf16>
    tpu.vector_store %arg6[%c32_56, %c0_57], %54 {strides = array<i32>} : memref<144x80xbf16, #tpu.memory_space<vmem>>, vector<16x80xbf16>,
    %c1_58 = arith.constant 1 : index
    %c0_59 = arith.constant 0 : index
    %c10_60 = arith.constant 10 : index
    %56 = vector.load %arg0[%c1_58, %c0_59, %c10_60] : memref<2x16x102xbf16, #tpu.memory_space<vmem>>, vector<1x16x80xbf16>
    %57 = vector.shape_cast %56 : vector<1x16x80xbf16> to vector<16x80xbf16>
    %c48_61 = arith.constant 48 : index
    %c0_62 = arith.constant 0 : index
    %58 = vector.load %arg6[%c48_61, %c0_62] : memref<144x80xbf16, #tpu.memory_space<vmem>>, vector<16x80xbf16>
    tpu.vector_store %arg6[%c48_61, %c0_62], %57 {strides = array<i32>} : memref<144x80xbf16, #tpu.memory_space<vmem>>, vector<16x80xbf16>,
    %c1_63 = arith.constant 1 : index
    %c0_64 = arith.constant 0 : index
    %c11_65 = arith.constant 11 : index
    %59 = vector.load %arg0[%c1_63, %c0_64, %c11_65] : memref<2x16x102xbf16, #tpu.memory_space<vmem>>, vector<1x16x80xbf16>
    %60 = vector.shape_cast %59 : vector<1x16x80xbf16> to vector<16x80xbf16>
    %c64_66 = arith.constant 64 : index
    %c0_67 = arith.constant 0 : index
    %61 = vector.load %arg6[%c64_66, %c0_67] : memref<144x80xbf16, #tpu.memory_space<vmem>>, vector<16x80xbf16>
    tpu.vector_store %arg6[%c64_66, %c0_67], %60 {strides = array<i32>} : memref<144x80xbf16, #tpu.memory_space<vmem>>, vector<16x80xbf16>,
    %c1_68 = arith.constant 1 : index
    %c0_69 = arith.constant 0 : index
    %c12_70 = arith.constant 12 : index
    %62 = vector.load %arg0[%c1_68, %c0_69, %c12_70] : memref<2x16x102xbf16, #tpu.memory_space<vmem>>, vector<1x16x80xbf16>
    %63 = vector.shape_cast %62 : vector<1x16x80xbf16> to vector<16x80xbf16>
    %c80_71 = arith.constant 80 : index
    %c0_72 = arith.constant 0 : index
    %64 = vector.load %arg6[%c80_71, %c0_72] : memref<144x80xbf16, #tpu.memory_space<vmem>>, vector<16x80xbf16>
    tpu.vector_store %arg6[%c80_71, %c0_72], %63 {strides = array<i32>} : memref<144x80xbf16, #tpu.memory_space<vmem>>, vector<16x80xbf16>,
    %c1_73 = arith.constant 1 : index
    %c0_74 = arith.constant 0 : index
    %c20_75 = arith.constant 20 : index
    %65 = vector.load %arg0[%c1_73, %c0_74, %c20_75] : memref<2x16x102xbf16, #tpu.memory_space<vmem>>, vector<1x16x80xbf16>
    %66 = vector.shape_cast %65 : vector<1x16x80xbf16> to vector<16x80xbf16>
    %c96_76 = arith.constant 96 : index
    %c0_77 = arith.constant 0 : index
    %67 = vector.load %arg6[%c96_76, %c0_77] : memref<144x80xbf16, #tpu.memory_space<vmem>>, vector<16x80xbf16>
    tpu.vector_store %arg6[%c96_76, %c0_77], %66 {strides = array<i32>} : memref<144x80xbf16, #tpu.memory_space<vmem>>, vector<16x80xbf16>,
    %c1_78 = arith.constant 1 : index
    %c0_79 = arith.constant 0 : index
    %c21_80 = arith.constant 21 : index
    %68 = vector.load %arg0[%c1_78, %c0_79, %c21_80] : memref<2x16x102xbf16, #tpu.memory_space<vmem>>, vector<1x16x80xbf16>
    %69 = vector.shape_cast %68 : vector<1x16x80xbf16> to vector<16x80xbf16>
    %c112_81 = arith.constant 112 : index
    %c0_82 = arith.constant 0 : index
    %70 = vector.load %arg6[%c112_81, %c0_82] : memref<144x80xbf16, #tpu.memory_space<vmem>>, vector<16x80xbf16>
    tpu.vector_store %arg6[%c112_81, %c0_82], %69 {strides = array<i32>} : memref<144x80xbf16, #tpu.memory_space<vmem>>, vector<16x80xbf16>,
    %c1_83 = arith.constant 1 : index
    %c0_84 = arith.constant 0 : index
    %c22_85 = arith.constant 22 : index
    %71 = vector.load %arg0[%c1_83, %c0_84, %c22_85] : memref<2x16x102xbf16, #tpu.memory_space<vmem>>, vector<1x16x80xbf16>
    %72 = vector.shape_cast %71 : vector<1x16x80xbf16> to vector<16x80xbf16>
    %c128_86 = arith.constant 128 : index
    %c0_87 = arith.constant 0 : index
    %73 = vector.load %arg6[%c128_86, %c0_87] : memref<144x80xbf16, #tpu.memory_space<vmem>>, vector<16x80xbf16>
    tpu.vector_store %arg6[%c128_86, %c0_87], %72 {strides = array<i32>} : memref<144x80xbf16, #tpu.memory_space<vmem>>, vector<16x80xbf16>,
    %c0_88 = arith.constant 0 : index
    %c0_89 = arith.constant 0 : index
    %c0_90 = arith.constant 0 : index
    %74 = vector.load %arg1[%c0_88, %c0_89, %c0_90] : memref<1x8x144xbf16, #tpu.memory_space<vmem>>, vector<1x8x144xbf16>
    %75 = vector.shape_cast %74 : vector<1x8x144xbf16> to vector<8x144xbf16>
    %c0_91 = arith.constant 0 : index
    %c0_92 = arith.constant 0 : index
    %76 = vector.load %arg6[%c0_91, %c0_92] : memref<144x80xbf16, #tpu.memory_space<vmem>>, vector<144x80xbf16>
    %cst_93 = arith.constant dense<0.000000e+00> : vector<8x80xf32>
    %77 = tpu.matmul %75, %76, %cst_93 {dimension_numbers = #tpu.dot_dimension_numbers<[1], [0], [0], [1], [0, 0, 1, 1], [], []>} : vector<8x144xbf16>, vector<144x80xbf16>, vector<8x80xf32> -> vector<8x80xf32>
    %78 = arith.mulf %77, %2 : vector<8x80xf32>
    %cst_94 = arith.constant dense<0.000000e+00> : vector<8xf32>
    %79 = vector.multi_reduction <add>, %78, %cst_94 [1] : vector<8x80xf32> to vector<8xf32>
    %80 = vector.shape_cast %79 : vector<8xf32> to vector<8x1xf32>
    %81 = arith.addf %39, %80 : vector<8x1xf32>
    %82 = arith.mulf %78, %78 : vector<8x80xf32>
    %cst_95 = arith.constant dense<0.000000e+00> : vector<8xf32>
    %83 = vector.multi_reduction <add>, %82, %cst_95 [1] : vector<8x80xf32> to vector<8xf32>
    %84 = vector.shape_cast %83 : vector<8xf32> to vector<8x1xf32>
    %85 = arith.addf %43, %84 : vector<8x1xf32>
    %c1_96 = arith.constant 1 : index
    %c0_97 = arith.constant 0 : index
    %c0_98 = arith.constant 0 : index
    %c0_99 = arith.constant 0 : index
    %86 = vector.load %arg5[%c1_96, %c0_97, %c0_98, %c0_99] : memref<2x1x8x80xf32, #tpu.memory_space<vmem>>, vector<1x1x8x80xf32>
    %87 = vector.shape_cast %86 : vector<1x1x8x80xf32> to vector<8x80xf32>
    %88 = vector.shape_cast %77 : vector<8x80xf32> to vector<1x1x8x80xf32>
    tpu.vector_store %arg5[%c1_96, %c0_97, %c0_98, %c0_99], %88 {strides = array<i32>} : memref<2x1x8x80xf32, #tpu.memory_space<vmem>>, vector<1x1x8x80xf32>,
    %cst_100 = arith.constant 7.812500e-03 : f32
    %89 = vector.broadcast %cst_100 : f32 to vector<8x1xf32>
    %90 = arith.mulf %81, %89 : vector<8x1xf32>
    %cst_101 = arith.constant 7.812500e-03 : f32
    %91 = vector.broadcast %cst_101 : f32 to vector<8x1xf32>
    %92 = arith.mulf %85, %91 : vector<8x1xf32>
    %93 = arith.mulf %90, %90 : vector<8x1xf32>
    %94 = arith.subf %92, %93 : vector<8x1xf32>
    %cst_102 = arith.constant 0.000000e+00 : f32
    %95 = vector.broadcast %cst_102 : f32 to vector<8x1xf32>
    %96 = arith.maximumf %94, %95 : vector<8x1xf32>
    %c0_103 = arith.constant 0 : index
    %c0_104 = arith.constant 0 : index
    %97 = vector.load %arg2[%c0_103, %c0_104] : memref<8x1xf32, #tpu.memory_space<vmem>>, vector<8x1xf32>
    %cst_105 = arith.constant 9.99999974E-6 : f32
    %98 = vector.broadcast %cst_105 : f32 to vector<8x1xf32>
    %99 = arith.addf %96, %98 : vector<8x1xf32>
    %100 = math.rsqrt %99 : vector<8x1xf32>
    %101 = arith.mulf %97, %100 : vector<8x1xf32>
    %c0_106 = arith.constant 0 : index
    %c0_107 = arith.constant 0 : index
    %102 = vector.load %arg3[%c0_106, %c0_107] : memref<8x1xf32, #tpu.memory_space<vmem>>, vector<8x1xf32>
    %103 = arith.mulf %90, %101 : vector<8x1xf32>
    %104 = arith.subf %102, %103 : vector<8x1xf32>
    %105 = vector.shape_cast %101 : vector<8x1xf32> to vector<8x1xf32>
    %106 = vector.broadcast %105 : vector<8x1xf32> to vector<8x80xf32>
    %107 = vector.shape_cast %104 : vector<8x1xf32> to vector<8x1xf32>
    %108 = vector.broadcast %107 : vector<8x1xf32> to vector<8x80xf32>
    %c0_108 = arith.constant 0 : index
    %c0_109 = arith.constant 0 : index
    %c0_110 = arith.constant 0 : index
    %c0_111 = arith.constant 0 : index
    %109 = vector.load %arg5[%c0_108, %c0_109, %c0_110, %c0_111] : memref<2x1x8x80xf32, #tpu.memory_space<vmem>>, vector<1x1x8x80xf32>
    %110 = vector.shape_cast %109 : vector<1x1x8x80xf32> to vector<8x80xf32>
    %111 = arith.mulf %110, %106 : vector<8x80xf32>
    %112 = arith.addf %111, %108 : vector<8x80xf32>
    %cst_112 = arith.constant 0.000000e+00 : f32
    %113 = vector.broadcast %cst_112 : f32 to vector<8x80xf32>
    %114 = arith.maximumf %112, %113 : vector<8x80xf32>
    %c0_113 = arith.constant 0 : index
    %c0_114 = arith.constant 0 : index
    %c0_115 = arith.constant 0 : index
    %c0_116 = arith.constant 0 : index
    %115 = vector.load %arg5[%c0_113, %c0_114, %c0_115, %c0_116] : memref<2x1x8x80xf32, #tpu.memory_space<vmem>>, vector<1x1x8x80xf32>
    %116 = vector.shape_cast %115 : vector<1x1x8x80xf32> to vector<8x80xf32>
    %117 = vector.shape_cast %114 : vector<8x80xf32> to vector<1x1x8x80xf32>
    tpu.vector_store %arg5[%c0_113, %c0_114, %c0_115, %c0_116], %117 {strides = array<i32>} : memref<2x1x8x80xf32, #tpu.memory_space<vmem>>, vector<1x1x8x80xf32>,
    %c1_117 = arith.constant 1 : index
    %c0_118 = arith.constant 0 : index
    %c0_119 = arith.constant 0 : index
    %c0_120 = arith.constant 0 : index
    %118 = vector.load %arg5[%c1_117, %c0_118, %c0_119, %c0_120] : memref<2x1x8x80xf32, #tpu.memory_space<vmem>>, vector<1x1x8x80xf32>
    %119 = vector.shape_cast %118 : vector<1x1x8x80xf32> to vector<8x80xf32>
    %120 = arith.mulf %119, %106 : vector<8x80xf32>
    %121 = arith.addf %120, %108 : vector<8x80xf32>
    %cst_121 = arith.constant 0.000000e+00 : f32
    %122 = vector.broadcast %cst_121 : f32 to vector<8x80xf32>
    %123 = arith.maximumf %121, %122 : vector<8x80xf32>
    %c1_122 = arith.constant 1 : index
    %c0_123 = arith.constant 0 : index
    %c0_124 = arith.constant 0 : index
    %c0_125 = arith.constant 0 : index
    %124 = vector.load %arg5[%c1_122, %c0_123, %c0_124, %c0_125] : memref<2x1x8x80xf32, #tpu.memory_space<vmem>>, vector<1x1x8x80xf32>
    %125 = vector.shape_cast %124 : vector<1x1x8x80xf32> to vector<8x80xf32>
    %126 = vector.shape_cast %123 : vector<8x80xf32> to vector<1x1x8x80xf32>
    tpu.vector_store %arg5[%c1_122, %c0_123, %c0_124, %c0_125], %126 {strides = array<i32>} : memref<2x1x8x80xf32, #tpu.memory_space<vmem>>, vector<1x1x8x80xf32>,
    return
  }
}

module attributes {stable_mosaic.version = 11 : i64} {
  func.func @kernel(%arg0: memref<2x16x102xbf16, #tpu.memory_space<vmem>>, %arg1: memref<4x8x64xbf16, #tpu.memory_space<vmem>>, %arg2: memref<8x1xf32, #tpu.memory_space<vmem>>, %arg3: memref<8x1xf32, #tpu.memory_space<vmem>>, %arg4: memref<1x80xf32, #tpu.memory_space<vmem>>, %arg5: memref<2x4x8x80xf32, #tpu.memory_space<vmem>>, %arg6: memref<64x80xbf16, #tpu.memory_space<vmem>>) attributes {dimension_semantics = [], scalar_prefetch = 0 : i64, scratch_operands = 1 : i64, tpu.core_type = #tpu.core_type<tc>} {
    %c0 = arith.constant 0 : index
    %c0_0 = arith.constant 0 : index
    %0 = vector.load %arg4[%c0, %c0_0] : memref<1x80xf32, #tpu.memory_space<vmem>>, vector<1x80xf32>
    %1 = vector.shape_cast %0 : vector<1x80xf32> to vector<1x80xf32>
    %2 = vector.broadcast %1 : vector<1x80xf32> to vector<8x80xf32>
    %cst = arith.constant 0.000000e+00 : f32
    %3 = vector.broadcast %cst : f32 to vector<8x1xf32>
    %cst_1 = arith.constant 0.000000e+00 : f32
    %4 = vector.broadcast %cst_1 : f32 to vector<8x1xf32>
    %c0_2 = arith.constant 0 : index
    %c0_3 = arith.constant 0 : index
    %c0_4 = arith.constant 0 : index
    %5 = vector.load %arg0[%c0_2, %c0_3, %c0_4] : memref<2x16x102xbf16, #tpu.memory_space<vmem>>, vector<1x16x80xbf16>
    %6 = vector.shape_cast %5 : vector<1x16x80xbf16> to vector<16x80xbf16>
    %c0_5 = arith.constant 0 : index
    %c0_6 = arith.constant 0 : index
    %7 = vector.load %arg6[%c0_5, %c0_6] : memref<64x80xbf16, #tpu.memory_space<vmem>>, vector<16x80xbf16>
    tpu.vector_store %arg6[%c0_5, %c0_6], %6 {strides = array<i32>} : memref<64x80xbf16, #tpu.memory_space<vmem>>, vector<16x80xbf16>,
    %c0_7 = arith.constant 0 : index
    %c0_8 = arith.constant 0 : index
    %c1 = arith.constant 1 : index
    %8 = vector.load %arg0[%c0_7, %c0_8, %c1] : memref<2x16x102xbf16, #tpu.memory_space<vmem>>, vector<1x16x80xbf16>
    %9 = vector.shape_cast %8 : vector<1x16x80xbf16> to vector<16x80xbf16>
    %c16 = arith.constant 16 : index
    %c0_9 = arith.constant 0 : index
    %10 = vector.load %arg6[%c16, %c0_9] : memref<64x80xbf16, #tpu.memory_space<vmem>>, vector<16x80xbf16>
    tpu.vector_store %arg6[%c16, %c0_9], %9 {strides = array<i32>} : memref<64x80xbf16, #tpu.memory_space<vmem>>, vector<16x80xbf16>,
    %c0_10 = arith.constant 0 : index
    %c0_11 = arith.constant 0 : index
    %c10 = arith.constant 10 : index
    %11 = vector.load %arg0[%c0_10, %c0_11, %c10] : memref<2x16x102xbf16, #tpu.memory_space<vmem>>, vector<1x16x80xbf16>
    %12 = vector.shape_cast %11 : vector<1x16x80xbf16> to vector<16x80xbf16>
    %c32 = arith.constant 32 : index
    %c0_12 = arith.constant 0 : index
    %13 = vector.load %arg6[%c32, %c0_12] : memref<64x80xbf16, #tpu.memory_space<vmem>>, vector<16x80xbf16>
    tpu.vector_store %arg6[%c32, %c0_12], %12 {strides = array<i32>} : memref<64x80xbf16, #tpu.memory_space<vmem>>, vector<16x80xbf16>,
    %c0_13 = arith.constant 0 : index
    %c0_14 = arith.constant 0 : index
    %c11 = arith.constant 11 : index
    %14 = vector.load %arg0[%c0_13, %c0_14, %c11] : memref<2x16x102xbf16, #tpu.memory_space<vmem>>, vector<1x16x80xbf16>
    %15 = vector.shape_cast %14 : vector<1x16x80xbf16> to vector<16x80xbf16>
    %c48 = arith.constant 48 : index
    %c0_15 = arith.constant 0 : index
    %16 = vector.load %arg6[%c48, %c0_15] : memref<64x80xbf16, #tpu.memory_space<vmem>>, vector<16x80xbf16>
    tpu.vector_store %arg6[%c48, %c0_15], %15 {strides = array<i32>} : memref<64x80xbf16, #tpu.memory_space<vmem>>, vector<16x80xbf16>,
    %c0_16 = arith.constant 0 : index
    %c0_17 = arith.constant 0 : index
    %c0_18 = arith.constant 0 : index
    %17 = vector.load %arg1[%c0_16, %c0_17, %c0_18] : memref<4x8x64xbf16, #tpu.memory_space<vmem>>, vector<1x8x64xbf16>
    %18 = vector.shape_cast %17 : vector<1x8x64xbf16> to vector<8x64xbf16>
    %c0_19 = arith.constant 0 : index
    %c0_20 = arith.constant 0 : index
    %19 = vector.load %arg6[%c0_19, %c0_20] : memref<64x80xbf16, #tpu.memory_space<vmem>>, vector<64x80xbf16>
    %cst_21 = arith.constant dense<0.000000e+00> : vector<8x80xf32>
    %20 = tpu.matmul %18, %19, %cst_21 {dimension_numbers = #tpu.dot_dimension_numbers<[1], [0], [0], [1], [0, 0, 1, 1], [], []>} : vector<8x64xbf16>, vector<64x80xbf16>, vector<8x80xf32> -> vector<8x80xf32>
    %21 = arith.mulf %20, %2 : vector<8x80xf32>
    %cst_22 = arith.constant dense<0.000000e+00> : vector<8xf32>
    %22 = vector.multi_reduction <add>, %21, %cst_22 [1] : vector<8x80xf32> to vector<8xf32>
    %23 = vector.shape_cast %22 : vector<8xf32> to vector<8x1xf32>
    %24 = arith.addf %3, %23 : vector<8x1xf32>
    %25 = arith.mulf %21, %21 : vector<8x80xf32>
    %cst_23 = arith.constant dense<0.000000e+00> : vector<8xf32>
    %26 = vector.multi_reduction <add>, %25, %cst_23 [1] : vector<8x80xf32> to vector<8xf32>
    %27 = vector.shape_cast %26 : vector<8xf32> to vector<8x1xf32>
    %28 = arith.addf %4, %27 : vector<8x1xf32>
    %c0_24 = arith.constant 0 : index
    %c0_25 = arith.constant 0 : index
    %c0_26 = arith.constant 0 : index
    %c0_27 = arith.constant 0 : index
    %29 = vector.load %arg5[%c0_24, %c0_25, %c0_26, %c0_27] : memref<2x4x8x80xf32, #tpu.memory_space<vmem>>, vector<1x1x8x80xf32>
    %30 = vector.shape_cast %29 : vector<1x1x8x80xf32> to vector<8x80xf32>
    %31 = vector.shape_cast %20 : vector<8x80xf32> to vector<1x1x8x80xf32>
    tpu.vector_store %arg5[%c0_24, %c0_25, %c0_26, %c0_27], %31 {strides = array<i32>} : memref<2x4x8x80xf32, #tpu.memory_space<vmem>>, vector<1x1x8x80xf32>,
    %c0_28 = arith.constant 0 : index
    %c0_29 = arith.constant 0 : index
    %c1_30 = arith.constant 1 : index
    %32 = vector.load %arg0[%c0_28, %c0_29, %c1_30] : memref<2x16x102xbf16, #tpu.memory_space<vmem>>, vector<1x16x80xbf16>
    %33 = vector.shape_cast %32 : vector<1x16x80xbf16> to vector<16x80xbf16>
    %c0_31 = arith.constant 0 : index
    %c0_32 = arith.constant 0 : index
    %34 = vector.load %arg6[%c0_31, %c0_32] : memref<64x80xbf16, #tpu.memory_space<vmem>>, vector<16x80xbf16>
    tpu.vector_store %arg6[%c0_31, %c0_32], %33 {strides = array<i32>} : memref<64x80xbf16, #tpu.memory_space<vmem>>, vector<16x80xbf16>,
    %c0_33 = arith.constant 0 : index
    %c0_34 = arith.constant 0 : index
    %c2 = arith.constant 2 : index
    %35 = vector.load %arg0[%c0_33, %c0_34, %c2] : memref<2x16x102xbf16, #tpu.memory_space<vmem>>, vector<1x16x80xbf16>
    %36 = vector.shape_cast %35 : vector<1x16x80xbf16> to vector<16x80xbf16>
    %c16_35 = arith.constant 16 : index
    %c0_36 = arith.constant 0 : index
    %37 = vector.load %arg6[%c16_35, %c0_36] : memref<64x80xbf16, #tpu.memory_space<vmem>>, vector<16x80xbf16>
    tpu.vector_store %arg6[%c16_35, %c0_36], %36 {strides = array<i32>} : memref<64x80xbf16, #tpu.memory_space<vmem>>, vector<16x80xbf16>,
    %c0_37 = arith.constant 0 : index
    %c0_38 = arith.constant 0 : index
    %c11_39 = arith.constant 11 : index
    %38 = vector.load %arg0[%c0_37, %c0_38, %c11_39] : memref<2x16x102xbf16, #tpu.memory_space<vmem>>, vector<1x16x80xbf16>
    %39 = vector.shape_cast %38 : vector<1x16x80xbf16> to vector<16x80xbf16>
    %c32_40 = arith.constant 32 : index
    %c0_41 = arith.constant 0 : index
    %40 = vector.load %arg6[%c32_40, %c0_41] : memref<64x80xbf16, #tpu.memory_space<vmem>>, vector<16x80xbf16>
    tpu.vector_store %arg6[%c32_40, %c0_41], %39 {strides = array<i32>} : memref<64x80xbf16, #tpu.memory_space<vmem>>, vector<16x80xbf16>,
    %c0_42 = arith.constant 0 : index
    %c0_43 = arith.constant 0 : index
    %c12 = arith.constant 12 : index
    %41 = vector.load %arg0[%c0_42, %c0_43, %c12] : memref<2x16x102xbf16, #tpu.memory_space<vmem>>, vector<1x16x80xbf16>
    %42 = vector.shape_cast %41 : vector<1x16x80xbf16> to vector<16x80xbf16>
    %c48_44 = arith.constant 48 : index
    %c0_45 = arith.constant 0 : index
    %43 = vector.load %arg6[%c48_44, %c0_45] : memref<64x80xbf16, #tpu.memory_space<vmem>>, vector<16x80xbf16>
    tpu.vector_store %arg6[%c48_44, %c0_45], %42 {strides = array<i32>} : memref<64x80xbf16, #tpu.memory_space<vmem>>, vector<16x80xbf16>,
    %c1_46 = arith.constant 1 : index
    %c0_47 = arith.constant 0 : index
    %c0_48 = arith.constant 0 : index
    %44 = vector.load %arg1[%c1_46, %c0_47, %c0_48] : memref<4x8x64xbf16, #tpu.memory_space<vmem>>, vector<1x8x64xbf16>
    %45 = vector.shape_cast %44 : vector<1x8x64xbf16> to vector<8x64xbf16>
    %c0_49 = arith.constant 0 : index
    %c0_50 = arith.constant 0 : index
    %46 = vector.load %arg6[%c0_49, %c0_50] : memref<64x80xbf16, #tpu.memory_space<vmem>>, vector<64x80xbf16>
    %cst_51 = arith.constant dense<0.000000e+00> : vector<8x80xf32>
    %47 = tpu.matmul %45, %46, %cst_51 {dimension_numbers = #tpu.dot_dimension_numbers<[1], [0], [0], [1], [0, 0, 1, 1], [], []>} : vector<8x64xbf16>, vector<64x80xbf16>, vector<8x80xf32> -> vector<8x80xf32>
    %48 = arith.mulf %47, %2 : vector<8x80xf32>
    %cst_52 = arith.constant dense<0.000000e+00> : vector<8xf32>
    %49 = vector.multi_reduction <add>, %48, %cst_52 [1] : vector<8x80xf32> to vector<8xf32>
    %50 = vector.shape_cast %49 : vector<8xf32> to vector<8x1xf32>
    %51 = arith.addf %24, %50 : vector<8x1xf32>
    %52 = arith.mulf %48, %48 : vector<8x80xf32>
    %cst_53 = arith.constant dense<0.000000e+00> : vector<8xf32>
    %53 = vector.multi_reduction <add>, %52, %cst_53 [1] : vector<8x80xf32> to vector<8xf32>
    %54 = vector.shape_cast %53 : vector<8xf32> to vector<8x1xf32>
    %55 = arith.addf %28, %54 : vector<8x1xf32>
    %c0_54 = arith.constant 0 : index
    %c1_55 = arith.constant 1 : index
    %c0_56 = arith.constant 0 : index
    %c0_57 = arith.constant 0 : index
    %56 = vector.load %arg5[%c0_54, %c1_55, %c0_56, %c0_57] : memref<2x4x8x80xf32, #tpu.memory_space<vmem>>, vector<1x1x8x80xf32>
    %57 = vector.shape_cast %56 : vector<1x1x8x80xf32> to vector<8x80xf32>
    %58 = vector.shape_cast %47 : vector<8x80xf32> to vector<1x1x8x80xf32>
    tpu.vector_store %arg5[%c0_54, %c1_55, %c0_56, %c0_57], %58 {strides = array<i32>} : memref<2x4x8x80xf32, #tpu.memory_space<vmem>>, vector<1x1x8x80xf32>,
    %c0_58 = arith.constant 0 : index
    %c0_59 = arith.constant 0 : index
    %c10_60 = arith.constant 10 : index
    %59 = vector.load %arg0[%c0_58, %c0_59, %c10_60] : memref<2x16x102xbf16, #tpu.memory_space<vmem>>, vector<1x16x80xbf16>
    %60 = vector.shape_cast %59 : vector<1x16x80xbf16> to vector<16x80xbf16>
    %c0_61 = arith.constant 0 : index
    %c0_62 = arith.constant 0 : index
    %61 = vector.load %arg6[%c0_61, %c0_62] : memref<64x80xbf16, #tpu.memory_space<vmem>>, vector<16x80xbf16>
    tpu.vector_store %arg6[%c0_61, %c0_62], %60 {strides = array<i32>} : memref<64x80xbf16, #tpu.memory_space<vmem>>, vector<16x80xbf16>,
    %c0_63 = arith.constant 0 : index
    %c0_64 = arith.constant 0 : index
    %c11_65 = arith.constant 11 : index
    %62 = vector.load %arg0[%c0_63, %c0_64, %c11_65] : memref<2x16x102xbf16, #tpu.memory_space<vmem>>, vector<1x16x80xbf16>
    %63 = vector.shape_cast %62 : vector<1x16x80xbf16> to vector<16x80xbf16>
    %c16_66 = arith.constant 16 : index
    %c0_67 = arith.constant 0 : index
    %64 = vector.load %arg6[%c16_66, %c0_67] : memref<64x80xbf16, #tpu.memory_space<vmem>>, vector<16x80xbf16>
    tpu.vector_store %arg6[%c16_66, %c0_67], %63 {strides = array<i32>} : memref<64x80xbf16, #tpu.memory_space<vmem>>, vector<16x80xbf16>,
    %c0_68 = arith.constant 0 : index
    %c0_69 = arith.constant 0 : index
    %c20 = arith.constant 20 : index
    %65 = vector.load %arg0[%c0_68, %c0_69, %c20] : memref<2x16x102xbf16, #tpu.memory_space<vmem>>, vector<1x16x80xbf16>
    %66 = vector.shape_cast %65 : vector<1x16x80xbf16> to vector<16x80xbf16>
    %c32_70 = arith.constant 32 : index
    %c0_71 = arith.constant 0 : index
    %67 = vector.load %arg6[%c32_70, %c0_71] : memref<64x80xbf16, #tpu.memory_space<vmem>>, vector<16x80xbf16>
    tpu.vector_store %arg6[%c32_70, %c0_71], %66 {strides = array<i32>} : memref<64x80xbf16, #tpu.memory_space<vmem>>, vector<16x80xbf16>,
    %c0_72 = arith.constant 0 : index
    %c0_73 = arith.constant 0 : index
    %c21 = arith.constant 21 : index
    %68 = vector.load %arg0[%c0_72, %c0_73, %c21] : memref<2x16x102xbf16, #tpu.memory_space<vmem>>, vector<1x16x80xbf16>
    %69 = vector.shape_cast %68 : vector<1x16x80xbf16> to vector<16x80xbf16>
    %c48_74 = arith.constant 48 : index
    %c0_75 = arith.constant 0 : index
    %70 = vector.load %arg6[%c48_74, %c0_75] : memref<64x80xbf16, #tpu.memory_space<vmem>>, vector<16x80xbf16>
    tpu.vector_store %arg6[%c48_74, %c0_75], %69 {strides = array<i32>} : memref<64x80xbf16, #tpu.memory_space<vmem>>, vector<16x80xbf16>,
    %c2_76 = arith.constant 2 : index
    %c0_77 = arith.constant 0 : index
    %c0_78 = arith.constant 0 : index
    %71 = vector.load %arg1[%c2_76, %c0_77, %c0_78] : memref<4x8x64xbf16, #tpu.memory_space<vmem>>, vector<1x8x64xbf16>
    %72 = vector.shape_cast %71 : vector<1x8x64xbf16> to vector<8x64xbf16>
    %c0_79 = arith.constant 0 : index
    %c0_80 = arith.constant 0 : index
    %73 = vector.load %arg6[%c0_79, %c0_80] : memref<64x80xbf16, #tpu.memory_space<vmem>>, vector<64x80xbf16>
    %cst_81 = arith.constant dense<0.000000e+00> : vector<8x80xf32>
    %74 = tpu.matmul %72, %73, %cst_81 {dimension_numbers = #tpu.dot_dimension_numbers<[1], [0], [0], [1], [0, 0, 1, 1], [], []>} : vector<8x64xbf16>, vector<64x80xbf16>, vector<8x80xf32> -> vector<8x80xf32>
    %75 = arith.mulf %74, %2 : vector<8x80xf32>
    %cst_82 = arith.constant dense<0.000000e+00> : vector<8xf32>
    %76 = vector.multi_reduction <add>, %75, %cst_82 [1] : vector<8x80xf32> to vector<8xf32>
    %77 = vector.shape_cast %76 : vector<8xf32> to vector<8x1xf32>
    %78 = arith.addf %51, %77 : vector<8x1xf32>
    %79 = arith.mulf %75, %75 : vector<8x80xf32>
    %cst_83 = arith.constant dense<0.000000e+00> : vector<8xf32>
    %80 = vector.multi_reduction <add>, %79, %cst_83 [1] : vector<8x80xf32> to vector<8xf32>
    %81 = vector.shape_cast %80 : vector<8xf32> to vector<8x1xf32>
    %82 = arith.addf %55, %81 : vector<8x1xf32>
    %c0_84 = arith.constant 0 : index
    %c2_85 = arith.constant 2 : index
    %c0_86 = arith.constant 0 : index
    %c0_87 = arith.constant 0 : index
    %83 = vector.load %arg5[%c0_84, %c2_85, %c0_86, %c0_87] : memref<2x4x8x80xf32, #tpu.memory_space<vmem>>, vector<1x1x8x80xf32>
    %84 = vector.shape_cast %83 : vector<1x1x8x80xf32> to vector<8x80xf32>
    %85 = vector.shape_cast %74 : vector<8x80xf32> to vector<1x1x8x80xf32>
    tpu.vector_store %arg5[%c0_84, %c2_85, %c0_86, %c0_87], %85 {strides = array<i32>} : memref<2x4x8x80xf32, #tpu.memory_space<vmem>>, vector<1x1x8x80xf32>,
    %c0_88 = arith.constant 0 : index
    %c0_89 = arith.constant 0 : index
    %c11_90 = arith.constant 11 : index
    %86 = vector.load %arg0[%c0_88, %c0_89, %c11_90] : memref<2x16x102xbf16, #tpu.memory_space<vmem>>, vector<1x16x80xbf16>
    %87 = vector.shape_cast %86 : vector<1x16x80xbf16> to vector<16x80xbf16>
    %c0_91 = arith.constant 0 : index
    %c0_92 = arith.constant 0 : index
    %88 = vector.load %arg6[%c0_91, %c0_92] : memref<64x80xbf16, #tpu.memory_space<vmem>>, vector<16x80xbf16>
    tpu.vector_store %arg6[%c0_91, %c0_92], %87 {strides = array<i32>} : memref<64x80xbf16, #tpu.memory_space<vmem>>, vector<16x80xbf16>,
    %c0_93 = arith.constant 0 : index
    %c0_94 = arith.constant 0 : index
    %c12_95 = arith.constant 12 : index
    %89 = vector.load %arg0[%c0_93, %c0_94, %c12_95] : memref<2x16x102xbf16, #tpu.memory_space<vmem>>, vector<1x16x80xbf16>
    %90 = vector.shape_cast %89 : vector<1x16x80xbf16> to vector<16x80xbf16>
    %c16_96 = arith.constant 16 : index
    %c0_97 = arith.constant 0 : index
    %91 = vector.load %arg6[%c16_96, %c0_97] : memref<64x80xbf16, #tpu.memory_space<vmem>>, vector<16x80xbf16>
    tpu.vector_store %arg6[%c16_96, %c0_97], %90 {strides = array<i32>} : memref<64x80xbf16, #tpu.memory_space<vmem>>, vector<16x80xbf16>,
    %c0_98 = arith.constant 0 : index
    %c0_99 = arith.constant 0 : index
    %c21_100 = arith.constant 21 : index
    %92 = vector.load %arg0[%c0_98, %c0_99, %c21_100] : memref<2x16x102xbf16, #tpu.memory_space<vmem>>, vector<1x16x80xbf16>
    %93 = vector.shape_cast %92 : vector<1x16x80xbf16> to vector<16x80xbf16>
    %c32_101 = arith.constant 32 : index
    %c0_102 = arith.constant 0 : index
    %94 = vector.load %arg6[%c32_101, %c0_102] : memref<64x80xbf16, #tpu.memory_space<vmem>>, vector<16x80xbf16>
    tpu.vector_store %arg6[%c32_101, %c0_102], %93 {strides = array<i32>} : memref<64x80xbf16, #tpu.memory_space<vmem>>, vector<16x80xbf16>,
    %c0_103 = arith.constant 0 : index
    %c0_104 = arith.constant 0 : index
    %c22 = arith.constant 22 : index
    %95 = vector.load %arg0[%c0_103, %c0_104, %c22] : memref<2x16x102xbf16, #tpu.memory_space<vmem>>, vector<1x16x80xbf16>
    %96 = vector.shape_cast %95 : vector<1x16x80xbf16> to vector<16x80xbf16>
    %c48_105 = arith.constant 48 : index
    %c0_106 = arith.constant 0 : index
    %97 = vector.load %arg6[%c48_105, %c0_106] : memref<64x80xbf16, #tpu.memory_space<vmem>>, vector<16x80xbf16>
    tpu.vector_store %arg6[%c48_105, %c0_106], %96 {strides = array<i32>} : memref<64x80xbf16, #tpu.memory_space<vmem>>, vector<16x80xbf16>,
    %c3 = arith.constant 3 : index
    %c0_107 = arith.constant 0 : index
    %c0_108 = arith.constant 0 : index
    %98 = vector.load %arg1[%c3, %c0_107, %c0_108] : memref<4x8x64xbf16, #tpu.memory_space<vmem>>, vector<1x8x64xbf16>
    %99 = vector.shape_cast %98 : vector<1x8x64xbf16> to vector<8x64xbf16>
    %c0_109 = arith.constant 0 : index
    %c0_110 = arith.constant 0 : index
    %100 = vector.load %arg6[%c0_109, %c0_110] : memref<64x80xbf16, #tpu.memory_space<vmem>>, vector<64x80xbf16>
    %cst_111 = arith.constant dense<0.000000e+00> : vector<8x80xf32>
    %101 = tpu.matmul %99, %100, %cst_111 {dimension_numbers = #tpu.dot_dimension_numbers<[1], [0], [0], [1], [0, 0, 1, 1], [], []>} : vector<8x64xbf16>, vector<64x80xbf16>, vector<8x80xf32> -> vector<8x80xf32>
    %102 = arith.mulf %101, %2 : vector<8x80xf32>
    %cst_112 = arith.constant dense<0.000000e+00> : vector<8xf32>
    %103 = vector.multi_reduction <add>, %102, %cst_112 [1] : vector<8x80xf32> to vector<8xf32>
    %104 = vector.shape_cast %103 : vector<8xf32> to vector<8x1xf32>
    %105 = arith.addf %78, %104 : vector<8x1xf32>
    %106 = arith.mulf %102, %102 : vector<8x80xf32>
    %cst_113 = arith.constant dense<0.000000e+00> : vector<8xf32>
    %107 = vector.multi_reduction <add>, %106, %cst_113 [1] : vector<8x80xf32> to vector<8xf32>
    %108 = vector.shape_cast %107 : vector<8xf32> to vector<8x1xf32>
    %109 = arith.addf %82, %108 : vector<8x1xf32>
    %c0_114 = arith.constant 0 : index
    %c3_115 = arith.constant 3 : index
    %c0_116 = arith.constant 0 : index
    %c0_117 = arith.constant 0 : index
    %110 = vector.load %arg5[%c0_114, %c3_115, %c0_116, %c0_117] : memref<2x4x8x80xf32, #tpu.memory_space<vmem>>, vector<1x1x8x80xf32>
    %111 = vector.shape_cast %110 : vector<1x1x8x80xf32> to vector<8x80xf32>
    %112 = vector.shape_cast %101 : vector<8x80xf32> to vector<1x1x8x80xf32>
    tpu.vector_store %arg5[%c0_114, %c3_115, %c0_116, %c0_117], %112 {strides = array<i32>} : memref<2x4x8x80xf32, #tpu.memory_space<vmem>>, vector<1x1x8x80xf32>,
    %c1_118 = arith.constant 1 : index
    %c0_119 = arith.constant 0 : index
    %c0_120 = arith.constant 0 : index
    %113 = vector.load %arg0[%c1_118, %c0_119, %c0_120] : memref<2x16x102xbf16, #tpu.memory_space<vmem>>, vector<1x16x80xbf16>
    %114 = vector.shape_cast %113 : vector<1x16x80xbf16> to vector<16x80xbf16>
    %c0_121 = arith.constant 0 : index
    %c0_122 = arith.constant 0 : index
    %115 = vector.load %arg6[%c0_121, %c0_122] : memref<64x80xbf16, #tpu.memory_space<vmem>>, vector<16x80xbf16>
    tpu.vector_store %arg6[%c0_121, %c0_122], %114 {strides = array<i32>} : memref<64x80xbf16, #tpu.memory_space<vmem>>, vector<16x80xbf16>,
    %c1_123 = arith.constant 1 : index
    %c0_124 = arith.constant 0 : index
    %c1_125 = arith.constant 1 : index
    %116 = vector.load %arg0[%c1_123, %c0_124, %c1_125] : memref<2x16x102xbf16, #tpu.memory_space<vmem>>, vector<1x16x80xbf16>
    %117 = vector.shape_cast %116 : vector<1x16x80xbf16> to vector<16x80xbf16>
    %c16_126 = arith.constant 16 : index
    %c0_127 = arith.constant 0 : index
    %118 = vector.load %arg6[%c16_126, %c0_127] : memref<64x80xbf16, #tpu.memory_space<vmem>>, vector<16x80xbf16>
    tpu.vector_store %arg6[%c16_126, %c0_127], %117 {strides = array<i32>} : memref<64x80xbf16, #tpu.memory_space<vmem>>, vector<16x80xbf16>,
    %c1_128 = arith.constant 1 : index
    %c0_129 = arith.constant 0 : index
    %c10_130 = arith.constant 10 : index
    %119 = vector.load %arg0[%c1_128, %c0_129, %c10_130] : memref<2x16x102xbf16, #tpu.memory_space<vmem>>, vector<1x16x80xbf16>
    %120 = vector.shape_cast %119 : vector<1x16x80xbf16> to vector<16x80xbf16>
    %c32_131 = arith.constant 32 : index
    %c0_132 = arith.constant 0 : index
    %121 = vector.load %arg6[%c32_131, %c0_132] : memref<64x80xbf16, #tpu.memory_space<vmem>>, vector<16x80xbf16>
    tpu.vector_store %arg6[%c32_131, %c0_132], %120 {strides = array<i32>} : memref<64x80xbf16, #tpu.memory_space<vmem>>, vector<16x80xbf16>,
    %c1_133 = arith.constant 1 : index
    %c0_134 = arith.constant 0 : index
    %c11_135 = arith.constant 11 : index
    %122 = vector.load %arg0[%c1_133, %c0_134, %c11_135] : memref<2x16x102xbf16, #tpu.memory_space<vmem>>, vector<1x16x80xbf16>
    %123 = vector.shape_cast %122 : vector<1x16x80xbf16> to vector<16x80xbf16>
    %c48_136 = arith.constant 48 : index
    %c0_137 = arith.constant 0 : index
    %124 = vector.load %arg6[%c48_136, %c0_137] : memref<64x80xbf16, #tpu.memory_space<vmem>>, vector<16x80xbf16>
    tpu.vector_store %arg6[%c48_136, %c0_137], %123 {strides = array<i32>} : memref<64x80xbf16, #tpu.memory_space<vmem>>, vector<16x80xbf16>,
    %c0_138 = arith.constant 0 : index
    %c0_139 = arith.constant 0 : index
    %c0_140 = arith.constant 0 : index
    %125 = vector.load %arg1[%c0_138, %c0_139, %c0_140] : memref<4x8x64xbf16, #tpu.memory_space<vmem>>, vector<1x8x64xbf16>
    %126 = vector.shape_cast %125 : vector<1x8x64xbf16> to vector<8x64xbf16>
    %c0_141 = arith.constant 0 : index
    %c0_142 = arith.constant 0 : index
    %127 = vector.load %arg6[%c0_141, %c0_142] : memref<64x80xbf16, #tpu.memory_space<vmem>>, vector<64x80xbf16>
    %cst_143 = arith.constant dense<0.000000e+00> : vector<8x80xf32>
    %128 = tpu.matmul %126, %127, %cst_143 {dimension_numbers = #tpu.dot_dimension_numbers<[1], [0], [0], [1], [0, 0, 1, 1], [], []>} : vector<8x64xbf16>, vector<64x80xbf16>, vector<8x80xf32> -> vector<8x80xf32>
    %129 = arith.mulf %128, %2 : vector<8x80xf32>
    %cst_144 = arith.constant dense<0.000000e+00> : vector<8xf32>
    %130 = vector.multi_reduction <add>, %129, %cst_144 [1] : vector<8x80xf32> to vector<8xf32>
    %131 = vector.shape_cast %130 : vector<8xf32> to vector<8x1xf32>
    %132 = arith.addf %105, %131 : vector<8x1xf32>
    %133 = arith.mulf %129, %129 : vector<8x80xf32>
    %cst_145 = arith.constant dense<0.000000e+00> : vector<8xf32>
    %134 = vector.multi_reduction <add>, %133, %cst_145 [1] : vector<8x80xf32> to vector<8xf32>
    %135 = vector.shape_cast %134 : vector<8xf32> to vector<8x1xf32>
    %136 = arith.addf %109, %135 : vector<8x1xf32>
    %c1_146 = arith.constant 1 : index
    %c0_147 = arith.constant 0 : index
    %c0_148 = arith.constant 0 : index
    %c0_149 = arith.constant 0 : index
    %137 = vector.load %arg5[%c1_146, %c0_147, %c0_148, %c0_149] : memref<2x4x8x80xf32, #tpu.memory_space<vmem>>, vector<1x1x8x80xf32>
    %138 = vector.shape_cast %137 : vector<1x1x8x80xf32> to vector<8x80xf32>
    %139 = vector.shape_cast %128 : vector<8x80xf32> to vector<1x1x8x80xf32>
    tpu.vector_store %arg5[%c1_146, %c0_147, %c0_148, %c0_149], %139 {strides = array<i32>} : memref<2x4x8x80xf32, #tpu.memory_space<vmem>>, vector<1x1x8x80xf32>,
    %c1_150 = arith.constant 1 : index
    %c0_151 = arith.constant 0 : index
    %c1_152 = arith.constant 1 : index
    %140 = vector.load %arg0[%c1_150, %c0_151, %c1_152] : memref<2x16x102xbf16, #tpu.memory_space<vmem>>, vector<1x16x80xbf16>
    %141 = vector.shape_cast %140 : vector<1x16x80xbf16> to vector<16x80xbf16>
    %c0_153 = arith.constant 0 : index
    %c0_154 = arith.constant 0 : index
    %142 = vector.load %arg6[%c0_153, %c0_154] : memref<64x80xbf16, #tpu.memory_space<vmem>>, vector<16x80xbf16>
    tpu.vector_store %arg6[%c0_153, %c0_154], %141 {strides = array<i32>} : memref<64x80xbf16, #tpu.memory_space<vmem>>, vector<16x80xbf16>,
    %c1_155 = arith.constant 1 : index
    %c0_156 = arith.constant 0 : index
    %c2_157 = arith.constant 2 : index
    %143 = vector.load %arg0[%c1_155, %c0_156, %c2_157] : memref<2x16x102xbf16, #tpu.memory_space<vmem>>, vector<1x16x80xbf16>
    %144 = vector.shape_cast %143 : vector<1x16x80xbf16> to vector<16x80xbf16>
    %c16_158 = arith.constant 16 : index
    %c0_159 = arith.constant 0 : index
    %145 = vector.load %arg6[%c16_158, %c0_159] : memref<64x80xbf16, #tpu.memory_space<vmem>>, vector<16x80xbf16>
    tpu.vector_store %arg6[%c16_158, %c0_159], %144 {strides = array<i32>} : memref<64x80xbf16, #tpu.memory_space<vmem>>, vector<16x80xbf16>,
    %c1_160 = arith.constant 1 : index
    %c0_161 = arith.constant 0 : index
    %c11_162 = arith.constant 11 : index
    %146 = vector.load %arg0[%c1_160, %c0_161, %c11_162] : memref<2x16x102xbf16, #tpu.memory_space<vmem>>, vector<1x16x80xbf16>
    %147 = vector.shape_cast %146 : vector<1x16x80xbf16> to vector<16x80xbf16>
    %c32_163 = arith.constant 32 : index
    %c0_164 = arith.constant 0 : index
    %148 = vector.load %arg6[%c32_163, %c0_164] : memref<64x80xbf16, #tpu.memory_space<vmem>>, vector<16x80xbf16>
    tpu.vector_store %arg6[%c32_163, %c0_164], %147 {strides = array<i32>} : memref<64x80xbf16, #tpu.memory_space<vmem>>, vector<16x80xbf16>,
    %c1_165 = arith.constant 1 : index
    %c0_166 = arith.constant 0 : index
    %c12_167 = arith.constant 12 : index
    %149 = vector.load %arg0[%c1_165, %c0_166, %c12_167] : memref<2x16x102xbf16, #tpu.memory_space<vmem>>, vector<1x16x80xbf16>
    %150 = vector.shape_cast %149 : vector<1x16x80xbf16> to vector<16x80xbf16>
    %c48_168 = arith.constant 48 : index
    %c0_169 = arith.constant 0 : index
    %151 = vector.load %arg6[%c48_168, %c0_169] : memref<64x80xbf16, #tpu.memory_space<vmem>>, vector<16x80xbf16>
    tpu.vector_store %arg6[%c48_168, %c0_169], %150 {strides = array<i32>} : memref<64x80xbf16, #tpu.memory_space<vmem>>, vector<16x80xbf16>,
    %c1_170 = arith.constant 1 : index
    %c0_171 = arith.constant 0 : index
    %c0_172 = arith.constant 0 : index
    %152 = vector.load %arg1[%c1_170, %c0_171, %c0_172] : memref<4x8x64xbf16, #tpu.memory_space<vmem>>, vector<1x8x64xbf16>
    %153 = vector.shape_cast %152 : vector<1x8x64xbf16> to vector<8x64xbf16>
    %c0_173 = arith.constant 0 : index
    %c0_174 = arith.constant 0 : index
    %154 = vector.load %arg6[%c0_173, %c0_174] : memref<64x80xbf16, #tpu.memory_space<vmem>>, vector<64x80xbf16>
    %cst_175 = arith.constant dense<0.000000e+00> : vector<8x80xf32>
    %155 = tpu.matmul %153, %154, %cst_175 {dimension_numbers = #tpu.dot_dimension_numbers<[1], [0], [0], [1], [0, 0, 1, 1], [], []>} : vector<8x64xbf16>, vector<64x80xbf16>, vector<8x80xf32> -> vector<8x80xf32>
    %156 = arith.mulf %155, %2 : vector<8x80xf32>
    %cst_176 = arith.constant dense<0.000000e+00> : vector<8xf32>
    %157 = vector.multi_reduction <add>, %156, %cst_176 [1] : vector<8x80xf32> to vector<8xf32>
    %158 = vector.shape_cast %157 : vector<8xf32> to vector<8x1xf32>
    %159 = arith.addf %132, %158 : vector<8x1xf32>
    %160 = arith.mulf %156, %156 : vector<8x80xf32>
    %cst_177 = arith.constant dense<0.000000e+00> : vector<8xf32>
    %161 = vector.multi_reduction <add>, %160, %cst_177 [1] : vector<8x80xf32> to vector<8xf32>
    %162 = vector.shape_cast %161 : vector<8xf32> to vector<8x1xf32>
    %163 = arith.addf %136, %162 : vector<8x1xf32>
    %c1_178 = arith.constant 1 : index
    %c1_179 = arith.constant 1 : index
    %c0_180 = arith.constant 0 : index
    %c0_181 = arith.constant 0 : index
    %164 = vector.load %arg5[%c1_178, %c1_179, %c0_180, %c0_181] : memref<2x4x8x80xf32, #tpu.memory_space<vmem>>, vector<1x1x8x80xf32>
    %165 = vector.shape_cast %164 : vector<1x1x8x80xf32> to vector<8x80xf32>
    %166 = vector.shape_cast %155 : vector<8x80xf32> to vector<1x1x8x80xf32>
    tpu.vector_store %arg5[%c1_178, %c1_179, %c0_180, %c0_181], %166 {strides = array<i32>} : memref<2x4x8x80xf32, #tpu.memory_space<vmem>>, vector<1x1x8x80xf32>,
    %c1_182 = arith.constant 1 : index
    %c0_183 = arith.constant 0 : index
    %c10_184 = arith.constant 10 : index
    %167 = vector.load %arg0[%c1_182, %c0_183, %c10_184] : memref<2x16x102xbf16, #tpu.memory_space<vmem>>, vector<1x16x80xbf16>
    %168 = vector.shape_cast %167 : vector<1x16x80xbf16> to vector<16x80xbf16>
    %c0_185 = arith.constant 0 : index
    %c0_186 = arith.constant 0 : index
    %169 = vector.load %arg6[%c0_185, %c0_186] : memref<64x80xbf16, #tpu.memory_space<vmem>>, vector<16x80xbf16>
    tpu.vector_store %arg6[%c0_185, %c0_186], %168 {strides = array<i32>} : memref<64x80xbf16, #tpu.memory_space<vmem>>, vector<16x80xbf16>,
    %c1_187 = arith.constant 1 : index
    %c0_188 = arith.constant 0 : index
    %c11_189 = arith.constant 11 : index
    %170 = vector.load %arg0[%c1_187, %c0_188, %c11_189] : memref<2x16x102xbf16, #tpu.memory_space<vmem>>, vector<1x16x80xbf16>
    %171 = vector.shape_cast %170 : vector<1x16x80xbf16> to vector<16x80xbf16>
    %c16_190 = arith.constant 16 : index
    %c0_191 = arith.constant 0 : index
    %172 = vector.load %arg6[%c16_190, %c0_191] : memref<64x80xbf16, #tpu.memory_space<vmem>>, vector<16x80xbf16>
    tpu.vector_store %arg6[%c16_190, %c0_191], %171 {strides = array<i32>} : memref<64x80xbf16, #tpu.memory_space<vmem>>, vector<16x80xbf16>,
    %c1_192 = arith.constant 1 : index
    %c0_193 = arith.constant 0 : index
    %c20_194 = arith.constant 20 : index
    %173 = vector.load %arg0[%c1_192, %c0_193, %c20_194] : memref<2x16x102xbf16, #tpu.memory_space<vmem>>, vector<1x16x80xbf16>
    %174 = vector.shape_cast %173 : vector<1x16x80xbf16> to vector<16x80xbf16>
    %c32_195 = arith.constant 32 : index
    %c0_196 = arith.constant 0 : index
    %175 = vector.load %arg6[%c32_195, %c0_196] : memref<64x80xbf16, #tpu.memory_space<vmem>>, vector<16x80xbf16>
    tpu.vector_store %arg6[%c32_195, %c0_196], %174 {strides = array<i32>} : memref<64x80xbf16, #tpu.memory_space<vmem>>, vector<16x80xbf16>,
    %c1_197 = arith.constant 1 : index
    %c0_198 = arith.constant 0 : index
    %c21_199 = arith.constant 21 : index
    %176 = vector.load %arg0[%c1_197, %c0_198, %c21_199] : memref<2x16x102xbf16, #tpu.memory_space<vmem>>, vector<1x16x80xbf16>
    %177 = vector.shape_cast %176 : vector<1x16x80xbf16> to vector<16x80xbf16>
    %c48_200 = arith.constant 48 : index
    %c0_201 = arith.constant 0 : index
    %178 = vector.load %arg6[%c48_200, %c0_201] : memref<64x80xbf16, #tpu.memory_space<vmem>>, vector<16x80xbf16>
    tpu.vector_store %arg6[%c48_200, %c0_201], %177 {strides = array<i32>} : memref<64x80xbf16, #tpu.memory_space<vmem>>, vector<16x80xbf16>,
    %c2_202 = arith.constant 2 : index
    %c0_203 = arith.constant 0 : index
    %c0_204 = arith.constant 0 : index
    %179 = vector.load %arg1[%c2_202, %c0_203, %c0_204] : memref<4x8x64xbf16, #tpu.memory_space<vmem>>, vector<1x8x64xbf16>
    %180 = vector.shape_cast %179 : vector<1x8x64xbf16> to vector<8x64xbf16>
    %c0_205 = arith.constant 0 : index
    %c0_206 = arith.constant 0 : index
    %181 = vector.load %arg6[%c0_205, %c0_206] : memref<64x80xbf16, #tpu.memory_space<vmem>>, vector<64x80xbf16>
    %cst_207 = arith.constant dense<0.000000e+00> : vector<8x80xf32>
    %182 = tpu.matmul %180, %181, %cst_207 {dimension_numbers = #tpu.dot_dimension_numbers<[1], [0], [0], [1], [0, 0, 1, 1], [], []>} : vector<8x64xbf16>, vector<64x80xbf16>, vector<8x80xf32> -> vector<8x80xf32>
    %183 = arith.mulf %182, %2 : vector<8x80xf32>
    %cst_208 = arith.constant dense<0.000000e+00> : vector<8xf32>
    %184 = vector.multi_reduction <add>, %183, %cst_208 [1] : vector<8x80xf32> to vector<8xf32>
    %185 = vector.shape_cast %184 : vector<8xf32> to vector<8x1xf32>
    %186 = arith.addf %159, %185 : vector<8x1xf32>
    %187 = arith.mulf %183, %183 : vector<8x80xf32>
    %cst_209 = arith.constant dense<0.000000e+00> : vector<8xf32>
    %188 = vector.multi_reduction <add>, %187, %cst_209 [1] : vector<8x80xf32> to vector<8xf32>
    %189 = vector.shape_cast %188 : vector<8xf32> to vector<8x1xf32>
    %190 = arith.addf %163, %189 : vector<8x1xf32>
    %c1_210 = arith.constant 1 : index
    %c2_211 = arith.constant 2 : index
    %c0_212 = arith.constant 0 : index
    %c0_213 = arith.constant 0 : index
    %191 = vector.load %arg5[%c1_210, %c2_211, %c0_212, %c0_213] : memref<2x4x8x80xf32, #tpu.memory_space<vmem>>, vector<1x1x8x80xf32>
    %192 = vector.shape_cast %191 : vector<1x1x8x80xf32> to vector<8x80xf32>
    %193 = vector.shape_cast %182 : vector<8x80xf32> to vector<1x1x8x80xf32>
    tpu.vector_store %arg5[%c1_210, %c2_211, %c0_212, %c0_213], %193 {strides = array<i32>} : memref<2x4x8x80xf32, #tpu.memory_space<vmem>>, vector<1x1x8x80xf32>,
    %c1_214 = arith.constant 1 : index
    %c0_215 = arith.constant 0 : index
    %c11_216 = arith.constant 11 : index
    %194 = vector.load %arg0[%c1_214, %c0_215, %c11_216] : memref<2x16x102xbf16, #tpu.memory_space<vmem>>, vector<1x16x80xbf16>
    %195 = vector.shape_cast %194 : vector<1x16x80xbf16> to vector<16x80xbf16>
    %c0_217 = arith.constant 0 : index
    %c0_218 = arith.constant 0 : index
    %196 = vector.load %arg6[%c0_217, %c0_218] : memref<64x80xbf16, #tpu.memory_space<vmem>>, vector<16x80xbf16>
    tpu.vector_store %arg6[%c0_217, %c0_218], %195 {strides = array<i32>} : memref<64x80xbf16, #tpu.memory_space<vmem>>, vector<16x80xbf16>,
    %c1_219 = arith.constant 1 : index
    %c0_220 = arith.constant 0 : index
    %c12_221 = arith.constant 12 : index
    %197 = vector.load %arg0[%c1_219, %c0_220, %c12_221] : memref<2x16x102xbf16, #tpu.memory_space<vmem>>, vector<1x16x80xbf16>
    %198 = vector.shape_cast %197 : vector<1x16x80xbf16> to vector<16x80xbf16>
    %c16_222 = arith.constant 16 : index
    %c0_223 = arith.constant 0 : index
    %199 = vector.load %arg6[%c16_222, %c0_223] : memref<64x80xbf16, #tpu.memory_space<vmem>>, vector<16x80xbf16>
    tpu.vector_store %arg6[%c16_222, %c0_223], %198 {strides = array<i32>} : memref<64x80xbf16, #tpu.memory_space<vmem>>, vector<16x80xbf16>,
    %c1_224 = arith.constant 1 : index
    %c0_225 = arith.constant 0 : index
    %c21_226 = arith.constant 21 : index
    %200 = vector.load %arg0[%c1_224, %c0_225, %c21_226] : memref<2x16x102xbf16, #tpu.memory_space<vmem>>, vector<1x16x80xbf16>
    %201 = vector.shape_cast %200 : vector<1x16x80xbf16> to vector<16x80xbf16>
    %c32_227 = arith.constant 32 : index
    %c0_228 = arith.constant 0 : index
    %202 = vector.load %arg6[%c32_227, %c0_228] : memref<64x80xbf16, #tpu.memory_space<vmem>>, vector<16x80xbf16>
    tpu.vector_store %arg6[%c32_227, %c0_228], %201 {strides = array<i32>} : memref<64x80xbf16, #tpu.memory_space<vmem>>, vector<16x80xbf16>,
    %c1_229 = arith.constant 1 : index
    %c0_230 = arith.constant 0 : index
    %c22_231 = arith.constant 22 : index
    %203 = vector.load %arg0[%c1_229, %c0_230, %c22_231] : memref<2x16x102xbf16, #tpu.memory_space<vmem>>, vector<1x16x80xbf16>
    %204 = vector.shape_cast %203 : vector<1x16x80xbf16> to vector<16x80xbf16>
    %c48_232 = arith.constant 48 : index
    %c0_233 = arith.constant 0 : index
    %205 = vector.load %arg6[%c48_232, %c0_233] : memref<64x80xbf16, #tpu.memory_space<vmem>>, vector<16x80xbf16>
    tpu.vector_store %arg6[%c48_232, %c0_233], %204 {strides = array<i32>} : memref<64x80xbf16, #tpu.memory_space<vmem>>, vector<16x80xbf16>,
    %c3_234 = arith.constant 3 : index
    %c0_235 = arith.constant 0 : index
    %c0_236 = arith.constant 0 : index
    %206 = vector.load %arg1[%c3_234, %c0_235, %c0_236] : memref<4x8x64xbf16, #tpu.memory_space<vmem>>, vector<1x8x64xbf16>
    %207 = vector.shape_cast %206 : vector<1x8x64xbf16> to vector<8x64xbf16>
    %c0_237 = arith.constant 0 : index
    %c0_238 = arith.constant 0 : index
    %208 = vector.load %arg6[%c0_237, %c0_238] : memref<64x80xbf16, #tpu.memory_space<vmem>>, vector<64x80xbf16>
    %cst_239 = arith.constant dense<0.000000e+00> : vector<8x80xf32>
    %209 = tpu.matmul %207, %208, %cst_239 {dimension_numbers = #tpu.dot_dimension_numbers<[1], [0], [0], [1], [0, 0, 1, 1], [], []>} : vector<8x64xbf16>, vector<64x80xbf16>, vector<8x80xf32> -> vector<8x80xf32>
    %210 = arith.mulf %209, %2 : vector<8x80xf32>
    %cst_240 = arith.constant dense<0.000000e+00> : vector<8xf32>
    %211 = vector.multi_reduction <add>, %210, %cst_240 [1] : vector<8x80xf32> to vector<8xf32>
    %212 = vector.shape_cast %211 : vector<8xf32> to vector<8x1xf32>
    %213 = arith.addf %186, %212 : vector<8x1xf32>
    %214 = arith.mulf %210, %210 : vector<8x80xf32>
    %cst_241 = arith.constant dense<0.000000e+00> : vector<8xf32>
    %215 = vector.multi_reduction <add>, %214, %cst_241 [1] : vector<8x80xf32> to vector<8xf32>
    %216 = vector.shape_cast %215 : vector<8xf32> to vector<8x1xf32>
    %217 = arith.addf %190, %216 : vector<8x1xf32>
    %c1_242 = arith.constant 1 : index
    %c3_243 = arith.constant 3 : index
    %c0_244 = arith.constant 0 : index
    %c0_245 = arith.constant 0 : index
    %218 = vector.load %arg5[%c1_242, %c3_243, %c0_244, %c0_245] : memref<2x4x8x80xf32, #tpu.memory_space<vmem>>, vector<1x1x8x80xf32>
    %219 = vector.shape_cast %218 : vector<1x1x8x80xf32> to vector<8x80xf32>
    %220 = vector.shape_cast %209 : vector<8x80xf32> to vector<1x1x8x80xf32>
    tpu.vector_store %arg5[%c1_242, %c3_243, %c0_244, %c0_245], %220 {strides = array<i32>} : memref<2x4x8x80xf32, #tpu.memory_space<vmem>>, vector<1x1x8x80xf32>,
    %cst_246 = arith.constant 0.001953125 : f32
    %221 = vector.broadcast %cst_246 : f32 to vector<8x1xf32>
    %222 = arith.mulf %213, %221 : vector<8x1xf32>
    %cst_247 = arith.constant 0.001953125 : f32
    %223 = vector.broadcast %cst_247 : f32 to vector<8x1xf32>
    %224 = arith.mulf %217, %223 : vector<8x1xf32>
    %225 = arith.mulf %222, %222 : vector<8x1xf32>
    %226 = arith.subf %224, %225 : vector<8x1xf32>
    %cst_248 = arith.constant 0.000000e+00 : f32
    %227 = vector.broadcast %cst_248 : f32 to vector<8x1xf32>
    %228 = arith.maximumf %226, %227 : vector<8x1xf32>
    %c0_249 = arith.constant 0 : index
    %c0_250 = arith.constant 0 : index
    %229 = vector.load %arg2[%c0_249, %c0_250] : memref<8x1xf32, #tpu.memory_space<vmem>>, vector<8x1xf32>
    %cst_251 = arith.constant 9.99999974E-6 : f32
    %230 = vector.broadcast %cst_251 : f32 to vector<8x1xf32>
    %231 = arith.addf %228, %230 : vector<8x1xf32>
    %232 = math.rsqrt %231 : vector<8x1xf32>
    %233 = arith.mulf %229, %232 : vector<8x1xf32>
    %c0_252 = arith.constant 0 : index
    %c0_253 = arith.constant 0 : index
    %234 = vector.load %arg3[%c0_252, %c0_253] : memref<8x1xf32, #tpu.memory_space<vmem>>, vector<8x1xf32>
    %235 = arith.mulf %222, %233 : vector<8x1xf32>
    %236 = arith.subf %234, %235 : vector<8x1xf32>
    %237 = vector.shape_cast %233 : vector<8x1xf32> to vector<8x1xf32>
    %238 = vector.broadcast %237 : vector<8x1xf32> to vector<8x80xf32>
    %239 = vector.shape_cast %236 : vector<8x1xf32> to vector<8x1xf32>
    %240 = vector.broadcast %239 : vector<8x1xf32> to vector<8x80xf32>
    %c0_254 = arith.constant 0 : index
    %c0_255 = arith.constant 0 : index
    %c0_256 = arith.constant 0 : index
    %c0_257 = arith.constant 0 : index
    %241 = vector.load %arg5[%c0_254, %c0_255, %c0_256, %c0_257] : memref<2x4x8x80xf32, #tpu.memory_space<vmem>>, vector<1x1x8x80xf32>
    %242 = vector.shape_cast %241 : vector<1x1x8x80xf32> to vector<8x80xf32>
    %243 = arith.mulf %242, %238 : vector<8x80xf32>
    %244 = arith.addf %243, %240 : vector<8x80xf32>
    %cst_258 = arith.constant 0.000000e+00 : f32
    %245 = vector.broadcast %cst_258 : f32 to vector<8x80xf32>
    %246 = arith.maximumf %244, %245 : vector<8x80xf32>
    %c0_259 = arith.constant 0 : index
    %c0_260 = arith.constant 0 : index
    %c0_261 = arith.constant 0 : index
    %c0_262 = arith.constant 0 : index
    %247 = vector.load %arg5[%c0_259, %c0_260, %c0_261, %c0_262] : memref<2x4x8x80xf32, #tpu.memory_space<vmem>>, vector<1x1x8x80xf32>
    %248 = vector.shape_cast %247 : vector<1x1x8x80xf32> to vector<8x80xf32>
    %249 = vector.shape_cast %246 : vector<8x80xf32> to vector<1x1x8x80xf32>
    tpu.vector_store %arg5[%c0_259, %c0_260, %c0_261, %c0_262], %249 {strides = array<i32>} : memref<2x4x8x80xf32, #tpu.memory_space<vmem>>, vector<1x1x8x80xf32>,
    %c0_263 = arith.constant 0 : index
    %c1_264 = arith.constant 1 : index
    %c0_265 = arith.constant 0 : index
    %c0_266 = arith.constant 0 : index
    %250 = vector.load %arg5[%c0_263, %c1_264, %c0_265, %c0_266] : memref<2x4x8x80xf32, #tpu.memory_space<vmem>>, vector<1x1x8x80xf32>
    %251 = vector.shape_cast %250 : vector<1x1x8x80xf32> to vector<8x80xf32>
    %252 = arith.mulf %251, %238 : vector<8x80xf32>
    %253 = arith.addf %252, %240 : vector<8x80xf32>
    %cst_267 = arith.constant 0.000000e+00 : f32
    %254 = vector.broadcast %cst_267 : f32 to vector<8x80xf32>
    %255 = arith.maximumf %253, %254 : vector<8x80xf32>
    %c0_268 = arith.constant 0 : index
    %c1_269 = arith.constant 1 : index
    %c0_270 = arith.constant 0 : index
    %c0_271 = arith.constant 0 : index
    %256 = vector.load %arg5[%c0_268, %c1_269, %c0_270, %c0_271] : memref<2x4x8x80xf32, #tpu.memory_space<vmem>>, vector<1x1x8x80xf32>
    %257 = vector.shape_cast %256 : vector<1x1x8x80xf32> to vector<8x80xf32>
    %258 = vector.shape_cast %255 : vector<8x80xf32> to vector<1x1x8x80xf32>
    tpu.vector_store %arg5[%c0_268, %c1_269, %c0_270, %c0_271], %258 {strides = array<i32>} : memref<2x4x8x80xf32, #tpu.memory_space<vmem>>, vector<1x1x8x80xf32>,
    %c0_272 = arith.constant 0 : index
    %c2_273 = arith.constant 2 : index
    %c0_274 = arith.constant 0 : index
    %c0_275 = arith.constant 0 : index
    %259 = vector.load %arg5[%c0_272, %c2_273, %c0_274, %c0_275] : memref<2x4x8x80xf32, #tpu.memory_space<vmem>>, vector<1x1x8x80xf32>
    %260 = vector.shape_cast %259 : vector<1x1x8x80xf32> to vector<8x80xf32>
    %261 = arith.mulf %260, %238 : vector<8x80xf32>
    %262 = arith.addf %261, %240 : vector<8x80xf32>
    %cst_276 = arith.constant 0.000000e+00 : f32
    %263 = vector.broadcast %cst_276 : f32 to vector<8x80xf32>
    %264 = arith.maximumf %262, %263 : vector<8x80xf32>
    %c0_277 = arith.constant 0 : index
    %c2_278 = arith.constant 2 : index
    %c0_279 = arith.constant 0 : index
    %c0_280 = arith.constant 0 : index
    %265 = vector.load %arg5[%c0_277, %c2_278, %c0_279, %c0_280] : memref<2x4x8x80xf32, #tpu.memory_space<vmem>>, vector<1x1x8x80xf32>
    %266 = vector.shape_cast %265 : vector<1x1x8x80xf32> to vector<8x80xf32>
    %267 = vector.shape_cast %264 : vector<8x80xf32> to vector<1x1x8x80xf32>
    tpu.vector_store %arg5[%c0_277, %c2_278, %c0_279, %c0_280], %267 {strides = array<i32>} : memref<2x4x8x80xf32, #tpu.memory_space<vmem>>, vector<1x1x8x80xf32>,
    %c0_281 = arith.constant 0 : index
    %c3_282 = arith.constant 3 : index
    %c0_283 = arith.constant 0 : index
    %c0_284 = arith.constant 0 : index
    %268 = vector.load %arg5[%c0_281, %c3_282, %c0_283, %c0_284] : memref<2x4x8x80xf32, #tpu.memory_space<vmem>>, vector<1x1x8x80xf32>
    %269 = vector.shape_cast %268 : vector<1x1x8x80xf32> to vector<8x80xf32>
    %270 = arith.mulf %269, %238 : vector<8x80xf32>
    %271 = arith.addf %270, %240 : vector<8x80xf32>
    %cst_285 = arith.constant 0.000000e+00 : f32
    %272 = vector.broadcast %cst_285 : f32 to vector<8x80xf32>
    %273 = arith.maximumf %271, %272 : vector<8x80xf32>
    %c0_286 = arith.constant 0 : index
    %c3_287 = arith.constant 3 : index
    %c0_288 = arith.constant 0 : index
    %c0_289 = arith.constant 0 : index
    %274 = vector.load %arg5[%c0_286, %c3_287, %c0_288, %c0_289] : memref<2x4x8x80xf32, #tpu.memory_space<vmem>>, vector<1x1x8x80xf32>
    %275 = vector.shape_cast %274 : vector<1x1x8x80xf32> to vector<8x80xf32>
    %276 = vector.shape_cast %273 : vector<8x80xf32> to vector<1x1x8x80xf32>
    tpu.vector_store %arg5[%c0_286, %c3_287, %c0_288, %c0_289], %276 {strides = array<i32>} : memref<2x4x8x80xf32, #tpu.memory_space<vmem>>, vector<1x1x8x80xf32>,
    %c1_290 = arith.constant 1 : index
    %c0_291 = arith.constant 0 : index
    %c0_292 = arith.constant 0 : index
    %c0_293 = arith.constant 0 : index
    %277 = vector.load %arg5[%c1_290, %c0_291, %c0_292, %c0_293] : memref<2x4x8x80xf32, #tpu.memory_space<vmem>>, vector<1x1x8x80xf32>
    %278 = vector.shape_cast %277 : vector<1x1x8x80xf32> to vector<8x80xf32>
    %279 = arith.mulf %278, %238 : vector<8x80xf32>
    %280 = arith.addf %279, %240 : vector<8x80xf32>
    %cst_294 = arith.constant 0.000000e+00 : f32
    %281 = vector.broadcast %cst_294 : f32 to vector<8x80xf32>
    %282 = arith.maximumf %280, %281 : vector<8x80xf32>
    %c1_295 = arith.constant 1 : index
    %c0_296 = arith.constant 0 : index
    %c0_297 = arith.constant 0 : index
    %c0_298 = arith.constant 0 : index
    %283 = vector.load %arg5[%c1_295, %c0_296, %c0_297, %c0_298] : memref<2x4x8x80xf32, #tpu.memory_space<vmem>>, vector<1x1x8x80xf32>
    %284 = vector.shape_cast %283 : vector<1x1x8x80xf32> to vector<8x80xf32>
    %285 = vector.shape_cast %282 : vector<8x80xf32> to vector<1x1x8x80xf32>
    tpu.vector_store %arg5[%c1_295, %c0_296, %c0_297, %c0_298], %285 {strides = array<i32>} : memref<2x4x8x80xf32, #tpu.memory_space<vmem>>, vector<1x1x8x80xf32>,
    %c1_299 = arith.constant 1 : index
    %c1_300 = arith.constant 1 : index
    %c0_301 = arith.constant 0 : index
    %c0_302 = arith.constant 0 : index
    %286 = vector.load %arg5[%c1_299, %c1_300, %c0_301, %c0_302] : memref<2x4x8x80xf32, #tpu.memory_space<vmem>>, vector<1x1x8x80xf32>
    %287 = vector.shape_cast %286 : vector<1x1x8x80xf32> to vector<8x80xf32>
    %288 = arith.mulf %287, %238 : vector<8x80xf32>
    %289 = arith.addf %288, %240 : vector<8x80xf32>
    %cst_303 = arith.constant 0.000000e+00 : f32
    %290 = vector.broadcast %cst_303 : f32 to vector<8x80xf32>
    %291 = arith.maximumf %289, %290 : vector<8x80xf32>
    %c1_304 = arith.constant 1 : index
    %c1_305 = arith.constant 1 : index
    %c0_306 = arith.constant 0 : index
    %c0_307 = arith.constant 0 : index
    %292 = vector.load %arg5[%c1_304, %c1_305, %c0_306, %c0_307] : memref<2x4x8x80xf32, #tpu.memory_space<vmem>>, vector<1x1x8x80xf32>
    %293 = vector.shape_cast %292 : vector<1x1x8x80xf32> to vector<8x80xf32>
    %294 = vector.shape_cast %291 : vector<8x80xf32> to vector<1x1x8x80xf32>
    tpu.vector_store %arg5[%c1_304, %c1_305, %c0_306, %c0_307], %294 {strides = array<i32>} : memref<2x4x8x80xf32, #tpu.memory_space<vmem>>, vector<1x1x8x80xf32>,
    %c1_308 = arith.constant 1 : index
    %c2_309 = arith.constant 2 : index
    %c0_310 = arith.constant 0 : index
    %c0_311 = arith.constant 0 : index
    %295 = vector.load %arg5[%c1_308, %c2_309, %c0_310, %c0_311] : memref<2x4x8x80xf32, #tpu.memory_space<vmem>>, vector<1x1x8x80xf32>
    %296 = vector.shape_cast %295 : vector<1x1x8x80xf32> to vector<8x80xf32>
    %297 = arith.mulf %296, %238 : vector<8x80xf32>
    %298 = arith.addf %297, %240 : vector<8x80xf32>
    %cst_312 = arith.constant 0.000000e+00 : f32
    %299 = vector.broadcast %cst_312 : f32 to vector<8x80xf32>
    %300 = arith.maximumf %298, %299 : vector<8x80xf32>
    %c1_313 = arith.constant 1 : index
    %c2_314 = arith.constant 2 : index
    %c0_315 = arith.constant 0 : index
    %c0_316 = arith.constant 0 : index
    %301 = vector.load %arg5[%c1_313, %c2_314, %c0_315, %c0_316] : memref<2x4x8x80xf32, #tpu.memory_space<vmem>>, vector<1x1x8x80xf32>
    %302 = vector.shape_cast %301 : vector<1x1x8x80xf32> to vector<8x80xf32>
    %303 = vector.shape_cast %300 : vector<8x80xf32> to vector<1x1x8x80xf32>
    tpu.vector_store %arg5[%c1_313, %c2_314, %c0_315, %c0_316], %303 {strides = array<i32>} : memref<2x4x8x80xf32, #tpu.memory_space<vmem>>, vector<1x1x8x80xf32>,
    %c1_317 = arith.constant 1 : index
    %c3_318 = arith.constant 3 : index
    %c0_319 = arith.constant 0 : index
    %c0_320 = arith.constant 0 : index
    %304 = vector.load %arg5[%c1_317, %c3_318, %c0_319, %c0_320] : memref<2x4x8x80xf32, #tpu.memory_space<vmem>>, vector<1x1x8x80xf32>
    %305 = vector.shape_cast %304 : vector<1x1x8x80xf32> to vector<8x80xf32>
    %306 = arith.mulf %305, %238 : vector<8x80xf32>
    %307 = arith.addf %306, %240 : vector<8x80xf32>
    %cst_321 = arith.constant 0.000000e+00 : f32
    %308 = vector.broadcast %cst_321 : f32 to vector<8x80xf32>
    %309 = arith.maximumf %307, %308 : vector<8x80xf32>
    %c1_322 = arith.constant 1 : index
    %c3_323 = arith.constant 3 : index
    %c0_324 = arith.constant 0 : index
    %c0_325 = arith.constant 0 : index
    %310 = vector.load %arg5[%c1_322, %c3_323, %c0_324, %c0_325] : memref<2x4x8x80xf32, #tpu.memory_space<vmem>>, vector<1x1x8x80xf32>
    %311 = vector.shape_cast %310 : vector<1x1x8x80xf32> to vector<8x80xf32>
    %312 = vector.shape_cast %309 : vector<8x80xf32> to vector<1x1x8x80xf32>
    tpu.vector_store %arg5[%c1_322, %c3_323, %c0_324, %c0_325], %312 {strides = array<i32>} : memref<2x4x8x80xf32, #tpu.memory_space<vmem>>, vector<1x1x8x80xf32>,
    return
  }
}

module attributes {stable_mosaic.version = 11 : i64} {
  func.func @kernel(%arg0: memref<2x16x326xbf16, #tpu.memory_space<vmem>>, %arg1: memref<1x8x144xbf16, #tpu.memory_space<vmem>>, %arg2: memref<8x1xf32, #tpu.memory_space<vmem>>, %arg3: memref<8x1xf32, #tpu.memory_space<vmem>>, %arg4: memref<1x288xf32, #tpu.memory_space<vmem>>, %arg5: memref<2x1x8x288xf32, #tpu.memory_space<vmem>>, %arg6: memref<144x288xbf16, #tpu.memory_space<vmem>>) attributes {dimension_semantics = [], scalar_prefetch = 0 : i64, scratch_operands = 1 : i64, tpu.core_type = #tpu.core_type<tc>} {
    %c0 = arith.constant 0 : index
    %c0_0 = arith.constant 0 : index
    %0 = vector.load %arg4[%c0, %c0_0] : memref<1x288xf32, #tpu.memory_space<vmem>>, vector<1x288xf32>
    %1 = vector.shape_cast %0 : vector<1x288xf32> to vector<1x288xf32>
    %2 = vector.broadcast %1 : vector<1x288xf32> to vector<8x288xf32>
    %cst = arith.constant 0.000000e+00 : f32
    %3 = vector.broadcast %cst : f32 to vector<8x1xf32>
    %cst_1 = arith.constant 0.000000e+00 : f32
    %4 = vector.broadcast %cst_1 : f32 to vector<8x1xf32>
    %c0_2 = arith.constant 0 : index
    %c0_3 = arith.constant 0 : index
    %c0_4 = arith.constant 0 : index
    %5 = vector.load %arg0[%c0_2, %c0_3, %c0_4] : memref<2x16x326xbf16, #tpu.memory_space<vmem>>, vector<1x16x288xbf16>
    %6 = vector.shape_cast %5 : vector<1x16x288xbf16> to vector<16x288xbf16>
    %c0_5 = arith.constant 0 : index
    %c0_6 = arith.constant 0 : index
    %7 = vector.load %arg6[%c0_5, %c0_6] : memref<144x288xbf16, #tpu.memory_space<vmem>>, vector<16x288xbf16>
    tpu.vector_store %arg6[%c0_5, %c0_6], %6 {strides = array<i32>} : memref<144x288xbf16, #tpu.memory_space<vmem>>, vector<16x288xbf16>,
    %c0_7 = arith.constant 0 : index
    %c0_8 = arith.constant 0 : index
    %c1 = arith.constant 1 : index
    %8 = vector.load %arg0[%c0_7, %c0_8, %c1] : memref<2x16x326xbf16, #tpu.memory_space<vmem>>, vector<1x16x288xbf16>
    %9 = vector.shape_cast %8 : vector<1x16x288xbf16> to vector<16x288xbf16>
    %c16 = arith.constant 16 : index
    %c0_9 = arith.constant 0 : index
    %10 = vector.load %arg6[%c16, %c0_9] : memref<144x288xbf16, #tpu.memory_space<vmem>>, vector<16x288xbf16>
    tpu.vector_store %arg6[%c16, %c0_9], %9 {strides = array<i32>} : memref<144x288xbf16, #tpu.memory_space<vmem>>, vector<16x288xbf16>,
    %c0_10 = arith.constant 0 : index
    %c0_11 = arith.constant 0 : index
    %c2 = arith.constant 2 : index
    %11 = vector.load %arg0[%c0_10, %c0_11, %c2] : memref<2x16x326xbf16, #tpu.memory_space<vmem>>, vector<1x16x288xbf16>
    %12 = vector.shape_cast %11 : vector<1x16x288xbf16> to vector<16x288xbf16>
    %c32 = arith.constant 32 : index
    %c0_12 = arith.constant 0 : index
    %13 = vector.load %arg6[%c32, %c0_12] : memref<144x288xbf16, #tpu.memory_space<vmem>>, vector<16x288xbf16>
    tpu.vector_store %arg6[%c32, %c0_12], %12 {strides = array<i32>} : memref<144x288xbf16, #tpu.memory_space<vmem>>, vector<16x288xbf16>,
    %c0_13 = arith.constant 0 : index
    %c0_14 = arith.constant 0 : index
    %c18 = arith.constant 18 : index
    %14 = vector.load %arg0[%c0_13, %c0_14, %c18] : memref<2x16x326xbf16, #tpu.memory_space<vmem>>, vector<1x16x288xbf16>
    %15 = vector.shape_cast %14 : vector<1x16x288xbf16> to vector<16x288xbf16>
    %c48 = arith.constant 48 : index
    %c0_15 = arith.constant 0 : index
    %16 = vector.load %arg6[%c48, %c0_15] : memref<144x288xbf16, #tpu.memory_space<vmem>>, vector<16x288xbf16>
    tpu.vector_store %arg6[%c48, %c0_15], %15 {strides = array<i32>} : memref<144x288xbf16, #tpu.memory_space<vmem>>, vector<16x288xbf16>,
    %c0_16 = arith.constant 0 : index
    %c0_17 = arith.constant 0 : index
    %c19 = arith.constant 19 : index
    %17 = vector.load %arg0[%c0_16, %c0_17, %c19] : memref<2x16x326xbf16, #tpu.memory_space<vmem>>, vector<1x16x288xbf16>
    %18 = vector.shape_cast %17 : vector<1x16x288xbf16> to vector<16x288xbf16>
    %c64 = arith.constant 64 : index
    %c0_18 = arith.constant 0 : index
    %19 = vector.load %arg6[%c64, %c0_18] : memref<144x288xbf16, #tpu.memory_space<vmem>>, vector<16x288xbf16>
    tpu.vector_store %arg6[%c64, %c0_18], %18 {strides = array<i32>} : memref<144x288xbf16, #tpu.memory_space<vmem>>, vector<16x288xbf16>,
    %c0_19 = arith.constant 0 : index
    %c0_20 = arith.constant 0 : index
    %c20 = arith.constant 20 : index
    %20 = vector.load %arg0[%c0_19, %c0_20, %c20] : memref<2x16x326xbf16, #tpu.memory_space<vmem>>, vector<1x16x288xbf16>
    %21 = vector.shape_cast %20 : vector<1x16x288xbf16> to vector<16x288xbf16>
    %c80 = arith.constant 80 : index
    %c0_21 = arith.constant 0 : index
    %22 = vector.load %arg6[%c80, %c0_21] : memref<144x288xbf16, #tpu.memory_space<vmem>>, vector<16x288xbf16>
    tpu.vector_store %arg6[%c80, %c0_21], %21 {strides = array<i32>} : memref<144x288xbf16, #tpu.memory_space<vmem>>, vector<16x288xbf16>,
    %c0_22 = arith.constant 0 : index
    %c0_23 = arith.constant 0 : index
    %c36 = arith.constant 36 : index
    %23 = vector.load %arg0[%c0_22, %c0_23, %c36] : memref<2x16x326xbf16, #tpu.memory_space<vmem>>, vector<1x16x288xbf16>
    %24 = vector.shape_cast %23 : vector<1x16x288xbf16> to vector<16x288xbf16>
    %c96 = arith.constant 96 : index
    %c0_24 = arith.constant 0 : index
    %25 = vector.load %arg6[%c96, %c0_24] : memref<144x288xbf16, #tpu.memory_space<vmem>>, vector<16x288xbf16>
    tpu.vector_store %arg6[%c96, %c0_24], %24 {strides = array<i32>} : memref<144x288xbf16, #tpu.memory_space<vmem>>, vector<16x288xbf16>,
    %c0_25 = arith.constant 0 : index
    %c0_26 = arith.constant 0 : index
    %c37 = arith.constant 37 : index
    %26 = vector.load %arg0[%c0_25, %c0_26, %c37] : memref<2x16x326xbf16, #tpu.memory_space<vmem>>, vector<1x16x288xbf16>
    %27 = vector.shape_cast %26 : vector<1x16x288xbf16> to vector<16x288xbf16>
    %c112 = arith.constant 112 : index
    %c0_27 = arith.constant 0 : index
    %28 = vector.load %arg6[%c112, %c0_27] : memref<144x288xbf16, #tpu.memory_space<vmem>>, vector<16x288xbf16>
    tpu.vector_store %arg6[%c112, %c0_27], %27 {strides = array<i32>} : memref<144x288xbf16, #tpu.memory_space<vmem>>, vector<16x288xbf16>,
    %c0_28 = arith.constant 0 : index
    %c0_29 = arith.constant 0 : index
    %c38 = arith.constant 38 : index
    %29 = vector.load %arg0[%c0_28, %c0_29, %c38] : memref<2x16x326xbf16, #tpu.memory_space<vmem>>, vector<1x16x288xbf16>
    %30 = vector.shape_cast %29 : vector<1x16x288xbf16> to vector<16x288xbf16>
    %c128 = arith.constant 128 : index
    %c0_30 = arith.constant 0 : index
    %31 = vector.load %arg6[%c128, %c0_30] : memref<144x288xbf16, #tpu.memory_space<vmem>>, vector<16x288xbf16>
    tpu.vector_store %arg6[%c128, %c0_30], %30 {strides = array<i32>} : memref<144x288xbf16, #tpu.memory_space<vmem>>, vector<16x288xbf16>,
    %c0_31 = arith.constant 0 : index
    %c0_32 = arith.constant 0 : index
    %c0_33 = arith.constant 0 : index
    %32 = vector.load %arg1[%c0_31, %c0_32, %c0_33] : memref<1x8x144xbf16, #tpu.memory_space<vmem>>, vector<1x8x144xbf16>
    %33 = vector.shape_cast %32 : vector<1x8x144xbf16> to vector<8x144xbf16>
    %c0_34 = arith.constant 0 : index
    %c0_35 = arith.constant 0 : index
    %34 = vector.load %arg6[%c0_34, %c0_35] : memref<144x288xbf16, #tpu.memory_space<vmem>>, vector<144x288xbf16>
    %cst_36 = arith.constant dense<0.000000e+00> : vector<8x288xf32>
    %35 = tpu.matmul %33, %34, %cst_36 {dimension_numbers = #tpu.dot_dimension_numbers<[1], [0], [0], [1], [0, 0, 1, 1], [], []>} : vector<8x144xbf16>, vector<144x288xbf16>, vector<8x288xf32> -> vector<8x288xf32>
    %36 = arith.mulf %35, %2 : vector<8x288xf32>
    %cst_37 = arith.constant dense<0.000000e+00> : vector<8xf32>
    %37 = vector.multi_reduction <add>, %36, %cst_37 [1] : vector<8x288xf32> to vector<8xf32>
    %38 = vector.shape_cast %37 : vector<8xf32> to vector<8x1xf32>
    %39 = arith.addf %3, %38 : vector<8x1xf32>
    %40 = arith.mulf %36, %36 : vector<8x288xf32>
    %cst_38 = arith.constant dense<0.000000e+00> : vector<8xf32>
    %41 = vector.multi_reduction <add>, %40, %cst_38 [1] : vector<8x288xf32> to vector<8xf32>
    %42 = vector.shape_cast %41 : vector<8xf32> to vector<8x1xf32>
    %43 = arith.addf %4, %42 : vector<8x1xf32>
    %c0_39 = arith.constant 0 : index
    %c0_40 = arith.constant 0 : index
    %c0_41 = arith.constant 0 : index
    %c0_42 = arith.constant 0 : index
    %44 = vector.load %arg5[%c0_39, %c0_40, %c0_41, %c0_42] : memref<2x1x8x288xf32, #tpu.memory_space<vmem>>, vector<1x1x8x288xf32>
    %45 = vector.shape_cast %44 : vector<1x1x8x288xf32> to vector<8x288xf32>
    %46 = vector.shape_cast %35 : vector<8x288xf32> to vector<1x1x8x288xf32>
    tpu.vector_store %arg5[%c0_39, %c0_40, %c0_41, %c0_42], %46 {strides = array<i32>} : memref<2x1x8x288xf32, #tpu.memory_space<vmem>>, vector<1x1x8x288xf32>,
    %c1_43 = arith.constant 1 : index
    %c0_44 = arith.constant 0 : index
    %c0_45 = arith.constant 0 : index
    %47 = vector.load %arg0[%c1_43, %c0_44, %c0_45] : memref<2x16x326xbf16, #tpu.memory_space<vmem>>, vector<1x16x288xbf16>
    %48 = vector.shape_cast %47 : vector<1x16x288xbf16> to vector<16x288xbf16>
    %c0_46 = arith.constant 0 : index
    %c0_47 = arith.constant 0 : index
    %49 = vector.load %arg6[%c0_46, %c0_47] : memref<144x288xbf16, #tpu.memory_space<vmem>>, vector<16x288xbf16>
    tpu.vector_store %arg6[%c0_46, %c0_47], %48 {strides = array<i32>} : memref<144x288xbf16, #tpu.memory_space<vmem>>, vector<16x288xbf16>,
    %c1_48 = arith.constant 1 : index
    %c0_49 = arith.constant 0 : index
    %c1_50 = arith.constant 1 : index
    %50 = vector.load %arg0[%c1_48, %c0_49, %c1_50] : memref<2x16x326xbf16, #tpu.memory_space<vmem>>, vector<1x16x288xbf16>
    %51 = vector.shape_cast %50 : vector<1x16x288xbf16> to vector<16x288xbf16>
    %c16_51 = arith.constant 16 : index
    %c0_52 = arith.constant 0 : index
    %52 = vector.load %arg6[%c16_51, %c0_52] : memref<144x288xbf16, #tpu.memory_space<vmem>>, vector<16x288xbf16>
    tpu.vector_store %arg6[%c16_51, %c0_52], %51 {strides = array<i32>} : memref<144x288xbf16, #tpu.memory_space<vmem>>, vector<16x288xbf16>,
    %c1_53 = arith.constant 1 : index
    %c0_54 = arith.constant 0 : index
    %c2_55 = arith.constant 2 : index
    %53 = vector.load %arg0[%c1_53, %c0_54, %c2_55] : memref<2x16x326xbf16, #tpu.memory_space<vmem>>, vector<1x16x288xbf16>
    %54 = vector.shape_cast %53 : vector<1x16x288xbf16> to vector<16x288xbf16>
    %c32_56 = arith.constant 32 : index
    %c0_57 = arith.constant 0 : index
    %55 = vector.load %arg6[%c32_56, %c0_57] : memref<144x288xbf16, #tpu.memory_space<vmem>>, vector<16x288xbf16>
    tpu.vector_store %arg6[%c32_56, %c0_57], %54 {strides = array<i32>} : memref<144x288xbf16, #tpu.memory_space<vmem>>, vector<16x288xbf16>,
    %c1_58 = arith.constant 1 : index
    %c0_59 = arith.constant 0 : index
    %c18_60 = arith.constant 18 : index
    %56 = vector.load %arg0[%c1_58, %c0_59, %c18_60] : memref<2x16x326xbf16, #tpu.memory_space<vmem>>, vector<1x16x288xbf16>
    %57 = vector.shape_cast %56 : vector<1x16x288xbf16> to vector<16x288xbf16>
    %c48_61 = arith.constant 48 : index
    %c0_62 = arith.constant 0 : index
    %58 = vector.load %arg6[%c48_61, %c0_62] : memref<144x288xbf16, #tpu.memory_space<vmem>>, vector<16x288xbf16>
    tpu.vector_store %arg6[%c48_61, %c0_62], %57 {strides = array<i32>} : memref<144x288xbf16, #tpu.memory_space<vmem>>, vector<16x288xbf16>,
    %c1_63 = arith.constant 1 : index
    %c0_64 = arith.constant 0 : index
    %c19_65 = arith.constant 19 : index
    %59 = vector.load %arg0[%c1_63, %c0_64, %c19_65] : memref<2x16x326xbf16, #tpu.memory_space<vmem>>, vector<1x16x288xbf16>
    %60 = vector.shape_cast %59 : vector<1x16x288xbf16> to vector<16x288xbf16>
    %c64_66 = arith.constant 64 : index
    %c0_67 = arith.constant 0 : index
    %61 = vector.load %arg6[%c64_66, %c0_67] : memref<144x288xbf16, #tpu.memory_space<vmem>>, vector<16x288xbf16>
    tpu.vector_store %arg6[%c64_66, %c0_67], %60 {strides = array<i32>} : memref<144x288xbf16, #tpu.memory_space<vmem>>, vector<16x288xbf16>,
    %c1_68 = arith.constant 1 : index
    %c0_69 = arith.constant 0 : index
    %c20_70 = arith.constant 20 : index
    %62 = vector.load %arg0[%c1_68, %c0_69, %c20_70] : memref<2x16x326xbf16, #tpu.memory_space<vmem>>, vector<1x16x288xbf16>
    %63 = vector.shape_cast %62 : vector<1x16x288xbf16> to vector<16x288xbf16>
    %c80_71 = arith.constant 80 : index
    %c0_72 = arith.constant 0 : index
    %64 = vector.load %arg6[%c80_71, %c0_72] : memref<144x288xbf16, #tpu.memory_space<vmem>>, vector<16x288xbf16>
    tpu.vector_store %arg6[%c80_71, %c0_72], %63 {strides = array<i32>} : memref<144x288xbf16, #tpu.memory_space<vmem>>, vector<16x288xbf16>,
    %c1_73 = arith.constant 1 : index
    %c0_74 = arith.constant 0 : index
    %c36_75 = arith.constant 36 : index
    %65 = vector.load %arg0[%c1_73, %c0_74, %c36_75] : memref<2x16x326xbf16, #tpu.memory_space<vmem>>, vector<1x16x288xbf16>
    %66 = vector.shape_cast %65 : vector<1x16x288xbf16> to vector<16x288xbf16>
    %c96_76 = arith.constant 96 : index
    %c0_77 = arith.constant 0 : index
    %67 = vector.load %arg6[%c96_76, %c0_77] : memref<144x288xbf16, #tpu.memory_space<vmem>>, vector<16x288xbf16>
    tpu.vector_store %arg6[%c96_76, %c0_77], %66 {strides = array<i32>} : memref<144x288xbf16, #tpu.memory_space<vmem>>, vector<16x288xbf16>,
    %c1_78 = arith.constant 1 : index
    %c0_79 = arith.constant 0 : index
    %c37_80 = arith.constant 37 : index
    %68 = vector.load %arg0[%c1_78, %c0_79, %c37_80] : memref<2x16x326xbf16, #tpu.memory_space<vmem>>, vector<1x16x288xbf16>
    %69 = vector.shape_cast %68 : vector<1x16x288xbf16> to vector<16x288xbf16>
    %c112_81 = arith.constant 112 : index
    %c0_82 = arith.constant 0 : index
    %70 = vector.load %arg6[%c112_81, %c0_82] : memref<144x288xbf16, #tpu.memory_space<vmem>>, vector<16x288xbf16>
    tpu.vector_store %arg6[%c112_81, %c0_82], %69 {strides = array<i32>} : memref<144x288xbf16, #tpu.memory_space<vmem>>, vector<16x288xbf16>,
    %c1_83 = arith.constant 1 : index
    %c0_84 = arith.constant 0 : index
    %c38_85 = arith.constant 38 : index
    %71 = vector.load %arg0[%c1_83, %c0_84, %c38_85] : memref<2x16x326xbf16, #tpu.memory_space<vmem>>, vector<1x16x288xbf16>
    %72 = vector.shape_cast %71 : vector<1x16x288xbf16> to vector<16x288xbf16>
    %c128_86 = arith.constant 128 : index
    %c0_87 = arith.constant 0 : index
    %73 = vector.load %arg6[%c128_86, %c0_87] : memref<144x288xbf16, #tpu.memory_space<vmem>>, vector<16x288xbf16>
    tpu.vector_store %arg6[%c128_86, %c0_87], %72 {strides = array<i32>} : memref<144x288xbf16, #tpu.memory_space<vmem>>, vector<16x288xbf16>,
    %c0_88 = arith.constant 0 : index
    %c0_89 = arith.constant 0 : index
    %c0_90 = arith.constant 0 : index
    %74 = vector.load %arg1[%c0_88, %c0_89, %c0_90] : memref<1x8x144xbf16, #tpu.memory_space<vmem>>, vector<1x8x144xbf16>
    %75 = vector.shape_cast %74 : vector<1x8x144xbf16> to vector<8x144xbf16>
    %c0_91 = arith.constant 0 : index
    %c0_92 = arith.constant 0 : index
    %76 = vector.load %arg6[%c0_91, %c0_92] : memref<144x288xbf16, #tpu.memory_space<vmem>>, vector<144x288xbf16>
    %cst_93 = arith.constant dense<0.000000e+00> : vector<8x288xf32>
    %77 = tpu.matmul %75, %76, %cst_93 {dimension_numbers = #tpu.dot_dimension_numbers<[1], [0], [0], [1], [0, 0, 1, 1], [], []>} : vector<8x144xbf16>, vector<144x288xbf16>, vector<8x288xf32> -> vector<8x288xf32>
    %78 = arith.mulf %77, %2 : vector<8x288xf32>
    %cst_94 = arith.constant dense<0.000000e+00> : vector<8xf32>
    %79 = vector.multi_reduction <add>, %78, %cst_94 [1] : vector<8x288xf32> to vector<8xf32>
    %80 = vector.shape_cast %79 : vector<8xf32> to vector<8x1xf32>
    %81 = arith.addf %39, %80 : vector<8x1xf32>
    %82 = arith.mulf %78, %78 : vector<8x288xf32>
    %cst_95 = arith.constant dense<0.000000e+00> : vector<8xf32>
    %83 = vector.multi_reduction <add>, %82, %cst_95 [1] : vector<8x288xf32> to vector<8xf32>
    %84 = vector.shape_cast %83 : vector<8xf32> to vector<8x1xf32>
    %85 = arith.addf %43, %84 : vector<8x1xf32>
    %c1_96 = arith.constant 1 : index
    %c0_97 = arith.constant 0 : index
    %c0_98 = arith.constant 0 : index
    %c0_99 = arith.constant 0 : index
    %86 = vector.load %arg5[%c1_96, %c0_97, %c0_98, %c0_99] : memref<2x1x8x288xf32, #tpu.memory_space<vmem>>, vector<1x1x8x288xf32>
    %87 = vector.shape_cast %86 : vector<1x1x8x288xf32> to vector<8x288xf32>
    %88 = vector.shape_cast %77 : vector<8x288xf32> to vector<1x1x8x288xf32>
    tpu.vector_store %arg5[%c1_96, %c0_97, %c0_98, %c0_99], %88 {strides = array<i32>} : memref<2x1x8x288xf32, #tpu.memory_space<vmem>>, vector<1x1x8x288xf32>,
    %cst_100 = arith.constant 0.001953125 : f32
    %89 = vector.broadcast %cst_100 : f32 to vector<8x1xf32>
    %90 = arith.mulf %81, %89 : vector<8x1xf32>
    %cst_101 = arith.constant 0.001953125 : f32
    %91 = vector.broadcast %cst_101 : f32 to vector<8x1xf32>
    %92 = arith.mulf %85, %91 : vector<8x1xf32>
    %93 = arith.mulf %90, %90 : vector<8x1xf32>
    %94 = arith.subf %92, %93 : vector<8x1xf32>
    %cst_102 = arith.constant 0.000000e+00 : f32
    %95 = vector.broadcast %cst_102 : f32 to vector<8x1xf32>
    %96 = arith.maximumf %94, %95 : vector<8x1xf32>
    %c0_103 = arith.constant 0 : index
    %c0_104 = arith.constant 0 : index
    %97 = vector.load %arg2[%c0_103, %c0_104] : memref<8x1xf32, #tpu.memory_space<vmem>>, vector<8x1xf32>
    %cst_105 = arith.constant 9.99999974E-6 : f32
    %98 = vector.broadcast %cst_105 : f32 to vector<8x1xf32>
    %99 = arith.addf %96, %98 : vector<8x1xf32>
    %100 = math.rsqrt %99 : vector<8x1xf32>
    %101 = arith.mulf %97, %100 : vector<8x1xf32>
    %c0_106 = arith.constant 0 : index
    %c0_107 = arith.constant 0 : index
    %102 = vector.load %arg3[%c0_106, %c0_107] : memref<8x1xf32, #tpu.memory_space<vmem>>, vector<8x1xf32>
    %103 = arith.mulf %90, %101 : vector<8x1xf32>
    %104 = arith.subf %102, %103 : vector<8x1xf32>
    %105 = vector.shape_cast %101 : vector<8x1xf32> to vector<8x1xf32>
    %106 = vector.broadcast %105 : vector<8x1xf32> to vector<8x288xf32>
    %107 = vector.shape_cast %104 : vector<8x1xf32> to vector<8x1xf32>
    %108 = vector.broadcast %107 : vector<8x1xf32> to vector<8x288xf32>
    %c0_108 = arith.constant 0 : index
    %c0_109 = arith.constant 0 : index
    %c0_110 = arith.constant 0 : index
    %c0_111 = arith.constant 0 : index
    %109 = vector.load %arg5[%c0_108, %c0_109, %c0_110, %c0_111] : memref<2x1x8x288xf32, #tpu.memory_space<vmem>>, vector<1x1x8x288xf32>
    %110 = vector.shape_cast %109 : vector<1x1x8x288xf32> to vector<8x288xf32>
    %111 = arith.mulf %110, %106 : vector<8x288xf32>
    %112 = arith.addf %111, %108 : vector<8x288xf32>
    %cst_112 = arith.constant 0.000000e+00 : f32
    %113 = vector.broadcast %cst_112 : f32 to vector<8x288xf32>
    %114 = arith.maximumf %112, %113 : vector<8x288xf32>
    %c0_113 = arith.constant 0 : index
    %c0_114 = arith.constant 0 : index
    %c0_115 = arith.constant 0 : index
    %c0_116 = arith.constant 0 : index
    %115 = vector.load %arg5[%c0_113, %c0_114, %c0_115, %c0_116] : memref<2x1x8x288xf32, #tpu.memory_space<vmem>>, vector<1x1x8x288xf32>
    %116 = vector.shape_cast %115 : vector<1x1x8x288xf32> to vector<8x288xf32>
    %117 = vector.shape_cast %114 : vector<8x288xf32> to vector<1x1x8x288xf32>
    tpu.vector_store %arg5[%c0_113, %c0_114, %c0_115, %c0_116], %117 {strides = array<i32>} : memref<2x1x8x288xf32, #tpu.memory_space<vmem>>, vector<1x1x8x288xf32>,
    %c1_117 = arith.constant 1 : index
    %c0_118 = arith.constant 0 : index
    %c0_119 = arith.constant 0 : index
    %c0_120 = arith.constant 0 : index
    %118 = vector.load %arg5[%c1_117, %c0_118, %c0_119, %c0_120] : memref<2x1x8x288xf32, #tpu.memory_space<vmem>>, vector<1x1x8x288xf32>
    %119 = vector.shape_cast %118 : vector<1x1x8x288xf32> to vector<8x288xf32>
    %120 = arith.mulf %119, %106 : vector<8x288xf32>
    %121 = arith.addf %120, %108 : vector<8x288xf32>
    %cst_121 = arith.constant 0.000000e+00 : f32
    %122 = vector.broadcast %cst_121 : f32 to vector<8x288xf32>
    %123 = arith.maximumf %121, %122 : vector<8x288xf32>
    %c1_122 = arith.constant 1 : index
    %c0_123 = arith.constant 0 : index
    %c0_124 = arith.constant 0 : index
    %c0_125 = arith.constant 0 : index
    %124 = vector.load %arg5[%c1_122, %c0_123, %c0_124, %c0_125] : memref<2x1x8x288xf32, #tpu.memory_space<vmem>>, vector<1x1x8x288xf32>
    %125 = vector.shape_cast %124 : vector<1x1x8x288xf32> to vector<8x288xf32>
    %126 = vector.shape_cast %123 : vector<8x288xf32> to vector<1x1x8x288xf32>
    tpu.vector_store %arg5[%c1_122, %c0_123, %c0_124, %c0_125], %126 {strides = array<i32>} : memref<2x1x8x288xf32, #tpu.memory_space<vmem>>, vector<1x1x8x288xf32>,
    return
  }
}

module attributes {stable_mosaic.version = 11 : i64} {
  func.func @kernel(%arg0: memref<2x16x326xbf16, #tpu.memory_space<vmem>>, %arg1: memref<4x8x64xbf16, #tpu.memory_space<vmem>>, %arg2: memref<8x1xf32, #tpu.memory_space<vmem>>, %arg3: memref<8x1xf32, #tpu.memory_space<vmem>>, %arg4: memref<1x288xf32, #tpu.memory_space<vmem>>, %arg5: memref<2x4x8x288xf32, #tpu.memory_space<vmem>>, %arg6: memref<64x288xbf16, #tpu.memory_space<vmem>>) attributes {dimension_semantics = [], scalar_prefetch = 0 : i64, scratch_operands = 1 : i64, tpu.core_type = #tpu.core_type<tc>} {
    %c0 = arith.constant 0 : index
    %c0_0 = arith.constant 0 : index
    %0 = vector.load %arg4[%c0, %c0_0] : memref<1x288xf32, #tpu.memory_space<vmem>>, vector<1x288xf32>
    %1 = vector.shape_cast %0 : vector<1x288xf32> to vector<1x288xf32>
    %2 = vector.broadcast %1 : vector<1x288xf32> to vector<8x288xf32>
    %cst = arith.constant 0.000000e+00 : f32
    %3 = vector.broadcast %cst : f32 to vector<8x1xf32>
    %cst_1 = arith.constant 0.000000e+00 : f32
    %4 = vector.broadcast %cst_1 : f32 to vector<8x1xf32>
    %c0_2 = arith.constant 0 : index
    %c0_3 = arith.constant 0 : index
    %c0_4 = arith.constant 0 : index
    %5 = vector.load %arg0[%c0_2, %c0_3, %c0_4] : memref<2x16x326xbf16, #tpu.memory_space<vmem>>, vector<1x16x288xbf16>
    %6 = vector.shape_cast %5 : vector<1x16x288xbf16> to vector<16x288xbf16>
    %c0_5 = arith.constant 0 : index
    %c0_6 = arith.constant 0 : index
    %7 = vector.load %arg6[%c0_5, %c0_6] : memref<64x288xbf16, #tpu.memory_space<vmem>>, vector<16x288xbf16>
    tpu.vector_store %arg6[%c0_5, %c0_6], %6 {strides = array<i32>} : memref<64x288xbf16, #tpu.memory_space<vmem>>, vector<16x288xbf16>,
    %c0_7 = arith.constant 0 : index
    %c0_8 = arith.constant 0 : index
    %c1 = arith.constant 1 : index
    %8 = vector.load %arg0[%c0_7, %c0_8, %c1] : memref<2x16x326xbf16, #tpu.memory_space<vmem>>, vector<1x16x288xbf16>
    %9 = vector.shape_cast %8 : vector<1x16x288xbf16> to vector<16x288xbf16>
    %c16 = arith.constant 16 : index
    %c0_9 = arith.constant 0 : index
    %10 = vector.load %arg6[%c16, %c0_9] : memref<64x288xbf16, #tpu.memory_space<vmem>>, vector<16x288xbf16>
    tpu.vector_store %arg6[%c16, %c0_9], %9 {strides = array<i32>} : memref<64x288xbf16, #tpu.memory_space<vmem>>, vector<16x288xbf16>,
    %c0_10 = arith.constant 0 : index
    %c0_11 = arith.constant 0 : index
    %c18 = arith.constant 18 : index
    %11 = vector.load %arg0[%c0_10, %c0_11, %c18] : memref<2x16x326xbf16, #tpu.memory_space<vmem>>, vector<1x16x288xbf16>
    %12 = vector.shape_cast %11 : vector<1x16x288xbf16> to vector<16x288xbf16>
    %c32 = arith.constant 32 : index
    %c0_12 = arith.constant 0 : index
    %13 = vector.load %arg6[%c32, %c0_12] : memref<64x288xbf16, #tpu.memory_space<vmem>>, vector<16x288xbf16>
    tpu.vector_store %arg6[%c32, %c0_12], %12 {strides = array<i32>} : memref<64x288xbf16, #tpu.memory_space<vmem>>, vector<16x288xbf16>,
    %c0_13 = arith.constant 0 : index
    %c0_14 = arith.constant 0 : index
    %c19 = arith.constant 19 : index
    %14 = vector.load %arg0[%c0_13, %c0_14, %c19] : memref<2x16x326xbf16, #tpu.memory_space<vmem>>, vector<1x16x288xbf16>
    %15 = vector.shape_cast %14 : vector<1x16x288xbf16> to vector<16x288xbf16>
    %c48 = arith.constant 48 : index
    %c0_15 = arith.constant 0 : index
    %16 = vector.load %arg6[%c48, %c0_15] : memref<64x288xbf16, #tpu.memory_space<vmem>>, vector<16x288xbf16>
    tpu.vector_store %arg6[%c48, %c0_15], %15 {strides = array<i32>} : memref<64x288xbf16, #tpu.memory_space<vmem>>, vector<16x288xbf16>,
    %c0_16 = arith.constant 0 : index
    %c0_17 = arith.constant 0 : index
    %c0_18 = arith.constant 0 : index
    %17 = vector.load %arg1[%c0_16, %c0_17, %c0_18] : memref<4x8x64xbf16, #tpu.memory_space<vmem>>, vector<1x8x64xbf16>
    %18 = vector.shape_cast %17 : vector<1x8x64xbf16> to vector<8x64xbf16>
    %c0_19 = arith.constant 0 : index
    %c0_20 = arith.constant 0 : index
    %19 = vector.load %arg6[%c0_19, %c0_20] : memref<64x288xbf16, #tpu.memory_space<vmem>>, vector<64x288xbf16>
    %cst_21 = arith.constant dense<0.000000e+00> : vector<8x288xf32>
    %20 = tpu.matmul %18, %19, %cst_21 {dimension_numbers = #tpu.dot_dimension_numbers<[1], [0], [0], [1], [0, 0, 1, 1], [], []>} : vector<8x64xbf16>, vector<64x288xbf16>, vector<8x288xf32> -> vector<8x288xf32>
    %21 = arith.mulf %20, %2 : vector<8x288xf32>
    %cst_22 = arith.constant dense<0.000000e+00> : vector<8xf32>
    %22 = vector.multi_reduction <add>, %21, %cst_22 [1] : vector<8x288xf32> to vector<8xf32>
    %23 = vector.shape_cast %22 : vector<8xf32> to vector<8x1xf32>
    %24 = arith.addf %3, %23 : vector<8x1xf32>
    %25 = arith.mulf %21, %21 : vector<8x288xf32>
    %cst_23 = arith.constant dense<0.000000e+00> : vector<8xf32>
    %26 = vector.multi_reduction <add>, %25, %cst_23 [1] : vector<8x288xf32> to vector<8xf32>
    %27 = vector.shape_cast %26 : vector<8xf32> to vector<8x1xf32>
    %28 = arith.addf %4, %27 : vector<8x1xf32>
    %c0_24 = arith.constant 0 : index
    %c0_25 = arith.constant 0 : index
    %c0_26 = arith.constant 0 : index
    %c0_27 = arith.constant 0 : index
    %29 = vector.load %arg5[%c0_24, %c0_25, %c0_26, %c0_27] : memref<2x4x8x288xf32, #tpu.memory_space<vmem>>, vector<1x1x8x288xf32>
    %30 = vector.shape_cast %29 : vector<1x1x8x288xf32> to vector<8x288xf32>
    %31 = vector.shape_cast %20 : vector<8x288xf32> to vector<1x1x8x288xf32>
    tpu.vector_store %arg5[%c0_24, %c0_25, %c0_26, %c0_27], %31 {strides = array<i32>} : memref<2x4x8x288xf32, #tpu.memory_space<vmem>>, vector<1x1x8x288xf32>,
    %c0_28 = arith.constant 0 : index
    %c0_29 = arith.constant 0 : index
    %c1_30 = arith.constant 1 : index
    %32 = vector.load %arg0[%c0_28, %c0_29, %c1_30] : memref<2x16x326xbf16, #tpu.memory_space<vmem>>, vector<1x16x288xbf16>
    %33 = vector.shape_cast %32 : vector<1x16x288xbf16> to vector<16x288xbf16>
    %c0_31 = arith.constant 0 : index
    %c0_32 = arith.constant 0 : index
    %34 = vector.load %arg6[%c0_31, %c0_32] : memref<64x288xbf16, #tpu.memory_space<vmem>>, vector<16x288xbf16>
    tpu.vector_store %arg6[%c0_31, %c0_32], %33 {strides = array<i32>} : memref<64x288xbf16, #tpu.memory_space<vmem>>, vector<16x288xbf16>,
    %c0_33 = arith.constant 0 : index
    %c0_34 = arith.constant 0 : index
    %c2 = arith.constant 2 : index
    %35 = vector.load %arg0[%c0_33, %c0_34, %c2] : memref<2x16x326xbf16, #tpu.memory_space<vmem>>, vector<1x16x288xbf16>
    %36 = vector.shape_cast %35 : vector<1x16x288xbf16> to vector<16x288xbf16>
    %c16_35 = arith.constant 16 : index
    %c0_36 = arith.constant 0 : index
    %37 = vector.load %arg6[%c16_35, %c0_36] : memref<64x288xbf16, #tpu.memory_space<vmem>>, vector<16x288xbf16>
    tpu.vector_store %arg6[%c16_35, %c0_36], %36 {strides = array<i32>} : memref<64x288xbf16, #tpu.memory_space<vmem>>, vector<16x288xbf16>,
    %c0_37 = arith.constant 0 : index
    %c0_38 = arith.constant 0 : index
    %c19_39 = arith.constant 19 : index
    %38 = vector.load %arg0[%c0_37, %c0_38, %c19_39] : memref<2x16x326xbf16, #tpu.memory_space<vmem>>, vector<1x16x288xbf16>
    %39 = vector.shape_cast %38 : vector<1x16x288xbf16> to vector<16x288xbf16>
    %c32_40 = arith.constant 32 : index
    %c0_41 = arith.constant 0 : index
    %40 = vector.load %arg6[%c32_40, %c0_41] : memref<64x288xbf16, #tpu.memory_space<vmem>>, vector<16x288xbf16>
    tpu.vector_store %arg6[%c32_40, %c0_41], %39 {strides = array<i32>} : memref<64x288xbf16, #tpu.memory_space<vmem>>, vector<16x288xbf16>,
    %c0_42 = arith.constant 0 : index
    %c0_43 = arith.constant 0 : index
    %c20 = arith.constant 20 : index
    %41 = vector.load %arg0[%c0_42, %c0_43, %c20] : memref<2x16x326xbf16, #tpu.memory_space<vmem>>, vector<1x16x288xbf16>
    %42 = vector.shape_cast %41 : vector<1x16x288xbf16> to vector<16x288xbf16>
    %c48_44 = arith.constant 48 : index
    %c0_45 = arith.constant 0 : index
    %43 = vector.load %arg6[%c48_44, %c0_45] : memref<64x288xbf16, #tpu.memory_space<vmem>>, vector<16x288xbf16>
    tpu.vector_store %arg6[%c48_44, %c0_45], %42 {strides = array<i32>} : memref<64x288xbf16, #tpu.memory_space<vmem>>, vector<16x288xbf16>,
    %c1_46 = arith.constant 1 : index
    %c0_47 = arith.constant 0 : index
    %c0_48 = arith.constant 0 : index
    %44 = vector.load %arg1[%c1_46, %c0_47, %c0_48] : memref<4x8x64xbf16, #tpu.memory_space<vmem>>, vector<1x8x64xbf16>
    %45 = vector.shape_cast %44 : vector<1x8x64xbf16> to vector<8x64xbf16>
    %c0_49 = arith.constant 0 : index
    %c0_50 = arith.constant 0 : index
    %46 = vector.load %arg6[%c0_49, %c0_50] : memref<64x288xbf16, #tpu.memory_space<vmem>>, vector<64x288xbf16>
    %cst_51 = arith.constant dense<0.000000e+00> : vector<8x288xf32>
    %47 = tpu.matmul %45, %46, %cst_51 {dimension_numbers = #tpu.dot_dimension_numbers<[1], [0], [0], [1], [0, 0, 1, 1], [], []>} : vector<8x64xbf16>, vector<64x288xbf16>, vector<8x288xf32> -> vector<8x288xf32>
    %48 = arith.mulf %47, %2 : vector<8x288xf32>
    %cst_52 = arith.constant dense<0.000000e+00> : vector<8xf32>
    %49 = vector.multi_reduction <add>, %48, %cst_52 [1] : vector<8x288xf32> to vector<8xf32>
    %50 = vector.shape_cast %49 : vector<8xf32> to vector<8x1xf32>
    %51 = arith.addf %24, %50 : vector<8x1xf32>
    %52 = arith.mulf %48, %48 : vector<8x288xf32>
    %cst_53 = arith.constant dense<0.000000e+00> : vector<8xf32>
    %53 = vector.multi_reduction <add>, %52, %cst_53 [1] : vector<8x288xf32> to vector<8xf32>
    %54 = vector.shape_cast %53 : vector<8xf32> to vector<8x1xf32>
    %55 = arith.addf %28, %54 : vector<8x1xf32>
    %c0_54 = arith.constant 0 : index
    %c1_55 = arith.constant 1 : index
    %c0_56 = arith.constant 0 : index
    %c0_57 = arith.constant 0 : index
    %56 = vector.load %arg5[%c0_54, %c1_55, %c0_56, %c0_57] : memref<2x4x8x288xf32, #tpu.memory_space<vmem>>, vector<1x1x8x288xf32>
    %57 = vector.shape_cast %56 : vector<1x1x8x288xf32> to vector<8x288xf32>
    %58 = vector.shape_cast %47 : vector<8x288xf32> to vector<1x1x8x288xf32>
    tpu.vector_store %arg5[%c0_54, %c1_55, %c0_56, %c0_57], %58 {strides = array<i32>} : memref<2x4x8x288xf32, #tpu.memory_space<vmem>>, vector<1x1x8x288xf32>,
    %c0_58 = arith.constant 0 : index
    %c0_59 = arith.constant 0 : index
    %c18_60 = arith.constant 18 : index
    %59 = vector.load %arg0[%c0_58, %c0_59, %c18_60] : memref<2x16x326xbf16, #tpu.memory_space<vmem>>, vector<1x16x288xbf16>
    %60 = vector.shape_cast %59 : vector<1x16x288xbf16> to vector<16x288xbf16>
    %c0_61 = arith.constant 0 : index
    %c0_62 = arith.constant 0 : index
    %61 = vector.load %arg6[%c0_61, %c0_62] : memref<64x288xbf16, #tpu.memory_space<vmem>>, vector<16x288xbf16>
    tpu.vector_store %arg6[%c0_61, %c0_62], %60 {strides = array<i32>} : memref<64x288xbf16, #tpu.memory_space<vmem>>, vector<16x288xbf16>,
    %c0_63 = arith.constant 0 : index
    %c0_64 = arith.constant 0 : index
    %c19_65 = arith.constant 19 : index
    %62 = vector.load %arg0[%c0_63, %c0_64, %c19_65] : memref<2x16x326xbf16, #tpu.memory_space<vmem>>, vector<1x16x288xbf16>
    %63 = vector.shape_cast %62 : vector<1x16x288xbf16> to vector<16x288xbf16>
    %c16_66 = arith.constant 16 : index
    %c0_67 = arith.constant 0 : index
    %64 = vector.load %arg6[%c16_66, %c0_67] : memref<64x288xbf16, #tpu.memory_space<vmem>>, vector<16x288xbf16>
    tpu.vector_store %arg6[%c16_66, %c0_67], %63 {strides = array<i32>} : memref<64x288xbf16, #tpu.memory_space<vmem>>, vector<16x288xbf16>,
    %c0_68 = arith.constant 0 : index
    %c0_69 = arith.constant 0 : index
    %c36 = arith.constant 36 : index
    %65 = vector.load %arg0[%c0_68, %c0_69, %c36] : memref<2x16x326xbf16, #tpu.memory_space<vmem>>, vector<1x16x288xbf16>
    %66 = vector.shape_cast %65 : vector<1x16x288xbf16> to vector<16x288xbf16>
    %c32_70 = arith.constant 32 : index
    %c0_71 = arith.constant 0 : index
    %67 = vector.load %arg6[%c32_70, %c0_71] : memref<64x288xbf16, #tpu.memory_space<vmem>>, vector<16x288xbf16>
    tpu.vector_store %arg6[%c32_70, %c0_71], %66 {strides = array<i32>} : memref<64x288xbf16, #tpu.memory_space<vmem>>, vector<16x288xbf16>,
    %c0_72 = arith.constant 0 : index
    %c0_73 = arith.constant 0 : index
    %c37 = arith.constant 37 : index
    %68 = vector.load %arg0[%c0_72, %c0_73, %c37] : memref<2x16x326xbf16, #tpu.memory_space<vmem>>, vector<1x16x288xbf16>
    %69 = vector.shape_cast %68 : vector<1x16x288xbf16> to vector<16x288xbf16>
    %c48_74 = arith.constant 48 : index
    %c0_75 = arith.constant 0 : index
    %70 = vector.load %arg6[%c48_74, %c0_75] : memref<64x288xbf16, #tpu.memory_space<vmem>>, vector<16x288xbf16>
    tpu.vector_store %arg6[%c48_74, %c0_75], %69 {strides = array<i32>} : memref<64x288xbf16, #tpu.memory_space<vmem>>, vector<16x288xbf16>,
    %c2_76 = arith.constant 2 : index
    %c0_77 = arith.constant 0 : index
    %c0_78 = arith.constant 0 : index
    %71 = vector.load %arg1[%c2_76, %c0_77, %c0_78] : memref<4x8x64xbf16, #tpu.memory_space<vmem>>, vector<1x8x64xbf16>
    %72 = vector.shape_cast %71 : vector<1x8x64xbf16> to vector<8x64xbf16>
    %c0_79 = arith.constant 0 : index
    %c0_80 = arith.constant 0 : index
    %73 = vector.load %arg6[%c0_79, %c0_80] : memref<64x288xbf16, #tpu.memory_space<vmem>>, vector<64x288xbf16>
    %cst_81 = arith.constant dense<0.000000e+00> : vector<8x288xf32>
    %74 = tpu.matmul %72, %73, %cst_81 {dimension_numbers = #tpu.dot_dimension_numbers<[1], [0], [0], [1], [0, 0, 1, 1], [], []>} : vector<8x64xbf16>, vector<64x288xbf16>, vector<8x288xf32> -> vector<8x288xf32>
    %75 = arith.mulf %74, %2 : vector<8x288xf32>
    %cst_82 = arith.constant dense<0.000000e+00> : vector<8xf32>
    %76 = vector.multi_reduction <add>, %75, %cst_82 [1] : vector<8x288xf32> to vector<8xf32>
    %77 = vector.shape_cast %76 : vector<8xf32> to vector<8x1xf32>
    %78 = arith.addf %51, %77 : vector<8x1xf32>
    %79 = arith.mulf %75, %75 : vector<8x288xf32>
    %cst_83 = arith.constant dense<0.000000e+00> : vector<8xf32>
    %80 = vector.multi_reduction <add>, %79, %cst_83 [1] : vector<8x288xf32> to vector<8xf32>
    %81 = vector.shape_cast %80 : vector<8xf32> to vector<8x1xf32>
    %82 = arith.addf %55, %81 : vector<8x1xf32>
    %c0_84 = arith.constant 0 : index
    %c2_85 = arith.constant 2 : index
    %c0_86 = arith.constant 0 : index
    %c0_87 = arith.constant 0 : index
    %83 = vector.load %arg5[%c0_84, %c2_85, %c0_86, %c0_87] : memref<2x4x8x288xf32, #tpu.memory_space<vmem>>, vector<1x1x8x288xf32>
    %84 = vector.shape_cast %83 : vector<1x1x8x288xf32> to vector<8x288xf32>
    %85 = vector.shape_cast %74 : vector<8x288xf32> to vector<1x1x8x288xf32>
    tpu.vector_store %arg5[%c0_84, %c2_85, %c0_86, %c0_87], %85 {strides = array<i32>} : memref<2x4x8x288xf32, #tpu.memory_space<vmem>>, vector<1x1x8x288xf32>,
    %c0_88 = arith.constant 0 : index
    %c0_89 = arith.constant 0 : index
    %c19_90 = arith.constant 19 : index
    %86 = vector.load %arg0[%c0_88, %c0_89, %c19_90] : memref<2x16x326xbf16, #tpu.memory_space<vmem>>, vector<1x16x288xbf16>
    %87 = vector.shape_cast %86 : vector<1x16x288xbf16> to vector<16x288xbf16>
    %c0_91 = arith.constant 0 : index
    %c0_92 = arith.constant 0 : index
    %88 = vector.load %arg6[%c0_91, %c0_92] : memref<64x288xbf16, #tpu.memory_space<vmem>>, vector<16x288xbf16>
    tpu.vector_store %arg6[%c0_91, %c0_92], %87 {strides = array<i32>} : memref<64x288xbf16, #tpu.memory_space<vmem>>, vector<16x288xbf16>,
    %c0_93 = arith.constant 0 : index
    %c0_94 = arith.constant 0 : index
    %c20_95 = arith.constant 20 : index
    %89 = vector.load %arg0[%c0_93, %c0_94, %c20_95] : memref<2x16x326xbf16, #tpu.memory_space<vmem>>, vector<1x16x288xbf16>
    %90 = vector.shape_cast %89 : vector<1x16x288xbf16> to vector<16x288xbf16>
    %c16_96 = arith.constant 16 : index
    %c0_97 = arith.constant 0 : index
    %91 = vector.load %arg6[%c16_96, %c0_97] : memref<64x288xbf16, #tpu.memory_space<vmem>>, vector<16x288xbf16>
    tpu.vector_store %arg6[%c16_96, %c0_97], %90 {strides = array<i32>} : memref<64x288xbf16, #tpu.memory_space<vmem>>, vector<16x288xbf16>,
    %c0_98 = arith.constant 0 : index
    %c0_99 = arith.constant 0 : index
    %c37_100 = arith.constant 37 : index
    %92 = vector.load %arg0[%c0_98, %c0_99, %c37_100] : memref<2x16x326xbf16, #tpu.memory_space<vmem>>, vector<1x16x288xbf16>
    %93 = vector.shape_cast %92 : vector<1x16x288xbf16> to vector<16x288xbf16>
    %c32_101 = arith.constant 32 : index
    %c0_102 = arith.constant 0 : index
    %94 = vector.load %arg6[%c32_101, %c0_102] : memref<64x288xbf16, #tpu.memory_space<vmem>>, vector<16x288xbf16>
    tpu.vector_store %arg6[%c32_101, %c0_102], %93 {strides = array<i32>} : memref<64x288xbf16, #tpu.memory_space<vmem>>, vector<16x288xbf16>,
    %c0_103 = arith.constant 0 : index
    %c0_104 = arith.constant 0 : index
    %c38 = arith.constant 38 : index
    %95 = vector.load %arg0[%c0_103, %c0_104, %c38] : memref<2x16x326xbf16, #tpu.memory_space<vmem>>, vector<1x16x288xbf16>
    %96 = vector.shape_cast %95 : vector<1x16x288xbf16> to vector<16x288xbf16>
    %c48_105 = arith.constant 48 : index
    %c0_106 = arith.constant 0 : index
    %97 = vector.load %arg6[%c48_105, %c0_106] : memref<64x288xbf16, #tpu.memory_space<vmem>>, vector<16x288xbf16>
    tpu.vector_store %arg6[%c48_105, %c0_106], %96 {strides = array<i32>} : memref<64x288xbf16, #tpu.memory_space<vmem>>, vector<16x288xbf16>,
    %c3 = arith.constant 3 : index
    %c0_107 = arith.constant 0 : index
    %c0_108 = arith.constant 0 : index
    %98 = vector.load %arg1[%c3, %c0_107, %c0_108] : memref<4x8x64xbf16, #tpu.memory_space<vmem>>, vector<1x8x64xbf16>
    %99 = vector.shape_cast %98 : vector<1x8x64xbf16> to vector<8x64xbf16>
    %c0_109 = arith.constant 0 : index
    %c0_110 = arith.constant 0 : index
    %100 = vector.load %arg6[%c0_109, %c0_110] : memref<64x288xbf16, #tpu.memory_space<vmem>>, vector<64x288xbf16>
    %cst_111 = arith.constant dense<0.000000e+00> : vector<8x288xf32>
    %101 = tpu.matmul %99, %100, %cst_111 {dimension_numbers = #tpu.dot_dimension_numbers<[1], [0], [0], [1], [0, 0, 1, 1], [], []>} : vector<8x64xbf16>, vector<64x288xbf16>, vector<8x288xf32> -> vector<8x288xf32>
    %102 = arith.mulf %101, %2 : vector<8x288xf32>
    %cst_112 = arith.constant dense<0.000000e+00> : vector<8xf32>
    %103 = vector.multi_reduction <add>, %102, %cst_112 [1] : vector<8x288xf32> to vector<8xf32>
    %104 = vector.shape_cast %103 : vector<8xf32> to vector<8x1xf32>
    %105 = arith.addf %78, %104 : vector<8x1xf32>
    %106 = arith.mulf %102, %102 : vector<8x288xf32>
    %cst_113 = arith.constant dense<0.000000e+00> : vector<8xf32>
    %107 = vector.multi_reduction <add>, %106, %cst_113 [1] : vector<8x288xf32> to vector<8xf32>
    %108 = vector.shape_cast %107 : vector<8xf32> to vector<8x1xf32>
    %109 = arith.addf %82, %108 : vector<8x1xf32>
    %c0_114 = arith.constant 0 : index
    %c3_115 = arith.constant 3 : index
    %c0_116 = arith.constant 0 : index
    %c0_117 = arith.constant 0 : index
    %110 = vector.load %arg5[%c0_114, %c3_115, %c0_116, %c0_117] : memref<2x4x8x288xf32, #tpu.memory_space<vmem>>, vector<1x1x8x288xf32>
    %111 = vector.shape_cast %110 : vector<1x1x8x288xf32> to vector<8x288xf32>
    %112 = vector.shape_cast %101 : vector<8x288xf32> to vector<1x1x8x288xf32>
    tpu.vector_store %arg5[%c0_114, %c3_115, %c0_116, %c0_117], %112 {strides = array<i32>} : memref<2x4x8x288xf32, #tpu.memory_space<vmem>>, vector<1x1x8x288xf32>,
    %c1_118 = arith.constant 1 : index
    %c0_119 = arith.constant 0 : index
    %c0_120 = arith.constant 0 : index
    %113 = vector.load %arg0[%c1_118, %c0_119, %c0_120] : memref<2x16x326xbf16, #tpu.memory_space<vmem>>, vector<1x16x288xbf16>
    %114 = vector.shape_cast %113 : vector<1x16x288xbf16> to vector<16x288xbf16>
    %c0_121 = arith.constant 0 : index
    %c0_122 = arith.constant 0 : index
    %115 = vector.load %arg6[%c0_121, %c0_122] : memref<64x288xbf16, #tpu.memory_space<vmem>>, vector<16x288xbf16>
    tpu.vector_store %arg6[%c0_121, %c0_122], %114 {strides = array<i32>} : memref<64x288xbf16, #tpu.memory_space<vmem>>, vector<16x288xbf16>,
    %c1_123 = arith.constant 1 : index
    %c0_124 = arith.constant 0 : index
    %c1_125 = arith.constant 1 : index
    %116 = vector.load %arg0[%c1_123, %c0_124, %c1_125] : memref<2x16x326xbf16, #tpu.memory_space<vmem>>, vector<1x16x288xbf16>
    %117 = vector.shape_cast %116 : vector<1x16x288xbf16> to vector<16x288xbf16>
    %c16_126 = arith.constant 16 : index
    %c0_127 = arith.constant 0 : index
    %118 = vector.load %arg6[%c16_126, %c0_127] : memref<64x288xbf16, #tpu.memory_space<vmem>>, vector<16x288xbf16>
    tpu.vector_store %arg6[%c16_126, %c0_127], %117 {strides = array<i32>} : memref<64x288xbf16, #tpu.memory_space<vmem>>, vector<16x288xbf16>,
    %c1_128 = arith.constant 1 : index
    %c0_129 = arith.constant 0 : index
    %c18_130 = arith.constant 18 : index
    %119 = vector.load %arg0[%c1_128, %c0_129, %c18_130] : memref<2x16x326xbf16, #tpu.memory_space<vmem>>, vector<1x16x288xbf16>
    %120 = vector.shape_cast %119 : vector<1x16x288xbf16> to vector<16x288xbf16>
    %c32_131 = arith.constant 32 : index
    %c0_132 = arith.constant 0 : index
    %121 = vector.load %arg6[%c32_131, %c0_132] : memref<64x288xbf16, #tpu.memory_space<vmem>>, vector<16x288xbf16>
    tpu.vector_store %arg6[%c32_131, %c0_132], %120 {strides = array<i32>} : memref<64x288xbf16, #tpu.memory_space<vmem>>, vector<16x288xbf16>,
    %c1_133 = arith.constant 1 : index
    %c0_134 = arith.constant 0 : index
    %c19_135 = arith.constant 19 : index
    %122 = vector.load %arg0[%c1_133, %c0_134, %c19_135] : memref<2x16x326xbf16, #tpu.memory_space<vmem>>, vector<1x16x288xbf16>
    %123 = vector.shape_cast %122 : vector<1x16x288xbf16> to vector<16x288xbf16>
    %c48_136 = arith.constant 48 : index
    %c0_137 = arith.constant 0 : index
    %124 = vector.load %arg6[%c48_136, %c0_137] : memref<64x288xbf16, #tpu.memory_space<vmem>>, vector<16x288xbf16>
    tpu.vector_store %arg6[%c48_136, %c0_137], %123 {strides = array<i32>} : memref<64x288xbf16, #tpu.memory_space<vmem>>, vector<16x288xbf16>,
    %c0_138 = arith.constant 0 : index
    %c0_139 = arith.constant 0 : index
    %c0_140 = arith.constant 0 : index
    %125 = vector.load %arg1[%c0_138, %c0_139, %c0_140] : memref<4x8x64xbf16, #tpu.memory_space<vmem>>, vector<1x8x64xbf16>
    %126 = vector.shape_cast %125 : vector<1x8x64xbf16> to vector<8x64xbf16>
    %c0_141 = arith.constant 0 : index
    %c0_142 = arith.constant 0 : index
    %127 = vector.load %arg6[%c0_141, %c0_142] : memref<64x288xbf16, #tpu.memory_space<vmem>>, vector<64x288xbf16>
    %cst_143 = arith.constant dense<0.000000e+00> : vector<8x288xf32>
    %128 = tpu.matmul %126, %127, %cst_143 {dimension_numbers = #tpu.dot_dimension_numbers<[1], [0], [0], [1], [0, 0, 1, 1], [], []>} : vector<8x64xbf16>, vector<64x288xbf16>, vector<8x288xf32> -> vector<8x288xf32>
    %129 = arith.mulf %128, %2 : vector<8x288xf32>
    %cst_144 = arith.constant dense<0.000000e+00> : vector<8xf32>
    %130 = vector.multi_reduction <add>, %129, %cst_144 [1] : vector<8x288xf32> to vector<8xf32>
    %131 = vector.shape_cast %130 : vector<8xf32> to vector<8x1xf32>
    %132 = arith.addf %105, %131 : vector<8x1xf32>
    %133 = arith.mulf %129, %129 : vector<8x288xf32>
    %cst_145 = arith.constant dense<0.000000e+00> : vector<8xf32>
    %134 = vector.multi_reduction <add>, %133, %cst_145 [1] : vector<8x288xf32> to vector<8xf32>
    %135 = vector.shape_cast %134 : vector<8xf32> to vector<8x1xf32>
    %136 = arith.addf %109, %135 : vector<8x1xf32>
    %c1_146 = arith.constant 1 : index
    %c0_147 = arith.constant 0 : index
    %c0_148 = arith.constant 0 : index
    %c0_149 = arith.constant 0 : index
    %137 = vector.load %arg5[%c1_146, %c0_147, %c0_148, %c0_149] : memref<2x4x8x288xf32, #tpu.memory_space<vmem>>, vector<1x1x8x288xf32>
    %138 = vector.shape_cast %137 : vector<1x1x8x288xf32> to vector<8x288xf32>
    %139 = vector.shape_cast %128 : vector<8x288xf32> to vector<1x1x8x288xf32>
    tpu.vector_store %arg5[%c1_146, %c0_147, %c0_148, %c0_149], %139 {strides = array<i32>} : memref<2x4x8x288xf32, #tpu.memory_space<vmem>>, vector<1x1x8x288xf32>,
    %c1_150 = arith.constant 1 : index
    %c0_151 = arith.constant 0 : index
    %c1_152 = arith.constant 1 : index
    %140 = vector.load %arg0[%c1_150, %c0_151, %c1_152] : memref<2x16x326xbf16, #tpu.memory_space<vmem>>, vector<1x16x288xbf16>
    %141 = vector.shape_cast %140 : vector<1x16x288xbf16> to vector<16x288xbf16>
    %c0_153 = arith.constant 0 : index
    %c0_154 = arith.constant 0 : index
    %142 = vector.load %arg6[%c0_153, %c0_154] : memref<64x288xbf16, #tpu.memory_space<vmem>>, vector<16x288xbf16>
    tpu.vector_store %arg6[%c0_153, %c0_154], %141 {strides = array<i32>} : memref<64x288xbf16, #tpu.memory_space<vmem>>, vector<16x288xbf16>,
    %c1_155 = arith.constant 1 : index
    %c0_156 = arith.constant 0 : index
    %c2_157 = arith.constant 2 : index
    %143 = vector.load %arg0[%c1_155, %c0_156, %c2_157] : memref<2x16x326xbf16, #tpu.memory_space<vmem>>, vector<1x16x288xbf16>
    %144 = vector.shape_cast %143 : vector<1x16x288xbf16> to vector<16x288xbf16>
    %c16_158 = arith.constant 16 : index
    %c0_159 = arith.constant 0 : index
    %145 = vector.load %arg6[%c16_158, %c0_159] : memref<64x288xbf16, #tpu.memory_space<vmem>>, vector<16x288xbf16>
    tpu.vector_store %arg6[%c16_158, %c0_159], %144 {strides = array<i32>} : memref<64x288xbf16, #tpu.memory_space<vmem>>, vector<16x288xbf16>,
    %c1_160 = arith.constant 1 : index
    %c0_161 = arith.constant 0 : index
    %c19_162 = arith.constant 19 : index
    %146 = vector.load %arg0[%c1_160, %c0_161, %c19_162] : memref<2x16x326xbf16, #tpu.memory_space<vmem>>, vector<1x16x288xbf16>
    %147 = vector.shape_cast %146 : vector<1x16x288xbf16> to vector<16x288xbf16>
    %c32_163 = arith.constant 32 : index
    %c0_164 = arith.constant 0 : index
    %148 = vector.load %arg6[%c32_163, %c0_164] : memref<64x288xbf16, #tpu.memory_space<vmem>>, vector<16x288xbf16>
    tpu.vector_store %arg6[%c32_163, %c0_164], %147 {strides = array<i32>} : memref<64x288xbf16, #tpu.memory_space<vmem>>, vector<16x288xbf16>,
    %c1_165 = arith.constant 1 : index
    %c0_166 = arith.constant 0 : index
    %c20_167 = arith.constant 20 : index
    %149 = vector.load %arg0[%c1_165, %c0_166, %c20_167] : memref<2x16x326xbf16, #tpu.memory_space<vmem>>, vector<1x16x288xbf16>
    %150 = vector.shape_cast %149 : vector<1x16x288xbf16> to vector<16x288xbf16>
    %c48_168 = arith.constant 48 : index
    %c0_169 = arith.constant 0 : index
    %151 = vector.load %arg6[%c48_168, %c0_169] : memref<64x288xbf16, #tpu.memory_space<vmem>>, vector<16x288xbf16>
    tpu.vector_store %arg6[%c48_168, %c0_169], %150 {strides = array<i32>} : memref<64x288xbf16, #tpu.memory_space<vmem>>, vector<16x288xbf16>,
    %c1_170 = arith.constant 1 : index
    %c0_171 = arith.constant 0 : index
    %c0_172 = arith.constant 0 : index
    %152 = vector.load %arg1[%c1_170, %c0_171, %c0_172] : memref<4x8x64xbf16, #tpu.memory_space<vmem>>, vector<1x8x64xbf16>
    %153 = vector.shape_cast %152 : vector<1x8x64xbf16> to vector<8x64xbf16>
    %c0_173 = arith.constant 0 : index
    %c0_174 = arith.constant 0 : index
    %154 = vector.load %arg6[%c0_173, %c0_174] : memref<64x288xbf16, #tpu.memory_space<vmem>>, vector<64x288xbf16>
    %cst_175 = arith.constant dense<0.000000e+00> : vector<8x288xf32>
    %155 = tpu.matmul %153, %154, %cst_175 {dimension_numbers = #tpu.dot_dimension_numbers<[1], [0], [0], [1], [0, 0, 1, 1], [], []>} : vector<8x64xbf16>, vector<64x288xbf16>, vector<8x288xf32> -> vector<8x288xf32>
    %156 = arith.mulf %155, %2 : vector<8x288xf32>
    %cst_176 = arith.constant dense<0.000000e+00> : vector<8xf32>
    %157 = vector.multi_reduction <add>, %156, %cst_176 [1] : vector<8x288xf32> to vector<8xf32>
    %158 = vector.shape_cast %157 : vector<8xf32> to vector<8x1xf32>
    %159 = arith.addf %132, %158 : vector<8x1xf32>
    %160 = arith.mulf %156, %156 : vector<8x288xf32>
    %cst_177 = arith.constant dense<0.000000e+00> : vector<8xf32>
    %161 = vector.multi_reduction <add>, %160, %cst_177 [1] : vector<8x288xf32> to vector<8xf32>
    %162 = vector.shape_cast %161 : vector<8xf32> to vector<8x1xf32>
    %163 = arith.addf %136, %162 : vector<8x1xf32>
    %c1_178 = arith.constant 1 : index
    %c1_179 = arith.constant 1 : index
    %c0_180 = arith.constant 0 : index
    %c0_181 = arith.constant 0 : index
    %164 = vector.load %arg5[%c1_178, %c1_179, %c0_180, %c0_181] : memref<2x4x8x288xf32, #tpu.memory_space<vmem>>, vector<1x1x8x288xf32>
    %165 = vector.shape_cast %164 : vector<1x1x8x288xf32> to vector<8x288xf32>
    %166 = vector.shape_cast %155 : vector<8x288xf32> to vector<1x1x8x288xf32>
    tpu.vector_store %arg5[%c1_178, %c1_179, %c0_180, %c0_181], %166 {strides = array<i32>} : memref<2x4x8x288xf32, #tpu.memory_space<vmem>>, vector<1x1x8x288xf32>,
    %c1_182 = arith.constant 1 : index
    %c0_183 = arith.constant 0 : index
    %c18_184 = arith.constant 18 : index
    %167 = vector.load %arg0[%c1_182, %c0_183, %c18_184] : memref<2x16x326xbf16, #tpu.memory_space<vmem>>, vector<1x16x288xbf16>
    %168 = vector.shape_cast %167 : vector<1x16x288xbf16> to vector<16x288xbf16>
    %c0_185 = arith.constant 0 : index
    %c0_186 = arith.constant 0 : index
    %169 = vector.load %arg6[%c0_185, %c0_186] : memref<64x288xbf16, #tpu.memory_space<vmem>>, vector<16x288xbf16>
    tpu.vector_store %arg6[%c0_185, %c0_186], %168 {strides = array<i32>} : memref<64x288xbf16, #tpu.memory_space<vmem>>, vector<16x288xbf16>,
    %c1_187 = arith.constant 1 : index
    %c0_188 = arith.constant 0 : index
    %c19_189 = arith.constant 19 : index
    %170 = vector.load %arg0[%c1_187, %c0_188, %c19_189] : memref<2x16x326xbf16, #tpu.memory_space<vmem>>, vector<1x16x288xbf16>
    %171 = vector.shape_cast %170 : vector<1x16x288xbf16> to vector<16x288xbf16>
    %c16_190 = arith.constant 16 : index
    %c0_191 = arith.constant 0 : index
    %172 = vector.load %arg6[%c16_190, %c0_191] : memref<64x288xbf16, #tpu.memory_space<vmem>>, vector<16x288xbf16>
    tpu.vector_store %arg6[%c16_190, %c0_191], %171 {strides = array<i32>} : memref<64x288xbf16, #tpu.memory_space<vmem>>, vector<16x288xbf16>,
    %c1_192 = arith.constant 1 : index
    %c0_193 = arith.constant 0 : index
    %c36_194 = arith.constant 36 : index
    %173 = vector.load %arg0[%c1_192, %c0_193, %c36_194] : memref<2x16x326xbf16, #tpu.memory_space<vmem>>, vector<1x16x288xbf16>
    %174 = vector.shape_cast %173 : vector<1x16x288xbf16> to vector<16x288xbf16>
    %c32_195 = arith.constant 32 : index
    %c0_196 = arith.constant 0 : index
    %175 = vector.load %arg6[%c32_195, %c0_196] : memref<64x288xbf16, #tpu.memory_space<vmem>>, vector<16x288xbf16>
    tpu.vector_store %arg6[%c32_195, %c0_196], %174 {strides = array<i32>} : memref<64x288xbf16, #tpu.memory_space<vmem>>, vector<16x288xbf16>,
    %c1_197 = arith.constant 1 : index
    %c0_198 = arith.constant 0 : index
    %c37_199 = arith.constant 37 : index
    %176 = vector.load %arg0[%c1_197, %c0_198, %c37_199] : memref<2x16x326xbf16, #tpu.memory_space<vmem>>, vector<1x16x288xbf16>
    %177 = vector.shape_cast %176 : vector<1x16x288xbf16> to vector<16x288xbf16>
    %c48_200 = arith.constant 48 : index
    %c0_201 = arith.constant 0 : index
    %178 = vector.load %arg6[%c48_200, %c0_201] : memref<64x288xbf16, #tpu.memory_space<vmem>>, vector<16x288xbf16>
    tpu.vector_store %arg6[%c48_200, %c0_201], %177 {strides = array<i32>} : memref<64x288xbf16, #tpu.memory_space<vmem>>, vector<16x288xbf16>,
    %c2_202 = arith.constant 2 : index
    %c0_203 = arith.constant 0 : index
    %c0_204 = arith.constant 0 : index
    %179 = vector.load %arg1[%c2_202, %c0_203, %c0_204] : memref<4x8x64xbf16, #tpu.memory_space<vmem>>, vector<1x8x64xbf16>
    %180 = vector.shape_cast %179 : vector<1x8x64xbf16> to vector<8x64xbf16>
    %c0_205 = arith.constant 0 : index
    %c0_206 = arith.constant 0 : index
    %181 = vector.load %arg6[%c0_205, %c0_206] : memref<64x288xbf16, #tpu.memory_space<vmem>>, vector<64x288xbf16>
    %cst_207 = arith.constant dense<0.000000e+00> : vector<8x288xf32>
    %182 = tpu.matmul %180, %181, %cst_207 {dimension_numbers = #tpu.dot_dimension_numbers<[1], [0], [0], [1], [0, 0, 1, 1], [], []>} : vector<8x64xbf16>, vector<64x288xbf16>, vector<8x288xf32> -> vector<8x288xf32>
    %183 = arith.mulf %182, %2 : vector<8x288xf32>
    %cst_208 = arith.constant dense<0.000000e+00> : vector<8xf32>
    %184 = vector.multi_reduction <add>, %183, %cst_208 [1] : vector<8x288xf32> to vector<8xf32>
    %185 = vector.shape_cast %184 : vector<8xf32> to vector<8x1xf32>
    %186 = arith.addf %159, %185 : vector<8x1xf32>
    %187 = arith.mulf %183, %183 : vector<8x288xf32>
    %cst_209 = arith.constant dense<0.000000e+00> : vector<8xf32>
    %188 = vector.multi_reduction <add>, %187, %cst_209 [1] : vector<8x288xf32> to vector<8xf32>
    %189 = vector.shape_cast %188 : vector<8xf32> to vector<8x1xf32>
    %190 = arith.addf %163, %189 : vector<8x1xf32>
    %c1_210 = arith.constant 1 : index
    %c2_211 = arith.constant 2 : index
    %c0_212 = arith.constant 0 : index
    %c0_213 = arith.constant 0 : index
    %191 = vector.load %arg5[%c1_210, %c2_211, %c0_212, %c0_213] : memref<2x4x8x288xf32, #tpu.memory_space<vmem>>, vector<1x1x8x288xf32>
    %192 = vector.shape_cast %191 : vector<1x1x8x288xf32> to vector<8x288xf32>
    %193 = vector.shape_cast %182 : vector<8x288xf32> to vector<1x1x8x288xf32>
    tpu.vector_store %arg5[%c1_210, %c2_211, %c0_212, %c0_213], %193 {strides = array<i32>} : memref<2x4x8x288xf32, #tpu.memory_space<vmem>>, vector<1x1x8x288xf32>,
    %c1_214 = arith.constant 1 : index
    %c0_215 = arith.constant 0 : index
    %c19_216 = arith.constant 19 : index
    %194 = vector.load %arg0[%c1_214, %c0_215, %c19_216] : memref<2x16x326xbf16, #tpu.memory_space<vmem>>, vector<1x16x288xbf16>
    %195 = vector.shape_cast %194 : vector<1x16x288xbf16> to vector<16x288xbf16>
    %c0_217 = arith.constant 0 : index
    %c0_218 = arith.constant 0 : index
    %196 = vector.load %arg6[%c0_217, %c0_218] : memref<64x288xbf16, #tpu.memory_space<vmem>>, vector<16x288xbf16>
    tpu.vector_store %arg6[%c0_217, %c0_218], %195 {strides = array<i32>} : memref<64x288xbf16, #tpu.memory_space<vmem>>, vector<16x288xbf16>,
    %c1_219 = arith.constant 1 : index
    %c0_220 = arith.constant 0 : index
    %c20_221 = arith.constant 20 : index
    %197 = vector.load %arg0[%c1_219, %c0_220, %c20_221] : memref<2x16x326xbf16, #tpu.memory_space<vmem>>, vector<1x16x288xbf16>
    %198 = vector.shape_cast %197 : vector<1x16x288xbf16> to vector<16x288xbf16>
    %c16_222 = arith.constant 16 : index
    %c0_223 = arith.constant 0 : index
    %199 = vector.load %arg6[%c16_222, %c0_223] : memref<64x288xbf16, #tpu.memory_space<vmem>>, vector<16x288xbf16>
    tpu.vector_store %arg6[%c16_222, %c0_223], %198 {strides = array<i32>} : memref<64x288xbf16, #tpu.memory_space<vmem>>, vector<16x288xbf16>,
    %c1_224 = arith.constant 1 : index
    %c0_225 = arith.constant 0 : index
    %c37_226 = arith.constant 37 : index
    %200 = vector.load %arg0[%c1_224, %c0_225, %c37_226] : memref<2x16x326xbf16, #tpu.memory_space<vmem>>, vector<1x16x288xbf16>
    %201 = vector.shape_cast %200 : vector<1x16x288xbf16> to vector<16x288xbf16>
    %c32_227 = arith.constant 32 : index
    %c0_228 = arith.constant 0 : index
    %202 = vector.load %arg6[%c32_227, %c0_228] : memref<64x288xbf16, #tpu.memory_space<vmem>>, vector<16x288xbf16>
    tpu.vector_store %arg6[%c32_227, %c0_228], %201 {strides = array<i32>} : memref<64x288xbf16, #tpu.memory_space<vmem>>, vector<16x288xbf16>,
    %c1_229 = arith.constant 1 : index
    %c0_230 = arith.constant 0 : index
    %c38_231 = arith.constant 38 : index
    %203 = vector.load %arg0[%c1_229, %c0_230, %c38_231] : memref<2x16x326xbf16, #tpu.memory_space<vmem>>, vector<1x16x288xbf16>
    %204 = vector.shape_cast %203 : vector<1x16x288xbf16> to vector<16x288xbf16>
    %c48_232 = arith.constant 48 : index
    %c0_233 = arith.constant 0 : index
    %205 = vector.load %arg6[%c48_232, %c0_233] : memref<64x288xbf16, #tpu.memory_space<vmem>>, vector<16x288xbf16>
    tpu.vector_store %arg6[%c48_232, %c0_233], %204 {strides = array<i32>} : memref<64x288xbf16, #tpu.memory_space<vmem>>, vector<16x288xbf16>,
    %c3_234 = arith.constant 3 : index
    %c0_235 = arith.constant 0 : index
    %c0_236 = arith.constant 0 : index
    %206 = vector.load %arg1[%c3_234, %c0_235, %c0_236] : memref<4x8x64xbf16, #tpu.memory_space<vmem>>, vector<1x8x64xbf16>
    %207 = vector.shape_cast %206 : vector<1x8x64xbf16> to vector<8x64xbf16>
    %c0_237 = arith.constant 0 : index
    %c0_238 = arith.constant 0 : index
    %208 = vector.load %arg6[%c0_237, %c0_238] : memref<64x288xbf16, #tpu.memory_space<vmem>>, vector<64x288xbf16>
    %cst_239 = arith.constant dense<0.000000e+00> : vector<8x288xf32>
    %209 = tpu.matmul %207, %208, %cst_239 {dimension_numbers = #tpu.dot_dimension_numbers<[1], [0], [0], [1], [0, 0, 1, 1], [], []>} : vector<8x64xbf16>, vector<64x288xbf16>, vector<8x288xf32> -> vector<8x288xf32>
    %210 = arith.mulf %209, %2 : vector<8x288xf32>
    %cst_240 = arith.constant dense<0.000000e+00> : vector<8xf32>
    %211 = vector.multi_reduction <add>, %210, %cst_240 [1] : vector<8x288xf32> to vector<8xf32>
    %212 = vector.shape_cast %211 : vector<8xf32> to vector<8x1xf32>
    %213 = arith.addf %186, %212 : vector<8x1xf32>
    %214 = arith.mulf %210, %210 : vector<8x288xf32>
    %cst_241 = arith.constant dense<0.000000e+00> : vector<8xf32>
    %215 = vector.multi_reduction <add>, %214, %cst_241 [1] : vector<8x288xf32> to vector<8xf32>
    %216 = vector.shape_cast %215 : vector<8xf32> to vector<8x1xf32>
    %217 = arith.addf %190, %216 : vector<8x1xf32>
    %c1_242 = arith.constant 1 : index
    %c3_243 = arith.constant 3 : index
    %c0_244 = arith.constant 0 : index
    %c0_245 = arith.constant 0 : index
    %218 = vector.load %arg5[%c1_242, %c3_243, %c0_244, %c0_245] : memref<2x4x8x288xf32, #tpu.memory_space<vmem>>, vector<1x1x8x288xf32>
    %219 = vector.shape_cast %218 : vector<1x1x8x288xf32> to vector<8x288xf32>
    %220 = vector.shape_cast %209 : vector<8x288xf32> to vector<1x1x8x288xf32>
    tpu.vector_store %arg5[%c1_242, %c3_243, %c0_244, %c0_245], %220 {strides = array<i32>} : memref<2x4x8x288xf32, #tpu.memory_space<vmem>>, vector<1x1x8x288xf32>,
    %cst_246 = arith.constant 4.8828125E-4 : f32
    %221 = vector.broadcast %cst_246 : f32 to vector<8x1xf32>
    %222 = arith.mulf %213, %221 : vector<8x1xf32>
    %cst_247 = arith.constant 4.8828125E-4 : f32
    %223 = vector.broadcast %cst_247 : f32 to vector<8x1xf32>
    %224 = arith.mulf %217, %223 : vector<8x1xf32>
    %225 = arith.mulf %222, %222 : vector<8x1xf32>
    %226 = arith.subf %224, %225 : vector<8x1xf32>
    %cst_248 = arith.constant 0.000000e+00 : f32
    %227 = vector.broadcast %cst_248 : f32 to vector<8x1xf32>
    %228 = arith.maximumf %226, %227 : vector<8x1xf32>
    %c0_249 = arith.constant 0 : index
    %c0_250 = arith.constant 0 : index
    %229 = vector.load %arg2[%c0_249, %c0_250] : memref<8x1xf32, #tpu.memory_space<vmem>>, vector<8x1xf32>
    %cst_251 = arith.constant 9.99999974E-6 : f32
    %230 = vector.broadcast %cst_251 : f32 to vector<8x1xf32>
    %231 = arith.addf %228, %230 : vector<8x1xf32>
    %232 = math.rsqrt %231 : vector<8x1xf32>
    %233 = arith.mulf %229, %232 : vector<8x1xf32>
    %c0_252 = arith.constant 0 : index
    %c0_253 = arith.constant 0 : index
    %234 = vector.load %arg3[%c0_252, %c0_253] : memref<8x1xf32, #tpu.memory_space<vmem>>, vector<8x1xf32>
    %235 = arith.mulf %222, %233 : vector<8x1xf32>
    %236 = arith.subf %234, %235 : vector<8x1xf32>
    %237 = vector.shape_cast %233 : vector<8x1xf32> to vector<8x1xf32>
    %238 = vector.broadcast %237 : vector<8x1xf32> to vector<8x288xf32>
    %239 = vector.shape_cast %236 : vector<8x1xf32> to vector<8x1xf32>
    %240 = vector.broadcast %239 : vector<8x1xf32> to vector<8x288xf32>
    %c0_254 = arith.constant 0 : index
    %c0_255 = arith.constant 0 : index
    %c0_256 = arith.constant 0 : index
    %c0_257 = arith.constant 0 : index
    %241 = vector.load %arg5[%c0_254, %c0_255, %c0_256, %c0_257] : memref<2x4x8x288xf32, #tpu.memory_space<vmem>>, vector<1x1x8x288xf32>
    %242 = vector.shape_cast %241 : vector<1x1x8x288xf32> to vector<8x288xf32>
    %243 = arith.mulf %242, %238 : vector<8x288xf32>
    %244 = arith.addf %243, %240 : vector<8x288xf32>
    %cst_258 = arith.constant 0.000000e+00 : f32
    %245 = vector.broadcast %cst_258 : f32 to vector<8x288xf32>
    %246 = arith.maximumf %244, %245 : vector<8x288xf32>
    %c0_259 = arith.constant 0 : index
    %c0_260 = arith.constant 0 : index
    %c0_261 = arith.constant 0 : index
    %c0_262 = arith.constant 0 : index
    %247 = vector.load %arg5[%c0_259, %c0_260, %c0_261, %c0_262] : memref<2x4x8x288xf32, #tpu.memory_space<vmem>>, vector<1x1x8x288xf32>
    %248 = vector.shape_cast %247 : vector<1x1x8x288xf32> to vector<8x288xf32>
    %249 = vector.shape_cast %246 : vector<8x288xf32> to vector<1x1x8x288xf32>
    tpu.vector_store %arg5[%c0_259, %c0_260, %c0_261, %c0_262], %249 {strides = array<i32>} : memref<2x4x8x288xf32, #tpu.memory_space<vmem>>, vector<1x1x8x288xf32>,
    %c0_263 = arith.constant 0 : index
    %c1_264 = arith.constant 1 : index
    %c0_265 = arith.constant 0 : index
    %c0_266 = arith.constant 0 : index
    %250 = vector.load %arg5[%c0_263, %c1_264, %c0_265, %c0_266] : memref<2x4x8x288xf32, #tpu.memory_space<vmem>>, vector<1x1x8x288xf32>
    %251 = vector.shape_cast %250 : vector<1x1x8x288xf32> to vector<8x288xf32>
    %252 = arith.mulf %251, %238 : vector<8x288xf32>
    %253 = arith.addf %252, %240 : vector<8x288xf32>
    %cst_267 = arith.constant 0.000000e+00 : f32
    %254 = vector.broadcast %cst_267 : f32 to vector<8x288xf32>
    %255 = arith.maximumf %253, %254 : vector<8x288xf32>
    %c0_268 = arith.constant 0 : index
    %c1_269 = arith.constant 1 : index
    %c0_270 = arith.constant 0 : index
    %c0_271 = arith.constant 0 : index
    %256 = vector.load %arg5[%c0_268, %c1_269, %c0_270, %c0_271] : memref<2x4x8x288xf32, #tpu.memory_space<vmem>>, vector<1x1x8x288xf32>
    %257 = vector.shape_cast %256 : vector<1x1x8x288xf32> to vector<8x288xf32>
    %258 = vector.shape_cast %255 : vector<8x288xf32> to vector<1x1x8x288xf32>
    tpu.vector_store %arg5[%c0_268, %c1_269, %c0_270, %c0_271], %258 {strides = array<i32>} : memref<2x4x8x288xf32, #tpu.memory_space<vmem>>, vector<1x1x8x288xf32>,
    %c0_272 = arith.constant 0 : index
    %c2_273 = arith.constant 2 : index
    %c0_274 = arith.constant 0 : index
    %c0_275 = arith.constant 0 : index
    %259 = vector.load %arg5[%c0_272, %c2_273, %c0_274, %c0_275] : memref<2x4x8x288xf32, #tpu.memory_space<vmem>>, vector<1x1x8x288xf32>
    %260 = vector.shape_cast %259 : vector<1x1x8x288xf32> to vector<8x288xf32>
    %261 = arith.mulf %260, %238 : vector<8x288xf32>
    %262 = arith.addf %261, %240 : vector<8x288xf32>
    %cst_276 = arith.constant 0.000000e+00 : f32
    %263 = vector.broadcast %cst_276 : f32 to vector<8x288xf32>
    %264 = arith.maximumf %262, %263 : vector<8x288xf32>
    %c0_277 = arith.constant 0 : index
    %c2_278 = arith.constant 2 : index
    %c0_279 = arith.constant 0 : index
    %c0_280 = arith.constant 0 : index
    %265 = vector.load %arg5[%c0_277, %c2_278, %c0_279, %c0_280] : memref<2x4x8x288xf32, #tpu.memory_space<vmem>>, vector<1x1x8x288xf32>
    %266 = vector.shape_cast %265 : vector<1x1x8x288xf32> to vector<8x288xf32>
    %267 = vector.shape_cast %264 : vector<8x288xf32> to vector<1x1x8x288xf32>
    tpu.vector_store %arg5[%c0_277, %c2_278, %c0_279, %c0_280], %267 {strides = array<i32>} : memref<2x4x8x288xf32, #tpu.memory_space<vmem>>, vector<1x1x8x288xf32>,
    %c0_281 = arith.constant 0 : index
    %c3_282 = arith.constant 3 : index
    %c0_283 = arith.constant 0 : index
    %c0_284 = arith.constant 0 : index
    %268 = vector.load %arg5[%c0_281, %c3_282, %c0_283, %c0_284] : memref<2x4x8x288xf32, #tpu.memory_space<vmem>>, vector<1x1x8x288xf32>
    %269 = vector.shape_cast %268 : vector<1x1x8x288xf32> to vector<8x288xf32>
    %270 = arith.mulf %269, %238 : vector<8x288xf32>
    %271 = arith.addf %270, %240 : vector<8x288xf32>
    %cst_285 = arith.constant 0.000000e+00 : f32
    %272 = vector.broadcast %cst_285 : f32 to vector<8x288xf32>
    %273 = arith.maximumf %271, %272 : vector<8x288xf32>
    %c0_286 = arith.constant 0 : index
    %c3_287 = arith.constant 3 : index
    %c0_288 = arith.constant 0 : index
    %c0_289 = arith.constant 0 : index
    %274 = vector.load %arg5[%c0_286, %c3_287, %c0_288, %c0_289] : memref<2x4x8x288xf32, #tpu.memory_space<vmem>>, vector<1x1x8x288xf32>
    %275 = vector.shape_cast %274 : vector<1x1x8x288xf32> to vector<8x288xf32>
    %276 = vector.shape_cast %273 : vector<8x288xf32> to vector<1x1x8x288xf32>
    tpu.vector_store %arg5[%c0_286, %c3_287, %c0_288, %c0_289], %276 {strides = array<i32>} : memref<2x4x8x288xf32, #tpu.memory_space<vmem>>, vector<1x1x8x288xf32>,
    %c1_290 = arith.constant 1 : index
    %c0_291 = arith.constant 0 : index
    %c0_292 = arith.constant 0 : index
    %c0_293 = arith.constant 0 : index
    %277 = vector.load %arg5[%c1_290, %c0_291, %c0_292, %c0_293] : memref<2x4x8x288xf32, #tpu.memory_space<vmem>>, vector<1x1x8x288xf32>
    %278 = vector.shape_cast %277 : vector<1x1x8x288xf32> to vector<8x288xf32>
    %279 = arith.mulf %278, %238 : vector<8x288xf32>
    %280 = arith.addf %279, %240 : vector<8x288xf32>
    %cst_294 = arith.constant 0.000000e+00 : f32
    %281 = vector.broadcast %cst_294 : f32 to vector<8x288xf32>
    %282 = arith.maximumf %280, %281 : vector<8x288xf32>
    %c1_295 = arith.constant 1 : index
    %c0_296 = arith.constant 0 : index
    %c0_297 = arith.constant 0 : index
    %c0_298 = arith.constant 0 : index
    %283 = vector.load %arg5[%c1_295, %c0_296, %c0_297, %c0_298] : memref<2x4x8x288xf32, #tpu.memory_space<vmem>>, vector<1x1x8x288xf32>
    %284 = vector.shape_cast %283 : vector<1x1x8x288xf32> to vector<8x288xf32>
    %285 = vector.shape_cast %282 : vector<8x288xf32> to vector<1x1x8x288xf32>
    tpu.vector_store %arg5[%c1_295, %c0_296, %c0_297, %c0_298], %285 {strides = array<i32>} : memref<2x4x8x288xf32, #tpu.memory_space<vmem>>, vector<1x1x8x288xf32>,
    %c1_299 = arith.constant 1 : index
    %c1_300 = arith.constant 1 : index
    %c0_301 = arith.constant 0 : index
    %c0_302 = arith.constant 0 : index
    %286 = vector.load %arg5[%c1_299, %c1_300, %c0_301, %c0_302] : memref<2x4x8x288xf32, #tpu.memory_space<vmem>>, vector<1x1x8x288xf32>
    %287 = vector.shape_cast %286 : vector<1x1x8x288xf32> to vector<8x288xf32>
    %288 = arith.mulf %287, %238 : vector<8x288xf32>
    %289 = arith.addf %288, %240 : vector<8x288xf32>
    %cst_303 = arith.constant 0.000000e+00 : f32
    %290 = vector.broadcast %cst_303 : f32 to vector<8x288xf32>
    %291 = arith.maximumf %289, %290 : vector<8x288xf32>
    %c1_304 = arith.constant 1 : index
    %c1_305 = arith.constant 1 : index
    %c0_306 = arith.constant 0 : index
    %c0_307 = arith.constant 0 : index
    %292 = vector.load %arg5[%c1_304, %c1_305, %c0_306, %c0_307] : memref<2x4x8x288xf32, #tpu.memory_space<vmem>>, vector<1x1x8x288xf32>
    %293 = vector.shape_cast %292 : vector<1x1x8x288xf32> to vector<8x288xf32>
    %294 = vector.shape_cast %291 : vector<8x288xf32> to vector<1x1x8x288xf32>
    tpu.vector_store %arg5[%c1_304, %c1_305, %c0_306, %c0_307], %294 {strides = array<i32>} : memref<2x4x8x288xf32, #tpu.memory_space<vmem>>, vector<1x1x8x288xf32>,
    %c1_308 = arith.constant 1 : index
    %c2_309 = arith.constant 2 : index
    %c0_310 = arith.constant 0 : index
    %c0_311 = arith.constant 0 : index
    %295 = vector.load %arg5[%c1_308, %c2_309, %c0_310, %c0_311] : memref<2x4x8x288xf32, #tpu.memory_space<vmem>>, vector<1x1x8x288xf32>
    %296 = vector.shape_cast %295 : vector<1x1x8x288xf32> to vector<8x288xf32>
    %297 = arith.mulf %296, %238 : vector<8x288xf32>
    %298 = arith.addf %297, %240 : vector<8x288xf32>
    %cst_312 = arith.constant 0.000000e+00 : f32
    %299 = vector.broadcast %cst_312 : f32 to vector<8x288xf32>
    %300 = arith.maximumf %298, %299 : vector<8x288xf32>
    %c1_313 = arith.constant 1 : index
    %c2_314 = arith.constant 2 : index
    %c0_315 = arith.constant 0 : index
    %c0_316 = arith.constant 0 : index
    %301 = vector.load %arg5[%c1_313, %c2_314, %c0_315, %c0_316] : memref<2x4x8x288xf32, #tpu.memory_space<vmem>>, vector<1x1x8x288xf32>
    %302 = vector.shape_cast %301 : vector<1x1x8x288xf32> to vector<8x288xf32>
    %303 = vector.shape_cast %300 : vector<8x288xf32> to vector<1x1x8x288xf32>
    tpu.vector_store %arg5[%c1_313, %c2_314, %c0_315, %c0_316], %303 {strides = array<i32>} : memref<2x4x8x288xf32, #tpu.memory_space<vmem>>, vector<1x1x8x288xf32>,
    %c1_317 = arith.constant 1 : index
    %c3_318 = arith.constant 3 : index
    %c0_319 = arith.constant 0 : index
    %c0_320 = arith.constant 0 : index
    %304 = vector.load %arg5[%c1_317, %c3_318, %c0_319, %c0_320] : memref<2x4x8x288xf32, #tpu.memory_space<vmem>>, vector<1x1x8x288xf32>
    %305 = vector.shape_cast %304 : vector<1x1x8x288xf32> to vector<8x288xf32>
    %306 = arith.mulf %305, %238 : vector<8x288xf32>
    %307 = arith.addf %306, %240 : vector<8x288xf32>
    %cst_321 = arith.constant 0.000000e+00 : f32
    %308 = vector.broadcast %cst_321 : f32 to vector<8x288xf32>
    %309 = arith.maximumf %307, %308 : vector<8x288xf32>
    %c1_322 = arith.constant 1 : index
    %c3_323 = arith.constant 3 : index
    %c0_324 = arith.constant 0 : index
    %c0_325 = arith.constant 0 : index
    %310 = vector.load %arg5[%c1_322, %c3_323, %c0_324, %c0_325] : memref<2x4x8x288xf32, #tpu.memory_space<vmem>>, vector<1x1x8x288xf32>
    %311 = vector.shape_cast %310 : vector<1x1x8x288xf32> to vector<8x288xf32>
    %312 = vector.shape_cast %309 : vector<8x288xf32> to vector<1x1x8x288xf32>
    tpu.vector_store %arg5[%c1_322, %c3_323, %c0_324, %c0_325], %312 {strides = array<i32>} : memref<2x4x8x288xf32, #tpu.memory_space<vmem>>, vector<1x1x8x288xf32>,
    return
  }
}

</mosaic_0001>

<bundles_post_ra>
// kernel: _lambda_.4
= control target key start
LH: loop header
LB: loop body
LE: loop exit
PB: predicated region body
PF: predicated region fallthrough
CT: control target
= control target key end

     0   :  { %s640_s22 = smov 107   ;;  %s641_s23 = smov 108   ;;  %vm27_vm0 = vcmask 650240   ;;  %vm205_vm1 = vcmask 130048   ;;  %vm236_vm2 = vcmask 654336   ;;  %s867_s0 = inlined_call_operand.vmem [shape: bf16[2,16,102], index: 0, kind: input, shape index: {}]   ;;  %s868_s1 = inlined_call_operand.vmem [shape: bf16[1,8,144], index: 1, kind: input, shape index: {}]   ;;  %s869_s4 = inlined_call_operand.vmem [shape: f32[1,80], index: 4, kind: input, shape index: {}]   ;;  %s870_s5 = inlined_call_operand.vmem [shape: f32[2,1,8,80], index: 5, kind: output, shape index: {}]   ;;  %s871_s2 = inlined_call_operand.vmem [shape: f32[8,1], index: 2, kind: input, shape index: {}]   ;;  %s872_s3 = inlined_call_operand.vmem [shape: f32[8,1], index: 3, kind: input, shape index: {}]  }
   0x1   :  { %v102_v0 = vld [vmem:[%s867_s0] sm:$0xf]  ;;  %s642_s26 = smov 116   ;;  %v103_v3 = vld [vmem:[%s867_s0 + $0x4] sm:$0xf]  ;;  %s643_s14 = smov 117  }
   0x2   :  { %v90_v1 = vld [vmem:[%s867_s0] sm:$0xf]  ;;  %106 = vrot.lane.b32.xlu0 %v102_v0, %s640_s22  ;;  %v91_v4 = vld [vmem:[%s867_s0 + $0x4] sm:$0xf]  ;;  %v564_v6 = vld [vmem:[%s867_s0 + $0x8] sm:$0xf] }
   0x3   :  { %94 = vrot.lane.b32.xlu1 %v90_v1, %s641_s23  ;;  %v78_v2 = vld [vmem:[%s867_s0] sm:$0xf]  ;;  %v79_v5 = vld [vmem:[%s867_s0 + $0x4] sm:$0xf]  ;;  %v565_v7 = vld [vmem:[%s867_s0 + $0xc] sm:$0xf] }
   0x4   :  { %82 = vrot.lane.b32.xlu2 %v78_v2, %s642_s26  ;;  %v66_v8 = vld [vmem:[%s867_s0] sm:$0xf]  ;;  %v562_v9 = vld [vmem:[%s867_s0 + $0x8] sm:$0xf]  ;;  %v67_v10 = vld [vmem:[%s867_s0 + $0x4] sm:$0xf] }
   0x5   :  { %v563_v11 = vld [vmem:[%s867_s0 + $0xc] sm:$0xf]  ;;  %v55_v12 = vld [vmem:[%s867_s0 + $0x4] sm:$0xf]  ;;  %v54_v13 = vld [vmem:[%s867_s0] sm:$0xf] }
   0x6   :  { %v560_v14 = vld [vmem:[%s867_s0 + $0x8] sm:$0xf]  ;;  %s644_s29 = smov 118   ;;  %v561_v15 = vld [vmem:[%s867_s0 + $0xc] sm:$0xf]  ;;  %s645_s10 = smov 126  }
   0x7   :  { %v42_v16 = vld [vmem:[%s867_s0] sm:$0xf]  ;;  %v43_v17 = vld [vmem:[%s867_s0 + $0x4] sm:$0xf]  ;;  %v558_v18 = vld [vmem:[%s867_s0 + $0x8] sm:$0xf] }
   0x8   :  { %v559_v19 = vld [vmem:[%s867_s0 + $0xc] sm:$0xf]  ;;  %v30_v20 = vld [vmem:[%s867_s0] sm:$0xf]  ;;  %s646_s18 = smov 127  }
   0x9   :  { %v556_v21 = vld [vmem:[%s867_s0 + $0x8] sm:$0xf]  ;;  %v31_v22 = vld [vmem:[%s867_s0 + $0x4] sm:$0xf]  ;;  %v557_v23 = vld [vmem:[%s867_s0 + $0xc] sm:$0xf] }
   0xa   :  { %108 = vrot.lane.b32.xlu0 %v103_v3, %s640_s22  ;;  %v115_v24 = vld [vmem:[%s867_s0 + $0x4] sm:$0xf]  ;;  %v114_v25 = vld [vmem:[%s867_s0] sm:$0xf]  ;;  %v554_v26 = vld [vmem:[%s867_s0 + $0x8] sm:$0xf] }
   0xb   :  { %96 = vrot.lane.b32.xlu1 %v91_v4, %s641_s23  ;;  %v552_v27 = vld [vmem:[%s867_s0 + $0x8] sm:$0xf]  ;;  %v555_v28 = vld [vmem:[%s867_s0 + $0xc] sm:$0xf]  ;;  %v25_v59 = vld [vmem:[%s867_s0] sm:$0xf] }
   0xc   :  { %84 = vrot.lane.b32.xlu2 %v79_v5, %s642_s26  ;;  %v553_v29 = vld [vmem:[%s867_s0 + $0xc] sm:$0xf]  ;;  %v566_v31 = vld [vmem:[%s867_s0 + $0x8] sm:$0xf]  ;;  %v26_v61 = vld [vmem:[%s867_s0 + $0x4] sm:$0xf] }
   0xd   :  { %v567_v30 = vld [vmem:[%s867_s0 + $0xc] sm:$0xf]  ;;  %28 = vst.msk [vmem:[#allocation2] sm:$0xf] %vm27_vm0, %v25_v59  ;;  %v550_v2 = vld [vmem:[%s867_s0 + $0x8] sm:$0xf] }
   0xe   :  { %29 = vst.msk [vmem:[#allocation2 + $0x4] sm:$0xf] %vm27_vm0, %v26_v61  ;;  %v551_v3 = vld [vmem:[%s867_s0 + $0xc] sm:$0xf] }
   0xf   :  { %250 = vst.msk [vmem:[#allocation2] sm:$0xf] %vm27_vm0, %v550_v2 }
  0x12   :  { %328 = vrot.lane.b32.xlu0 %v564_v6, %s640_s22 }
  0x13   :  { %330 = vrot.lane.b32.xlu1 %v565_v7, %s640_s22 }
  0x14   :  { %70 = vrot.lane.b32.xlu2 %v66_v8, %s643_s14 }
  0x16   :  { %v608_v4 = vld [vmem:[#allocation2] sm:$0xff] }
  0x17   :  { %251 = vst.msk [vmem:[#allocation2 + $0x4] sm:$0xf] %vm27_vm0, %v551_v3 }
  0x1a   :  { %72 = vrot.lane.b32.xlu0 %v67_v10, %s643_s14 }
  0x1b   :  { %316 = vrot.lane.b32.xlu1 %v562_v9, %s641_s23  ;;  %v126_v9 = vld [vmem:[%s868_s1] sm:$0xff] }
  0x1c   :  { %318 = vrot.lane.b32.xlu2 %v563_v11, %s641_s23  ;;  %s647_s23 = smov 106  }
  0x22   :  { %58 = vrot.lane.b32.xlu0 %v54_v13, %s644_s29 }
  0x23   :  { %60 = vrot.lane.b32.xlu1 %v55_v12, %s644_s29 }
  0x24   :  { %304 = vrot.lane.b32.xlu2 %v560_v14, %s642_s26  ;;  %v146_v14 = vunpack.c.l.b16 %v126_v9 }
  0x2a   :  { %306 = vrot.lane.b32.xlu0 %v561_v15, %s642_s26  ;;  %v147_v15 = vunpack.c.h.b16 %v126_v9 }
  0x2b   :  { %46 = vrot.lane.b32.xlu1 %v42_v16, %s645_s10  ;;  %v148_v16 = vpack.c.b16 %v146_v14, %v146_v14 }
  0x2c   :  { %48 = vrot.lane.b32.xlu2 %v43_v17, %s645_s10 }
  0x32   :  { %292 = vrot.lane.b32.xlu0 %v558_v18, %s643_s14 }
  0x33   :  { %294 = vrot.lane.b32.xlu1 %v559_v19, %s643_s14 }
  0x34   :  { %34 = vrot.lane.b32.xlu2 %v30_v20, %s646_s18  ;;  %v149_v20 = vpack.c.b16 %v147_v15, %v147_v15 }
  0x3a   :  { %36 = vrot.lane.b32.xlu0 %v31_v22, %s646_s18 }
  0x3b   :  { %280 = vrot.lane.b32.xlu1 %v556_v21, %s644_s29 }
  0x3c   :  { %282 = vrot.lane.b32.xlu2 %v557_v23, %s644_s29 }
  0x42   :  { %118 = vrot.lane.b32.xlu0 %v114_v25, %s647_s23  ;;  %v617_v25 = vld [vmem:[#allocation2] sm:$0xff] }
  0x43   :  { %120 = vrot.lane.b32.xlu1 %v115_v24, %s647_s23 }
  0x44   :  { %268 = vrot.lane.b32.xlu2 %v554_v26, %s645_s10 }
  0x4a   :  { %270 = vrot.lane.b32.xlu0 %v555_v28, %s645_s10  ;;  %v637_v28 = vld [vmem:[%s869_s4] ss:$0 sm:$0xff] }
  0x4b   :  { %256 = vrot.lane.b32.xlu1 %v552_v27, %s646_s18 }
  0x4c   :  { %258 = vrot.lane.b32.xlu2 %v553_v29, %s646_s18 }
  0x52   :  { %340 = vrot.lane.b32.xlu0 %v566_v31, %s647_s23 }
  0x53   :  { %342 = vrot.lane.b32.xlu1 %v567_v30, %s647_s23 }
  0x5e   :  { %v83_v32 = vpop.permute.xlu2 %82 }
  0x5f   :  { %88 = vst.msk [vmem:[#allocation2 + $0x28] sm:$0xf] %vm27_vm0, %v83_v32 }
  0x66   :  { %v85_v33 = vpop.permute.xlu2 %84 }
  0x67   :  { %89 = vst.msk [vmem:[#allocation2 + $0x2c] sm:$0xf] %vm27_vm0, %v85_v33 }
  0x6e   :  { %v71_v34 = vpop.permute.xlu2 %70 }
  0x6f   :  { %76 = vst.msk [vmem:[#allocation2 + $0x20] sm:$0xf] %vm27_vm0, %v71_v34 }
  0x74   :  { %v107_v35 = vpop.permute.xlu0 %106 }
  0x75   :  { %v95_v36 = vpop.permute.xlu1 %94  ;;  %112 = vst.msk [vmem:[#allocation2 + $0x38] sm:$0xf] %vm27_vm0, %v107_v35 }
  0x76   :  { %100 = vst.msk [vmem:[#allocation2 + $0x30] sm:$0xf] %vm27_vm0, %v95_v36  ;;  %v319_v37 = vpop.permute.xlu2 %318 }
  0x7c   :  { %v109_v38 = vpop.permute.xlu0 %108 }
  0x7d   :  { %v97_v39 = vpop.permute.xlu1 %96  ;;  %113 = vst.msk [vmem:[#allocation2 + $0x3c] sm:$0xf] %vm27_vm0, %v109_v38 }
  0x7e   :  { %101 = vst.msk [vmem:[#allocation2 + $0x34] sm:$0xf] %vm27_vm0, %v97_v39  ;;  %v305_v40 = vpop.permute.xlu2 %304 }
  0x7f   :  { %310 = vst.msk [vmem:[#allocation2 + $0x28] sm:$0xf] %vm27_vm0, %v305_v40 }
  0x84   :  { %v329_v41 = vpop.permute.xlu0 %328  ;;  %v615_v43 = vld [vmem:[#allocation2 + $0x38] sm:$0xff] }
  0x85   :  { %v331_v42 = vpop.permute.xlu1 %330  ;;  %334 = vst.msk [vmem:[#allocation2 + $0x38] sm:$0xf] %vm27_vm0, %v329_v41  ;;  %209 = vmatpush.bf16.msra.mxu0 %v615_v43  ;;  %v614_v44 = vld [vmem:[#allocation2 + $0x30] sm:$0xff] }
  0x86   :  { %335 = vst.msk [vmem:[#allocation2 + $0x3c] sm:$0xf] %vm27_vm0, %v331_v42  ;;  %v49_v45 = vpop.permute.xlu2 %48  ;;  %v613_v48 = vld [vmem:[#allocation2 + $0x28] sm:$0xff] }
  0x87   :  { %323 = vst.msk [vmem:[#allocation2 + $0x34] sm:$0xf] %vm27_vm0, %v319_v37 }
  0x88   :  { %53 = vst.msk [vmem:[#allocation2 + $0x14] sm:$0xf] %vm27_vm0, %v49_v45 }
  0x89   :  { %210 = vmatpush.bf16.msra.mxu0 %v614_v44 }
  0x8c   :  { %v73_v47 = vpop.permute.xlu0 %72 }
  0x8d   :  { %v317_v46 = vpop.permute.xlu1 %316  ;;  %v624_v49 = vld [vmem:[#allocation2 + $0x38] sm:$0xff]  ;;  %77 = vst.msk [vmem:[#allocation2 + $0x24] sm:$0xf] %vm27_vm0, %v73_v47  ;;  %211 = vmatpush.bf16.msra.mxu0 %v613_v48  ;;  %v648_v47 = vmov 0  }
  0x8e   :  { %322 = vst.msk [vmem:[#allocation2 + $0x30] sm:$0xf] %vm27_vm0, %v317_v46  ;;  %v35_v50 = vpop.permute.xlu2 %34  ;;  %430 = vmatpush.bf16.msra.mxu2 %v624_v49  ;;  %635 = vset.pattern.permute.xlu2 %v648_v47 }
  0x8f   :  { %40 = vst.msk [vmem:[#allocation2 + $0x8] sm:$0xf] %vm27_vm0, %v35_v50  ;;  %636 = vset.pattern.permute.xlu0 %v648_v47 }
  0x94   :  { %v59_v52 = vpop.permute.xlu0 %58  ;;  %v612_v54 = vld [vmem:[#allocation2 + $0x20] sm:$0xff] }
  0x95   :  { %v61_v51 = vpop.permute.xlu1 %60  ;;  %v623_v53 = vld [vmem:[#allocation2 + $0x30] sm:$0xff]  ;;  %64 = vst.msk [vmem:[#allocation2 + $0x18] sm:$0xf] %vm27_vm0, %v59_v52  ;;  %212 = vmatpush.bf16.msra.mxu0 %v612_v54 }
  0x96   :  { %65 = vst.msk [vmem:[#allocation2 + $0x1c] sm:$0xf] %vm27_vm0, %v61_v51  ;;  %431 = vmatpush.bf16.msra.mxu2 %v623_v53  ;;  %v283_v55 = vpop.permute.xlu2 %282 }
  0x9c   :  { %v307_v56 = vpop.permute.xlu0 %306 }
  0x9d   :  { %v47_v57 = vpop.permute.xlu1 %46  ;;  %311 = vst.msk [vmem:[#allocation2 + $0x2c] sm:$0xf] %vm27_vm0, %v307_v56  ;;  %v611_v58 = vld [vmem:[#allocation2 + $0x18] sm:$0xff] }
  0x9e   :  { %52 = vst.msk [vmem:[#allocation2 + $0x10] sm:$0xf] %vm27_vm0, %v47_v57  ;;  %213 = vmatpush.bf16.msra.mxu0 %v611_v58  ;;  %v269_v60 = vpop.permute.xlu2 %268 }
  0x9f   :  { %287 = vst.msk [vmem:[#allocation2 + $0x1c] sm:$0xf] %vm27_vm0, %v283_v55 }
  0xa0   :  { %274 = vst.msk [vmem:[#allocation2 + $0x10] sm:$0xf] %vm27_vm0, %v269_v60 }
  0xa4   :  { %v293_v62 = vpop.permute.xlu0 %292  ;;  %v622_v0 = vld [vmem:[#allocation2 + $0x28] sm:$0xff] }
  0xa5   :  { %v295_v63 = vpop.permute.xlu1 %294  ;;  %298 = vst.msk [vmem:[#allocation2 + $0x20] sm:$0xf] %vm27_vm0, %v293_v62  ;;  %432 = vmatpush.bf16.msra.mxu2 %v622_v0  ;;  %v473_v0 = vld [vmem:[%s871_s2] sm:$0xff] }
  0xa6   :  { %299 = vst.msk [vmem:[#allocation2 + $0x24] sm:$0xf] %vm27_vm0, %v295_v63  ;;  %v259_v8 = vpop.permute.xlu2 %258 }
  0xa7   :  { %v610_v1 = vld [vmem:[#allocation2 + $0x10] sm:$0xff] }
  0xa8   :  { %214 = vmatpush.bf16.msra.mxu0 %v610_v1 }
  0xac   :  { %v37_v6 = vpop.permute.xlu0 %36 }
  0xad   :  { %v281_v5 = vpop.permute.xlu1 %280  ;;  %v621_v7 = vld [vmem:[#allocation2 + $0x20] sm:$0xff]  ;;  %41 = vst.msk [vmem:[#allocation2 + $0xc] sm:$0xf] %vm27_vm0, %v37_v6 }
  0xae   :  { %286 = vst.msk [vmem:[#allocation2 + $0x18] sm:$0xf] %vm27_vm0, %v281_v5  ;;  %433 = vmatpush.bf16.msra.mxu2 %v621_v7 }
  0xb4   :  { %v119_v11 = vpop.permute.xlu0 %118  ;;  %v609_v13 = vld [vmem:[#allocation2 + $0x8] sm:$0xff] }
  0xb5   :  { %v121_v10 = vpop.permute.xlu1 %120  ;;  %v620_v12 = vld [vmem:[#allocation2 + $0x18] sm:$0xff]  ;;  %124 = vst.msk [vmem:[#allocation2 + $0x40] sm:$0xf] %vm27_vm0, %v119_v11  ;;  %215 = vmatpush.bf16.msra.mxu0 %v609_v13 }
  0xb6   :  { %125 = vst.msk [vmem:[#allocation2 + $0x44] sm:$0xf] %vm27_vm0, %v121_v10  ;;  %434 = vmatpush.bf16.msra.mxu2 %v620_v12 }
  0xb7   :  { %263 = vst.msk [vmem:[#allocation2 + $0xc] sm:$0xf] %vm27_vm0, %v259_v8 }
  0xb9   :  { %216 = vmatpush.bf16.msra.mxu0 %v608_v4  ;;  %v486_v4 = vld [vmem:[%s872_s3] sm:$0xff] }
  0xbc   :  { %v271_v18 = vpop.permute.xlu0 %270  ;;  %217 = vmatmul.bf16.vlgmr.msra.gmra.mxu0 %v148_v16 }
  0xbd   :  { %v257_v17 = vpop.permute.xlu1 %256  ;;  %v616_v19 = vld [vmem:[#allocation2 + $0x40] sm:$0xff]  ;;  %275 = vst.msk [vmem:[#allocation2 + $0x14] sm:$0xf] %vm27_vm0, %v271_v18 }
  0xbe   :  { %262 = vst.msk [vmem:[#allocation2 + $0x8] sm:$0xf] %vm27_vm0, %v257_v17  ;;  %229 = vmatpush.bf16.msra.mxu1 %v616_v19 }
  0xc1   :  { %549 = vmatmul.msk.bf16.vlgmr.msra.gmra.mxu1 %vm205_vm1, %v149_v20 }
  0xc4   :  { %v341_v22 = vpop.permute.xlu0 %340  ;;  %v619_v23 = vld [vmem:[#allocation2 + $0x10] sm:$0xff] }
  0xc5   :  { %v343_v21 = vpop.permute.xlu1 %342  ;;  %346 = vst.msk [vmem:[#allocation2 + $0x40] sm:$0xf] %vm27_vm0, %v341_v22  ;;  %435 = vmatpush.bf16.msra.mxu2 %v619_v23  ;;  %v618_v24 = vld [vmem:[#allocation2 + $0x8] sm:$0xff] }
  0xc6   :  { %347 = vst.msk [vmem:[#allocation2 + $0x44] sm:$0xf] %vm27_vm0, %v343_v21 }
  0xc9   :  { %436 = vmatpush.bf16.msra.mxu2 %v618_v24 }
  0xcd   :  { %v625_v26 = vld [vmem:[#allocation2 + $0x40] sm:$0xff]  ;;  %437 = vmatpush.bf16.msra.mxu2 %v617_v25 }
  0xce   :  { %450 = vmatpush.bf16.msra.mxu3 %v625_v26 }
  0xd0   :  { %438 = vmatmul.bf16.vlgmr.msra.gmra.mxu2 %v148_v16 }
  0xd1   :  { %604 = vmatmul.msk.bf16.vlgmr.msra.gmra.mxu3 %vm205_vm1, %v149_v20 }
 0x139   :  { %v218_v27 = vpop.f32.mrf.mxu0 }
 0x13e   :  { %v231_v29 = vpop.f32.mrf.mxu1 }
 0x13f   :  { %v232_v30 = vadd.f32 %v231_v29, %v218_v27 }
 0x141   :  { %246 = vst.msk [vmem:[%s870_s5] sm:$0xff] %vm236_vm2, %v232_v30  ;;  %v235_v31 = vmul.f32 %v637_v28, %v232_v30  ;;  %v220_v32 = vpop.f32.mrf.mxu0 }
 0x143   :  { %v237_v33 = vsel %vm236_vm2, %v235_v31, 0.0  ;;  %v241_v34 = vmul.f32 %v235_v31, %v235_v31 }
 0x144   :  { %238 = vadd.xlane.f32.xlu2 %v237_v33 }
 0x145   :  { %v242_v35 = vsel %vm236_vm2, %v241_v34, 0.0 }
 0x146   :  { %v233_v36 = vpop.f32.mrf.mxu1  ;;  %243 = vadd.xlane.f32.xlu1 %v242_v35 }
 0x148   :  { %v499_v8 = vld [vmem:[%s870_s5] sm:$0xff] }
 0x153   :  { %v439_v37 = vpop.f32.mrf.mxu2 }
 0x154   :  { %v452_v38 = vpop.f32.mrf.mxu3 }
 0x155   :  { %v453_v39 = vadd.f32 %v452_v38, %v439_v37 }
 0x157   :  { %605 = vst.msk [vmem:[%s870_s5 + $0x8] sm:$0xff] %vm236_vm2, %v453_v39  ;;  %v456_v40 = vmul.f32 %v637_v28, %v453_v39 }
 0x159   :  { %v457_v41 = vsel %vm236_vm2, %v456_v40, 0.0  ;;  %v461_v42 = vmul.f32 %v456_v40, %v456_v40 }
 0x15a   :  { %458 = vadd.xlane.f32.xlu0 %v457_v41 }
 0x15b   :  { %v462_v43 = vsel %vm236_vm2, %v461_v42, 0.0  ;;  %v441_v44 = vpop.f32.mrf.mxu2 }
 0x15c   :  { %v454_v45 = vpop.f32.mrf.mxu3  ;;  %463 = vadd.xlane.f32.xlu2 %v462_v43 }
 0x15e   :  { %v606_v9 = vld [vmem:[%s870_s5 + $0x8] sm:$0xff] }
 0x1b7   :  { %v239_v46 = vpop.xlane.xlu2 %238 }
 0x1b9   :  { %v244_v50 = vpop.xlane.xlu1 %243 }
 0x1cd   :  { %v459_v48 = vpop.xlane.xlu0 %458 }
 0x1ce   :  { %v460_v49 = vadd.f32 %v459_v48, %v239_v46 }
 0x1cf   :  { %v464_v51 = vpop.xlane.xlu2 %463 }
 0x1d0   :  { %v468_v52 = vmul.f32 0.0078125, %v460_v49  ;;  %v465_v53 = vadd.f32 %v464_v51, %v244_v50 }
 0x1d2   :  { %v470_v54 = vmul.f32 %v468_v52, %v468_v52  ;;  %v469_v55 = vmul.f32 0.0078125, %v465_v53 }
 0x1d4   :  { %v471_v56 = vsub.f32 %v469_v55, %v470_v54 }
 0x1d6   :  { %v472_v57 = vmax.f32 %v471_v56, 0.0 }
 0x1d8   :  { %v474_v58 = vadd.f32 1e-05, %v472_v57 }
 0x1da   :  { %638 = vrsqrt.f32 %v474_v58  ;;  %vm481_vm4 = vweird.f32 %v474_v58 }
 0x1e0   :  { %v639_v59 = vpop.eup %638 }
 0x1e1   :  { %v476_v60 = vmul.f32 %v639_v59, %v474_v58  ;;  %vm482_vm3 = vweird.f32 %v639_v59 }
 0x1e2   :  { %vm483_vm5 = vmor %vm481_vm4, %vm482_vm3 }
 0x1e3   :  { %v477_v61 = vmul.f32 %v639_v59, %v476_v60 }
 0x1e5   :  { %v478_v62 = vmul.f32 0.5, %v477_v61 }
 0x1e7   :  { %v479_v63 = vsub.f32 1.5, %v478_v62 }
 0x1e9   :  { %v480_v1 = vmul.f32 %v639_v59, %v479_v63 }
 0x1eb   :  { %v484_v2 = vsel %vm483_vm5, %v639_v59, %v480_v1 }
 0x1ec   :  { %v485_v3 = vmul.f32 %v484_v2, %v473_v0 }
 0x1ee   :  { %491 = vperm.xlu2 %635, %v485_v3   ;;  %v487_v5 = vmul.f32 %v485_v3, %v468_v52 }
 0x1f0   :  { %v488_v6 = vsub.f32 %v486_v4, %v487_v5 }
 0x1f2   :  { %496 = vperm.xlu0 %636, %v488_v6  }
 0x248   :  { %v492_v7 = vpop.permute.xlu2 %491 }
 0x249   :  { %v500_v10 = vmul.f32 %v499_v8, %v492_v7  ;;  %v505_v11 = vmul.f32 %v606_v9, %v492_v7 }
 0x264   :  { %v497_v12 = vpop.permute.xlu0 %496 }
 0x265   :  { %v501_v13 = vadd.f32 %v500_v10, %v497_v12  ;;  %v506_v14 = vadd.f32 %v505_v11, %v497_v12 }
 0x267   :  { %v502_v15 = vmax.f32 %v501_v13, 0.0  ;;  %v507_v16 = vmax.f32 %v506_v14, 0.0 }
 0x269   :  { %503 = vst.msk [vmem:[%s870_s5] sm:$0xff] %vm236_vm2, %v502_v15 }
 0x26a   :  { %607 = vst.msk [vmem:[%s870_s5 + $0x8] sm:$0xff] %vm236_vm2, %v507_v16 }

// kernel: _lambda_.5
= control target key start
LH: loop header
LB: loop body
LE: loop exit
PB: predicated region body
PF: predicated region fallthrough
CT: control target
= control target key end

     0   :  { %s1203_s22 = smov 117   ;;  %s1204_s23 = smov 118   ;;  %vm27_vm0 = vcmask 650240   ;;  %vm99_vm1 = vcmask 523264   ;;  %vm117_vm2 = vcmask 654336   ;;  %s1716_s0 = inlined_call_operand.vmem [shape: bf16[2,16,102], index: 0, kind: input, shape index: {}]   ;;  %s1717_s4 = inlined_call_operand.vmem [shape: f32[1,80], index: 4, kind: input, shape index: {}]   ;;  %s1718_s1 = inlined_call_operand.vmem [shape: bf16[4,8,64], index: 1, kind: input, shape index: {}]   ;;  %s1719_s5 = inlined_call_operand.vmem [shape: f32[2,4,8,80], index: 5, kind: output, shape index: {}]   ;;  %s1720_s2 = inlined_call_operand.vmem [shape: f32[8,1], index: 2, kind: input, shape index: {}]   ;;  %s1721_s3 = inlined_call_operand.vmem [shape: f32[8,1], index: 3, kind: input, shape index: {}]  }
   0x1   :  { %v54_v0 = vld [vmem:[%s1716_s0] sm:$0xf]  ;;  %s1205_s26 = smov 127   ;;  %v55_v3 = vld [vmem:[%s1716_s0 + $0x4] sm:$0xf]  ;;  %s1206_s14 = smov 116  }
   0x2   :  { %v42_v1 = vld [vmem:[%s1716_s0] sm:$0xf]  ;;  %58 = vrot.lane.b32.xlu0 %v54_v0, %s1203_s22  ;;  %v43_v4 = vld [vmem:[%s1716_s0 + $0x4] sm:$0xf]  ;;  %s1207_s21 = smov 126   ;;  %s1208_s6 = smov 107  }
   0x3   :  { %46 = vrot.lane.b32.xlu1 %v42_v1, %s1204_s23  ;;  %v30_v2 = vld [vmem:[%s1716_s0] sm:$0xf]  ;;  %v31_v5 = vld [vmem:[%s1716_s0 + $0x4] sm:$0xf]  ;;  %s1209_s13 = smov 108   ;;  %s1210_s24 = smov 106  }
   0x4   :  { %34 = vrot.lane.b32.xlu2 %v30_v2, %s1205_s26  ;;  %v164_v6 = vld [vmem:[%s1716_s0] sm:$0xf]  ;;  %v165_v7 = vld [vmem:[%s1716_s0 + $0x4] sm:$0xf]  ;;  %v1042_v28 = vld [vmem:[%s1716_s0 + $0x8] sm:$0xf] }
   0x5   :  { %v152_v8 = vld [vmem:[%s1716_s0] sm:$0xf]  ;;  %v153_v9 = vld [vmem:[%s1716_s0 + $0x4] sm:$0xf]  ;;  %v1043_v29 = vld [vmem:[%s1716_s0 + $0xc] sm:$0xf] }
   0x6   :  { %v140_v10 = vld [vmem:[%s1716_s0] sm:$0xf]  ;;  %v141_v11 = vld [vmem:[%s1716_s0 + $0x4] sm:$0xf]  ;;  %v1040_v32 = vld [vmem:[%s1716_s0 + $0x8] sm:$0xf] }
   0x7   :  { %v274_v12 = vld [vmem:[%s1716_s0] sm:$0xf]  ;;  %v275_v13 = vld [vmem:[%s1716_s0 + $0x4] sm:$0xf]  ;;  %v1041_v33 = vld [vmem:[%s1716_s0 + $0xc] sm:$0xf] }
   0x8   :  { %v128_v14 = vld [vmem:[%s1716_s0] sm:$0xf]  ;;  %v129_v15 = vld [vmem:[%s1716_s0 + $0x4] sm:$0xf]  ;;  %v1038_v34 = vld [vmem:[%s1716_s0 + $0x8] sm:$0xf] }
   0x9   :  { %v262_v16 = vld [vmem:[%s1716_s0] sm:$0xf]  ;;  %v263_v17 = vld [vmem:[%s1716_s0 + $0x4] sm:$0xf]  ;;  %v1039_v35 = vld [vmem:[%s1716_s0 + $0xc] sm:$0xf] }
   0xa   :  { %60 = vrot.lane.b32.xlu0 %v55_v3, %s1203_s22  ;;  %v250_v18 = vld [vmem:[%s1716_s0] sm:$0xf]  ;;  %v251_v19 = vld [vmem:[%s1716_s0 + $0x4] sm:$0xf]  ;;  %v1068_v37 = vld [vmem:[%s1716_s0 + $0x8] sm:$0xf] }
   0xb   :  { %48 = vrot.lane.b32.xlu1 %v43_v4, %s1204_s23  ;;  %v384_v20 = vld [vmem:[%s1716_s0] sm:$0xf]  ;;  %v385_v21 = vld [vmem:[%s1716_s0 + $0x4] sm:$0xf]  ;;  %v1069_v38 = vld [vmem:[%s1716_s0 + $0xc] sm:$0xf] }
   0xc   :  { %36 = vrot.lane.b32.xlu2 %v31_v5, %s1205_s26  ;;  %v238_v22 = vld [vmem:[%s1716_s0] sm:$0xf]  ;;  %v239_v23 = vld [vmem:[%s1716_s0 + $0x4] sm:$0xf]  ;;  %v1066_v39 = vld [vmem:[%s1716_s0 + $0x8] sm:$0xf] }
   0xd   :  { %v372_v24 = vld [vmem:[%s1716_s0] sm:$0xf]  ;;  %v373_v25 = vld [vmem:[%s1716_s0 + $0x4] sm:$0xf]  ;;  %v1067_v41 = vld [vmem:[%s1716_s0 + $0xc] sm:$0xf] }
   0xe   :  { %v360_v26 = vld [vmem:[%s1716_s0] sm:$0xf]  ;;  %v361_v27 = vld [vmem:[%s1716_s0 + $0x4] sm:$0xf]  ;;  %v1064_v42 = vld [vmem:[%s1716_s0 + $0x8] sm:$0xf] }
   0xf   :  { %v348_v30 = vld [vmem:[%s1716_s0] sm:$0xf]  ;;  %v349_v31 = vld [vmem:[%s1716_s0 + $0x4] sm:$0xf]  ;;  %v1065_v43 = vld [vmem:[%s1716_s0 + $0xc] sm:$0xf] }
  0x10   :  { %v1095_v45 = vld [vmem:[%s1716_s0 + $0x8] sm:$0xf]  ;;  %v1096_v46 = vld [vmem:[%s1716_s0 + $0xc] sm:$0xf]  ;;  %v25_v48 = vld [vmem:[%s1716_s0] sm:$0xf] }
  0x11   :  { %v1062_v47 = vld [vmem:[%s1716_s0 + $0x8] sm:$0xf]  ;;  %28 = vst.msk [vmem:[#allocation2] sm:$0xf] %vm27_vm0, %v25_v48  ;;  %v26_v51 = vld [vmem:[%s1716_s0 + $0x4] sm:$0xf] }
  0x12   :  { %168 = vrot.lane.b32.xlu0 %v164_v6, %s1206_s14  ;;  %v1063_v54 = vld [vmem:[%s1716_s0 + $0xc] sm:$0xf]  ;;  %v1093_v55 = vld [vmem:[%s1716_s0 + $0x8] sm:$0xf]  ;;  %29 = vst.msk [vmem:[#allocation2 + $0x4] sm:$0xf] %vm27_vm0, %v26_v51 }
  0x13   :  { %170 = vrot.lane.b32.xlu1 %v165_v7, %s1206_s14  ;;  %v1094_v56 = vld [vmem:[%s1716_s0 + $0xc] sm:$0xf]  ;;  %v1091_v62 = vld [vmem:[%s1716_s0 + $0x8] sm:$0xf] }
  0x14   :  { %156 = vrot.lane.b32.xlu2 %v152_v8, %s1203_s22  ;;  %v1092_v63 = vld [vmem:[%s1716_s0 + $0xc] sm:$0xf]  ;;  %v1122_v0 = vld [vmem:[%s1716_s0 + $0x8] sm:$0xf] }
  0x15   :  { %v1123_v8 = vld [vmem:[%s1716_s0 + $0xc] sm:$0xf] }
  0x18   :  { %v1448_v59 = vld [vmem:[#allocation2] sm:$0xf] }
  0x1a   :  { %158 = vrot.lane.b32.xlu0 %v153_v9, %s1203_s22  ;;  %v1089_v9 = vld [vmem:[%s1716_s0 + $0x8] sm:$0xf] }
  0x1b   :  { %144 = vrot.lane.b32.xlu1 %v140_v10, %s1207_s21 }
  0x1c   :  { %146 = vrot.lane.b32.xlu2 %v141_v11, %s1207_s21  ;;  %v1090_v11 = vld [vmem:[%s1716_s0 + $0xc] sm:$0xf] }
  0x22   :  { %278 = vrot.lane.b32.xlu0 %v274_v12, %s1208_s6 }
  0x23   :  { %280 = vrot.lane.b32.xlu1 %v275_v13, %s1208_s6 }
  0x24   :  { %132 = vrot.lane.b32.xlu2 %v128_v14, %s1205_s26 }
  0x2a   :  { %134 = vrot.lane.b32.xlu0 %v129_v15, %s1205_s26 }
  0x2b   :  { %266 = vrot.lane.b32.xlu1 %v262_v16, %s1209_s13 }
  0x2c   :  { %268 = vrot.lane.b32.xlu2 %v263_v17, %s1209_s13 }
  0x32   :  { %254 = vrot.lane.b32.xlu0 %v250_v18, %s1203_s22  ;;  %v1120_v18 = vld [vmem:[%s1716_s0 + $0x8] sm:$0xf] }
  0x33   :  { %256 = vrot.lane.b32.xlu1 %v251_v19, %s1203_s22  ;;  %v1121_v19 = vld [vmem:[%s1716_s0 + $0xc] sm:$0xf] }
  0x34   :  { %388 = vrot.lane.b32.xlu2 %v384_v20, %s1210_s24  ;;  %v1118_v20 = vld [vmem:[%s1716_s0 + $0x8] sm:$0xf] }
  0x3a   :  { %390 = vrot.lane.b32.xlu0 %v385_v21, %s1210_s24 }
  0x3b   :  { %242 = vrot.lane.b32.xlu1 %v238_v22, %s1204_s23 }
  0x3c   :  { %244 = vrot.lane.b32.xlu2 %v239_v23, %s1204_s23 }
  0x42   :  { %376 = vrot.lane.b32.xlu0 %v372_v24, %s1208_s6 }
  0x43   :  { %378 = vrot.lane.b32.xlu1 %v373_v25, %s1208_s6 }
  0x44   :  { %364 = vrot.lane.b32.xlu2 %v360_v26, %s1206_s14  ;;  %v1119_v26 = vld [vmem:[%s1716_s0 + $0xc] sm:$0xf] }
  0x4a   :  { %366 = vrot.lane.b32.xlu0 %v361_v27, %s1206_s14  ;;  %v1116_v27 = vld [vmem:[%s1716_s0 + $0x8] sm:$0xf] }
  0x4b   :  { %491 = vrot.lane.b32.xlu1 %v1042_v28, %s1203_s22  ;;  %v1117_v28 = vld [vmem:[%s1716_s0 + $0xc] sm:$0xf] }
  0x4c   :  { %493 = vrot.lane.b32.xlu2 %v1043_v29, %s1203_s22  ;;  %v1157_v29 = vld [vmem:[#allocation2] sm:$0xf0] }
  0x52   :  { %352 = vrot.lane.b32.xlu0 %v348_v30, %s1203_s22 }
  0x53   :  { %354 = vrot.lane.b32.xlu1 %v349_v31, %s1203_s22 }
  0x54   :  { %479 = vrot.lane.b32.xlu2 %v1040_v32, %s1204_s23 }
  0x5a   :  { %481 = vrot.lane.b32.xlu0 %v1041_v33, %s1204_s23 }
  0x5b   :  { %467 = vrot.lane.b32.xlu1 %v1038_v34, %s1205_s26 }
  0x5c   :  { %469 = vrot.lane.b32.xlu2 %v1039_v35, %s1205_s26 }
  0x5e   :  { %v35_v36 = vpop.permute.xlu2 %34 }
  0x5f   :  { %40 = vst.msk [vmem:[#allocation2 + $0x8] sm:$0xf] %vm27_vm0, %v35_v36 }
  0x62   :  { %600 = vrot.lane.b32.xlu0 %v1068_v37, %s1206_s14 }
  0x63   :  { %602 = vrot.lane.b32.xlu1 %v1069_v38, %s1206_s14 }
  0x64   :  { %588 = vrot.lane.b32.xlu2 %v1066_v39, %s1203_s22  ;;  %v965_v39 = vor.u32 %v1157_v29, %v1448_v59 }
  0x66   :  { %v37_v40 = vpop.permute.xlu2 %36  ;;  %v968_v12 = vld [vmem:[#allocation2 + $0x8] sm:$0xf] }
  0x67   :  { %41 = vst.msk [vmem:[#allocation2 + $0xc] sm:$0xf] %vm27_vm0, %v37_v40 }
  0x6a   :  { %590 = vrot.lane.b32.xlu0 %v1067_v41, %s1203_s22 }
  0x6b   :  { %576 = vrot.lane.b32.xlu1 %v1064_v42, %s1207_s21 }
  0x6c   :  { %578 = vrot.lane.b32.xlu2 %v1065_v43, %s1207_s21 }
  0x6e   :  { %v157_v44 = vpop.permute.xlu2 %156  ;;  %v1158_v52 = vld [vmem:[#allocation2 + $0x8] sm:$0xf0] }
  0x6f   :  { %v969_v15 = vor.u32 %v1158_v52, %v968_v12 }
  0x72   :  { %709 = vrot.lane.b32.xlu0 %v1095_v45, %s1208_s6 }
  0x73   :  { %711 = vrot.lane.b32.xlu1 %v1096_v46, %s1208_s6 }
  0x74   :  { %v59_v49 = vpop.permute.xlu0 %58  ;;  %564 = vrot.lane.b32.xlu2 %v1062_v47, %s1205_s26 }
  0x75   :  { %v47_v50 = vpop.permute.xlu1 %46  ;;  %64 = vst.msk [vmem:[#allocation2 + $0x18] sm:$0xf] %vm27_vm0, %v59_v49 }
  0x76   :  { %52 = vst.msk [vmem:[#allocation2 + $0x10] sm:$0xf] %vm27_vm0, %v47_v50  ;;  %v147_v53 = vpop.permute.xlu2 %146 }
  0x77   :  { %151 = vst.msk [vmem:[#allocation2 + $0xc] sm:$0xf] %vm27_vm0, %v147_v53 }
  0x7a   :  { %566 = vrot.lane.b32.xlu0 %v1063_v54, %s1205_s26 }
  0x7b   :  { %697 = vrot.lane.b32.xlu1 %v1093_v55, %s1209_s13 }
  0x7c   :  { %v61_v57 = vpop.permute.xlu0 %60  ;;  %699 = vrot.lane.b32.xlu2 %v1094_v56, %s1209_s13  ;;  %v976_v1 = vld [vmem:[#allocation2 + $0x18] sm:$0xf] }
  0x7d   :  { %v49_v58 = vpop.permute.xlu1 %48  ;;  %65 = vst.msk [vmem:[#allocation2 + $0x1c] sm:$0xf] %vm27_vm0, %v61_v57  ;;  %v972_v60 = vld [vmem:[#allocation2 + $0x10] sm:$0xf]  ;;  %v1036_v57 = vld [vmem:[%s1716_s0 + $0x8] sm:$0xf] }
  0x7e   :  { %53 = vst.msk [vmem:[#allocation2 + $0x14] sm:$0xf] %vm27_vm0, %v49_v58  ;;  %v133_v61 = vpop.permute.xlu2 %132 }
  0x7f   :  { %162 = vst.msk [vmem:[#allocation2 + $0x10] sm:$0xf] %vm27_vm0, %v157_v44 }
  0x80   :  { %138 = vst.msk [vmem:[#allocation2] sm:$0xf] %vm27_vm0, %v133_v61  ;;  %v1037_v61 = vld [vmem:[%s1716_s0 + $0xc] sm:$0xf] }
  0x82   :  { %685 = vrot.lane.b32.xlu0 %v1091_v62, %s1203_s22 }
  0x83   :  { %687 = vrot.lane.b32.xlu1 %v1092_v63, %s1203_s22  ;;  %v66_v63 = vld [vmem:[%s1718_s1] sm:$0xf] }
  0x84   :  { %v169_v2 = vpop.permute.xlu0 %168  ;;  %v1160_v3 = vld [vmem:[#allocation2 + $0x18] sm:$0xf0]  ;;  %818 = vrot.lane.b32.xlu2 %v1122_v0, %s1210_s24  ;;  %v979_v0 = vld [vmem:[%s1718_s1 + $0x4] sm:$0xf] }
  0x85   :  { %v171_v4 = vpop.permute.xlu1 %170  ;;  %174 = vst.msk [vmem:[#allocation2 + $0x18] sm:$0xf] %vm27_vm0, %v169_v2  ;;  %v977_v5 = vor.u32 %v1160_v3, %v976_v1  ;;  %v1159_v6 = vld [vmem:[#allocation2 + $0x10] sm:$0xf0]  ;;  %v998_v3 = vld [vmem:[%s1718_s1 + $0x8] sm:$0xf] }
  0x86   :  { %175 = vst.msk [vmem:[#allocation2 + $0x1c] sm:$0xf] %vm27_vm0, %v171_v4  ;;  %v269_v7 = vpop.permute.xlu2 %268  ;;  %v973_v10 = vor.u32 %v1159_v6, %v972_v60 }
  0x87   :  { %107 = vmatpush.bf16.msra.mxu0 %v977_v5 }
  0x8a   :  { %820 = vrot.lane.b32.xlu0 %v1123_v8, %s1210_s24 }
  0x8b   :  { %673 = vrot.lane.b32.xlu1 %v1089_v9, %s1204_s23  ;;  %108 = vmatpush.bf16.msra.mxu0 %v973_v10 }
  0x8c   :  { %v159_v13 = vpop.permute.xlu0 %158  ;;  %675 = vrot.lane.b32.xlu2 %v1090_v11, %s1204_s23 }
  0x8d   :  { %v145_v14 = vpop.permute.xlu1 %144  ;;  %163 = vst.msk [vmem:[#allocation2 + $0x14] sm:$0xf] %vm27_vm0, %v159_v13  ;;  %v1164_v16 = vld [vmem:[#allocation2 + $0x18] sm:$0xff] }
  0x8e   :  { %150 = vst.msk [vmem:[#allocation2 + $0x8] sm:$0xf] %vm27_vm0, %v145_v14  ;;  %v389_v17 = vpop.permute.xlu2 %388  ;;  %217 = vmatpush.bf16.msra.mxu1 %v1164_v16 }
  0x8f   :  { %109 = vmatpush.bf16.msra.mxu0 %v969_v15  ;;  %v499_v15 = vld [vmem:[%s1718_s1] sm:$0xf] }
  0x92   :  { %806 = vrot.lane.b32.xlu0 %v1120_v18, %s1208_s6 }
  0x93   :  { %808 = vrot.lane.b32.xlu1 %v1121_v19, %s1208_s6  ;;  %110 = vmatpush.bf16.msra.mxu0 %v965_v39  ;;  %v1097_v39 = vld [vmem:[%s1718_s1 + $0x8] sm:$0xf] }
  0x94   :  { %v279_v21 = vpop.permute.xlu0 %278  ;;  %v1163_v23 = vld [vmem:[#allocation2 + $0x10] sm:$0xff]  ;;  %794 = vrot.lane.b32.xlu2 %v1118_v20, %s1206_s14 }
  0x95   :  { %v281_v22 = vpop.permute.xlu1 %280  ;;  %284 = vst.msk [vmem:[#allocation2 + $0x18] sm:$0xf] %vm27_vm0, %v279_v21  ;;  %218 = vmatpush.bf16.msra.mxu1 %v1163_v23  ;;  %v1162_v24 = vld [vmem:[#allocation2 + $0x8] sm:$0xff] }
  0x96   :  { %285 = vst.msk [vmem:[#allocation2 + $0x1c] sm:$0xf] %vm27_vm0, %v281_v22  ;;  %v245_v25 = vpop.permute.xlu2 %244  ;;  %978 = vmatmul.msk.bf16.vlgmr.msra.gmra.mxu0 %vm99_vm1, %v66_v63 }
  0x97   :  { %273 = vst.msk [vmem:[#allocation2 + $0x14] sm:$0xf] %vm27_vm0, %v269_v7  ;;  %v1017_v7 = vld [vmem:[%s1718_s1 + $0xc] sm:$0xf] }
  0x98   :  { %394 = vst.msk [vmem:[#allocation2 + $0x18] sm:$0xf] %vm27_vm0, %v389_v17 }
  0x99   :  { %219 = vmatpush.bf16.msra.mxu1 %v1162_v24 }
  0x9a   :  { %796 = vrot.lane.b32.xlu0 %v1119_v26, %s1206_s14 }
  0x9b   :  { %782 = vrot.lane.b32.xlu1 %v1116_v27, %s1203_s22 }
  0x9c   :  { %v135_v30 = vpop.permute.xlu0 %134  ;;  %784 = vrot.lane.b32.xlu2 %v1117_v28, %s1203_s22 }
  0x9d   :  { %v267_v31 = vpop.permute.xlu1 %266  ;;  %139 = vst.msk [vmem:[#allocation2 + $0x4] sm:$0xf] %vm27_vm0, %v135_v30  ;;  %v1070_v30 = vld [vmem:[%s1718_s1 + $0x4] sm:$0xf] }
  0x9e   :  { %272 = vst.msk [vmem:[#allocation2 + $0x10] sm:$0xf] %vm27_vm0, %v267_v31  ;;  %v365_v33 = vpop.permute.xlu2 %364 }
  0x9f   :  { %v1168_v32 = vld [vmem:[#allocation2 + $0x18] sm:$0xff] }
  0xa0   :  { %327 = vmatpush.bf16.msra.mxu2 %v1168_v32 }
  0xa4   :  { %v255_v34 = vpop.permute.xlu0 %254  ;;  %v1161_v36 = vld [vmem:[#allocation2] sm:$0xff] }
  0xa5   :  { %v257_v35 = vpop.permute.xlu1 %256  ;;  %260 = vst.msk [vmem:[#allocation2 + $0x8] sm:$0xf] %vm27_vm0, %v255_v34  ;;  %v1167_v37 = vld [vmem:[#allocation2 + $0x10] sm:$0xff]  ;;  %220 = vmatpush.bf16.msra.mxu1 %v1161_v36 }
  0xa6   :  { %261 = vst.msk [vmem:[#allocation2 + $0xc] sm:$0xf] %vm27_vm0, %v257_v35  ;;  %v494_v38 = vpop.permute.xlu2 %493  ;;  %328 = vmatpush.bf16.msra.mxu2 %v1167_v37 }
  0xa7   :  { %249 = vst.msk [vmem:[#allocation2 + $0x4] sm:$0xf] %vm27_vm0, %v245_v25 }
  0xa8   :  { %370 = vst.msk [vmem:[#allocation2 + $0x8] sm:$0xf] %vm27_vm0, %v365_v33  ;;  %996 = vmatmul.msk.bf16.vlgmr.msra.gmra.mxu1 %vm99_vm1, %v979_v0 }
  0xac   :  { %v391_v40 = vpop.permute.xlu0 %390 }
  0xad   :  { %v243_v41 = vpop.permute.xlu1 %242  ;;  %395 = vst.msk [vmem:[#allocation2 + $0x1c] sm:$0xf] %vm27_vm0, %v391_v40 }
  0xae   :  { %248 = vst.msk [vmem:[#allocation2] sm:$0xf] %vm27_vm0, %v243_v41  ;;  %v480_v43 = vpop.permute.xlu2 %479 }
  0xaf   :  { %v1166_v42 = vld [vmem:[#allocation2 + $0x8] sm:$0xff] }
  0xb0   :  { %329 = vmatpush.bf16.msra.mxu2 %v1166_v42 }
  0xb4   :  { %v377_v44 = vpop.permute.xlu0 %376  ;;  %v1172_v46 = vld [vmem:[#allocation2 + $0x18] sm:$0xff] }
  0xb5   :  { %v379_v45 = vpop.permute.xlu1 %378  ;;  %382 = vst.msk [vmem:[#allocation2 + $0x10] sm:$0xf] %vm27_vm0, %v377_v44  ;;  %v1165_v47 = vld [vmem:[#allocation2] sm:$0xff]  ;;  %437 = vmatpush.bf16.msra.mxu3 %v1172_v46 }
  0xb6   :  { %383 = vst.msk [vmem:[#allocation2 + $0x14] sm:$0xf] %vm27_vm0, %v379_v45  ;;  %v470_v48 = vpop.permute.xlu2 %469  ;;  %330 = vmatpush.bf16.msra.mxu2 %v1165_v47  ;;  %v1124_v45 = vld [vmem:[%s1718_s1 + $0xc] sm:$0xf]  ;;  %v1596_v46 = vld [vmem:[%s1717_s4] ss:$0 sm:$0xff] }
  0xb7   :  { %498 = vst.msk [vmem:[#allocation2 + $0x1c] sm:$0xf] %vm27_vm0, %v494_v38 }
  0xb8   :  { %485 = vst.msk [vmem:[#allocation2 + $0x10] sm:$0xf] %vm27_vm0, %v480_v43 }
  0xb9   :  { %1015 = vmatmul.msk.bf16.vlgmr.msra.gmra.mxu2 %vm99_vm1, %v998_v3 }
  0xbc   :  { %v367_v49 = vpop.permute.xlu0 %366 }
  0xbd   :  { %v492_v50 = vpop.permute.xlu1 %491  ;;  %371 = vst.msk [vmem:[#allocation2 + $0xc] sm:$0xf] %vm27_vm0, %v367_v49 }
  0xbe   :  { %497 = vst.msk [vmem:[#allocation2 + $0x18] sm:$0xf] %vm27_vm0, %v492_v50  ;;  %v589_v52 = vpop.permute.xlu2 %588 }
  0xbf   :  { %v1171_v51 = vld [vmem:[#allocation2 + $0x10] sm:$0xff] }
  0xc0   :  { %438 = vmatpush.bf16.msra.mxu3 %v1171_v51  ;;  %594 = vst.msk [vmem:[#allocation2 + $0x10] sm:$0xf] %vm27_vm0, %v589_v52 }
  0xc4   :  { %v353_v53 = vpop.permute.xlu0 %352  ;;  %v1170_v55 = vld [vmem:[#allocation2 + $0x8] sm:$0xff] }
  0xc5   :  { %v355_v54 = vpop.permute.xlu1 %354  ;;  %358 = vst.msk [vmem:[#allocation2] sm:$0xf] %vm27_vm0, %v353_v53  ;;  %v1176_v56 = vld [vmem:[#allocation2 + $0x18] sm:$0xff]  ;;  %439 = vmatpush.bf16.msra.mxu3 %v1170_v55 }
  0xc6   :  { %359 = vst.msk [vmem:[#allocation2 + $0x4] sm:$0xf] %vm27_vm0, %v355_v54  ;;  %v579_v58 = vpop.permute.xlu2 %578  ;;  %539 = vmatpush.bf16.msrb.mxu0 %v1176_v56 }
  0xc7   :  { %474 = vst.msk [vmem:[#allocation2 + $0xc] sm:$0xf] %vm27_vm0, %v470_v48 }
  0xc8   :  { %461 = vst.msk [vmem:[#allocation2] sm:$0xf] %vm27_vm0, %v1036_v57 }
  0xcc   :  { %v482_v59 = vpop.permute.xlu0 %481 }
  0xcd   :  { %v468_v60 = vpop.permute.xlu1 %467  ;;  %486 = vst.msk [vmem:[#allocation2 + $0x14] sm:$0xf] %vm27_vm0, %v482_v59 }
  0xce   :  { %473 = vst.msk [vmem:[#allocation2 + $0x8] sm:$0xf] %vm27_vm0, %v468_v60  ;;  %v565_v1 = vpop.permute.xlu2 %564 }
  0xcf   :  { %v1169_v62 = vld [vmem:[#allocation2] sm:$0xff] }
  0xd0   :  { %440 = vmatpush.bf16.msra.mxu3 %v1169_v62  ;;  %462 = vst.msk [vmem:[#allocation2 + $0x4] sm:$0xf] %vm27_vm0, %v1037_v61  ;;  %v1046_v2 = vld [vmem:[#allocation2] sm:$0xf] }
  0xd1   :  { %570 = vst.msk [vmem:[#allocation2] sm:$0xf] %vm27_vm0, %v565_v1 }
  0xd3   :  { %1034 = vmatmul.msk.bf16.vlgmr.msra.gmra.mxu3 %vm99_vm1, %v1017_v7 }
  0xd4   :  { %v601_v4 = vpop.permute.xlu0 %600  ;;  %v1175_v6 = vld [vmem:[#allocation2 + $0x10] sm:$0xff] }
  0xd5   :  { %v603_v5 = vpop.permute.xlu1 %602  ;;  %606 = vst.msk [vmem:[#allocation2 + $0x18] sm:$0xf] %vm27_vm0, %v601_v4  ;;  %540 = vmatpush.bf16.msrb.mxu0 %v1175_v6  ;;  %v1174_v8 = vld [vmem:[#allocation2 + $0x8] sm:$0xff] }
  0xd6   :  { %607 = vst.msk [vmem:[#allocation2 + $0x1c] sm:$0xf] %vm27_vm0, %v603_v5  ;;  %v700_v9 = vpop.permute.xlu2 %699 }
  0xd7   :  { %583 = vst.msk [vmem:[#allocation2 + $0xc] sm:$0xf] %vm27_vm0, %v579_v58  ;;  %v1173_v10 = vld [vmem:[#allocation2] sm:$0xf0] }
  0xd8   :  { %v1047_v11 = vor.u32 %v1173_v10, %v1046_v2 }
  0xd9   :  { %541 = vmatpush.bf16.msrb.mxu0 %v1174_v8 }
  0xdc   :  { %v591_v12 = vpop.permute.xlu0 %590 }
  0xdd   :  { %v577_v13 = vpop.permute.xlu1 %576  ;;  %595 = vst.msk [vmem:[#allocation2 + $0x14] sm:$0xf] %vm27_vm0, %v591_v12  ;;  %v1180_v14 = vld [vmem:[#allocation2 + $0x18] sm:$0xff]  ;;  %542 = vmatpush.bf16.msrb.mxu0 %v1047_v11 }
  0xde   :  { %582 = vst.msk [vmem:[#allocation2 + $0x8] sm:$0xf] %vm27_vm0, %v577_v13  ;;  %648 = vmatpush.bf16.msrb.mxu1 %v1180_v14  ;;  %v819_v16 = vpop.permute.xlu2 %818 }
  0xe0   :  { %1060 = vmatmul.msk.bf16.vlgmr.msrb.gmra.mxu0 %vm99_vm1, %v499_v15 }
  0xe4   :  { %v710_v17 = vpop.permute.xlu0 %709  ;;  %v1179_v19 = vld [vmem:[#allocation2 + $0x10] sm:$0xff] }
  0xe5   :  { %v712_v18 = vpop.permute.xlu1 %711  ;;  %715 = vst.msk [vmem:[#allocation2 + $0x18] sm:$0xf] %vm27_vm0, %v710_v17  ;;  %649 = vmatpush.bf16.msrb.mxu1 %v1179_v19  ;;  %v1178_v20 = vld [vmem:[#allocation2 + $0x8] sm:$0xff] }
  0xe6   :  { %716 = vst.msk [vmem:[#allocation2 + $0x1c] sm:$0xf] %vm27_vm0, %v712_v18  ;;  %v676_v24 = vpop.permute.xlu2 %675 }
  0xe7   :  { %704 = vst.msk [vmem:[#allocation2 + $0x14] sm:$0xf] %vm27_vm0, %v700_v9 }
  0xe8   :  { %824 = vst.msk [vmem:[#allocation2 + $0x18] sm:$0xf] %vm27_vm0, %v819_v16 }
  0xe9   :  { %650 = vmatpush.bf16.msrb.mxu1 %v1178_v20 }
  0xec   :  { %v567_v21 = vpop.permute.xlu0 %566 }
  0xed   :  { %v698_v22 = vpop.permute.xlu1 %697  ;;  %571 = vst.msk [vmem:[#allocation2 + $0x4] sm:$0xf] %vm27_vm0, %v567_v21 }
  0xee   :  { %703 = vst.msk [vmem:[#allocation2 + $0x10] sm:$0xf] %vm27_vm0, %v698_v22  ;;  %v795_v29 = vpop.permute.xlu2 %794 }
  0xef   :  { %v1184_v23 = vld [vmem:[#allocation2 + $0x18] sm:$0xff] }
  0xf0   :  { %757 = vmatpush.bf16.msrb.mxu2 %v1184_v23 }
  0xf4   :  { %v686_v25 = vpop.permute.xlu0 %685  ;;  %v1177_v27 = vld [vmem:[#allocation2] sm:$0xff] }
  0xf5   :  { %v688_v26 = vpop.permute.xlu1 %687  ;;  %691 = vst.msk [vmem:[#allocation2 + $0x8] sm:$0xf] %vm27_vm0, %v686_v25  ;;  %v1183_v28 = vld [vmem:[#allocation2 + $0x10] sm:$0xff]  ;;  %651 = vmatpush.bf16.msrb.mxu1 %v1177_v27 }
  0xf6   :  { %692 = vst.msk [vmem:[#allocation2 + $0xc] sm:$0xf] %vm27_vm0, %v688_v26  ;;  %758 = vmatpush.bf16.msrb.mxu2 %v1183_v28  ;;  %v785_v34 = vpop.permute.xlu2 %784 }
  0xf7   :  { %680 = vst.msk [vmem:[#allocation2 + $0x4] sm:$0xf] %vm27_vm0, %v676_v24 }
  0xf8   :  { %800 = vst.msk [vmem:[#allocation2 + $0x8] sm:$0xf] %vm27_vm0, %v795_v29  ;;  %1087 = vmatmul.msk.bf16.vlgmr.msrb.gmra.mxu1 %vm99_vm1, %v1070_v30 }
  0xfc   :  { %v821_v31 = vpop.permute.xlu0 %820 }
  0xfd   :  { %v674_v32 = vpop.permute.xlu1 %673  ;;  %825 = vst.msk [vmem:[#allocation2 + $0x1c] sm:$0xf] %vm27_vm0, %v821_v31 }
  0xfe   :  { %679 = vst.msk [vmem:[#allocation2] sm:$0xf] %vm27_vm0, %v674_v32 }
  0xff   :  { %v1182_v33 = vld [vmem:[#allocation2 + $0x8] sm:$0xff] }
 0x100   :  { %759 = vmatpush.bf16.msrb.mxu2 %v1182_v33 }
 0x104   :  { %v807_v35 = vpop.permute.xlu0 %806  ;;  %v1188_v37 = vld [vmem:[#allocation2 + $0x18] sm:$0xff] }
 0x105   :  { %v809_v36 = vpop.permute.xlu1 %808  ;;  %812 = vst.msk [vmem:[#allocation2 + $0x10] sm:$0xf] %vm27_vm0, %v807_v35  ;;  %v1181_v38 = vld [vmem:[#allocation2] sm:$0xff]  ;;  %866 = vmatpush.bf16.msrb.mxu3 %v1188_v37 }
 0x106   :  { %813 = vst.msk [vmem:[#allocation2 + $0x14] sm:$0xf] %vm27_vm0, %v809_v36  ;;  %760 = vmatpush.bf16.msrb.mxu2 %v1181_v38 }
 0x107   :  { %789 = vst.msk [vmem:[#allocation2 + $0x4] sm:$0xf] %vm27_vm0, %v785_v34 }
 0x109   :  { %1114 = vmatmul.msk.bf16.vlgmr.msrb.gmra.mxu2 %vm99_vm1, %v1097_v39 }
 0x10c   :  { %v797_v40 = vpop.permute.xlu0 %796 }
 0x10d   :  { %801 = vst.msk [vmem:[#allocation2 + $0xc] sm:$0xf] %vm27_vm0, %v797_v40  ;;  %v1187_v41 = vld [vmem:[#allocation2 + $0x10] sm:$0xff]  ;;  %v783_v42 = vpop.permute.xlu1 %782 }
 0x10e   :  { %788 = vst.msk [vmem:[#allocation2] sm:$0xf] %vm27_vm0, %v783_v42  ;;  %867 = vmatpush.bf16.msrb.mxu3 %v1187_v41 }
 0x113   :  { %v112_v47 = vpop.f32.mrf.mxu0 }
 0x114   :  { %v1186_v43 = vld [vmem:[#allocation2 + $0x8] sm:$0xff]  ;;  %v116_v48 = vmul.f32 %v1596_v46, %v112_v47  ;;  %127 = vst.msk [vmem:[%s1719_s5] sm:$0xff] %vm117_vm2, %v112_v47 }
 0x115   :  { %868 = vmatpush.bf16.msrb.mxu3 %v1186_v43  ;;  %v1185_v44 = vld [vmem:[#allocation2] sm:$0xff] }
 0x116   :  { %v118_v51 = vsel %vm117_vm2, %v116_v48, 0.0  ;;  %v122_v52 = vmul.f32 %v116_v48, %v116_v48 }
 0x117   :  { %119 = vadd.xlane.f32.xlu0 %v118_v51 }
 0x118   :  { %v123_v54 = vsel %vm117_vm2, %v122_v52, 0.0 }
 0x119   :  { %869 = vmatpush.bf16.msrb.mxu3 %v1185_v44  ;;  %124 = vadd.xlane.f32.xlu1 %v123_v54 }
 0x11b   :  { %v114_v57 = vpop.f32.mrf.mxu0 }
 0x11c   :  { %1141 = vmatmul.msk.bf16.vlgmr.msrb.gmra.mxu3 %vm99_vm1, %v1124_v45 }
 0x125   :  { %v222_v49 = vpop.f32.mrf.mxu1 }
 0x126   :  { %v226_v50 = vmul.f32 %v1596_v46, %v222_v49  ;;  %997 = vst.msk [vmem:[%s1719_s5 + $0x8] sm:$0xff] %vm117_vm2, %v222_v49 }
 0x128   :  { %v227_v53 = vsel %vm117_vm2, %v226_v50, 0.0  ;;  %v231_v55 = vmul.f32 %v226_v50, %v226_v50  ;;  %v1211_v50 = vmov 0  }
 0x129   :  { %228 = vadd.xlane.f32.xlu2 %v227_v53  ;;  %1198 = vset.pattern.permute.xlu0 %v1211_v50 }
 0x12a   :  { %v232_v60 = vsel %vm117_vm2, %v231_v55, 0.0  ;;  %1199 = vset.pattern.permute.xlu1 %v1211_v50 }
 0x12d   :  { %v224_v59 = vpop.f32.mrf.mxu1 }
 0x131   :  { %233 = vadd.xlane.f32.xlu2 %v232_v60 }
 0x13c   :  { %v332_v56 = vpop.f32.mrf.mxu2 }
 0x13d   :  { %v336_v58 = vmul.f32 %v1596_v46, %v332_v56  ;;  %1016 = vst.msk [vmem:[%s1719_s5 + $0x10] sm:$0xff] %vm117_vm2, %v332_v56 }
 0x13f   :  { %v337_v61 = vsel %vm117_vm2, %v336_v58, 0.0  ;;  %v341_v62 = vmul.f32 %v336_v58, %v336_v58 }
 0x140   :  { %338 = vadd.xlane.f32.xlu0 %v337_v61 }
 0x141   :  { %v342_v63 = vsel %vm117_vm2, %v341_v62, 0.0 }
 0x142   :  { %343 = vadd.xlane.f32.xlu1 %v342_v63 }
 0x144   :  { %v334_v2 = vpop.f32.mrf.mxu2 }
 0x156   :  { %v442_v0 = vpop.f32.mrf.mxu3 }
 0x157   :  { %v446_v1 = vmul.f32 %v1596_v46, %v442_v0  ;;  %1035 = vst.msk [vmem:[%s1719_s5 + $0x18] sm:$0xff] %vm117_vm2, %v442_v0 }
 0x159   :  { %v451_v3 = vmul.f32 %v446_v1, %v446_v1  ;;  %v447_v4 = vsel %vm117_vm2, %v446_v1, 0.0 }
 0x15a   :  { %448 = vadd.xlane.f32.xlu2 %v447_v4 }
 0x15b   :  { %v452_v6 = vsel %vm117_vm2, %v451_v3, 0.0 }
 0x15c   :  { %453 = vadd.xlane.f32.xlu0 %v452_v6 }
 0x15d   :  { %v544_v5 = vpop.f32.mrf.mxu0 }
 0x15e   :  { %v548_v7 = vmul.f32 %v1596_v46, %v544_v5  ;;  %1061 = vst.msk [vmem:[%s1719_s5 + $0x20] sm:$0xff] %vm117_vm2, %v544_v5  ;;  %v444_v10 = vpop.f32.mrf.mxu3 }
 0x160   :  { %v549_v8 = vsel %vm117_vm2, %v548_v7, 0.0  ;;  %v553_v9 = vmul.f32 %v548_v7, %v548_v7 }
 0x161   :  { %550 = vadd.xlane.f32.xlu1 %v549_v8 }
 0x162   :  { %v554_v11 = vsel %vm117_vm2, %v553_v9, 0.0  ;;  %v892_v9 = vld [vmem:[%s1720_s2] sm:$0xff] }
 0x163   :  { %555 = vadd.xlane.f32.xlu2 %v554_v11 }
 0x165   :  { %v546_v12 = vpop.f32.mrf.mxu0 }
 0x175   :  { %v653_v13 = vpop.f32.mrf.mxu1 }
 0x176   :  { %v657_v14 = vmul.f32 %v1596_v46, %v653_v13  ;;  %1088 = vst.msk [vmem:[%s1719_s5 + $0x28] sm:$0xff] %vm117_vm2, %v653_v13  ;;  %v905_v13 = vld [vmem:[%s1721_s3] sm:$0xff] }
 0x178   :  { %v658_v15 = vsel %vm117_vm2, %v657_v14, 0.0  ;;  %v662_v16 = vmul.f32 %v657_v14, %v657_v14 }
 0x179   :  { %659 = vadd.xlane.f32.xlu0 %v658_v15 }
 0x17a   :  { %v663_v17 = vsel %vm117_vm2, %v662_v16, 0.0 }
 0x17b   :  { %664 = vadd.xlane.f32.xlu1 %v663_v17  ;;  %v1143_v17 = vld [vmem:[%s1719_s5 + $0x8] sm:$0xff] }
 0x17d   :  { %v655_v18 = vpop.f32.mrf.mxu1 }
 0x17e   :  { %v918_v18 = vld [vmem:[%s1719_s5] sm:$0xff] }
 0x18a   :  { %v120_v32 = vpop.xlane.xlu0 %119 }
 0x18c   :  { %v762_v19 = vpop.f32.mrf.mxu2  ;;  %v125_v33 = vpop.xlane.xlu1 %124 }
 0x18d   :  { %v766_v20 = vmul.f32 %v1596_v46, %v762_v19  ;;  %1115 = vst.msk [vmem:[%s1719_s5 + $0x30] sm:$0xff] %vm117_vm2, %v762_v19  ;;  %v1145_v19 = vld [vmem:[%s1719_s5 + $0x10] sm:$0xff] }
 0x18f   :  { %v767_v21 = vsel %vm117_vm2, %v766_v20, 0.0  ;;  %v771_v22 = vmul.f32 %v766_v20, %v766_v20  ;;  %v1147_v20 = vld [vmem:[%s1719_s5 + $0x18] sm:$0xff] }
 0x190   :  { %768 = vadd.xlane.f32.xlu2 %v767_v21  ;;  %v1149_v21 = vld [vmem:[%s1719_s5 + $0x20] sm:$0xff] }
 0x191   :  { %v772_v23 = vsel %vm117_vm2, %v771_v22, 0.0  ;;  %v1151_v22 = vld [vmem:[%s1719_s5 + $0x28] sm:$0xff] }
 0x192   :  { %773 = vadd.xlane.f32.xlu0 %v772_v23 }
 0x194   :  { %v764_v24 = vpop.f32.mrf.mxu2  ;;  %v1153_v23 = vld [vmem:[%s1719_s5 + $0x30] sm:$0xff] }
 0x19c   :  { %v229_v31 = vpop.xlane.xlu2 %228 }
 0x19d   :  { %v230_v39 = vadd.f32 %v229_v31, %v120_v32 }
 0x19f   :  { %v871_v25 = vpop.f32.mrf.mxu3 }
 0x1a0   :  { %v875_v26 = vmul.f32 %v1596_v46, %v871_v25  ;;  %1142 = vst.msk [vmem:[%s1719_s5 + $0x38] sm:$0xff] %vm117_vm2, %v871_v25 }
 0x1a2   :  { %v876_v27 = vsel %vm117_vm2, %v875_v26, 0.0  ;;  %v880_v28 = vmul.f32 %v875_v26, %v875_v26 }
 0x1a3   :  { %877 = vadd.xlane.f32.xlu1 %v876_v27 }
 0x1a4   :  { %v881_v29 = vsel %vm117_vm2, %v880_v28, 0.0  ;;  %v234_v34 = vpop.xlane.xlu2 %233 }
 0x1a5   :  { %882 = vadd.xlane.f32.xlu2 %v881_v29  ;;  %v235_v41 = vadd.f32 %v234_v34, %v125_v33 }
 0x1a7   :  { %v873_v30 = vpop.f32.mrf.mxu3  ;;  %v1155_v32 = vld [vmem:[%s1719_s5 + $0x38] sm:$0xff] }
 0x1b3   :  { %v339_v35 = vpop.xlane.xlu0 %338 }
 0x1b4   :  { %v340_v42 = vadd.f32 %v339_v35, %v230_v39 }
 0x1b5   :  { %v344_v36 = vpop.xlane.xlu1 %343 }
 0x1b6   :  { %v345_v44 = vadd.f32 %v344_v36, %v235_v41 }
 0x1cd   :  { %v449_v37 = vpop.xlane.xlu2 %448 }
 0x1ce   :  { %v450_v45 = vadd.f32 %v449_v37, %v340_v42 }
 0x1cf   :  { %v454_v38 = vpop.xlane.xlu0 %453 }
 0x1d0   :  { %v455_v47 = vadd.f32 %v454_v38, %v345_v44 }
 0x1d4   :  { %v551_v40 = vpop.xlane.xlu1 %550 }
 0x1d5   :  { %v552_v49 = vadd.f32 %v551_v40, %v450_v45 }
 0x1d6   :  { %v556_v43 = vpop.xlane.xlu2 %555 }
 0x1d7   :  { %v557_v52 = vadd.f32 %v556_v43, %v455_v47 }
 0x1ec   :  { %v660_v46 = vpop.xlane.xlu0 %659 }
 0x1ed   :  { %v661_v53 = vadd.f32 %v660_v46, %v552_v49 }
 0x1ee   :  { %v665_v48 = vpop.xlane.xlu1 %664 }
 0x1ef   :  { %v666_v55 = vadd.f32 %v665_v48, %v557_v52 }
 0x203   :  { %v769_v51 = vpop.xlane.xlu2 %768 }
 0x204   :  { %v770_v56 = vadd.f32 %v769_v51, %v661_v53 }
 0x205   :  { %v774_v54 = vpop.xlane.xlu0 %773 }
 0x206   :  { %v775_v58 = vadd.f32 %v774_v54, %v666_v55 }
 0x216   :  { %v878_v57 = vpop.xlane.xlu1 %877 }
 0x217   :  { %v879_v59 = vadd.f32 %v878_v57, %v770_v56 }
 0x218   :  { %v883_v60 = vpop.xlane.xlu2 %882 }
 0x219   :  { %v887_v61 = vmul.f32 0.001953125, %v879_v59  ;;  %v884_v62 = vadd.f32 %v883_v60, %v775_v58 }
 0x21b   :  { %v889_v63 = vmul.f32 %v887_v61, %v887_v61  ;;  %v888_v0 = vmul.f32 0.001953125, %v884_v62 }
 0x21d   :  { %v890_v1 = vsub.f32 %v888_v0, %v889_v63 }
 0x21f   :  { %v891_v2 = vmax.f32 %v890_v1, 0.0 }
 0x221   :  { %v893_v3 = vadd.f32 1e-05, %v891_v2 }
 0x223   :  { %1201 = vrsqrt.f32 %v893_v3  ;;  %vm900_vm4 = vweird.f32 %v893_v3 }
 0x229   :  { %v1202_v4 = vpop.eup %1201 }
 0x22a   :  { %v895_v5 = vmul.f32 %v1202_v4, %v893_v3  ;;  %vm901_vm3 = vweird.f32 %v1202_v4 }
 0x22b   :  { %vm902_vm5 = vmor %vm900_vm4, %vm901_vm3 }
 0x22c   :  { %v896_v6 = vmul.f32 %v1202_v4, %v895_v5 }
 0x22e   :  { %v897_v7 = vmul.f32 0.5, %v896_v6 }
 0x230   :  { %v898_v8 = vsub.f32 1.5, %v897_v7 }
 0x232   :  { %v899_v10 = vmul.f32 %v1202_v4, %v898_v8 }
 0x234   :  { %v903_v11 = vsel %vm902_vm5, %v1202_v4, %v899_v10 }
 0x235   :  { %v904_v12 = vmul.f32 %v903_v11, %v892_v9 }
 0x237   :  { %910 = vperm.xlu0 %1198, %v904_v12   ;;  %v906_v14 = vmul.f32 %v904_v12, %v887_v61 }
 0x239   :  { %v907_v15 = vsub.f32 %v905_v13, %v906_v14 }
 0x23b   :  { %915 = vperm.xlu1 %1199, %v907_v15  }
 0x2a9   :  { %v911_v16 = vpop.permute.xlu0 %910 }
 0x2aa   :  { %v919_v24 = vmul.f32 %v918_v18, %v911_v16  ;;  %v924_v25 = vmul.f32 %v1143_v17, %v911_v16  ;;  %v929_v26 = vmul.f32 %v1145_v19, %v911_v16  ;;  %v934_v27 = vmul.f32 %v1147_v20, %v911_v16 }
 0x2ab   :  { %v939_v28 = vmul.f32 %v1149_v21, %v911_v16  ;;  %v944_v29 = vmul.f32 %v1151_v22, %v911_v16  ;;  %v949_v30 = vmul.f32 %v1153_v23, %v911_v16  ;;  %v954_v37 = vmul.f32 %v1155_v32, %v911_v16 }
 0x2ad   :  { %v916_v31 = vpop.permute.xlu1 %915 }
 0x2ae   :  { %v920_v33 = vadd.f32 %v919_v24, %v916_v31  ;;  %v925_v34 = vadd.f32 %v924_v25, %v916_v31  ;;  %v930_v35 = vadd.f32 %v929_v26, %v916_v31  ;;  %v935_v36 = vadd.f32 %v934_v27, %v916_v31 }
 0x2af   :  { %v940_v38 = vadd.f32 %v939_v28, %v916_v31  ;;  %v945_v39 = vadd.f32 %v944_v29, %v916_v31  ;;  %v950_v43 = vadd.f32 %v949_v30, %v916_v31  ;;  %v955_v45 = vadd.f32 %v954_v37, %v916_v31 }
 0x2b0   :  { %v921_v40 = vmax.f32 %v920_v33, 0.0  ;;  %v926_v41 = vmax.f32 %v925_v34, 0.0  ;;  %v931_v42 = vmax.f32 %v930_v35, 0.0  ;;  %v936_v44 = vmax.f32 %v935_v36, 0.0 }
 0x2b1   :  { %v941_v46 = vmax.f32 %v940_v38, 0.0  ;;  %v946_v47 = vmax.f32 %v945_v39, 0.0  ;;  %v951_v48 = vmax.f32 %v950_v43, 0.0  ;;  %v956_v49 = vmax.f32 %v955_v45, 0.0 }
 0x2b2   :  { %922 = vst.msk [vmem:[%s1719_s5] sm:$0xff] %vm117_vm2, %v921_v40 }
 0x2b3   :  { %1144 = vst.msk [vmem:[%s1719_s5 + $0x8] sm:$0xff] %vm117_vm2, %v926_v41 }
 0x2b4   :  { %1146 = vst.msk [vmem:[%s1719_s5 + $0x10] sm:$0xff] %vm117_vm2, %v931_v42 }
 0x2b5   :  { %1148 = vst.msk [vmem:[%s1719_s5 + $0x18] sm:$0xff] %vm117_vm2, %v936_v44 }
 0x2b6   :  { %1150 = vst.msk [vmem:[%s1719_s5 + $0x20] sm:$0xff] %vm117_vm2, %v941_v46 }
 0x2b7   :  { %1152 = vst.msk [vmem:[%s1719_s5 + $0x28] sm:$0xff] %vm117_vm2, %v946_v47 }
 0x2b8   :  { %1154 = vst.msk [vmem:[%s1719_s5 + $0x30] sm:$0xff] %vm117_vm2, %v951_v48 }
 0x2b9   :  { %1156 = vst.msk [vmem:[%s1719_s5 + $0x38] sm:$0xff] %vm117_vm2, %v956_v49 }

// kernel: _lambda_.6
= control target key start
LH: loop header
LB: loop body
LE: loop exit
PB: predicated region body
PF: predicated region fallthrough
CT: control target
= control target key end

     0   :  { %s1549_s22 = smov 91   ;;  %s1550_s23 = smov 92   ;;  %vm34_vm0 = vcmask 257024   ;;  %vm58_vm1 = vcmask 1043456   ;;  %vm225_vm2 = vcmask 752640   ;;  %vm258_vm3 = vcmask 744448   ;;  %s2087_s0 = inlined_call_operand.vmem [shape: bf16[2,16,326], index: 0, kind: input, shape index: {}]   ;;  %s2088_s1 = inlined_call_operand.vmem [shape: bf16[1,8,144], index: 1, kind: input, shape index: {}]   ;;  %s2089_s4 = inlined_call_operand.vmem [shape: f32[1,288], index: 4, kind: input, shape index: {}]   ;;  %s2090_s5 = inlined_call_operand.vmem [shape: f32[2,1,8,288], index: 5, kind: output, shape index: {}]   ;;  %s2091_s2 = inlined_call_operand.vmem [shape: f32[8,1], index: 2, kind: input, shape index: {}]   ;;  %s2092_s3 = inlined_call_operand.vmem [shape: f32[8,1], index: 3, kind: input, shape index: {}]  }
   0x1   :  { %v1591_v0 = vld [vmem:[%s2087_s0 + $0xc] sm:$0xff]  ;;  %v1596_v1 = vld [vmem:[%s2087_s0] sm:$0xff]  ;;  %v240_v2 = vld [vmem:[%s2087_s0 + $0x14] sm:$0xf]  ;;  %s1551_s7 = smov 90   ;;  %s1552_s14 = smov 108  }
   0x2   :  { %249 = vrot.lane.b32.xlu1 %v1591_v0, %s1549_s22  ;;  %245 = vrot.lane.b32.xlu0 %v1596_v1, %s1549_s22  ;;  %33 = vst [vmem:[#allocation2] sm:$0xff] %v1596_v1  ;;  %v238_v3 = vld [vmem:[%s2087_s0 + $0x8] sm:$0xf]  ;;  %v207_v5 = vld [vmem:[%s2087_s0 + $0x14] sm:$0xf]  ;;  %s1553_s27 = smov 109  }
   0x3   :  { %212 = vrot.lane.b32.xlu2 %v1596_v1, %s1550_s23  ;;  %36 = vst [vmem:[#allocation2 + $0xc] sm:$0xff] %v1591_v0  ;;  %v205_v4 = vld [vmem:[%s2087_s0 + $0x8] sm:$0xf]  ;;  %v273_v7 = vld [vmem:[%s2087_s0 + $0x14] sm:$0xf]  ;;  %v1647_v9 = vld [vmem:[%s2087_s0 + $0x18] sm:$0xff] }
   0x4   :  { %v271_v6 = vld [vmem:[%s2087_s0 + $0x8] sm:$0xf]  ;;  %v174_v10 = vld [vmem:[%s2087_s0 + $0x14] sm:$0xf]  ;;  %v1354_v11 = vld [vmem:[%s2087_s0 + $0x20] sm:$0xf] }
   0x5   :  { %v172_v8 = vld [vmem:[%s2087_s0 + $0x8] sm:$0xf]  ;;  %v1356_v12 = vld [vmem:[%s2087_s0 + $0x2c] sm:$0xf]  ;;  %v141_v15 = vld [vmem:[%s2087_s0 + $0x14] sm:$0xf] }
   0x6   :  { %v1665_v13 = vld [vmem:[%s2087_s0 + $0x24] sm:$0xff]  ;;  %v1350_v16 = vld [vmem:[%s2087_s0 + $0x20] sm:$0xf]  ;;  %v1352_v17 = vld [vmem:[%s2087_s0 + $0x2c] sm:$0xf]  ;;  %s1554_s13 = smov 110  }
   0x7   :  { %v139_v14 = vld [vmem:[%s2087_s0 + $0x8] sm:$0xf]  ;;  %v108_v19 = vld [vmem:[%s2087_s0 + $0x14] sm:$0xf]  ;;  %v1346_v20 = vld [vmem:[%s2087_s0 + $0x20] sm:$0xf] }
   0x8   :  { %v106_v18 = vld [vmem:[%s2087_s0 + $0x8] sm:$0xf]  ;;  %v1348_v21 = vld [vmem:[%s2087_s0 + $0x2c] sm:$0xf]  ;;  %s1555_s24 = smov 126   ;;  %s1556_s6 = smov 127  }
   0x9   :  { %v73_v23 = vld [vmem:[%s2087_s0 + $0x8] sm:$0xf]  ;;  %v75_v27 = vld [vmem:[%s2087_s0 + $0x14] sm:$0xf]  ;;  %v1342_v29 = vld [vmem:[%s2087_s0 + $0x20] sm:$0xf] }
   0xa   :  { %251 = vrot.lane.b32.xlu1 %v240_v2, %s1549_s22  ;;  %247 = vrot.lane.b32.xlu0 %v238_v3, %s1549_s22  ;;  %v1344_v32 = vld [vmem:[%s2087_s0 + $0x2c] sm:$0xf]  ;;  %v39_v36 = vld [vmem:[%s2087_s0 + $0x8] sm:$0xf]  ;;  %vm291_vm4 = vcmask 736256   ;;  %vm192_vm5 = vcmask 883712  }
   0xb   :  { %214 = vrot.lane.b32.xlu2 %v205_v4, %s1550_s23  ;;  %v41_v37 = vld [vmem:[%s2087_s0 + $0x14] sm:$0xf]  ;;  %v1338_v47 = vld [vmem:[%s2087_s0 + $0x20] sm:$0xf]  ;;  %v1340_v57 = vld [vmem:[%s2087_s0 + $0x2c] sm:$0xf] }
   0xc   :  { %v1334_v61 = vld [vmem:[%s2087_s0 + $0x20] sm:$0xf]  ;;  %vm490_vm6 = vcmask 130048   ;;  %vm159_vm7 = vcmask 891904   ;;  %vm126_vm8 = vcmask 900096   ;;  %vm93_vm9 = vcmask 1031168  }
   0xd   :  { %vm60_vm10 = vcmask 1039360   ;;  %vm576_vm11 = vcmask 261120  }
  0x12   :  { %218 = vrot.lane.b32.xlu1 %v207_v5, %s1550_s23  ;;  %216 = vrot.lane.b32.xlu0 %v1591_v0, %s1550_s23 }
  0x13   :  { %278 = vrot.lane.b32.xlu2 %v1596_v1, %s1551_s7 }
  0x1a   :  { %282 = vrot.lane.b32.xlu1 %v1591_v0, %s1551_s7  ;;  %280 = vrot.lane.b32.xlu0 %v271_v6, %s1551_s7 }
  0x1b   :  { %284 = vrot.lane.b32.xlu2 %v273_v7, %s1551_s7 }
  0x22   :  { %181 = vrot.lane.b32.xlu1 %v172_v8, %s1552_s14  ;;  %179 = vrot.lane.b32.xlu0 %v1596_v1, %s1552_s14 }
  0x23   :  { %183 = vrot.lane.b32.xlu2 %v1591_v0, %s1552_s14 }
  0x2a   :  { %803 = vrot.lane.b32.xlu1 %v1647_v9, %s1549_s22  ;;  %185 = vrot.lane.b32.xlu0 %v174_v10, %s1552_s14 }
  0x2b   :  { %805 = vrot.lane.b32.xlu2 %v1354_v11, %s1549_s22 }
  0x32   :  { %809 = vrot.lane.b32.xlu1 %v1356_v12, %s1549_s22  ;;  %807 = vrot.lane.b32.xlu0 %v1665_v13, %s1549_s22  ;;  %v1336_v12 = vld [vmem:[%s2087_s0 + $0x2c] sm:$0xf] }
  0x33   :  { %146 = vrot.lane.b32.xlu2 %v1596_v1, %s1553_s27 }
  0x3a   :  { %150 = vrot.lane.b32.xlu1 %v1591_v0, %s1553_s27  ;;  %148 = vrot.lane.b32.xlu0 %v139_v14, %s1553_s27 }
  0x3b   :  { %152 = vrot.lane.b32.xlu2 %v141_v15, %s1553_s27 }
  0x42   :  { %773 = vrot.lane.b32.xlu1 %v1350_v16, %s1550_s23  ;;  %771 = vrot.lane.b32.xlu0 %v1647_v9, %s1550_s23 }
  0x43   :  { %775 = vrot.lane.b32.xlu2 %v1665_v13, %s1550_s23 }
  0x4a   :  { %777 = vrot.lane.b32.xlu0 %v1352_v17, %s1550_s23  ;;  %113 = vrot.lane.b32.xlu1 %v1596_v1, %s1554_s13 }
  0x4b   :  { %115 = vrot.lane.b32.xlu2 %v106_v18, %s1554_s13 }
  0x52   :  { %117 = vrot.lane.b32.xlu0 %v1591_v0, %s1554_s13  ;;  %119 = vrot.lane.b32.xlu1 %v108_v19, %s1554_s13 }
  0x53   :  { %739 = vrot.lane.b32.xlu2 %v1647_v9, %s1552_s14 }
  0x5a   :  { %741 = vrot.lane.b32.xlu0 %v1346_v20, %s1552_s14  ;;  %743 = vrot.lane.b32.xlu1 %v1665_v13, %s1552_s14 }
  0x5b   :  { %745 = vrot.lane.b32.xlu2 %v1348_v21, %s1552_s14 }
  0x5d   :  { %v213_v22 = vpop.permute.xlu2 %212 }
  0x5e   :  { %v220_v24 = vrot.slane %v213_v22, 4 }
  0x62   :  { %82 = vrot.lane.b32.xlu1 %v73_v23, %s1555_s24  ;;  %80 = vrot.lane.b32.xlu0 %v1596_v1, %s1555_s24 }
  0x63   :  { %84 = vrot.lane.b32.xlu2 %v1591_v0, %s1555_s24 }
  0x65   :  { %v215_v25 = vpop.permute.xlu2 %214 }
  0x66   :  { %v221_v26 = vrot.slane %v215_v25, 4  ;;  %234 = vst.msk [vmem:[#allocation2 + $0x98] sm:$0xf] %vm34_vm0, %v215_v25 }
  0x68   :  { %v224_v28 = vsel %vm58_vm1, %v220_v24, %v221_v26  ;;  %v1819_v24 = vld [vmem:[%s2088_s1] sm:$0xff] }
  0x69   :  { %v226_v30 = vsel %vm225_vm2, %v213_v22, %v224_v28 }
  0x6a   :  { %707 = vrot.lane.b32.xlu1 %v1647_v9, %s1553_s27  ;;  %86 = vrot.lane.b32.xlu0 %v75_v27, %s1555_s24  ;;  %233 = vst [vmem:[#allocation2 + $0x90] sm:$0xff] %v226_v30 }
  0x6b   :  { %709 = vrot.lane.b32.xlu2 %v1342_v29, %s1553_s27  ;;  %v1330_v29 = vld [vmem:[%s2087_s0 + $0x20] sm:$0xf] }
  0x6d   :  { %v1739_v31 = vpop.permute.xlu2 %278 }
  0x6e   :  { %v286_v5 = vrot.slane %v1739_v31, 4 }
  0x71   :  { %v1288_v14 = vld [vmem:[#allocation2 + $0x90] sm:$0xf]  ;;  %v1499_v18 = vld [vmem:[#allocation2 + $0x94] sm:$0xf] }
  0x72   :  { %713 = vrot.lane.b32.xlu1 %v1344_v32, %s1553_s27  ;;  %711 = vrot.lane.b32.xlu0 %v1665_v13, %s1553_s27  ;;  %v342_v32 = vunpack.c.h.b16 %v1819_v24 }
  0x73   :  { %46 = vrot.lane.b32.xlu2 %v1596_v1, %s1556_s6 }
  0x74   :  { %v250_v33 = vpop.permute.xlu1 %249  ;;  %v246_v34 = vpop.permute.xlu0 %245 }
  0x75   :  { %v1749_v35 = vpop.permute.xlu2 %284  ;;  %v255_v40 = vrot.slane %v250_v33, 4  ;;  %v253_v41 = vrot.slane %v246_v34, 4 }
  0x76   :  { %302 = vst.msk [vmem:[#allocation2 + $0xd4] sm:$0xf] %vm34_vm0, %v1749_v35  ;;  %v289_v2 = vrot.slane %v1749_v35, 4 }
  0x7a   :  { %50 = vrot.lane.b32.xlu1 %v1591_v0, %s1556_s6  ;;  %48 = vrot.lane.b32.xlu0 %v39_v36, %s1556_s6 }
  0x7b   :  { %52 = vrot.lane.b32.xlu2 %v41_v37, %s1556_s6 }
  0x7c   :  { %v252_v38 = vpop.permute.xlu1 %251  ;;  %v248_v39 = vpop.permute.xlu0 %247 }
  0x7d   :  { %v256_v42 = vrot.slane %v252_v38, 4  ;;  %269 = vst.msk [vmem:[#allocation2 + $0xbc] sm:$0xf] %vm34_vm0, %v252_v38  ;;  %v254_v43 = vrot.slane %v248_v39, 4  ;;  %v1764_v44 = vpop.permute.xlu2 %183 }
  0x7e   :  { %267 = vst.msk [vmem:[#allocation2 + $0xb0] sm:$0xf] %vm34_vm0, %v248_v39 }
  0x7f   :  { %v260_v45 = vsel %vm58_vm1, %v255_v40, %v256_v42  ;;  %v257_v46 = vsel %vm58_vm1, %v253_v41, %v254_v43 }
  0x80   :  { %v261_v48 = vsel %vm258_vm3, %v250_v33, %v260_v45  ;;  %v259_v49 = vsel %vm258_vm3, %v246_v34, %v257_v46  ;;  %v1332_v45 = vld [vmem:[%s2087_s0 + $0x2c] sm:$0xf]  ;;  %v1840_v46 = vpack.c.b16 %v342_v32, %v342_v32 }
  0x81   :  { %268 = vst [vmem:[#allocation2 + $0xb4] sm:$0xff] %v261_v48 }
  0x82   :  { %266 = vst [vmem:[#allocation2 + $0xa8] sm:$0xff] %v259_v49  ;;  %677 = vrot.lane.b32.xlu1 %v1338_v47, %s1554_s13  ;;  %675 = vrot.lane.b32.xlu0 %v1647_v9, %s1554_s13 }
  0x83   :  { %679 = vrot.lane.b32.xlu2 %v1665_v13, %s1554_s13 }
  0x84   :  { %v219_v50 = vpop.permute.xlu1 %218  ;;  %v217_v51 = vpop.permute.xlu0 %216  ;;  %v1504_v30 = vld [vmem:[#allocation2 + $0xb8] sm:$0xf0] }
  0x85   :  { %v223_v52 = vrot.slane %v219_v50, 4  ;;  %236 = vst.msk [vmem:[#allocation2 + $0xa4] sm:$0xf] %vm34_vm0, %v219_v50  ;;  %v222_v53 = vrot.slane %v217_v51, 4  ;;  %v1780_v54 = vld [vmem:[#allocation2 + $0xb0] sm:$0xf]  ;;  %v1782_v55 = vpop.permute.xlu2 %805 }
  0x86   :  { %824 = vst.msk [vmem:[#allocation2 + $0xb0] sm:$0xf] %vm34_vm0, %v1782_v55  ;;  %v1309_v41 = vor.u32 %v1504_v30, %v1780_v54  ;;  %v812_v43 = vrot.slane %v1782_v55, 4  ;;  %v189_v50 = vrot.slane %v1764_v44, 4  ;;  %v1296_v54 = vld [vmem:[#allocation2 + $0x98] sm:$0xf] }
  0x87   :  { %v227_v56 = vsel %vm58_vm1, %v222_v53, %v223_v52 }
  0x88   :  { %v228_v58 = vsel %vm225_vm2, %v217_v51, %v227_v56  ;;  %v1503_v59 = vld [vmem:[#allocation2 + $0xb0] sm:$0xf0]  ;;  %v1302_v60 = vld [vmem:[#allocation2 + $0xb4] sm:$0xf0] }
  0x89   :  { %235 = vst [vmem:[#allocation2 + $0x9c] sm:$0xff] %v228_v58  ;;  %v1300_v62 = vld [vmem:[#allocation2 + $0xa8] sm:$0xf]  ;;  %v1502_v63 = vld [vmem:[#allocation2 + $0xac] sm:$0xf] }
  0x8a   :  { %643 = vrot.lane.b32.xlu1 %v1647_v9, %s1555_s24  ;;  %681 = vrot.lane.b32.xlu0 %v1340_v57, %s1554_s13  ;;  %v1301_v0 = vor.u32 %v1503_v59, %v1300_v62  ;;  %v1305_v1 = vor.u32 %v1502_v63, %v1302_v60  ;;  %v1358_v58 = vld [vmem:[%s2087_s0 + $0x20] sm:$0xf] }
  0x8b   :  { %645 = vrot.lane.b32.xlu2 %v1334_v61, %s1555_s24 }
  0x8c   :  { %494 = vmatpush.bf16.msra.mxu0 %v1301_v0  ;;  %520 = vmatpush.bf16.msra.mxu2 %v1305_v1  ;;  %v283_v3 = vpop.permute.xlu1 %282  ;;  %v281_v4 = vpop.permute.xlu0 %280  ;;  %v1501_v49 = vld [vmem:[#allocation2 + $0xa0] sm:$0xf0] }
  0x8d   :  { %v288_v6 = vrot.slane %v283_v3, 4  ;;  %v287_v7 = vrot.slane %v281_v4, 4  ;;  %300 = vst.msk [vmem:[#allocation2 + $0xc8] sm:$0xf] %vm34_vm0, %v281_v4  ;;  %v1801_v8 = vpop.permute.xlu2 %146  ;;  %v1297_v57 = vor.u32 %v1501_v49, %v1296_v54 }
  0x8f   :  { %v290_v10 = vsel %vm58_vm1, %v286_v5, %v287_v7  ;;  %v293_v11 = vsel %vm58_vm1, %v288_v6, %v289_v2  ;;  %v1360_v5 = vld [vmem:[%s2087_s0 + $0x2c] sm:$0xf] }
  0x90   :  { %v292_v15 = vsel %vm291_vm4, %v1739_v31, %v290_v10  ;;  %v294_v16 = vsel %vm291_vm4, %v283_v3, %v293_v11  ;;  %v1500_v17 = vld [vmem:[#allocation2 + $0x98] sm:$0xf0]  ;;  %v1290_v19 = vld [vmem:[#allocation2 + $0x9c] sm:$0xf0]  ;;  %v1507_v31 = vld [vmem:[#allocation2 + $0xd0] sm:$0xf0] }
  0x91   :  { %299 = vst [vmem:[#allocation2 + $0xc0] sm:$0xff] %v292_v15  ;;  %v1289_v20 = vor.u32 %v1500_v17, %v1288_v14  ;;  %v1293_v21 = vor.u32 %v1499_v18, %v1290_v19  ;;  %v154_v19 = vrot.slane %v1801_v8, 4 }
  0x92   :  { %301 = vst [vmem:[#allocation2 + $0xcc] sm:$0xff] %v294_v16  ;;  %649 = vrot.lane.b32.xlu1 %v1336_v12, %s1555_s24  ;;  %647 = vrot.lane.b32.xlu0 %v1665_v13, %s1555_s24 }
  0x93   :  { %495 = vmatpush.bf16.msra.mxu0 %v1289_v20  ;;  %521 = vmatpush.bf16.msra.mxu2 %v1293_v21 }
  0x94   :  { %v182_v22 = vpop.permute.xlu1 %181  ;;  %v180_v23 = vpop.permute.xlu0 %179  ;;  %611 = vrot.lane.b32.xlu2 %v1647_v9, %s1556_s6  ;;  %v1320_v36 = vld [vmem:[#allocation2 + $0xc8] sm:$0xf] }
  0x95   :  { %v188_v25 = vrot.slane %v182_v22, 4  ;;  %201 = vst.msk [vmem:[#allocation2 + $0x80] sm:$0xf] %vm34_vm0, %v182_v22  ;;  %v187_v26 = vrot.slane %v180_v23, 4  ;;  %v1822_v27 = vpop.permute.xlu2 %152  ;;  %v1321_v42 = vor.u32 %v1507_v31, %v1320_v36 }
  0x96   :  { %170 = vst.msk [vmem:[#allocation2 + $0x74] sm:$0xf] %vm34_vm0, %v1822_v27  ;;  %v157_v16 = vrot.slane %v1822_v27, 4 }
  0x97   :  { %v191_v28 = vsel %vm58_vm1, %v187_v26, %v188_v25 }
  0x98   :  { %v193_v33 = vsel %vm192_vm5, %v180_v23, %v191_v28  ;;  %v1312_v34 = vld [vmem:[#allocation2 + $0xc0] sm:$0xf]  ;;  %v1505_v35 = vld [vmem:[#allocation2 + $0xc4] sm:$0xf] }
  0x99   :  { %200 = vst [vmem:[#allocation2 + $0x78] sm:$0xff] %v193_v33  ;;  %v1506_v37 = vld [vmem:[#allocation2 + $0xc8] sm:$0xf0]  ;;  %v1314_v38 = vld [vmem:[#allocation2 + $0xcc] sm:$0xf0] }
  0x9a   :  { %615 = vrot.lane.b32.xlu1 %v1665_v13, %s1556_s6  ;;  %613 = vrot.lane.b32.xlu0 %v1330_v29, %s1556_s6  ;;  %v1313_v39 = vor.u32 %v1506_v37, %v1312_v34  ;;  %v1317_v40 = vor.u32 %v1505_v35, %v1314_v38 }
  0x9c   :  { %514 = vmatpush.bf16.msra.mxu1 %v1313_v39  ;;  %540 = vmatpush.bf16.msra.mxu3 %v1317_v40  ;;  %v804_v47 = vpop.permute.xlu1 %803  ;;  %v186_v48 = vpop.permute.xlu0 %185  ;;  %v1284_v63 = vld [vmem:[#allocation2 + $0x80] sm:$0xf] }
  0x9d   :  { %v811_v51 = vrot.slane %v804_v47, 4  ;;  %v190_v52 = vrot.slane %v186_v48, 4  ;;  %203 = vst.msk [vmem:[#allocation2 + $0x8c] sm:$0xf] %vm34_vm0, %v186_v48  ;;  %v1844_v53 = vpop.permute.xlu2 %775  ;;  %617 = vrot.lane.b32.xlu2 %v1332_v45, %s1556_s6  ;;  %v1495_v31 = vld [vmem:[#allocation2 + $0x70] sm:$0xf0] }
  0x9f   :  { %v815_v55 = vsel %vm58_vm1, %v811_v51, %v812_v43  ;;  %v194_v56 = vsel %vm58_vm1, %v189_v50, %v190_v52  ;;  %1323 = vmatmul.msk.bf16.vlgmr.msra.gmra.mxu3 %vm490_vm6, %v1840_v46  ;;  %1322 = vmatmul.msk.bf16.vlgmr.msra.gmra.mxu1 %vm490_vm6, %v1840_v46  ;;  %v781_v51 = vrot.slane %v1844_v53, 4 }
  0xa0   :  { %546 = vmatpush.bf16.msrb.mxu1 %v1309_v41  ;;  %566 = vmatpush.bf16.msrb.mxu3 %v1321_v42  ;;  %v816_v59 = vsel %vm258_vm3, %v804_v47, %v815_v55  ;;  %v195_v60 = vsel %vm192_vm5, %v1764_v44, %v194_v56  ;;  %v1276_v7 = vld [vmem:[#allocation2 + $0x78] sm:$0xf]  ;;  %v1496_v10 = vld [vmem:[#allocation2 + $0x7c] sm:$0xf] }
  0xa1   :  { %823 = vst [vmem:[#allocation2 + $0xa8] sm:$0xff] %v816_v59 }
  0xa2   :  { %202 = vst [vmem:[#allocation2 + $0x84] sm:$0xff] %v195_v60  ;;  %837 = vrot.lane.b32.xlu1 %v1358_v58, %s1551_s7  ;;  %835 = vrot.lane.b32.xlu0 %v1647_v9, %s1551_s7 }
  0xa4   :  { %547 = vmatpush.bf16.msrb.mxu1 %v1297_v57  ;;  %v810_v61 = vpop.permute.xlu1 %809  ;;  %v808_v62 = vpop.permute.xlu0 %807  ;;  %v1498_v0 = vld [vmem:[#allocation2 + $0x88] sm:$0xf0] }
  0xa5   :  { %v814_v1 = vrot.slane %v810_v61, 4  ;;  %826 = vst.msk [vmem:[#allocation2 + $0xbc] sm:$0xf] %vm34_vm0, %v810_v61  ;;  %v813_v2 = vrot.slane %v808_v62, 4  ;;  %v1285_v3 = vor.u32 %v1498_v0, %v1284_v63  ;;  %v1863_v4 = vpop.permute.xlu2 %115  ;;  %839 = vrot.lane.b32.xlu2 %v1665_v13, %s1551_s7 }
  0xa6   :  { %135 = vst.msk [vmem:[#allocation2 + $0x50] sm:$0xf] %vm34_vm0, %v1863_v4  ;;  %v122_v48 = vrot.slane %v1863_v4, 4 }
  0xa7   :  { %v817_v44 = vsel %vm58_vm1, %v813_v2, %v814_v1 }
  0xa8   :  { %548 = vmatpush.bf16.msrb.mxu1 %v1285_v3  ;;  %v818_v6 = vsel %vm258_vm3, %v808_v62, %v817_v44  ;;  %v1447_v28 = vld [vmem:[#allocation2 + $0xa8] sm:$0xf] }
  0xa9   :  { %825 = vst [vmem:[#allocation2 + $0xb4] sm:$0xff] %v818_v6  ;;  %v1497_v11 = vld [vmem:[#allocation2 + $0x80] sm:$0xf0]  ;;  %v1278_v12 = vld [vmem:[#allocation2 + $0x84] sm:$0xf0] }
  0xaa   :  { %841 = vrot.lane.b32.xlu0 %v1360_v5, %s1551_s7  ;;  %v1277_v14 = vor.u32 %v1497_v11, %v1276_v7  ;;  %v1281_v15 = vor.u32 %v1496_v10, %v1278_v12 }
  0xac   :  { %496 = vmatpush.bf16.msra.mxu0 %v1277_v14  ;;  %522 = vmatpush.bf16.msra.mxu2 %v1281_v15  ;;  %v151_v17 = vpop.permute.xlu1 %150  ;;  %v149_v18 = vpop.permute.xlu0 %148 }
  0xad   :  { %v156_v20 = vrot.slane %v151_v17, 4  ;;  %v155_v21 = vrot.slane %v149_v18, 4  ;;  %168 = vst.msk [vmem:[#allocation2 + $0x68] sm:$0xf] %vm34_vm0, %v149_v18  ;;  %v1878_v22 = vpop.permute.xlu2 %739  ;;  %v1260_v7 = vld [vmem:[#allocation2 + $0x50] sm:$0xf] }
  0xae   :  { %v747_v11 = vrot.slane %v1878_v22, 4 }
  0xaf   :  { %v158_v23 = vsel %vm58_vm1, %v154_v19, %v155_v21  ;;  %v161_v25 = vsel %vm58_vm1, %v156_v20, %v157_v16  ;;  %1324 = vmatmul.msk.bf16.vlgmr.msrb.gmra.mxu3 %vm490_vm6, %v1840_v46 }
  0xb0   :  { %v160_v26 = vsel %vm159_vm7, %v1801_v8, %v158_v23  ;;  %v162_v27 = vsel %vm159_vm7, %v151_v17, %v161_v25  ;;  %v1530_v29 = vld [vmem:[#allocation2 + $0xb0] sm:$0xf0] }
  0xb1   :  { %167 = vst [vmem:[#allocation2 + $0x60] sm:$0xff] %v160_v26  ;;  %v1448_v30 = vor.u32 %v1530_v29, %v1447_v28 }
  0xb2   :  { %169 = vst [vmem:[#allocation2 + $0x6c] sm:$0xff] %v162_v27 }
  0xb3   :  { %1049 = vmatpush.bf16.msra.mxu3 %v1448_v30 }
  0xb4   :  { %v774_v32 = vpop.permute.xlu1 %773  ;;  %v772_v33 = vpop.permute.xlu0 %771  ;;  %v1272_v34 = vld [vmem:[#allocation2 + $0x68] sm:$0xf] }
  0xb5   :  { %v780_v35 = vrot.slane %v774_v32, 4  ;;  %792 = vst.msk [vmem:[#allocation2 + $0x98] sm:$0xf] %vm34_vm0, %v774_v32  ;;  %v779_v36 = vrot.slane %v772_v33, 4  ;;  %v1273_v37 = vor.u32 %v1495_v31, %v1272_v34  ;;  %v746_v38 = vpop.permute.xlu2 %745 }
  0xb6   :  { %762 = vst.msk [vmem:[#allocation2 + $0x8c] sm:$0xf] %vm34_vm0, %v746_v38  ;;  %v750_v44 = vrot.slane %v746_v38, 4 }
  0xb7   :  { %v783_v8 = vsel %vm58_vm1, %v779_v36, %v780_v35  ;;  %549 = vmatpush.bf16.msrb.mxu1 %v1273_v37 }
  0xb8   :  { %v784_v39 = vsel %vm225_vm2, %v772_v33, %v783_v8  ;;  %v1264_v40 = vld [vmem:[#allocation2 + $0x60] sm:$0xf]  ;;  %v1493_v41 = vld [vmem:[#allocation2 + $0x64] sm:$0xf] }
  0xb9   :  { %791 = vst [vmem:[#allocation2 + $0x90] sm:$0xff] %v784_v39  ;;  %v1494_v42 = vld [vmem:[#allocation2 + $0x68] sm:$0xf0]  ;;  %v1266_v43 = vld [vmem:[#allocation2 + $0x6c] sm:$0xf0] }
  0xba   :  { %v1265_v45 = vor.u32 %v1494_v42, %v1264_v40  ;;  %v1269_v47 = vor.u32 %v1493_v41, %v1266_v43 }
  0xbc   :  { %497 = vmatpush.bf16.msra.mxu0 %v1265_v45  ;;  %523 = vmatpush.bf16.msra.mxu2 %v1269_v47  ;;  %v778_v49 = vpop.permute.xlu0 %777  ;;  %v114_v50 = vpop.permute.xlu1 %113 }
  0xbd   :  { %v782_v52 = vrot.slane %v778_v49, 4  ;;  %794 = vst.msk [vmem:[#allocation2 + $0xa4] sm:$0xf] %vm34_vm0, %v778_v49  ;;  %v121_v54 = vrot.slane %v114_v50, 4  ;;  %v1894_v55 = vpop.permute.xlu2 %84  ;;  %v1929_v49 = vld [vmem:[#allocation2 + $0x4] sm:$0xf] }
  0xbe   :  { %v90_v40 = vrot.slane %v1894_v55, 4 }
  0xbf   :  { %v785_v56 = vsel %vm58_vm1, %v781_v51, %v782_v52  ;;  %v125_v57 = vsel %vm58_vm1, %v121_v54, %v122_v48  ;;  %v1927_v48 = vld [vmem:[#allocation2] sm:$0xf]  ;;  %v30_v52 = vld [vmem:[%s2087_s0 + $0x8] sm:$0xf]  ;;  %v1938_v54 = vld [vmem:[#allocation2 + $0x8] sm:$0xf0] }
  0xc0   :  { %v786_v58 = vsel %vm225_vm2, %v1844_v53, %v785_v56  ;;  %v127_v59 = vsel %vm126_vm8, %v114_v50, %v125_v57  ;;  %v1435_v3 = vld [vmem:[#allocation2 + $0x90] sm:$0xf]  ;;  %599 = vst [vmem:[#allocation2] sm:$0xff] %v1647_v9  ;;  %v32_v9 = vld [vmem:[%s2087_s0 + $0x14] sm:$0xf] }
  0xc1   :  { %793 = vst [vmem:[#allocation2 + $0x9c] sm:$0xff] %v786_v58  ;;  %v1940_v56 = vld [vmem:[#allocation2 + $0xc] sm:$0xf0] }
  0xc2   :  { %134 = vst [vmem:[#allocation2 + $0x48] sm:$0xff] %v127_v59 }
  0xc3   :  { %601 = vst [vmem:[#allocation2 + $0xc] sm:$0xff] %v1665_v13 }
  0xc4   :  { %v118_v60 = vpop.permute.xlu0 %117  ;;  %v120_v61 = vpop.permute.xlu1 %119  ;;  %35 = vst.msk [vmem:[#allocation2 + $0x8] sm:$0xf] %vm34_vm0, %v30_v52  ;;  %v1221_v52 = vor.u32 %v1929_v49, %v1940_v56 }
  0xc5   :  { %v123_v62 = vrot.slane %v118_v60, 4  ;;  %v124_v63 = vrot.slane %v120_v61, 4  ;;  %137 = vst.msk [vmem:[#allocation2 + $0x5c] sm:$0xf] %vm34_vm0, %v120_v61  ;;  %v710_v0 = vpop.permute.xlu2 %709 }
  0xc6   :  { %728 = vst.msk [vmem:[#allocation2 + $0x68] sm:$0xf] %vm34_vm0, %v710_v0  ;;  %v716_v38 = vrot.slane %v710_v0, 4 }
  0xc7   :  { %v128_v1 = vsel %vm58_vm1, %v123_v62, %v124_v63  ;;  %37 = vst.msk [vmem:[#allocation2 + $0x14] sm:$0xf] %vm34_vm0, %v32_v9 }
  0xc8   :  { %v129_v2 = vsel %vm126_vm8, %v118_v60, %v128_v1  ;;  %v1527_v4 = vld [vmem:[#allocation2 + $0x98] sm:$0xf0] }
  0xc9   :  { %136 = vst [vmem:[#allocation2 + $0x54] sm:$0xff] %v129_v2  ;;  %v1436_v53 = vor.u32 %v1527_v4, %v1435_v3  ;;  %v1252_v19 = vld [vmem:[#allocation2 + $0x48] sm:$0xf]  ;;  %v1490_v25 = vld [vmem:[#allocation2 + $0x4c] sm:$0xf] }
  0xcb   :  { %1050 = vmatpush.bf16.msra.mxu3 %v1436_v53 }
  0xcc   :  { %v742_v5 = vpop.permute.xlu0 %741  ;;  %v744_v6 = vpop.permute.xlu1 %743  ;;  %v1492_v10 = vld [vmem:[#allocation2 + $0x58] sm:$0xf0] }
  0xcd   :  { %v748_v12 = vrot.slane %v742_v5, 4  ;;  %760 = vst.msk [vmem:[#allocation2 + $0x80] sm:$0xf] %vm34_vm0, %v742_v5  ;;  %v749_v14 = vrot.slane %v744_v6, 4  ;;  %v1261_v15 = vor.u32 %v1492_v10, %v1260_v7  ;;  %v1907_v16 = vpop.permute.xlu2 %46 }
  0xce   :  { %v54_v10 = vrot.slane %v1907_v16, 4 }
  0xcf   :  { %v751_v17 = vsel %vm58_vm1, %v747_v11, %v748_v12  ;;  %v753_v18 = vsel %vm58_vm1, %v749_v14, %v750_v44  ;;  %550 = vmatpush.bf16.msrb.mxu1 %v1261_v15 }
  0xd0   :  { %v752_v20 = vsel %vm192_vm5, %v1878_v22, %v751_v17  ;;  %v754_v21 = vsel %vm192_vm5, %v744_v6, %v753_v18  ;;  %v1491_v23 = vld [vmem:[#allocation2 + $0x50] sm:$0xf0]  ;;  %v1254_v26 = vld [vmem:[#allocation2 + $0x54] sm:$0xf0] }
  0xd1   :  { %759 = vst [vmem:[#allocation2 + $0x78] sm:$0xff] %v752_v20  ;;  %v1253_v27 = vor.u32 %v1491_v23, %v1252_v19  ;;  %v1257_v28 = vor.u32 %v1490_v25, %v1254_v26 }
  0xd2   :  { %761 = vst [vmem:[#allocation2 + $0x84] sm:$0xff] %v754_v21 }
  0xd3   :  { %498 = vmatpush.bf16.msra.mxu0 %v1253_v27  ;;  %524 = vmatpush.bf16.msra.mxu2 %v1257_v28 }
  0xd4   :  { %v83_v29 = vpop.permute.xlu1 %82  ;;  %v81_v30 = vpop.permute.xlu0 %80 }
  0xd5   :  { %v89_v31 = vrot.slane %v83_v29, 4  ;;  %102 = vst.msk [vmem:[#allocation2 + $0x38] sm:$0xf] %vm34_vm0, %v83_v29  ;;  %v88_v32 = vrot.slane %v81_v30, 4  ;;  %v1915_v33 = vpop.permute.xlu2 %52  ;;  %v1224_v29 = vld [vmem:[#allocation2 + $0x8] sm:$0xf] }
  0xd6   :  { %71 = vst.msk [vmem:[#allocation2 + $0x2c] sm:$0xf] %vm34_vm0, %v1915_v33  ;;  %v57_v5 = vrot.slane %v1915_v33, 4 }
  0xd7   :  { %v92_v22 = vsel %vm58_vm1, %v88_v32, %v89_v31 }
  0xd8   :  { %v94_v34 = vsel %vm93_vm9, %v81_v30, %v92_v22  ;;  %v1423_v35 = vld [vmem:[#allocation2 + $0x78] sm:$0xf]  ;;  %v1483_v30 = vld [vmem:[#allocation2 + $0x10] sm:$0xf0] }
  0xd9   :  { %101 = vst [vmem:[#allocation2 + $0x30] sm:$0xff] %v94_v34  ;;  %v1524_v36 = vld [vmem:[#allocation2 + $0x80] sm:$0xf0]  ;;  %v1225_v22 = vor.u32 %v1483_v30, %v1224_v29 }
  0xda   :  { %v1424_v37 = vor.u32 %v1524_v36, %v1423_v35 }
  0xdc   :  { %1051 = vmatpush.bf16.msra.mxu3 %v1424_v37  ;;  %v708_v8 = vpop.permute.xlu1 %707  ;;  %v87_v39 = vpop.permute.xlu0 %86  ;;  %v1248_v57 = vld [vmem:[#allocation2 + $0x38] sm:$0xf] }
  0xdd   :  { %v715_v41 = vrot.slane %v708_v8, 4  ;;  %v91_v42 = vrot.slane %v87_v39, 4  ;;  %104 = vst.msk [vmem:[#allocation2 + $0x44] sm:$0xf] %vm34_vm0, %v87_v39  ;;  %v1923_v43 = vpop.permute.xlu2 %679  ;;  %v1486_v25 = vld [vmem:[#allocation2 + $0x28] sm:$0xf0] }
  0xdf   :  { %v719_v45 = vsel %vm58_vm1, %v715_v41, %v716_v38  ;;  %v95_v47 = vsel %vm58_vm1, %v90_v40, %v91_v42  ;;  %v341_v38 = vunpack.c.l.b16 %v1819_v24  ;;  %v1326_v42 = vld [vmem:[%s2087_s0 + $0x20] sm:$0xf] }
  0xe0   :  { %v720_v50 = vsel %vm159_vm7, %v708_v8, %v719_v45  ;;  %v96_v51 = vsel %vm93_vm9, %v1894_v55, %v95_v47  ;;  %v1240_v1 = vld [vmem:[#allocation2 + $0x30] sm:$0xf]  ;;  %v1487_v2 = vld [vmem:[#allocation2 + $0x34] sm:$0xf]  ;;  %v1328_v45 = vld [vmem:[%s2087_s0 + $0x2c] sm:$0xf] }
  0xe1   :  { %727 = vst [vmem:[#allocation2 + $0x60] sm:$0xff] %v720_v50 }
  0xe2   :  { %103 = vst [vmem:[#allocation2 + $0x3c] sm:$0xff] %v96_v51  ;;  %v1217_v51 = vor.u32 %v1938_v54, %v1927_v48 }
  0xe3   :  { %600 = vst.msk [vmem:[#allocation2 + $0x8] sm:$0xf] %vm34_vm0, %v1326_v42 }
  0xe4   :  { %v714_v58 = vpop.permute.xlu1 %713  ;;  %v712_v59 = vpop.permute.xlu0 %711  ;;  %v1489_v60 = vld [vmem:[#allocation2 + $0x40] sm:$0xf0]  ;;  %602 = vst.msk [vmem:[#allocation2 + $0x14] sm:$0xf] %vm34_vm0, %v1328_v45 }
  0xe5   :  { %v718_v55 = vrot.slane %v714_v58, 4  ;;  %730 = vst.msk [vmem:[#allocation2 + $0x74] sm:$0xf] %vm34_vm0, %v714_v58  ;;  %v717_v61 = vrot.slane %v712_v59, 4  ;;  %v1249_v62 = vor.u32 %v1489_v60, %v1248_v57  ;;  %v1948_v63 = vpop.permute.xlu2 %645  ;;  %v1449_v57 = vld [vmem:[#allocation2 + $0xb4] sm:$0xf0] }
  0xe6   :  { %664 = vst.msk [vmem:[#allocation2 + $0x38] sm:$0xf] %vm34_vm0, %v1948_v63  ;;  %v652_v47 = vrot.slane %v1948_v63, 4  ;;  %v1531_v58 = vld [vmem:[#allocation2 + $0xb8] sm:$0xf0]  ;;  %v685_v60 = vrot.slane %v1923_v43, 4 }
  0xe7   :  { %v721_v13 = vsel %vm58_vm1, %v717_v61, %v718_v55  ;;  %551 = vmatpush.bf16.msrb.mxu1 %v1249_v62  ;;  %v1529_v61 = vld [vmem:[#allocation2 + $0xac] sm:$0xf]  ;;  %v1455_v62 = vld [vmem:[#allocation2 + $0xb0] sm:$0xf] }
  0xe8   :  { %v722_v0 = vsel %vm159_vm7, %v712_v59, %v721_v13  ;;  %v1411_v20 = vld [vmem:[#allocation2 + $0x60] sm:$0xf]  ;;  %v1985_v59 = vpack.c.b16 %v341_v38, %v341_v38  ;;  %v1452_v54 = vor.u32 %v1529_v61, %v1449_v57  ;;  %v1456_v56 = vor.u32 %v1531_v58, %v1455_v62 }
  0xe9   :  { %729 = vst [vmem:[#allocation2 + $0x6c] sm:$0xff] %v722_v0  ;;  %v1488_v3 = vld [vmem:[#allocation2 + $0x38] sm:$0xf0]  ;;  %v1242_v4 = vld [vmem:[#allocation2 + $0x3c] sm:$0xf0] }
  0xea   :  { %v1241_v53 = vor.u32 %v1488_v3, %v1240_v1  ;;  %v1245_v44 = vor.u32 %v1487_v2, %v1242_v4  ;;  %v1437_v0 = vld [vmem:[#allocation2 + $0x9c] sm:$0xf0]  ;;  %v1528_v1 = vld [vmem:[#allocation2 + $0xa0] sm:$0xf0]  ;;  %v1526_v2 = vld [vmem:[#allocation2 + $0x94] sm:$0xf] }
  0xeb   :  { %v1443_v3 = vld [vmem:[#allocation2 + $0x98] sm:$0xf]  ;;  %v1440_v4 = vor.u32 %v1526_v2, %v1437_v0  ;;  %v1363_v0 = vld [vmem:[#allocation2] sm:$0xf]  ;;  %v1508_v2 = vld [vmem:[#allocation2 + $0x4] sm:$0xf] }
  0xec   :  { %499 = vmatpush.bf16.msra.mxu0 %v1241_v53  ;;  %525 = vmatpush.bf16.msra.mxu2 %v1245_v44  ;;  %v51_v6 = vpop.permute.xlu1 %50  ;;  %v49_v7 = vpop.permute.xlu0 %48  ;;  %v1444_v53 = vor.u32 %v1528_v1, %v1443_v3  ;;  %v1525_v44 = vld [vmem:[#allocation2 + $0x88] sm:$0xf0] }
  0xed   :  { %v56_v11 = vrot.slane %v51_v6, 4  ;;  %v55_v12 = vrot.slane %v49_v7, 4  ;;  %69 = vst.msk [vmem:[#allocation2 + $0x20] sm:$0xf] %vm34_vm0, %v49_v7  ;;  %v1425_v7 = vld [vmem:[#allocation2 + $0x84] sm:$0xf0] }
  0xee   :  { %v1958_v14 = vpop.permute.xlu2 %611  ;;  %v1509_v1 = vld [vmem:[#allocation2 + $0x8] sm:$0xf0] }
  0xef   :  { %v59_v15 = vsel %vm58_vm1, %v54_v10, %v55_v12  ;;  %v62_v17 = vsel %vm58_vm1, %v56_v11, %v57_v5  ;;  %v1431_v10 = vld [vmem:[#allocation2 + $0x80] sm:$0xf] }
  0xf0   :  { %v61_v18 = vsel %vm60_vm10, %v1907_v16, %v59_v15  ;;  %v63_v19 = vsel %vm60_vm10, %v51_v6, %v62_v17  ;;  %v1521_v21 = vld [vmem:[#allocation2 + $0x68] sm:$0xf0]  ;;  %v1523_v6 = vld [vmem:[#allocation2 + $0x7c] sm:$0xf] }
  0xf1   :  { %68 = vst [vmem:[#allocation2 + $0x18] sm:$0xff] %v61_v18  ;;  %v1412_v23 = vor.u32 %v1521_v21, %v1411_v20  ;;  %v1428_v17 = vor.u32 %v1523_v6, %v1425_v7  ;;  %v1432_v18 = vor.u32 %v1525_v44, %v1431_v10 }
  0xf2   :  { %70 = vst [vmem:[#allocation2 + $0x24] sm:$0xff] %v63_v19  ;;  %v1522_v19 = vld [vmem:[#allocation2 + $0x70] sm:$0xf0] }
  0xf3   :  { %1052 = vmatpush.bf16.msra.mxu3 %v1412_v23 }
  0xf4   :  { %v678_v26 = vpop.permute.xlu1 %677  ;;  %v676_v27 = vpop.permute.xlu0 %675  ;;  %v1236_v28 = vld [vmem:[#allocation2 + $0x20] sm:$0xf] }
  0xf5   :  { %v684_v31 = vrot.slane %v678_v26, 4  ;;  %696 = vst.msk [vmem:[#allocation2 + $0x50] sm:$0xf] %vm34_vm0, %v678_v26  ;;  %v683_v32 = vrot.slane %v676_v27, 4  ;;  %v1237_v33 = vor.u32 %v1486_v25, %v1236_v28  ;;  %v1413_v25 = vld [vmem:[#allocation2 + $0x6c] sm:$0xf0] }
  0xf6   :  { %v1419_v28 = vld [vmem:[#allocation2 + $0x68] sm:$0xf] }
  0xf7   :  { %v687_v16 = vsel %vm58_vm1, %v683_v32, %v684_v31  ;;  %552 = vmatpush.bf16.msrb.mxu1 %v1237_v33  ;;  %v1968_v37 = vpop.permute.xlu2 %617  ;;  %v1420_v31 = vor.u32 %v1522_v19, %v1419_v28 }
  0xf8   :  { %v688_v34 = vsel %vm126_vm8, %v676_v27, %v687_v16  ;;  %v1228_v35 = vld [vmem:[#allocation2 + $0x18] sm:$0xf]  ;;  %v1484_v36 = vld [vmem:[#allocation2 + $0x1c] sm:$0xf]  ;;  %634 = vst.msk [vmem:[#allocation2 + $0x2c] sm:$0xf] %vm34_vm0, %v1968_v37 }
  0xf9   :  { %695 = vst [vmem:[#allocation2 + $0x48] sm:$0xff] %v688_v34  ;;  %v1485_v8 = vld [vmem:[#allocation2 + $0x20] sm:$0xf0]  ;;  %v1230_v39 = vld [vmem:[#allocation2 + $0x24] sm:$0xf0]  ;;  %v622_v29 = vrot.slane %v1968_v37, 4 }
  0xfa   :  { %v1229_v40 = vor.u32 %v1485_v8, %v1228_v35  ;;  %v1233_v41 = vor.u32 %v1484_v36, %v1230_v39  ;;  %v1520_v27 = vld [vmem:[#allocation2 + $0x64] sm:$0xf]  ;;  %v619_v34 = vrot.slane %v1958_v14, 4 }
  0xfb   :  { %553 = vmatpush.bf16.msrb.mxu1 %v1225_v22  ;;  %v1416_v30 = vor.u32 %v1520_v27, %v1413_v25 }
  0xfc   :  { %500 = vmatpush.bf16.msra.mxu0 %v1229_v40  ;;  %526 = vmatpush.bf16.msra.mxu2 %v1233_v41  ;;  %v644_v24 = vpop.permute.xlu1 %643  ;;  %v682_v50 = vpop.permute.xlu0 %681  ;;  %v1407_v8 = vld [vmem:[#allocation2 + $0x50] sm:$0xf] }
  0xfd   :  { %v651_v9 = vrot.slane %v644_v24, 4  ;;  %v686_v55 = vrot.slane %v682_v50, 4  ;;  %698 = vst.msk [vmem:[#allocation2 + $0x5c] sm:$0xf] %vm34_vm0, %v682_v50 }
  0xfe   :  { %554 = vmatmul.bf16.vlgmr.msrb.gmra.mxu1 %v1985_v59 }
  0xff   :  { %v689_v48 = vsel %vm58_vm1, %v685_v60, %v686_v55  ;;  %v655_v49 = vsel %vm58_vm1, %v651_v9, %v652_v47  ;;  %v1395_v60 = vld [vmem:[#allocation2 + $0x38] sm:$0xf]  ;;  %v1513_v9 = vld [vmem:[#allocation2 + $0x28] sm:$0xf0]  ;;  %v840_v44 = vpop.permute.xlu2 %839 }
 0x100   :  { %v690_v63 = vsel %vm126_vm8, %v1923_v43, %v689_v48  ;;  %v656_v13 = vsel %vm93_vm9, %v644_v24, %v655_v49  ;;  %501 = vmatpush.bf16.msra.mxu0 %v1217_v51  ;;  %527 = vmatpush.bf16.msra.mxu2 %v1221_v52  ;;  %v1399_v21 = vld [vmem:[#allocation2 + $0x48] sm:$0xf]  ;;  %v1517_v38 = vld [vmem:[#allocation2 + $0x4c] sm:$0xf] }
 0x101   :  { %697 = vst [vmem:[#allocation2 + $0x54] sm:$0xff] %v690_v63  ;;  %v1510_v63 = vld [vmem:[#allocation2 + $0x10] sm:$0xf0] }
 0x102   :  { %663 = vst [vmem:[#allocation2 + $0x30] sm:$0xff] %v656_v13 }
 0x103   :  { %528 = vmatmul.bf16.vlgmr.msra.gmra.mxu2 %v1985_v59  ;;  %502 = vmatmul.bf16.vlgmr.msra.gmra.mxu0 %v1985_v59 }
 0x104   :  { %1075 = vmatpush.bf16.msrb.mxu2 %v1452_v54  ;;  %1101 = vmatpush.bf16.msrb.mxu0 %v1456_v56  ;;  %v650_v43 = vpop.permute.xlu1 %649  ;;  %v648_v5 = vpop.permute.xlu0 %647  ;;  %v1519_v22 = vld [vmem:[#allocation2 + $0x58] sm:$0xf0]  ;;  %v1371_v56 = vld [vmem:[#allocation2 + $0x8] sm:$0xf] }
 0x105   :  { %v654_v11 = vrot.slane %v650_v43, 4  ;;  %666 = vst.msk [vmem:[#allocation2 + $0x44] sm:$0xf] %vm34_vm0, %v650_v43  ;;  %v653_v12 = vrot.slane %v648_v5, 4  ;;  %v1408_v41 = vor.u32 %v1519_v22, %v1407_v8  ;;  %v1365_v43 = vld [vmem:[#allocation2 + $0xc] sm:$0xf0]  ;;  %v1372_v7 = vor.u32 %v1510_v63, %v1371_v56 }
 0x106   :  { %v21_v8 = vld [vmem:[%s2089_s4] sm:$0x7] }
 0x107   :  { %v657_v15 = vsel %vm58_vm1, %v653_v12, %v654_v11  ;;  %v845_v12 = vrot.slane %v840_v44, 4 }
 0x108   :  { %1076 = vmatpush.bf16.msrb.mxu2 %v1440_v4  ;;  %1102 = vmatpush.bf16.msrb.mxu0 %v1444_v53  ;;  %v658_v20 = vsel %vm93_vm9, %v648_v5, %v657_v15  ;;  %v1518_v23 = vld [vmem:[#allocation2 + $0x50] sm:$0xf0]  ;;  %v1401_v16 = vld [vmem:[#allocation2 + $0x54] sm:$0xf0] }
 0x109   :  { %665 = vst [vmem:[#allocation2 + $0x3c] sm:$0xff] %v658_v20  ;;  %v1400_v26 = vor.u32 %v1518_v23, %v1399_v21  ;;  %v1404_v40 = vor.u32 %v1517_v38, %v1401_v16  ;;  %v1387_v42 = vld [vmem:[#allocation2 + $0x30] sm:$0xf]  ;;  %v1514_v45 = vld [vmem:[#allocation2 + $0x34] sm:$0xf] }
 0x10b   :  { %1053 = vmatpush.bf16.msra.mxu3 %v1400_v26 }
 0x10c   :  { %1077 = vmatpush.bf16.msrb.mxu2 %v1428_v17  ;;  %1103 = vmatpush.bf16.msrb.mxu0 %v1432_v18  ;;  %v616_v32 = vpop.permute.xlu1 %615  ;;  %v614_v33 = vpop.permute.xlu0 %613  ;;  %v1516_v52 = vld [vmem:[#allocation2 + $0x40] sm:$0xf0]  ;;  %v1364_v17 = vor.u32 %v1509_v1, %v1363_v0  ;;  %v1368_v18 = vor.u32 %v1508_v2, %v1365_v43 }
 0x10d   :  { %v621_v35 = vrot.slane %v616_v32, 4  ;;  %v620_v36 = vrot.slane %v614_v33, 4  ;;  %632 = vst.msk [vmem:[#allocation2 + $0x20] sm:$0xf] %vm34_vm0, %v614_v33  ;;  %v1396_v55 = vor.u32 %v1516_v52, %v1395_v60 }
 0x10f   :  { %v623_v39 = vsel %vm58_vm1, %v619_v34, %v620_v36  ;;  %v625_v37 = vsel %vm58_vm1, %v621_v35, %v622_v29 }
 0x110   :  { %1078 = vmatpush.bf16.msrb.mxu2 %v1416_v30  ;;  %1104 = vmatpush.bf16.msrb.mxu0 %v1420_v31  ;;  %v624_v47 = vsel %vm60_vm10, %v1958_v14, %v623_v39  ;;  %v626_v24 = vsel %vm60_vm10, %v616_v32, %v625_v37  ;;  %v1515_v50 = vld [vmem:[#allocation2 + $0x38] sm:$0xf0]  ;;  %v1389_v51 = vld [vmem:[#allocation2 + $0x3c] sm:$0xf0]  ;;  %v25_v37 = vperm.slane %v21_v8, 2 }
 0x111   :  { %631 = vst [vmem:[#allocation2 + $0x18] sm:$0xff] %v624_v47  ;;  %v1388_v57 = vor.u32 %v1515_v50, %v1387_v42  ;;  %v1392_v58 = vor.u32 %v1514_v45, %v1389_v51  ;;  %v24_v47 = vperm.slane %v21_v8, 1 }
 0x112   :  { %633 = vst [vmem:[#allocation2 + $0x24] sm:$0xff] %v626_v24 }
 0x113   :  { %1054 = vmatpush.bf16.msra.mxu3 %v1388_v57 }
 0x114   :  { %1079 = vmatpush.bf16.msrb.mxu2 %v1404_v40  ;;  %1105 = vmatpush.bf16.msrb.mxu0 %v1408_v41  ;;  %v838_v61 = vpop.permute.xlu1 %837  ;;  %v836_v62 = vpop.permute.xlu0 %835  ;;  %v1383_v48 = vld [vmem:[#allocation2 + $0x20] sm:$0xf]  ;;  %v23_v40 = vperm.slane %v21_v8, 0 }
 0x115   :  { %v844_v49 = vrot.slane %v838_v61, 4  ;;  %856 = vst.msk [vmem:[#allocation2 + $0xc8] sm:$0xf] %vm34_vm0, %v838_v61  ;;  %v843_v14 = vrot.slane %v836_v62, 4  ;;  %v1384_v54 = vor.u32 %v1513_v9, %v1383_v48 }
 0x117   :  { %v847_v13 = vsel %vm58_vm1, %v843_v14, %v844_v49 }
 0x118   :  { %1080 = vmatpush.bf16.msrb.mxu2 %v1392_v58  ;;  %1106 = vmatpush.bf16.msrb.mxu0 %v1396_v55  ;;  %v848_v3 = vsel %vm291_vm4, %v836_v62, %v847_v13  ;;  %v1375_v4 = vld [vmem:[#allocation2 + $0x18] sm:$0xf]  ;;  %v1511_v53 = vld [vmem:[#allocation2 + $0x1c] sm:$0xf] }
 0x119   :  { %855 = vst [vmem:[#allocation2 + $0xc0] sm:$0xff] %v848_v3  ;;  %v1512_v5 = vld [vmem:[#allocation2 + $0x20] sm:$0xf0]  ;;  %v1377_v6 = vld [vmem:[#allocation2 + $0x24] sm:$0xf0] }
 0x11a   :  { %v1376_v10 = vor.u32 %v1512_v5, %v1375_v4  ;;  %v1380_v11 = vor.u32 %v1511_v53, %v1377_v6 }
 0x11c   :  { %1107 = vmatpush.bf16.msrb.mxu0 %v1384_v54  ;;  %1055 = vmatpush.bf16.msra.mxu3 %v1376_v10  ;;  %v842_v15 = vpop.permute.xlu0 %841  ;;  %v516_v20 = vpop.f32.mrf.mxu1  ;;  %v1467_v28 = vld [vmem:[#allocation2 + $0xc8] sm:$0xf] }
 0x11d   :  { %1081 = vmatpush.bf16.msrb.mxu2 %v1380_v11  ;;  %v846_v19 = vrot.slane %v842_v15, 4  ;;  %858 = vst.msk [vmem:[#allocation2 + $0xd4] sm:$0xf] %vm34_vm0, %v842_v15 }
 0x11f   :  { %v849_v21 = vsel %vm58_vm1, %v845_v12, %v846_v19 }
 0x120   :  { %1108 = vmatpush.bf16.msrb.mxu0 %v1372_v7  ;;  %v850_v23 = vsel %vm291_vm4, %v840_v44, %v849_v21  ;;  %1056 = vmatpush.bf16.msra.mxu3 %v1364_v17  ;;  %v1459_v27 = vld [vmem:[#allocation2 + $0xc0] sm:$0xf]  ;;  %v1532_v31 = vld [vmem:[#allocation2 + $0xc4] sm:$0xf] }
 0x121   :  { %1082 = vmatpush.bf16.msrb.mxu2 %v1368_v18  ;;  %857 = vst [vmem:[#allocation2 + $0xcc] sm:$0xff] %v850_v23 }
 0x122   :  { %v542_v25 = vpop.f32.mrf.mxu3 }
 0x123   :  { %1109 = vmatmul.bf16.vlgmr.msrb.gmra.mxu0 %v1985_v59  ;;  %1057 = vmatmul.bf16.vlgmr.msra.gmra.mxu3 %v1985_v59 }
 0x124   :  { %1083 = vmatmul.bf16.vlgmr.msrb.gmra.mxu2 %v1985_v59  ;;  %v518_v26 = vpop.f32.mrf.mxu1  ;;  %v1534_v29 = vld [vmem:[#allocation2 + $0xd0] sm:$0xf0] }
 0x125   :  { %v1468_v22 = vor.u32 %v1534_v29, %v1467_v28 }
 0x128   :  { %v1533_v30 = vld [vmem:[#allocation2 + $0xc8] sm:$0xf0]  ;;  %v1461_v32 = vld [vmem:[#allocation2 + $0xcc] sm:$0xf0] }
 0x129   :  { %v1460_v33 = vor.u32 %v1533_v30, %v1459_v27  ;;  %v1464_v16 = vor.u32 %v1532_v31, %v1461_v32  ;;  %v1557_v27 = vmov 0  }
 0x12a   :  { %v544_v34 = vpop.f32.mrf.mxu3  ;;  %1544 = vset.pattern.permute.xlu1 %v1557_v27  ;;  %1545 = vset.pattern.permute.xlu2 %v1557_v27 }
 0x12b   :  { %1069 = vmatpush.bf16.msrb.mxu3 %v1460_v33  ;;  %1095 = vmatpush.bf16.msra.mxu1 %v1464_v16 }
 0x12c   :  { %1546 = vset.pattern.permute.xlu0 %v1557_v27 }
 0x12e   :  { %1470 = vmatmul.msk.bf16.vlgmr.msra.gmra.mxu1 %vm490_vm6, %v1840_v46 }
 0x12f   :  { %1121 = vmatpush.bf16.msrb.mxu1 %v1468_v22 }
 0x132   :  { %v568_v59 = vpop.f32.mrf.mxu3 }
 0x133   :  { %1469 = vmatmul.msk.bf16.vlgmr.msrb.gmra.mxu3 %vm490_vm6, %v1840_v46 }
 0x13a   :  { %v570_v35 = vpop.f32.mrf.mxu3 }
 0x13e   :  { %1471 = vmatmul.msk.bf16.vlgmr.msrb.gmra.mxu1 %vm490_vm6, %v1840_v46 }
 0x17b   :  { %v555_v36 = vpop.f32.mrf.mxu1 }
 0x17c   :  { %v569_v38 = vadd.f32 %v568_v59, %v555_v36 }
 0x17e   :  { %593 = vst.msk [vmem:[%s2090_s5 + $0x10] sm:$0xff] %vm576_vm11, %v569_v38  ;;  %v574_v42 = vmul.f32 %v569_v38, %v25_v37 }
 0x180   :  { %v503_v39 = vpop.f32.mrf.mxu0  ;;  %v584_v51 = vmul.f32 %v574_v42, %v574_v42  ;;  %v577_v60 = vsel %vm576_vm11, %v574_v42, 0.0 }
 0x181   :  { %v2031_v41 = vadd.f32 %v516_v20, %v503_v39 }
 0x182   :  { %v586_v61 = vsel %vm576_vm11, %v584_v51, 0.0 }
 0x183   :  { %v557_v46 = vpop.f32.mrf.mxu1  ;;  %v572_v45 = vmul.f32 %v2031_v41, %v23_v40 }
 0x184   :  { %v1154_v46 = vld [vmem:[%s2091_s2] sm:$0xff] }
 0x185   :  { %v582_v57 = vmul.f32 %v572_v45, %v572_v45 }
 0x186   :  { %v529_v24 = vpop.f32.mrf.mxu2 }
 0x187   :  { %v2034_v50 = vadd.f32 %v542_v25, %v529_v24  ;;  %v1167_v24 = vld [vmem:[%s2092_s3] sm:$0xff] }
 0x188   :  { %v505_v52 = vpop.f32.mrf.mxu0 }
 0x189   :  { %v573_v58 = vmul.f32 %v2034_v50, %v24_v47 }
 0x18b   :  { %v583_v9 = vmul.f32 %v573_v58, %v573_v58  ;;  %v575_v55 = vadd.f32 %v573_v58, %v572_v45 }
 0x18d   :  { %v578_v62 = vadd.f32 %v577_v60, %v575_v55  ;;  %v585_v48 = vadd.f32 %v583_v9, %v582_v57  ;;  %v1182_v57 = vld [vmem:[%s2090_s5 + $0x10] sm:$0xff] }
 0x18e   :  { %v531_v49 = vpop.f32.mrf.mxu2 }
 0x18f   :  { %579 = vadd.xlane.f32.xlu1 %v578_v62  ;;  %v587_v14 = vadd.f32 %v586_v61, %v585_v48 }
 0x191   :  { %588 = vadd.xlane.f32.xlu0 %v587_v14 }
 0x1a0   :  { %v1110_v54 = vpop.f32.mrf.mxu0 }
 0x1a6   :  { %v1058_v56 = vpop.f32.mrf.mxu3 }
 0x1a7   :  { %v1084_v63 = vpop.f32.mrf.mxu2 }
 0x1a8   :  { %v1112_v13 = vpop.f32.mrf.mxu0 }
 0x1ab   :  { %v1097_v0 = vpop.f32.mrf.mxu1 }
 0x1ac   :  { %v2041_v44 = vadd.f32 %v1097_v0, %v1084_v63 }
 0x1ae   :  { %v1060_v1 = vpop.f32.mrf.mxu3  ;;  %v1128_v7 = vmul.f32 %v2041_v44, %v24_v47 }
 0x1af   :  { %v1086_v2 = vpop.f32.mrf.mxu2 }
 0x1b0   :  { %v1137_v21 = vmul.f32 %v1128_v7, %v1128_v7 }
 0x1b3   :  { %v1099_v3 = vpop.f32.mrf.mxu1 }
 0x1b6   :  { %v1071_v4 = vpop.f32.mrf.mxu3 }
 0x1b7   :  { %v2039_v53 = vadd.f32 %v1071_v4, %v1058_v56 }
 0x1b9   :  { %v1127_v43 = vmul.f32 %v2039_v53, %v23_v40 }
 0x1bb   :  { %v1123_v5 = vpop.f32.mrf.mxu1  ;;  %v1130_v12 = vadd.f32 %v1128_v7, %v1127_v43  ;;  %v1136_v19 = vmul.f32 %v1127_v43, %v1127_v43 }
 0x1bc   :  { %v1124_v6 = vadd.f32 %v1123_v5, %v1110_v54 }
 0x1bd   :  { %v1139_v25 = vadd.f32 %v1137_v21, %v1136_v19 }
 0x1be   :  { %v1129_v10 = vmul.f32 %v1124_v6, %v25_v37  ;;  %1474 = vst.msk [vmem:[%s2090_s5 + $0x28] sm:$0xff] %vm576_vm11, %v1124_v6  ;;  %v1073_v11 = vpop.f32.mrf.mxu3 }
 0x1c0   :  { %v1131_v15 = vsel %vm576_vm11, %v1129_v10, 0.0  ;;  %v1138_v18 = vmul.f32 %v1129_v10, %v1129_v10 }
 0x1c1   :  { %v1132_v17 = vadd.f32 %v1131_v15, %v1130_v12 }
 0x1c2   :  { %v1140_v23 = vsel %vm576_vm11, %v1138_v18, 0.0 }
 0x1c3   :  { %1133 = vadd.xlane.f32.xlu2 %v1132_v17  ;;  %v1125_v20 = vpop.f32.mrf.mxu1  ;;  %v1141_v26 = vadd.f32 %v1140_v23, %v1139_v25 }
 0x1c5   :  { %v1477_v60 = vld [vmem:[%s2090_s5 + $0x28] sm:$0xff] }
 0x1cb   :  { %1142 = vadd.xlane.f32.xlu2 %v1141_v26 }
 0x202   :  { %v580_v29 = vpop.xlane.xlu1 %579 }
 0x204   :  { %v589_v32 = vpop.xlane.xlu0 %588 }
 0x236   :  { %v1134_v28 = vpop.xlane.xlu2 %1133 }
 0x237   :  { %v1135_v30 = vadd.f32 %v1134_v28, %v580_v29 }
 0x239   :  { %v1149_v31 = vmul.f32 0.001953125, %v1135_v30 }
 0x23b   :  { %v1151_v22 = vmul.f32 %v1149_v31, %v1149_v31 }
 0x23e   :  { %v1143_v33 = vpop.xlane.xlu2 %1142 }
 0x23f   :  { %v1144_v16 = vadd.f32 %v1143_v33, %v589_v32 }
 0x241   :  { %v1150_v34 = vmul.f32 0.001953125, %v1144_v16 }
 0x243   :  { %v1152_v59 = vsub.f32 %v1150_v34, %v1151_v22 }
 0x245   :  { %v1153_v35 = vmax.f32 %v1152_v59, 0.0 }
 0x247   :  { %v1155_v36 = vadd.f32 1e-05, %v1153_v35 }
 0x249   :  { %1547 = vrsqrt.f32 %v1155_v36  ;;  %vm1162_vm13 = vweird.f32 %v1155_v36 }
 0x24f   :  { %v1548_v38 = vpop.eup %1547 }
 0x250   :  { %v1157_v8 = vmul.f32 %v1548_v38, %v1155_v36  ;;  %vm1163_vm12 = vweird.f32 %v1548_v38 }
 0x251   :  { %vm1164_vm14 = vmor %vm1162_vm13, %vm1163_vm12 }
 0x252   :  { %v1158_v39 = vmul.f32 %v1548_v38, %v1157_v8 }
 0x254   :  { %v1159_v37 = vmul.f32 0.5, %v1158_v39 }
 0x256   :  { %v1160_v40 = vsub.f32 1.5, %v1159_v37 }
 0x258   :  { %v1161_v42 = vmul.f32 %v1548_v38, %v1160_v40 }
 0x25a   :  { %v1165_v45 = vsel %vm1164_vm14, %v1548_v38, %v1161_v42 }
 0x25b   :  { %v1166_v47 = vmul.f32 %v1165_v45, %v1154_v46 }
 0x25d   :  { %1172 = vperm.xlu1 %1544, %v1166_v47   ;;  %v1168_v51 = vmul.f32 %v1166_v47, %v1149_v31 }
 0x25f   :  { %v1169_v52 = vsub.f32 %v1167_v24, %v1168_v51 }
 0x261   :  { %1177 = vperm.xlu2 %1545, %v1169_v52  }
 0x2bb   :  { %v1178_v48 = vpop.permute.xlu2 %1177 }
 0x2cf   :  { %v1173_v58 = vpop.permute.xlu1 %1172 }
 0x2d0   :  { %v1183_v9 = vmul.f32 %v1173_v58, %v2031_v41  ;;  %v1184_v55 = vmul.f32 %v1173_v58, %v2034_v50  ;;  %v1185_v61 = vmul.f32 %v1182_v57, %v1173_v58  ;;  %v1198_v62 = vmul.f32 %v1173_v58, %v2039_v53 }
 0x2d1   :  { %v1199_v49 = vmul.f32 %v1173_v58, %v2041_v44  ;;  %v1200_v14 = vmul.f32 %v1477_v60, %v1173_v58 }
 0x2d2   :  { %v1186_v54 = vadd.f32 %v1183_v9, %v1178_v48  ;;  %v1187_v56 = vadd.f32 %v1184_v55, %v1178_v48  ;;  %v1188_v63 = vadd.f32 %v1185_v61, %v1178_v48  ;;  %v1201_v13 = vadd.f32 %v1198_v62, %v1178_v48 }
 0x2d3   :  { %v1202_v0 = vadd.f32 %v1199_v49, %v1178_v48  ;;  %v1203_v1 = vadd.f32 %v1200_v14, %v1178_v48 }
 0x2d4   :  { %v1189_v2 = vmax.f32 %v1186_v54, 0.0  ;;  %v1190_v3 = vmax.f32 %v1187_v56, 0.0  ;;  %v1191_v4 = vmax.f32 %v1188_v63, 0.0  ;;  %v1204_v43 = vmax.f32 %v1201_v13, 0.0 }
 0x2d5   :  { %v1205_v41 = vmax.f32 %v1202_v0, 0.0  ;;  %v1206_v50 = vmax.f32 %v1203_v1, 0.0 }
 0x2d6   :  { %1192 = vst [vmem:[%s2090_s5] sm:$0xff] %v1189_v2 }
 0x2d7   :  { %1193 = vst [vmem:[%s2090_s5 + $0x8] sm:$0xff] %v1190_v3 }
 0x2d8   :  { %1194 = vst.msk [vmem:[%s2090_s5 + $0x10] sm:$0xff] %vm576_vm11, %v1191_v4 }
 0x2d9   :  { %1478 = vst [vmem:[%s2090_s5 + $0x18] sm:$0xff] %v1204_v43 }
 0x2da   :  { %1479 = vst [vmem:[%s2090_s5 + $0x20] sm:$0xff] %v1205_v41 }
 0x2db   :  { %1480 = vst.msk [vmem:[%s2090_s5 + $0x28] sm:$0xff] %vm576_vm11, %v1206_v50 }

// kernel: _lambda_.7
= control target key start
LH: loop header
LB: loop body
LE: loop exit
PB: predicated region body
PF: predicated region fallthrough
CT: control target
= control target key end

     0   :  { %s2986_s22 = smov 110   ;;  %s2987_s23 = smov 127   ;;  %vm34_vm0 = vcmask 257024   ;;  %vm58_vm1 = vcmask 1043456   ;;  %vm93_vm2 = vcmask 900096   ;;  %vm60_vm3 = vcmask 1039360   ;;  %s4102_s0 = inlined_call_operand.vmem [shape: bf16[2,16,326], index: 0, kind: input, shape index: {}]   ;;  %s4103_s1 = inlined_call_operand.vmem [shape: bf16[4,8,64], index: 1, kind: input, shape index: {}]   ;;  %s4104_s4 = inlined_call_operand.vmem [shape: f32[1,288], index: 4, kind: input, shape index: {}]   ;;  %s4105_s5 = inlined_call_operand.vmem [shape: f32[2,4,8,288], index: 5, kind: output, shape index: {}]   ;;  %s4106_s2 = inlined_call_operand.vmem [shape: f32[8,1], index: 2, kind: input, shape index: {}]   ;;  %s4107_s3 = inlined_call_operand.vmem [shape: f32[8,1], index: 3, kind: input, shape index: {}]  }
   0x1   :  { %v3028_v0 = vld [vmem:[%s4102_s0] sm:$0xff]  ;;  %v3033_v1 = vld [vmem:[%s4102_s0 + $0xc] sm:$0xff]  ;;  %v73_v2 = vld [vmem:[%s4102_s0 + $0x8] sm:$0xf]  ;;  %s2988_s7 = smov 109   ;;  %s2989_s14 = smov 126  }
   0x2   :  { %80 = vrot.lane.b32.xlu2 %v3028_v0, %s2986_s22  ;;  %50 = vrot.lane.b32.xlu1 %v3033_v1, %s2987_s23  ;;  %33 = vst [vmem:[#allocation2] sm:$0xff] %v3028_v0  ;;  %v41_v3 = vld [vmem:[%s4102_s0 + $0x14] sm:$0xf]  ;;  %v39_v4 = vld [vmem:[%s4102_s0 + $0x8] sm:$0xf]  ;;  %s2990_s17 = smov 108  }
   0x3   :  { %46 = vrot.lane.b32.xlu0 %v3028_v0, %s2987_s23  ;;  %36 = vst [vmem:[#allocation2 + $0xc] sm:$0xff] %v3033_v1  ;;  %v75_v5 = vld [vmem:[%s4102_s0 + $0x14] sm:$0xf]  ;;  %v106_v7 = vld [vmem:[%s4102_s0 + $0x8] sm:$0xf]  ;;  %s2991_s18 = smov 91  }
   0x4   :  { %v108_v6 = vld [vmem:[%s4102_s0 + $0x14] sm:$0xf]  ;;  %v285_v9 = vld [vmem:[%s4102_s0 + $0x8] sm:$0xf]  ;;  %s2992_s25 = smov 92   ;;  %s2993_s30 = smov 90  }
   0x5   :  { %v319_v8 = vld [vmem:[%s4102_s0 + $0x14] sm:$0xf]  ;;  %v382_v11 = vld [vmem:[%s4102_s0 + $0x8] sm:$0xf]  ;;  %vm126_vm4 = vcmask 891904   ;;  %vm337_vm5 = vcmask 1031168  }
   0x6   :  { %v384_v10 = vld [vmem:[%s4102_s0 + $0x14] sm:$0xf]  ;;  %v561_v13 = vld [vmem:[%s4102_s0 + $0x8] sm:$0xf]  ;;  %vm219_vm6 = vcmask 523264   ;;  %vm402_vm7 = vcmask 883712  }
   0x7   :  { %v287_v12 = vld [vmem:[%s4102_s0 + $0x14] sm:$0xf]  ;;  %v317_v14 = vld [vmem:[%s4102_s0 + $0x8] sm:$0xf]  ;;  %vm678_vm8 = vcmask 744448   ;;  %vm645_vm9 = vcmask 752640  }
   0x8   :  { %v563_v15 = vld [vmem:[%s4102_s0 + $0x14] sm:$0xf]  ;;  %v593_v16 = vld [vmem:[%s4102_s0 + $0x8] sm:$0xf]  ;;  %vm953_vm10 = vcmask 736256   ;;  %vm266_vm11 = vcmask 261120  }
   0x9   :  { %v350_v17 = vld [vmem:[%s4102_s0 + $0x8] sm:$0xf]  ;;  %v352_v19 = vld [vmem:[%s4102_s0 + $0x14] sm:$0xf]  ;;  %v3198_v55 = vld [vmem:[#allocation2 + $0x4] sm:$0xf] }
   0xa   :  { %82 = vrot.lane.b32.xlu2 %v73_v2, %s2986_s22  ;;  %52 = vrot.lane.b32.xlu1 %v41_v3, %s2987_s23  ;;  %v595_v20 = vld [vmem:[%s4102_s0 + $0x14] sm:$0xf]  ;;  %v30_v23 = vld [vmem:[%s4102_s0 + $0x8] sm:$0xf]  ;;  %v3201_v57 = vld [vmem:[#allocation2] sm:$0xf] }
   0xb   :  { %48 = vrot.lane.b32.xlu0 %v39_v4, %s2987_s23  ;;  %35 = vst.msk [vmem:[#allocation2 + $0x8] sm:$0xf] %vm34_vm0, %v30_v23  ;;  %v660_v26 = vld [vmem:[%s4102_s0 + $0x14] sm:$0xf]  ;;  %v625_v30 = vld [vmem:[%s4102_s0 + $0x8] sm:$0xf] }
   0xc   :  { %v32_v29 = vld [vmem:[%s4102_s0 + $0x14] sm:$0xf]  ;;  %v658_v34 = vld [vmem:[%s4102_s0 + $0x8] sm:$0xf] }
   0xd   :  { %37 = vst.msk [vmem:[#allocation2 + $0x14] sm:$0xf] %vm34_vm0, %v32_v29  ;;  %v627_v43 = vld [vmem:[%s4102_s0 + $0x14] sm:$0xf] }
   0xe   :  { %v935_v47 = vld [vmem:[%s4102_s0 + $0x14] sm:$0xf] }
  0x12   :  { %113 = vrot.lane.b32.xlu2 %v3028_v0, %s2988_s7  ;;  %86 = vrot.lane.b32.xlu1 %v75_v5, %s2986_s22  ;;  %v3191_v48 = vld [vmem:[#allocation2 + $0x8] sm:$0xf] }
  0x13   :  { %84 = vrot.lane.b32.xlu0 %v3033_v1, %s2986_s22  ;;  %v933_v5 = vld [vmem:[%s4102_s0 + $0x8] sm:$0xf] }
  0x1a   :  { %119 = vrot.lane.b32.xlu2 %v108_v6, %s2988_s7  ;;  %117 = vrot.lane.b32.xlu1 %v3033_v1, %s2988_s7 }
  0x1b   :  { %115 = vrot.lane.b32.xlu0 %v106_v7, %s2988_s7 }
  0x22   :  { %292 = vrot.lane.b32.xlu2 %v3028_v0, %s2987_s23  ;;  %330 = vrot.lane.b32.xlu1 %v319_v8, %s2989_s14 }
  0x23   :  { %328 = vrot.lane.b32.xlu0 %v3033_v1, %s2989_s14 }
  0x2a   :  { %294 = vrot.lane.b32.xlu2 %v285_v9, %s2987_s23  ;;  %389 = vrot.lane.b32.xlu1 %v3028_v0, %s2990_s17  ;;  %v901_v9 = vld [vmem:[%s4102_s0 + $0x8] sm:$0xf] }
  0x2b   :  { %361 = vrot.lane.b32.xlu0 %v3033_v1, %s2988_s7 }
  0x32   :  { %296 = vrot.lane.b32.xlu2 %v3033_v1, %s2987_s23  ;;  %395 = vrot.lane.b32.xlu1 %v384_v10, %s2990_s17  ;;  %v869_v10 = vld [vmem:[%s4102_s0 + $0x8] sm:$0xf] }
  0x33   :  { %391 = vrot.lane.b32.xlu0 %v382_v11, %s2990_s17 }
  0x3a   :  { %298 = vrot.lane.b32.xlu2 %v287_v12, %s2987_s23  ;;  %568 = vrot.lane.b32.xlu1 %v3028_v0, %s2986_s22 }
  0x3b   :  { %602 = vrot.lane.b32.xlu0 %v593_v16, %s2988_s7 }
  0x42   :  { %324 = vrot.lane.b32.xlu2 %v3028_v0, %s2989_s14  ;;  %570 = vrot.lane.b32.xlu1 %v561_v13, %s2986_s22 }
  0x43   :  { %665 = vrot.lane.b32.xlu0 %v3028_v0, %s2991_s18 }
  0x4a   :  { %326 = vrot.lane.b32.xlu2 %v317_v14, %s2989_s14  ;;  %572 = vrot.lane.b32.xlu1 %v3033_v1, %s2986_s22  ;;  %v3228_v14 = vld [vmem:[#allocation2 + $0x10] sm:$0xf0] }
  0x4b   :  { %671 = vrot.lane.b32.xlu0 %v660_v26, %s2991_s18 }
  0x52   :  { %357 = vrot.lane.b32.xlu2 %v3028_v0, %s2988_s7  ;;  %574 = vrot.lane.b32.xlu1 %v563_v15, %s2986_s22 }
  0x53   :  { %940 = vrot.lane.b32.xlu0 %v3028_v0, %s2993_s30 }
  0x5a   :  { %359 = vrot.lane.b32.xlu2 %v350_v17, %s2988_s7  ;;  %600 = vrot.lane.b32.xlu1 %v3028_v0, %s2988_s7 }
  0x5b   :  { %946 = vrot.lane.b32.xlu0 %v935_v47, %s2993_s30 }
  0x5c   :  { %v81_v18 = vpop.permute.xlu2 %80 }
  0x5d   :  { %v88_v21 = vrot.slane %v81_v18, 4 }
  0x62   :  { %363 = vrot.lane.b32.xlu2 %v352_v19, %s2988_s7  ;;  %606 = vrot.lane.b32.xlu1 %v595_v20, %s2988_s7  ;;  %v3232_v20 = vld [vmem:[#allocation2 + $0xc] sm:$0xf0] }
  0x63   :  { %912 = vrot.lane.b32.xlu0 %v3033_v1, %s2991_s18 }
  0x64   :  { %v83_v22 = vpop.permute.xlu2 %82 }
  0x65   :  { %v89_v24 = vrot.slane %v83_v22, 4  ;;  %102 = vst.msk [vmem:[#allocation2 + $0x38] sm:$0xf] %vm34_vm0, %v83_v22 }
  0x67   :  { %v92_v25 = vsel %vm58_vm1, %v88_v21, %v89_v24 }
  0x68   :  { %v94_v27 = vsel %vm93_vm2, %v81_v18, %v92_v25 }
  0x69   :  { %101 = vst [vmem:[#allocation2 + $0x30] sm:$0xff] %v94_v27  ;;  %v3236_v27 = vld [vmem:[#allocation2 + $0x8] sm:$0xf0] }
  0x6a   :  { %393 = vrot.lane.b32.xlu2 %v3033_v1, %s2990_s17  ;;  %632 = vrot.lane.b32.xlu1 %v3028_v0, %s2992_s25 }
  0x6b   :  { %878 = vrot.lane.b32.xlu0 %v869_v10, %s2990_s17  ;;  %v2342_v10 = vor.u32 %v3198_v55, %v3232_v20 }
  0x6c   :  { %v3158_v28 = vpop.permute.xlu2 %113 }
  0x6d   :  { %v121_v6 = vrot.slane %v3158_v28, 4 }
  0x72   :  { %634 = vrot.lane.b32.xlu1 %v625_v30, %s2992_s25  ;;  %604 = vrot.lane.b32.xlu2 %v3033_v1, %s2988_s7 }
  0x74   :  { %v120_v31 = vpop.permute.xlu2 %119  ;;  %v51_v32 = vpop.permute.xlu1 %50 }
  0x75   :  { %137 = vst.msk [vmem:[#allocation2 + $0x5c] sm:$0xf] %vm34_vm0, %v120_v31  ;;  %v47_v33 = vpop.permute.xlu0 %46  ;;  %v56_v37 = vrot.slane %v51_v32, 4  ;;  %v124_v2 = vrot.slane %v120_v31, 4 }
  0x76   :  { %v54_v40 = vrot.slane %v47_v33, 4 }
  0x7a   :  { %669 = vrot.lane.b32.xlu1 %v3033_v1, %s2991_s18  ;;  %667 = vrot.lane.b32.xlu2 %v658_v34, %s2991_s18 }
  0x7c   :  { %v293_v35 = vpop.permute.xlu2 %292  ;;  %v53_v36 = vpop.permute.xlu1 %52  ;;  %v2887_v17 = vld [vmem:[#allocation2 + $0x58] sm:$0xf0] }
  0x7d   :  { %v57_v38 = vrot.slane %v53_v36, 4  ;;  %71 = vst.msk [vmem:[#allocation2 + $0x2c] sm:$0xf] %vm34_vm0, %v53_v36  ;;  %v49_v39 = vpop.permute.xlu0 %48  ;;  %v300_v49 = vrot.slane %v293_v35, 4 }
  0x7e   :  { %v55_v41 = vrot.slane %v49_v39, 4  ;;  %69 = vst.msk [vmem:[#allocation2 + $0x20] sm:$0xf] %vm34_vm0, %v49_v39 }
  0x7f   :  { %v62_v42 = vsel %vm58_vm1, %v56_v37, %v57_v38 }
  0x80   :  { %v63_v44 = vsel %vm60_vm3, %v51_v32, %v62_v42  ;;  %v59_v45 = vsel %vm58_vm1, %v54_v40, %v55_v41  ;;  %v2369_v41 = vld [vmem:[#allocation2 + $0x38] sm:$0xf] }
  0x81   :  { %70 = vst [vmem:[#allocation2 + $0x24] sm:$0xff] %v63_v44  ;;  %v61_v46 = vsel %vm60_vm3, %v47_v33, %v59_v45  ;;  %v3249_v42 = vld [vmem:[%s4102_s0 + $0x18] sm:$0xff] }
  0x82   :  { %68 = vst [vmem:[#allocation2 + $0x18] sm:$0xff] %v61_v46  ;;  %638 = vrot.lane.b32.xlu1 %v627_v43, %s2992_s25  ;;  %636 = vrot.lane.b32.xlu2 %v3033_v1, %s2992_s25 }
  0x83   :  { %1192 = vrot.lane.b32.xlu0 %v3249_v42, %s2988_s7 }
  0x84   :  { %v295_v50 = vpop.permute.xlu2 %294  ;;  %v87_v51 = vpop.permute.xlu1 %86  ;;  %v2881_v18 = vld [vmem:[#allocation2 + $0x28] sm:$0xf0] }
  0x85   :  { %v301_v52 = vrot.slane %v295_v50, 4  ;;  %313 = vst.msk [vmem:[#allocation2 + $0x8] sm:$0xf] %vm34_vm0, %v295_v50  ;;  %v91_v53 = vrot.slane %v87_v51, 4  ;;  %v85_v54 = vpop.permute.xlu0 %84  ;;  %v2357_v47 = vld [vmem:[#allocation2 + $0x20] sm:$0xf] }
  0x86   :  { %104 = vst.msk [vmem:[#allocation2 + $0x44] sm:$0xf] %vm34_vm0, %v87_v51  ;;  %v90_v56 = vrot.slane %v85_v54, 4  ;;  %v2361_v50 = vld [vmem:[#allocation2 + $0x30] sm:$0xf] }
  0x87   :  { %v304_v58 = vsel %vm58_vm1, %v300_v49, %v301_v52  ;;  %v2882_v51 = vld [vmem:[#allocation2 + $0x34] sm:$0xf] }
  0x88   :  { %v305_v59 = vsel %vm60_vm3, %v293_v35, %v304_v58  ;;  %v95_v60 = vsel %vm58_vm1, %v90_v56, %v91_v53  ;;  %v2880_v29 = vld [vmem:[#allocation2 + $0x20] sm:$0xf0]  ;;  %v2351_v30 = vld [vmem:[#allocation2 + $0x24] sm:$0xf0]  ;;  %v2358_v56 = vor.u32 %v2881_v18, %v2357_v47 }
  0x89   :  { %v96_v61 = vsel %vm93_vm2, %v85_v54, %v95_v60  ;;  %312 = vst [vmem:[#allocation2] sm:$0xff] %v305_v59  ;;  %v2349_v58 = vld [vmem:[#allocation2 + $0x18] sm:$0xf]  ;;  %v2879_v59 = vld [vmem:[#allocation2 + $0x1c] sm:$0xf] }
  0x8a   :  { %103 = vst [vmem:[#allocation2 + $0x3c] sm:$0xff] %v96_v61  ;;  %944 = vrot.lane.b32.xlu1 %v3033_v1, %s2993_s30  ;;  %942 = vrot.lane.b32.xlu2 %v933_v5, %s2993_s30  ;;  %v871_v60 = vld [vmem:[%s4102_s0 + $0x14] sm:$0xf]  ;;  %v2346_v61 = vor.u32 %v3228_v14, %v3191_v48 }
  0x8c   :  { %v297_v62 = vpop.permute.xlu2 %296  ;;  %v118_v63 = vpop.permute.xlu1 %117 }
  0x8d   :  { %v123_v3 = vrot.slane %v118_v63, 4  ;;  %v116_v4 = vpop.permute.xlu0 %115  ;;  %v302_v15 = vrot.slane %v297_v62, 4  ;;  %v2884_v34 = vld [vmem:[#allocation2 + $0x40] sm:$0xf0] }
  0x8e   :  { %v122_v7 = vrot.slane %v116_v4, 4  ;;  %135 = vst.msk [vmem:[#allocation2 + $0x50] sm:$0xf] %vm34_vm0, %v116_v4  ;;  %v2370_v43 = vor.u32 %v2884_v34, %v2369_v41  ;;  %v839_v41 = vld [vmem:[%s4102_s0 + $0x14] sm:$0xf] }
  0x8f   :  { %v128_v8 = vsel %vm58_vm1, %v123_v3, %v124_v2  ;;  %v2350_v2 = vor.u32 %v2880_v29, %v2349_v58  ;;  %v2354_v3 = vor.u32 %v2879_v59, %v2351_v30 }
  0x90   :  { %v129_v11 = vsel %vm126_vm4, %v118_v63, %v128_v8  ;;  %v125_v12 = vsel %vm58_vm1, %v121_v6, %v122_v7  ;;  %v2566_v63 = vld [vmem:[%s4102_s0 + $0x2c] sm:$0xf]  ;;  %v2338_v6 = vor.u32 %v3236_v27, %v3201_v57  ;;  %v3309_v27 = vld [vmem:[#allocation2 + $0x8] sm:$0xf]  ;;  %v3320_v34 = vld [vmem:[#allocation2 + $0x4] sm:$0xf] }
  0x91   :  { %136 = vst [vmem:[#allocation2 + $0x54] sm:$0xff] %v129_v11  ;;  %v127_v13 = vsel %vm126_vm4, %v3158_v28, %v125_v12  ;;  %v2883_v44 = vld [vmem:[#allocation2 + $0x38] sm:$0xf0]  ;;  %v2363_v45 = vld [vmem:[#allocation2 + $0x3c] sm:$0xf0]  ;;  %1198 = vrot.lane.b32.xlu0 %v2566_v63, %s2988_s7 }
  0x92   :  { %134 = vst [vmem:[#allocation2 + $0x48] sm:$0xff] %v127_v13  ;;  %910 = vrot.lane.b32.xlu1 %v901_v9, %s2991_s18  ;;  %908 = vrot.lane.b32.xlu2 %v3028_v0, %s2991_s18  ;;  %v2362_v53 = vor.u32 %v2883_v44, %v2361_v50  ;;  %v2366_v54 = vor.u32 %v2882_v51, %v2363_v45  ;;  %v138_v9 = vld [vmem:[%s4103_s1] sm:$0xf]  ;;  %v3286_v13 = vld [vmem:[%s4102_s0 + $0x24] sm:$0xff] }
  0x94   :  { %v299_v16 = vpop.permute.xlu2 %298  ;;  %v331_v19 = vpop.permute.xlu1 %330 }
  0x95   :  { %v303_v21 = vrot.slane %v299_v16, 4  ;;  %315 = vst.msk [vmem:[#allocation2 + $0x14] sm:$0xf] %vm34_vm0, %v299_v16  ;;  %v2381_v22 = vld [vmem:[#allocation2 + $0x50] sm:$0xf]  ;;  %v335_v23 = vrot.slane %v331_v19, 4  ;;  %v329_v24 = vpop.permute.xlu0 %328 }
  0x96   :  { %v2382_v25 = vor.u32 %v2887_v17, %v2381_v22  ;;  %348 = vst.msk [vmem:[#allocation2 + $0x2c] sm:$0xf] %vm34_vm0, %v331_v19  ;;  %v334_v26 = vrot.slane %v329_v24, 4  ;;  %v2564_v22 = vld [vmem:[%s4102_s0 + $0x20] sm:$0xf] }
  0x97   :  { %v306_v28 = vsel %vm58_vm1, %v302_v15, %v303_v21  ;;  %v837_v21 = vld [vmem:[%s4102_s0 + $0x8] sm:$0xf] }
  0x98   :  { %v307_v31 = vsel %vm60_vm3, %v297_v62, %v306_v28  ;;  %253 = vmatpush.bf16.msra.mxu2 %v2382_v25  ;;  %v2886_v32 = vld [vmem:[#allocation2 + $0x50] sm:$0xf0]  ;;  %v2375_v33 = vld [vmem:[#allocation2 + $0x54] sm:$0xf0]  ;;  %v339_v35 = vsel %vm58_vm1, %v334_v26, %v335_v23 }
  0x99   :  { %v2373_v36 = vld [vmem:[#allocation2 + $0x48] sm:$0xf]  ;;  %v2885_v37 = vld [vmem:[#allocation2 + $0x4c] sm:$0xf]  ;;  %v340_v38 = vsel %vm337_vm5, %v329_v24, %v339_v35  ;;  %314 = vst [vmem:[#allocation2 + $0xc] sm:$0xff] %v307_v31  ;;  %848 = vrot.lane.b32.xlu0 %v3033_v1, %s2988_s7 }
  0x9a   :  { %v2374_v39 = vor.u32 %v2886_v32, %v2373_v36  ;;  %v2378_v40 = vor.u32 %v2885_v37, %v2375_v33  ;;  %347 = vst [vmem:[#allocation2 + $0x24] sm:$0xff] %v340_v38  ;;  %876 = vrot.lane.b32.xlu1 %v3028_v0, %s2990_s17  ;;  %v903_v62 = vld [vmem:[%s4102_s0 + $0x14] sm:$0xf]  ;;  %v2560_v31 = vld [vmem:[%s4102_s0 + $0x20] sm:$0xf] }
  0x9b   :  { %914 = vrot.lane.b32.xlu2 %v903_v62, %s2991_s18  ;;  %v3322_v35 = vld [vmem:[#allocation2] sm:$0xf] }
  0x9c   :  { %227 = vmatpush.bf16.msra.mxu0 %v2374_v39  ;;  %240 = vmatpush.bf16.msra.mxu1 %v2378_v40  ;;  %v325_v46 = vpop.permute.xlu2 %324  ;;  %v390_v49 = vpop.permute.xlu1 %389  ;;  %v2890_v51 = vld [vmem:[#allocation2 + $0x10] sm:$0xf0] }
  0x9d   :  { %254 = vmatpush.bf16.msra.mxu2 %v2370_v43  ;;  %v3253_v52 = vpop.permute.xlu0 %361  ;;  %v332_v4 = vrot.slane %v325_v46, 4  ;;  %v397_v5 = vrot.slane %v390_v49, 4  ;;  %v2893_v59 = vld [vmem:[#allocation2 + $0x28] sm:$0xf0] }
  0x9e   :  { %v367_v36 = vrot.slane %v3253_v52, 4 }
  0xa0   :  { %228 = vmatpush.bf16.msra.mxu0 %v2362_v53  ;;  %241 = vmatpush.bf16.msra.mxu1 %v2366_v54 }
  0xa1   :  { %255 = vmatpush.bf16.msra.mxu2 %v2358_v56  ;;  %1162 = vrot.lane.b32.xlu0 %v2560_v31, %s2986_s22 }
  0xa2   :  { %882 = vrot.lane.b32.xlu1 %v871_v60, %s2990_s17 }
  0xa3   :  { %880 = vrot.lane.b32.xlu2 %v3033_v1, %s2990_s17 }
  0xa4   :  { %229 = vmatpush.bf16.msra.mxu0 %v2350_v2  ;;  %242 = vmatpush.bf16.msra.mxu1 %v2354_v3  ;;  %v327_v48 = vpop.permute.xlu2 %326  ;;  %v3271_v7 = vpop.permute.xlu1 %395  ;;  %v3353_v3 = vld [vmem:[#allocation2 + $0xc] sm:$0xf0] }
  0xa5   :  { %256 = vmatpush.bf16.msra.mxu2 %v2346_v61  ;;  %v333_v8 = vrot.slane %v327_v48, 4  ;;  %346 = vst.msk [vmem:[#allocation2 + $0x20] sm:$0xf] %vm34_vm0, %v327_v48  ;;  %v392_v11 = vpop.permute.xlu0 %391  ;;  %v400_v45 = vrot.slane %v3271_v7, 4 }
  0xa6   :  { %413 = vst.msk [vmem:[#allocation2 + $0x5c] sm:$0xf] %vm34_vm0, %v3271_v7  ;;  %v398_v57 = vrot.slane %v392_v11, 4 }
  0xa7   :  { %v336_v12 = vsel %vm58_vm1, %v332_v4, %v333_v8  ;;  %411 = vst.msk [vmem:[#allocation2 + $0x50] sm:$0xf] %vm34_vm0, %v392_v11  ;;  %v3355_v4 = vld [vmem:[#allocation2 + $0x8] sm:$0xf0]  ;;  %v2398_v8 = vor.u32 %v2890_v51, %v3309_v27 }
  0xa8   :  { %v338_v14 = vsel %vm337_vm5, %v325_v46, %v336_v12  ;;  %2385 = vmatmul.msk.bf16.vlgmr.msra.gmra.mxu2 %vm219_vm6, %v138_v9  ;;  %230 = vmatpush.bf16.msra.mxu0 %v2338_v6  ;;  %v401_v55 = vsel %vm58_vm1, %v397_v5, %v398_v57 }
  0xa9   :  { %345 = vst [vmem:[#allocation2 + $0x18] sm:$0xff] %v338_v14  ;;  %243 = vmatpush.bf16.msra.mxu1 %v2342_v10  ;;  %v403_v15 = vsel %vm402_vm7, %v390_v49, %v401_v55  ;;  %1128 = vrot.lane.b32.xlu0 %v3249_v42, %s2987_s23 }
  0xaa   :  { %410 = vst [vmem:[#allocation2 + $0x48] sm:$0xff] %v403_v15  ;;  %1196 = vrot.lane.b32.xlu1 %v3286_v13, %s2988_s7 }
  0xab   :  { %2383 = vmatmul.msk.bf16.vlgmr.msra.gmra.mxu0 %vm219_vm6, %v138_v9  ;;  %1194 = vrot.lane.b32.xlu2 %v2564_v22, %s2988_s7  ;;  %v2634_v22 = vld [vmem:[%s4102_s0 + $0x20] sm:$0xf] }
  0xac   :  { %2384 = vmatmul.msk.bf16.vlgmr.msra.gmra.mxu1 %vm219_vm6, %v138_v9  ;;  %v358_v16 = vpop.permute.xlu2 %357  ;;  %v569_v17 = vpop.permute.xlu1 %568  ;;  %v2409_v58 = vld [vmem:[#allocation2 + $0x20] sm:$0xf] }
  0xad   :  { %v2899_v18 = vld [vmem:[#allocation2 + $0x58] sm:$0xf0]  ;;  %v365_v1 = vrot.slane %v358_v16, 4  ;;  %v576_v23 = vrot.slane %v569_v17, 4  ;;  %v2410_v2 = vor.u32 %v2893_v59, %v2409_v58  ;;  %v603_v48 = vpop.permute.xlu0 %602 }
  0xae   :  { %v2433_v19 = vld [vmem:[#allocation2 + $0x50] sm:$0xf]  ;;  %v609_v5 = vrot.slane %v603_v48, 4  ;;  %621 = vst.msk [vmem:[#allocation2 + $0x20] sm:$0xf] %vm34_vm0, %v603_v48 }
  0xaf   :  { %v2434_v20 = vor.u32 %v2899_v18, %v2433_v19 }
  0xb0   :  { %v2401_v10 = vld [vmem:[#allocation2 + $0x18] sm:$0xf]  ;;  %v2891_v12 = vld [vmem:[#allocation2 + $0x1c] sm:$0xf] }
  0xb1   :  { %529 = vmatpush.bf16.msrb.mxu1 %v2434_v20  ;;  %v2425_v11 = vld [vmem:[#allocation2 + $0x48] sm:$0xf]  ;;  %v2897_v57 = vld [vmem:[#allocation2 + $0x4c] sm:$0xf] }
  0xb2   :  { %846 = vrot.lane.b32.xlu1 %v837_v21, %s2988_s7 }
  0xb3   :  { %844 = vrot.lane.b32.xlu2 %v3028_v0, %s2988_s7  ;;  %v2562_v0 = vld [vmem:[%s4102_s0 + $0x2c] sm:$0xf] }
  0xb4   :  { %v360_v24 = vpop.permute.xlu2 %359  ;;  %v571_v25 = vpop.permute.xlu1 %570 }
  0xb5   :  { %v366_v26 = vrot.slane %v360_v24, 4  ;;  %378 = vst.msk [vmem:[#allocation2 + $0x38] sm:$0xf] %vm34_vm0, %v360_v24  ;;  %v577_v28 = vrot.slane %v571_v25, 4  ;;  %v666_v21 = vpop.permute.xlu0 %665 }
  0xb6   :  { %589 = vst.msk [vmem:[#allocation2 + $0x8] sm:$0xf] %vm34_vm0, %v571_v25  ;;  %v673_v25 = vrot.slane %v666_v21, 4 }
  0xb7   :  { %v369_v29 = vsel %vm58_vm1, %v365_v1, %v366_v26  ;;  %v580_v30 = vsel %vm58_vm1, %v576_v23, %v577_v28 }
  0xb8   :  { %v370_v32 = vsel %vm126_vm4, %v358_v16, %v369_v29  ;;  %v581_v33 = vsel %vm93_vm2, %v569_v17, %v580_v30  ;;  %v2386_v16 = vld [vmem:[%s4103_s1 + $0x4] sm:$0xf] }
  0xb9   :  { %377 = vst [vmem:[#allocation2 + $0x30] sm:$0xff] %v370_v32 }
  0xba   :  { %1160 = vrot.lane.b32.xlu1 %v3249_v42, %s2986_s22  ;;  %588 = vst [vmem:[#allocation2] sm:$0xff] %v581_v33  ;;  %v2892_v33 = vld [vmem:[#allocation2 + $0x20] sm:$0xf0] }
  0xbb   :  { %850 = vrot.lane.b32.xlu2 %v839_v41, %s2988_s7  ;;  %v2402_v41 = vor.u32 %v2892_v33, %v2401_v10 }
  0xbc   :  { %v364_v37 = vpop.permute.xlu2 %363  ;;  %v573_v38 = vpop.permute.xlu1 %572  ;;  %v2421_v44 = vld [vmem:[#allocation2 + $0x38] sm:$0xf] }
  0xbd   :  { %v368_v39 = vrot.slane %v364_v37, 4  ;;  %380 = vst.msk [vmem:[#allocation2 + $0x44] sm:$0xf] %vm34_vm0, %v364_v37  ;;  %v578_v46 = vrot.slane %v573_v38, 4 }
  0xbf   :  { %v371_v40 = vsel %vm58_vm1, %v367_v36, %v368_v39  ;;  %v2403_v36 = vld [vmem:[#allocation2 + $0x24] sm:$0xf0] }
  0xc0   :  { %v372_v43 = vsel %vm126_vm4, %v3253_v52, %v371_v40  ;;  %v2558_v52 = vld [vmem:[%s4102_s0 + $0x2c] sm:$0xf]  ;;  %v2413_v23 = vld [vmem:[#allocation2 + $0x30] sm:$0xf]  ;;  %v2894_v27 = vld [vmem:[#allocation2 + $0x34] sm:$0xf] }
  0xc1   :  { %379 = vst [vmem:[#allocation2 + $0x3c] sm:$0xff] %v372_v43  ;;  %1134 = vrot.lane.b32.xlu0 %v2558_v52, %s2987_s23  ;;  %v2556_v43 = vld [vmem:[%s4102_s0 + $0x20] sm:$0xf] }
  0xc2   :  { %1166 = vrot.lane.b32.xlu1 %v2562_v0, %s2986_s22  ;;  %v2406_v0 = vor.u32 %v2891_v12, %v2403_v36 }
  0xc3   :  { %1164 = vrot.lane.b32.xlu2 %v3286_v13, %s2986_s22 }
  0xc4   :  { %v394_v47 = vpop.permute.xlu2 %393  ;;  %v2896_v49 = vld [vmem:[#allocation2 + $0x40] sm:$0xf0]  ;;  %v575_v50 = vpop.permute.xlu1 %574 }
  0xc5   :  { %v399_v53 = vrot.slane %v394_v47, 4  ;;  %v2422_v54 = vor.u32 %v2896_v49, %v2421_v44  ;;  %v579_v56 = vrot.slane %v575_v50, 4  ;;  %591 = vst.msk [vmem:[#allocation2 + $0x14] sm:$0xf] %vm34_vm0, %v575_v50  ;;  %v2630_v44 = vld [vmem:[%s4102_s0 + $0x20] sm:$0xf]  ;;  %v2394_v49 = vor.u32 %v3320_v34, %v3353_v3 }
  0xc7   :  { %v404_v60 = vsel %vm58_vm1, %v399_v53, %v400_v45  ;;  %530 = vmatpush.bf16.msrb.mxu1 %v2422_v54  ;;  %v582_v61 = vsel %vm58_vm1, %v578_v46, %v579_v56  ;;  %v672_v45 = vpop.permute.xlu0 %671 }
  0xc8   :  { %v405_v62 = vsel %vm402_vm7, %v394_v47, %v404_v60  ;;  %v583_v63 = vsel %vm93_vm2, %v573_v38, %v582_v61  ;;  %v2895_v20 = vld [vmem:[#allocation2 + $0x38] sm:$0xf0]  ;;  %v2415_v1 = vld [vmem:[#allocation2 + $0x3c] sm:$0xf0]  ;;  %689 = vst.msk [vmem:[#allocation2 + $0x5c] sm:$0xf] %vm34_vm0, %v672_v45  ;;  %v2390_v47 = vor.u32 %v3355_v4, %v3322_v35 }
  0xc9   :  { %412 = vst [vmem:[#allocation2 + $0x54] sm:$0xff] %v405_v62  ;;  %1469 = vrot.lane.b32.xlu0 %v3286_v13, %s2990_s17  ;;  %v2414_v26 = vor.u32 %v2895_v20, %v2413_v23  ;;  %v2418_v30 = vor.u32 %v2894_v27, %v2415_v1  ;;  %v2636_v62 = vld [vmem:[%s4102_s0 + $0x2c] sm:$0xf]  ;;  %v2464_v1 = vld [vmem:[#allocation2 + $0x20] sm:$0xf] }
  0xca   :  { %590 = vst [vmem:[#allocation2 + $0xc] sm:$0xff] %v583_v63  ;;  %1132 = vrot.lane.b32.xlu1 %v3286_v13, %s2987_s23 }
  0xcb   :  { %531 = vmatpush.bf16.msrb.mxu1 %v2410_v2  ;;  %1130 = vrot.lane.b32.xlu2 %v2556_v43, %s2987_s23  ;;  %v676_v2 = vrot.slane %v672_v45, 4 }
  0xcc   :  { %v601_v6 = vpop.permute.xlu1 %600  ;;  %v605_v7 = vpop.permute.xlu2 %604 }
  0xcd   :  { %v608_v9 = vrot.slane %v601_v6, 4  ;;  %v610_v24 = vrot.slane %v605_v7, 4 }
  0xcf   :  { %532 = vmatpush.bf16.msrb.mxu1 %v2398_v8  ;;  %v612_v14 = vsel %vm58_vm1, %v608_v9, %v609_v5  ;;  %v2911_v53 = vld [vmem:[#allocation2 + $0x58] sm:$0xf0]  ;;  %v941_v34 = vpop.permute.xlu0 %940 }
  0xd0   :  { %v2898_v55 = vld [vmem:[#allocation2 + $0x50] sm:$0xf0]  ;;  %v2427_v15 = vld [vmem:[#allocation2 + $0x54] sm:$0xf0]  ;;  %v613_v17 = vsel %vm126_vm4, %v601_v6, %v612_v14  ;;  %v948_v59 = vrot.slane %v941_v34, 4 }
  0xd1   :  { %v2426_v18 = vor.u32 %v2898_v55, %v2425_v11  ;;  %v2430_v19 = vor.u32 %v2897_v57, %v2427_v15  ;;  %620 = vst [vmem:[#allocation2 + $0x18] sm:$0xff] %v613_v17  ;;  %1435 = vrot.lane.b32.xlu0 %v2630_v44, %s2988_s7 }
  0xd2   :  { %2437 = vmatmul.msk.bf16.vlgmr.msrb.gmra.mxu1 %vm219_vm6, %v2386_v16  ;;  %1467 = vrot.lane.b32.xlu1 %v2634_v22, %s2990_s17 }
  0xd3   :  { %503 = vmatpush.bf16.msra.mxu3 %v2426_v18  ;;  %516 = vmatpush.bf16.msrb.mxu0 %v2430_v19 }
  0xd4   :  { %v607_v28 = vpop.permute.xlu1 %606  ;;  %v668_v29 = vpop.permute.xlu2 %667  ;;  %1465 = vrot.lane.b32.xlu2 %v3249_v42, %s2990_s17 }
  0xd5   :  { %v611_v31 = vrot.slane %v607_v28, 4  ;;  %623 = vst.msk [vmem:[#allocation2 + $0x2c] sm:$0xf] %vm34_vm0, %v607_v28  ;;  %v674_v32 = vrot.slane %v668_v29, 4 }
  0xd6   :  { %687 = vst.msk [vmem:[#allocation2 + $0x50] sm:$0xf] %vm34_vm0, %v668_v29 }
  0xd7   :  { %504 = vmatpush.bf16.msra.mxu3 %v2414_v26  ;;  %517 = vmatpush.bf16.msrb.mxu0 %v2418_v30  ;;  %v614_v37 = vsel %vm58_vm1, %v610_v24, %v611_v31  ;;  %v677_v38 = vsel %vm58_vm1, %v673_v25, %v674_v32  ;;  %v947_v12 = vpop.permute.xlu0 %946 }
  0xd8   :  { %v615_v39 = vsel %vm126_vm4, %v605_v7, %v614_v37  ;;  %v679_v40 = vsel %vm678_vm8, %v666_v21, %v677_v38  ;;  %964 = vst.msk [vmem:[#allocation2 + $0x5c] sm:$0xf] %vm34_vm0, %v947_v12  ;;  %v951_v21 = vrot.slane %v947_v12, 4  ;;  %v2456_v33 = vld [vmem:[#allocation2 + $0x18] sm:$0xf] }
  0xd9   :  { %622 = vst [vmem:[#allocation2 + $0x24] sm:$0xff] %v615_v39  ;;  %v2903_v37 = vld [vmem:[#allocation2 + $0x1c] sm:$0xf] }
  0xda   :  { %686 = vst [vmem:[#allocation2 + $0x48] sm:$0xff] %v679_v40  ;;  %1433 = vrot.lane.b32.xlu1 %v3249_v42, %s2988_s7 }
  0xdb   :  { %505 = vmatpush.bf16.msra.mxu3 %v2402_v41  ;;  %518 = vmatpush.bf16.msrb.mxu0 %v2406_v0 }
  0xdc   :  { %v633_v46 = vpop.permute.xlu1 %632  ;;  %v637_v50 = vpop.permute.xlu2 %636  ;;  %1471 = vrot.lane.b32.xlu2 %v2636_v62, %s2990_s17  ;;  %v2905_v26 = vld [vmem:[#allocation2 + $0x28] sm:$0xf0] }
  0xdd   :  { %v2488_v51 = vld [vmem:[#allocation2 + $0x50] sm:$0xf]  ;;  %v640_v54 = vrot.slane %v633_v46, 4  ;;  %v642_v11 = vrot.slane %v637_v50, 4  ;;  %v2465_v0 = vor.u32 %v2905_v26, %v2464_v1 }
  0xde   :  { %v2489_v56 = vor.u32 %v2911_v53, %v2488_v51 }
  0xdf   :  { %506 = vmatpush.bf16.msra.mxu3 %v2390_v47  ;;  %519 = vmatpush.bf16.msrb.mxu0 %v2394_v49  ;;  %v913_v29 = vpop.permute.xlu0 %912  ;;  %v2452_v49 = vld [vmem:[#allocation2 + $0x8] sm:$0xf] }
  0xe0   :  { %v918_v32 = vrot.slane %v913_v29, 4  ;;  %v2904_v36 = vld [vmem:[#allocation2 + $0x20] sm:$0xf0]  ;;  %v2458_v41 = vld [vmem:[#allocation2 + $0x24] sm:$0xf0] }
  0xe1   :  { %v2480_v48 = vld [vmem:[#allocation2 + $0x48] sm:$0xf]  ;;  %v2909_v5 = vld [vmem:[#allocation2 + $0x4c] sm:$0xf]  ;;  %v2457_v51 = vor.u32 %v2904_v36, %v2456_v33  ;;  %v2461_v53 = vor.u32 %v2903_v37, %v2458_v41 }
  0xe2   :  { %2435 = vmatmul.msk.bf16.vlgmr.msra.gmra.mxu3 %vm219_vm6, %v2386_v16  ;;  %2436 = vmatmul.msk.bf16.vlgmr.msrb.gmra.mxu0 %vm219_vm6, %v2386_v16 }
  0xe3   :  { %805 = vmatpush.bf16.msra.mxu0 %v2489_v56  ;;  %v2444_v56 = vld [vmem:[#allocation2] sm:$0xf] }
  0xe4   :  { %v635_v52 = vpop.permute.xlu1 %634  ;;  %v943_v61 = vpop.permute.xlu2 %942  ;;  %1437 = vrot.lane.b32.xlu2 %v3286_v13, %s2988_s7 }
  0xe5   :  { %v641_v35 = vrot.slane %v635_v52, 4  ;;  %654 = vst.msk [vmem:[#allocation2 + $0x38] sm:$0xf] %vm34_vm0, %v635_v52  ;;  %v949_v63 = vrot.slane %v943_v61, 4  ;;  %v2901_v52 = vld [vmem:[#allocation2 + $0x8] sm:$0xf0] }
  0xe6   :  { %962 = vst.msk [vmem:[#allocation2 + $0x50] sm:$0xf] %vm34_vm0, %v943_v61 }
  0xe7   :  { %v644_v58 = vsel %vm58_vm1, %v640_v54, %v641_v35  ;;  %v952_v3 = vsel %vm58_vm1, %v948_v59, %v949_v63  ;;  %v2900_v35 = vld [vmem:[#allocation2 + $0x4] sm:$0xf]  ;;  %v879_v62 = vpop.permute.xlu0 %878  ;;  %v2445_v63 = vor.u32 %v2901_v52, %v2444_v56  ;;  %v21_v56 = vld [vmem:[%s4104_s4] sm:$0x7] }
  0xe8   :  { %v646_v60 = vsel %vm645_vm9, %v633_v46, %v644_v58  ;;  %v954_v6 = vsel %vm953_vm10, %v941_v34, %v952_v3  ;;  %v2446_v34 = vld [vmem:[#allocation2 + $0xc] sm:$0xf0]  ;;  %897 = vst.msk [vmem:[#allocation2 + $0x20] sm:$0xf] %vm34_vm0, %v879_v62 }
  0xe9   :  { %653 = vst [vmem:[#allocation2 + $0x30] sm:$0xff] %v646_v60 }
  0xea   :  { %961 = vst [vmem:[#allocation2 + $0x48] sm:$0xff] %v954_v6  ;;  %v885_v6 = vrot.slane %v879_v62, 4 }
  0xec   :  { %v670_v4 = vpop.permute.xlu1 %669  ;;  %v3412_v10 = vpop.permute.xlu2 %908  ;;  %v2476_v20 = vld [vmem:[#allocation2 + $0x38] sm:$0xf] }
  0xed   :  { %v675_v7 = vrot.slane %v670_v4, 4  ;;  %v916_v54 = vrot.slane %v3412_v10, 4 }
  0xef   :  { %v680_v8 = vsel %vm58_vm1, %v675_v7, %v676_v2  ;;  %v2449_v2 = vor.u32 %v2900_v35, %v2446_v34  ;;  %v3448_v34 = vperm.slane %v21_v56, 0 }
  0xf0   :  { %v681_v9 = vsel %vm678_vm8, %v670_v4, %v680_v8  ;;  %v2468_v30 = vld [vmem:[#allocation2 + $0x30] sm:$0xf]  ;;  %v2906_v31 = vld [vmem:[#allocation2 + $0x34] sm:$0xf] }
  0xf1   :  { %688 = vst [vmem:[#allocation2 + $0x54] sm:$0xff] %v681_v9  ;;  %v2921_v8 = vld [vmem:[#allocation2 + $0x4c] sm:$0xf] }
  0xf4   :  { %v639_v57 = vpop.permute.xlu1 %638 }
  0xf5   :  { %v643_v14 = vrot.slane %v639_v57, 4  ;;  %656 = vst.msk [vmem:[#allocation2 + $0x44] sm:$0xf] %vm34_vm0, %v639_v57  ;;  %v915_v24 = vpop.permute.xlu2 %914 }
  0xf6   :  { %v919_v28 = vrot.slane %v915_v24, 4 }
  0xf7   :  { %v647_v55 = vsel %vm58_vm1, %v642_v11, %v643_v14 }
  0xf8   :  { %v648_v15 = vsel %vm645_vm9, %v637_v50, %v647_v55  ;;  %v2910_v16 = vld [vmem:[#allocation2 + $0x50] sm:$0xf0]  ;;  %v2482_v17 = vld [vmem:[#allocation2 + $0x54] sm:$0xf0]  ;;  %v922_v44 = vsel %vm58_vm1, %v918_v32, %v919_v28  ;;  %v1193_v55 = vpop.permute.xlu0 %1192 }
  0xf9   :  { %655 = vst [vmem:[#allocation2 + $0x3c] sm:$0xff] %v648_v15  ;;  %v2481_v18 = vor.u32 %v2910_v16, %v2480_v48  ;;  %v2485_v19 = vor.u32 %v2909_v5, %v2482_v17  ;;  %v923_v47 = vsel %vm678_vm8, %v913_v29, %v922_v44  ;;  %v2902_v50 = vld [vmem:[#allocation2 + $0x10] sm:$0xf0]  ;;  %v2535_v48 = vld [vmem:[#allocation2 + $0x48] sm:$0xf] }
  0xfa   :  { %v2453_v59 = vor.u32 %v2902_v50, %v2452_v49  ;;  %v2543_v16 = vld [vmem:[#allocation2 + $0x50] sm:$0xf]  ;;  %v2923_v17 = vld [vmem:[#allocation2 + $0x58] sm:$0xf0] }
  0xfb   :  { %779 = vmatpush.bf16.msrb.mxu2 %v2481_v18  ;;  %792 = vmatpush.bf16.msrb.mxu3 %v2485_v19  ;;  %v2544_v19 = vor.u32 %v2923_v17, %v2543_v16 }
  0xfc   :  { %v2908_v22 = vld [vmem:[#allocation2 + $0x40] sm:$0xf0]  ;;  %v945_v23 = vpop.permute.xlu1 %944 }
  0xfd   :  { %v2477_v25 = vor.u32 %v2908_v22, %v2476_v20  ;;  %v950_v27 = vrot.slane %v945_v23, 4  ;;  %931 = vst.msk [vmem:[#allocation2 + $0x44] sm:$0xf] %vm34_vm0, %v915_v24  ;;  %v881_v60 = vpop.permute.xlu2 %880 }
  0xfe   :  { %v886_v18 = vrot.slane %v881_v60, 4 }
  0xff   :  { %806 = vmatpush.bf16.msra.mxu0 %v2477_v25  ;;  %v955_v38 = vsel %vm58_vm1, %v950_v27, %v951_v21  ;;  %v1200_v21 = vrot.slane %v1193_v55, 4 }
 0x100   :  { %v2907_v39 = vld [vmem:[#allocation2 + $0x38] sm:$0xf0]  ;;  %v2470_v40 = vld [vmem:[#allocation2 + $0x3c] sm:$0xf0]  ;;  %v956_v43 = vsel %vm953_vm10, %v945_v23, %v955_v38 }
 0x101   :  { %v2469_v45 = vor.u32 %v2907_v39, %v2468_v30  ;;  %v2473_v46 = vor.u32 %v2906_v31, %v2470_v40  ;;  %963 = vst [vmem:[#allocation2 + $0x54] sm:$0xff] %v956_v43  ;;  %v2519_v40 = vld [vmem:[#allocation2 + $0x20] sm:$0xf] }
 0x102   :  { %930 = vst [vmem:[#allocation2 + $0x3c] sm:$0xff] %v923_v47 }
 0x103   :  { %780 = vmatpush.bf16.msrb.mxu2 %v2469_v45  ;;  %793 = vmatpush.bf16.msrb.mxu3 %v2473_v46  ;;  %v1199_v31 = vpop.permute.xlu0 %1198 }
 0x104   :  { %807 = vmatpush.bf16.msra.mxu0 %v2465_v0  ;;  %v911_v58 = vpop.permute.xlu1 %910  ;;  %v2920_v33 = vld [vmem:[#allocation2 + $0x40] sm:$0xf0]  ;;  %1215 = vst.msk [vmem:[#allocation2 + $0x5c] sm:$0xf] %vm34_vm0, %v1199_v31  ;;  %v1203_v41 = vrot.slane %v1199_v31, 4 }
 0x105   :  { %v917_v61 = vrot.slane %v911_v58, 4  ;;  %929 = vst.msk [vmem:[#allocation2 + $0x38] sm:$0xf] %vm34_vm0, %v911_v58  ;;  %v1195_v14 = vpop.permute.xlu2 %1194 }
 0x106   :  { %1213 = vst.msk [vmem:[#allocation2 + $0x50] sm:$0xf] %vm34_vm0, %v1195_v14  ;;  %v1201_v20 = vrot.slane %v1195_v14, 4 }
 0x107   :  { %781 = vmatpush.bf16.msrb.mxu2 %v2457_v51  ;;  %794 = vmatpush.bf16.msrb.mxu3 %v2461_v53  ;;  %v920_v3 = vsel %vm58_vm1, %v916_v54, %v917_v61  ;;  %v2626_v61 = vld [vmem:[%s4102_s0 + $0x20] sm:$0xf] }
 0x108   :  { %v921_v4 = vsel %vm678_vm8, %v3412_v10, %v920_v3  ;;  %808 = vmatpush.bf16.msra.mxu0 %v2453_v59  ;;  %v2922_v5 = vld [vmem:[#allocation2 + $0x50] sm:$0xf0]  ;;  %v2537_v9 = vld [vmem:[#allocation2 + $0x54] sm:$0xf0]  ;;  %v1204_v29 = vsel %vm58_vm1, %v1200_v21, %v1201_v20  ;;  %v3450_v59 = vperm.slane %v21_v56, 1  ;;  %1403 = vrot.lane.b32.xlu2 %v2626_v61, %s2989_s14 }
 0x109   :  { %928 = vst [vmem:[#allocation2 + $0x30] sm:$0xff] %v921_v4  ;;  %v2536_v7 = vor.u32 %v2922_v5, %v2535_v48  ;;  %v2540_v57 = vor.u32 %v2921_v8, %v2537_v9  ;;  %v2919_v1 = vld [vmem:[#allocation2 + $0x38] sm:$0xf0]  ;;  %v2525_v26 = vld [vmem:[#allocation2 + $0x3c] sm:$0xf0]  ;;  %v1205_v36 = vsel %vm126_vm4, %v1193_v55, %v1204_v29 }
 0x10a   :  { %1212 = vst [vmem:[#allocation2 + $0x48] sm:$0xff] %v1205_v36 }
 0x10b   :  { %782 = vmatpush.bf16.msrb.mxu2 %v2445_v63  ;;  %795 = vmatpush.bf16.msrb.mxu3 %v2449_v2  ;;  %v849_v46 = vpop.permute.xlu0 %848 }
 0x10c   :  { %v877_v11 = vpop.permute.xlu1 %876  ;;  %1054 = vmatpush.bf16.msra.mxu1 %v2536_v7  ;;  %v2531_v27 = vld [vmem:[#allocation2 + $0x38] sm:$0xf]  ;;  %v854_v50 = vrot.slane %v849_v46, 4 }
 0x10d   :  { %v884_v12 = vrot.slane %v877_v11, 4  ;;  %v845_v30 = vpop.permute.xlu2 %844  ;;  %v2532_v37 = vor.u32 %v2920_v33, %v2531_v27 }
 0x10e   :  { %v852_v35 = vrot.slane %v845_v30, 4 }
 0x10f   :  { %1067 = vmatpush.bf16.msra.mxu2 %v2540_v57  ;;  %v888_v15 = vsel %vm58_vm1, %v884_v12, %v885_v6  ;;  %1080 = vmatpush.bf16.msra.mxu3 %v2544_v19  ;;  %v3460_v6 = vperm.slane %v21_v56, 2 }
 0x110   :  { %v889_v10 = vsel %vm402_vm7, %v877_v11, %v888_v15  ;;  %v2523_v22 = vld [vmem:[#allocation2 + $0x30] sm:$0xf]  ;;  %v2918_v25 = vld [vmem:[#allocation2 + $0x34] sm:$0xf] }
 0x111   :  { %896 = vst [vmem:[#allocation2 + $0x18] sm:$0xff] %v889_v10  ;;  %v2524_v24 = vor.u32 %v2919_v1, %v2523_v22  ;;  %v2528_v32 = vor.u32 %v2918_v25, %v2525_v26  ;;  %v2605_v12 = vld [vmem:[#allocation2 + $0x48] sm:$0xf]  ;;  %v2933_v20 = vld [vmem:[#allocation2 + $0x4c] sm:$0xf] }
 0x112   :  { %v2613_v25 = vld [vmem:[#allocation2 + $0x50] sm:$0xf] }
 0x113   :  { %1055 = vmatpush.bf16.msra.mxu1 %v2524_v24  ;;  %1068 = vmatpush.bf16.msra.mxu2 %v2528_v32  ;;  %v1163_v1 = vpop.permute.xlu0 %1162 }
 0x114   :  { %v883_v23 = vpop.permute.xlu1 %882  ;;  %1081 = vmatpush.bf16.msra.mxu3 %v2532_v37  ;;  %1181 = vst.msk [vmem:[#allocation2 + $0x38] sm:$0xf] %vm34_vm0, %v1163_v1  ;;  %v1169_v32 = vrot.slane %v1163_v1, 4 }
 0x115   :  { %v887_v28 = vrot.slane %v883_v23, 4  ;;  %899 = vst.msk [vmem:[#allocation2 + $0x2c] sm:$0xf] %vm34_vm0, %v883_v23  ;;  %v851_v45 = vpop.permute.xlu2 %850  ;;  %v2441_v23 = vld [vmem:[%s4103_s1 + $0x8] sm:$0xf] }
 0x116   :  { %v855_v49 = vrot.slane %v851_v45, 4  ;;  %867 = vst.msk [vmem:[#allocation2 + $0x14] sm:$0xf] %vm34_vm0, %v851_v45  ;;  %2490 = vmatmul.msk.bf16.vlgmr.msrb.gmra.mxu2 %vm219_vm6, %v2441_v23  ;;  %2491 = vmatmul.msk.bf16.vlgmr.msrb.gmra.mxu3 %vm219_vm6, %v2441_v23 }
 0x117   :  { %v890_v38 = vsel %vm58_vm1, %v886_v18, %v887_v28  ;;  %2492 = vmatmul.msk.bf16.vlgmr.msra.gmra.mxu0 %vm219_vm6, %v2441_v23 }
 0x118   :  { %v891_v39 = vsel %vm402_vm7, %v881_v60, %v890_v38  ;;  %v858_v54 = vsel %vm58_vm1, %v854_v50, %v855_v49  ;;  %v2511_v62 = vld [vmem:[#allocation2 + $0x18] sm:$0xf]  ;;  %v2915_v2 = vld [vmem:[#allocation2 + $0x1c] sm:$0xf] }
 0x119   :  { %898 = vst [vmem:[#allocation2 + $0x24] sm:$0xff] %v891_v39  ;;  %v859_v52 = vsel %vm126_vm4, %v849_v46, %v858_v54 }
 0x11a   :  { %866 = vst [vmem:[#allocation2 + $0xc] sm:$0xff] %v859_v52 }
 0x11c   :  { %v1197_v0 = vpop.permute.xlu1 %1196  ;;  %v2917_v43 = vld [vmem:[#allocation2 + $0x28] sm:$0xf0] }
 0x11d   :  { %v1202_v44 = vrot.slane %v1197_v0, 4  ;;  %v2520_v47 = vor.u32 %v2917_v43, %v2519_v40  ;;  %v1165_v49 = vpop.permute.xlu2 %1164 }
 0x11e   :  { %v1170_v50 = vrot.slane %v1165_v49, 4 }
 0x11f   :  { %v1206_v51 = vsel %vm58_vm1, %v1202_v44, %v1203_v41  ;;  %1082 = vmatpush.bf16.msra.mxu3 %v2520_v47 }
 0x120   :  { %v1207_v53 = vsel %vm126_vm4, %v1197_v0, %v1206_v51  ;;  %v2916_v63 = vld [vmem:[#allocation2 + $0x20] sm:$0xf0]  ;;  %v2513_v48 = vld [vmem:[#allocation2 + $0x24] sm:$0xf0] }
 0x121   :  { %1214 = vst [vmem:[#allocation2 + $0x54] sm:$0xff] %v1207_v53  ;;  %v2512_v4 = vor.u32 %v2916_v63, %v2511_v62  ;;  %v2516_v8 = vor.u32 %v2915_v2, %v2513_v48  ;;  %v2913_v19 = vld [vmem:[#allocation2 + $0x8] sm:$0xf0]  ;;  %v2501_v24 = vld [vmem:[#allocation2 + $0xc] sm:$0xf0]  ;;  %v1129_v53 = vpop.permute.xlu0 %1128 }
 0x122   :  { %1118 = vst [vmem:[#allocation2 + $0xc] sm:$0xff] %v3286_v13 }
 0x123   :  { %1056 = vmatpush.bf16.msra.mxu1 %v2512_v4  ;;  %1069 = vmatpush.bf16.msra.mxu2 %v2516_v8 }
 0x124   :  { %v847_v58 = vpop.permute.xlu1 %846 }
 0x125   :  { %v853_v60 = vrot.slane %v847_v58, 4  ;;  %865 = vst.msk [vmem:[#allocation2 + $0x8] sm:$0xf] %vm34_vm0, %v847_v58  ;;  %v1131_v58 = vpop.permute.xlu2 %1130 }
 0x126   :  { %v1137_v61 = vrot.slane %v1131_v58, 4  ;;  %1149 = vst.msk [vmem:[#allocation2 + $0x20] sm:$0xf] %vm34_vm0, %v1131_v58 }
 0x127   :  { %v856_v3 = vsel %vm58_vm1, %v852_v35, %v853_v60  ;;  %v1136_v35 = vrot.slane %v1129_v53, 4  ;;  %v2601_v60 = vld [vmem:[#allocation2 + $0x38] sm:$0xf] }
 0x128   :  { %v3458_v5 = vpop.f32.mrf.mxu0  ;;  %v857_v7 = vsel %vm126_vm4, %v845_v30, %v856_v3  ;;  %v2934_v14 = vld [vmem:[#allocation2 + $0x50] sm:$0xf0]  ;;  %v2607_v21 = vld [vmem:[#allocation2 + $0x54] sm:$0xf0]  ;;  %v2935_v30 = vld [vmem:[#allocation2 + $0x58] sm:$0xf0] }
 0x129   :  { %v262_v9 = vmul.f32 %v3458_v5, %v3448_v34  ;;  %v3465_v11 = vpop.f32.mrf.mxu1  ;;  %864 = vst [vmem:[#allocation2] sm:$0xff] %v857_v7  ;;  %v2606_v10 = vor.u32 %v2934_v14, %v2605_v12  ;;  %v2610_v38 = vor.u32 %v2933_v20, %v2607_v21  ;;  %v2614_v40 = vor.u32 %v2935_v30, %v2613_v25 }
 0x12a   :  { %v263_v57 = vmul.f32 %v3465_v11, %v3450_v59  ;;  %v1140_v7 = vsel %vm58_vm1, %v1136_v35, %v1137_v61  ;;  %v2925_v35 = vld [vmem:[#allocation2 + $0x8] sm:$0xf0] }
 0x12b   :  { %v272_v55 = vmul.f32 %v262_v9, %v262_v9  ;;  %v258_v15 = vpop.f32.mrf.mxu2  ;;  %1304 = vmatpush.bf16.msrb.mxu0 %v2606_v10  ;;  %v1141_v8 = vsel %vm60_vm3, %v1129_v53, %v1140_v7  ;;  %v2552_v53 = vld [vmem:[%s4102_s0 + $0x20] sm:$0xf] }
 0x12c   :  { %v273_v16 = vmul.f32 %v263_v57, %v263_v57  ;;  %v264_v17 = vmul.f32 %v258_v15, %v3460_v6  ;;  %283 = vst.msk [vmem:[%s4105_s5 + $0x10] sm:$0xff] %vm266_vm11, %v258_v15  ;;  %v265_v18 = vadd.f32 %v263_v57, %v262_v9  ;;  %v1161_v22 = vpop.permute.xlu1 %1160 }
 0x12d   :  { %v1168_v29 = vrot.slane %v1161_v22, 4  ;;  %1148 = vst [vmem:[#allocation2 + $0x18] sm:$0xff] %v1141_v8 }
 0x12e   :  { %v274_v26 = vmul.f32 %v264_v17, %v264_v17  ;;  %v267_v27 = vsel %vm266_vm11, %v264_v17, 0.0  ;;  %v275_v28 = vadd.f32 %v273_v16, %v272_v55  ;;  %v1466_v12 = vpop.permute.xlu2 %1465 }
 0x12f   :  { %v268_v31 = vadd.f32 %v267_v27, %v265_v18  ;;  %v1172_v44 = vsel %vm58_vm1, %v1168_v29, %v1169_v32  ;;  %v2632_v18 = vld [vmem:[%s4102_s0 + $0x2c] sm:$0xf]  ;;  %v1473_v1 = vrot.slane %v1466_v12, 4  ;;  %v2589_v32 = vld [vmem:[#allocation2 + $0x20] sm:$0xf] }
 0x130   :  { %v234_v33 = vpop.f32.mrf.mxu0  ;;  %v276_v36 = vsel %vm266_vm11, %v274_v26, 0.0  ;;  %v2499_v37 = vld [vmem:[#allocation2] sm:$0xf]  ;;  %v2912_v39 = vld [vmem:[#allocation2 + $0x4] sm:$0xf]  ;;  %v1173_v46 = vsel %vm93_vm2, %v1161_v22, %v1172_v44 }
 0x131   :  { %269 = vadd.xlane.f32.xlu0 %v268_v31  ;;  %v247_v41 = vpop.f32.mrf.mxu1  ;;  %v277_v0 = vadd.f32 %v276_v36, %v275_v28  ;;  %v2500_v43 = vor.u32 %v2913_v19, %v2499_v37  ;;  %v2504_v45 = vor.u32 %v2912_v39, %v2501_v24  ;;  %1116 = vst [vmem:[#allocation2] sm:$0xff] %v3249_v42  ;;  %v2628_v19 = vld [vmem:[%s4102_s0 + $0x2c] sm:$0xf] }
 0x132   :  { %1180 = vst [vmem:[#allocation2 + $0x30] sm:$0xff] %v1173_v46  ;;  %v2507_v46 = vld [vmem:[#allocation2 + $0x8] sm:$0xf] }
 0x133   :  { %v260_v47 = vpop.f32.mrf.mxu2  ;;  %278 = vadd.xlane.f32.xlu1 %v277_v0  ;;  %1057 = vmatpush.bf16.msra.mxu1 %v2500_v43  ;;  %v1135_v63 = vpop.permute.xlu0 %1134  ;;  %v2496_v0 = vld [vmem:[%s4103_s1 + $0xc] sm:$0xf]  ;;  %v2622_v43 = vld [vmem:[%s4102_s0 + $0x20] sm:$0xf]  ;;  %1117 = vst.msk [vmem:[#allocation2 + $0x8] sm:$0xf] %vm34_vm0, %v2552_v53 }
 0x134   :  { %1070 = vmatpush.bf16.msra.mxu2 %v2504_v45  ;;  %v1167_v51 = vpop.permute.xlu1 %1166  ;;  %v1139_v4 = vrot.slane %v1135_v63, 4  ;;  %1151 = vst.msk [vmem:[#allocation2 + $0x2c] sm:$0xf] %vm34_vm0, %v1135_v63  ;;  %v2581_v20 = vld [vmem:[#allocation2 + $0x18] sm:$0xf] }
 0x135   :  { %v1171_v54 = vrot.slane %v1167_v51, 4  ;;  %1183 = vst.msk [vmem:[#allocation2 + $0x44] sm:$0xf] %vm34_vm0, %v1167_v51  ;;  %v2927_v22 = vld [vmem:[#allocation2 + $0x1c] sm:$0xf] }
 0x136   :  { %v1472_v26 = vpop.permute.xlu2 %1471  ;;  %2545 = vmatmul.msk.bf16.vlgmr.msra.gmra.mxu1 %vm219_vm6, %v2496_v0  ;;  %v2914_v47 = vld [vmem:[#allocation2 + $0x10] sm:$0xf0] }
 0x137   :  { %1317 = vmatpush.bf16.msrb.mxu1 %v2610_v38  ;;  %v1174_v56 = vsel %vm58_vm1, %v1170_v50, %v1171_v54  ;;  %v1476_v28 = vrot.slane %v1472_v26, 4  ;;  %1488 = vst.msk [vmem:[#allocation2 + $0x5c] sm:$0xf] %vm34_vm0, %v1472_v26  ;;  %2546 = vmatmul.msk.bf16.vlgmr.msra.gmra.mxu2 %vm219_vm6, %v2496_v0  ;;  %v2508_v51 = vor.u32 %v2914_v47, %v2507_v46  ;;  %v2554_v54 = vld [vmem:[%s4102_s0 + $0x2c] sm:$0xf] }
 0x138   :  { %1330 = vmatpush.bf16.msrb.mxu2 %v2614_v40  ;;  %v1175_v52 = vsel %vm93_vm2, %v1165_v49, %v1174_v56  ;;  %1119 = vst.msk [vmem:[#allocation2 + $0x14] sm:$0xf] %vm34_vm0, %v2554_v54  ;;  %v2693_v47 = vld [vmem:[%s4102_s0 + $0x20] sm:$0xf] }
 0x139   :  { %1182 = vst [vmem:[#allocation2 + $0x3c] sm:$0xff] %v1175_v52  ;;  %v2593_v14 = vld [vmem:[#allocation2 + $0x30] sm:$0xf]  ;;  %v2930_v10 = vld [vmem:[#allocation2 + $0x34] sm:$0xf]  ;;  %1083 = vmatpush.bf16.msra.mxu3 %v2508_v51 }
 0x13a   :  { %v2569_v52 = vld [vmem:[#allocation2] sm:$0xf] }
 0x13b   :  { %v1470_v30 = vpop.permute.xlu0 %1469  ;;  %v2929_v37 = vld [vmem:[#allocation2 + $0x28] sm:$0xf0] }
 0x13c   :  { %v1133_v62 = vpop.permute.xlu1 %1132  ;;  %v2932_v2 = vld [vmem:[#allocation2 + $0x40] sm:$0xf0]  ;;  %v1475_v31 = vrot.slane %v1470_v30, 4  ;;  %v2590_v40 = vor.u32 %v2929_v37, %v2589_v32  ;;  %2547 = vmatmul.msk.bf16.vlgmr.msra.gmra.mxu3 %vm219_vm6, %v2496_v0  ;;  %v2695_v32 = vld [vmem:[%s4102_s0 + $0x2c] sm:$0xf] }
 0x13d   :  { %v1138_v3 = vrot.slane %v1133_v62, 4  ;;  %v2602_v48 = vor.u32 %v2932_v2, %v2601_v60  ;;  %v2570_v60 = vor.u32 %v2925_v35, %v2569_v52  ;;  %v2624_v37 = vld [vmem:[%s4102_s0 + $0x2c] sm:$0xf]  ;;  %v2701_v0 = vld [vmem:[%s4102_s0 + $0x20] sm:$0xf] }
 0x13e   :  { %v1479_v39 = vsel %vm58_vm1, %v1475_v31, %v1476_v28  ;;  %v1438_v31 = vpop.permute.xlu2 %1437 }
 0x13f   :  { %v1142_v9 = vsel %vm58_vm1, %v1138_v3, %v1139_v4  ;;  %1331 = vmatpush.bf16.msrb.mxu2 %v2602_v48  ;;  %v1480_v41 = vsel %vm402_vm7, %v1470_v30, %v1479_v39  ;;  %v3571_v30 = vld [vmem:[%s4102_s0 + $0x18] sm:$0xff] }
 0x140   :  { %v1143_v57 = vsel %vm60_vm3, %v1133_v62, %v1142_v9  ;;  %v2931_v55 = vld [vmem:[#allocation2 + $0x38] sm:$0xf0]  ;;  %v2595_v16 = vld [vmem:[#allocation2 + $0x3c] sm:$0xf0]  ;;  %1487 = vst [vmem:[#allocation2 + $0x54] sm:$0xff] %v1480_v41 }
 0x141   :  { %1150 = vst [vmem:[#allocation2 + $0x24] sm:$0xff] %v1143_v57  ;;  %v2594_v15 = vor.u32 %v2931_v55, %v2593_v14  ;;  %v2598_v17 = vor.u32 %v2930_v10, %v2595_v16  ;;  %v2577_v9 = vld [vmem:[#allocation2 + $0x8] sm:$0xf]  ;;  %v1216_v55 = vld [vmem:[%s4103_s1] sm:$0xf] }
 0x142   :  { %v2571_v10 = vld [vmem:[#allocation2 + $0xc] sm:$0xf0]  ;;  %v2772_v41 = vld [vmem:[%s4102_s0 + $0x20] sm:$0xf] }
 0x143   :  { %1305 = vmatpush.bf16.msrb.mxu0 %v2594_v15  ;;  %1318 = vmatpush.bf16.msrb.mxu1 %v2598_v17  ;;  %v1436_v50 = vpop.permute.xlu0 %1435  ;;  %v2924_v15 = vld [vmem:[#allocation2 + $0x4] sm:$0xf] }
 0x144   :  { %v1468_v27 = vpop.permute.xlu1 %1467  ;;  %1332 = vmatpush.bf16.msrb.mxu2 %v2590_v40  ;;  %v1442_v56 = vrot.slane %v1436_v50, 4  ;;  %1454 = vst.msk [vmem:[#allocation2 + $0x38] sm:$0xf] %vm34_vm0, %v1436_v50  ;;  %v2705_v40 = vld [vmem:[%s4102_s0 + $0x20] sm:$0xf] }
 0x145   :  { %1401 = vrot.lane.b32.xlu0 %v3249_v42, %s2989_s14  ;;  %v1474_v29 = vrot.slane %v1468_v27, 4  ;;  %1486 = vst.msk [vmem:[#allocation2 + $0x50] sm:$0xf] %vm34_vm0, %v1468_v27 }
 0x147   :  { %v1477_v36 = vsel %vm58_vm1, %v1473_v1, %v1474_v29  ;;  %v2946_v62 = vld [vmem:[#allocation2 + $0x50] sm:$0xf0]  ;;  %v2678_v4 = vld [vmem:[#allocation2 + $0x54] sm:$0xf0]  ;;  %v2697_v29 = vld [vmem:[%s4102_s0 + $0x20] sm:$0xf] }
 0x148   :  { %v2928_v21 = vld [vmem:[#allocation2 + $0x20] sm:$0xf0]  ;;  %v2583_v24 = vld [vmem:[#allocation2 + $0x24] sm:$0xf0]  ;;  %v1478_v38 = vsel %vm402_vm7, %v1466_v12, %v1477_v36  ;;  %v2926_v12 = vld [vmem:[#allocation2 + $0x10] sm:$0xf0] }
 0x149   :  { %v2582_v23 = vor.u32 %v2928_v21, %v2581_v20  ;;  %v2586_v25 = vor.u32 %v2927_v22, %v2583_v24  ;;  %1485 = vst [vmem:[#allocation2 + $0x48] sm:$0xff] %v1478_v38  ;;  %v2578_v14 = vor.u32 %v2926_v12, %v2577_v9  ;;  %v2707_v22 = vld [vmem:[%s4102_s0 + $0x2c] sm:$0xf]  ;;  %v2947_v36 = vld [vmem:[#allocation2 + $0x58] sm:$0xf0] }
 0x14b   :  { %1306 = vmatpush.bf16.msrb.mxu0 %v2582_v23  ;;  %1319 = vmatpush.bf16.msrb.mxu1 %v2586_v25 }
 0x14c   :  { %1439 = vrot.lane.b32.xlu1 %v2632_v18, %s2988_s7  ;;  %v1434_v45 = vpop.permute.xlu1 %1433  ;;  %1333 = vmatpush.bf16.msrb.mxu2 %v2578_v14  ;;  %v2574_v18 = vor.u32 %v2924_v15, %v2571_v10  ;;  %v2672_v14 = vld [vmem:[#allocation2 + $0x38] sm:$0xf] }
 0x14d   :  { %1407 = vrot.lane.b32.xlu0 %v2628_v19, %s2989_s14  ;;  %v1441_v49 = vrot.slane %v1434_v45, 4 }
 0x14f   :  { %v534_v33 = vpop.f32.mrf.mxu1  ;;  %v1445_v58 = vsel %vm58_vm1, %v1441_v49, %v1442_v56  ;;  %1307 = vmatpush.bf16.msrb.mxu0 %v2570_v60  ;;  %1320 = vmatpush.bf16.msrb.mxu1 %v2574_v18  ;;  %v2776_v60 = vld [vmem:[%s4102_s0 + $0x20] sm:$0xf] }
 0x150   :  { %2440 = vst.msk [vmem:[%s4105_s5 + $0x28] sm:$0xff] %vm266_vm11, %v534_v33  ;;  %v2676_v61 = vld [vmem:[#allocation2 + $0x48] sm:$0xf]  ;;  %v1446_v63 = vsel %vm126_vm4, %v1434_v45, %v1445_v58  ;;  %v2945_v3 = vld [vmem:[#allocation2 + $0x4c] sm:$0xf]  ;;  %v540_v8 = vmul.f32 %v534_v33, %v3460_v6  ;;  %2617 = vmatmul.msk.bf16.vlgmr.msrb.gmra.mxu2 %vm219_vm6, %v1216_v55 }
 0x151   :  { %v2677_v2 = vor.u32 %v2946_v62, %v2676_v61  ;;  %1453 = vst [vmem:[#allocation2 + $0x30] sm:$0xff] %v1446_v63  ;;  %v2681_v48 = vor.u32 %v2945_v3, %v2678_v4  ;;  %v2684_v33 = vld [vmem:[#allocation2 + $0x50] sm:$0xf]  ;;  %v2699_v45 = vld [vmem:[%s4102_s0 + $0x2c] sm:$0xf]  ;;  %v1443_v3 = vrot.slane %v1438_v31, 4 }
 0x152   :  { %v549_v17 = vmul.f32 %v540_v8, %v540_v8  ;;  %2615 = vmatmul.msk.bf16.vlgmr.msrb.gmra.mxu0 %vm219_vm6, %v1216_v55  ;;  %2616 = vmatmul.msk.bf16.vlgmr.msrb.gmra.mxu1 %vm219_vm6, %v1216_v55  ;;  %v542_v27 = vsel %vm266_vm11, %v540_v8, 0.0  ;;  %v2685_v38 = vor.u32 %v2947_v36, %v2684_v33  ;;  %v2778_v8 = vld [vmem:[%s4102_s0 + $0x2c] sm:$0xf]  ;;  %v2768_v33 = vld [vmem:[%s4102_s0 + $0x20] sm:$0xf] }
 0x153   :  { %1577 = vmatpush.bf16.msrb.mxu3 %v2677_v2  ;;  %1590 = vmatpush.bf16.msra.mxu0 %v2681_v48 }
 0x154   :  { %1405 = vrot.lane.b32.xlu1 %v3286_v13, %s2989_s14  ;;  %v551_v1 = vsel %vm266_vm11, %v549_v17, 0.0  ;;  %1603 = vmatpush.bf16.msra.mxu1 %v2685_v38 }
 0x157   :  { %v536_v44 = vpop.f32.mrf.mxu1 }
 0x158   :  { %v2770_v44 = vld [vmem:[%s4102_s0 + $0x2c] sm:$0xf] }
 0x15c   :  { %1371 = vrot.lane.b32.xlu1 %v2622_v43, %s2987_s23  ;;  %v2703_v43 = vld [vmem:[%s4102_s0 + $0x2c] sm:$0xf] }
 0x15f   :  { %v3539_v7 = vpop.f32.mrf.mxu0 }
 0x160   :  { %v539_v57 = vmul.f32 %v3539_v7, %v3450_v59 }
 0x162   :  { %v548_v20 = vmul.f32 %v539_v57, %v539_v57  ;;  %v1404_v39 = vpop.permute.xlu2 %1403 }
 0x163   :  { %1422 = vst.msk [vmem:[#allocation2 + $0x20] sm:$0xf] %vm34_vm0, %v1404_v39  ;;  %v1410_v56 = vrot.slane %v1404_v39, 4 }
 0x164   :  { %1738 = vrot.lane.b32.xlu1 %v3249_v42, %s2991_s18 }
 0x165   :  { %v3549_v16 = vpop.f32.mrf.mxu3 }
 0x166   :  { %v538_v19 = vmul.f32 %v3549_v16, %v3448_v34 }
 0x167   :  { %v523_v21 = vpop.f32.mrf.mxu0 }
 0x168   :  { %v547_v42 = vmul.f32 %v538_v19, %v538_v19  ;;  %v541_v26 = vadd.f32 %v539_v57, %v538_v19  ;;  %v2664_v19 = vld [vmem:[#allocation2 + $0x30] sm:$0xf] }
 0x16a   :  { %v550_v23 = vadd.f32 %v548_v20, %v547_v42  ;;  %v543_v28 = vadd.f32 %v542_v27, %v541_v26  ;;  %v2774_v26 = vld [vmem:[%s4102_s0 + $0x2c] sm:$0xf] }
 0x16c   :  { %1744 = vrot.lane.b32.xlu1 %v2707_v22, %s2991_s18  ;;  %v552_v24 = vadd.f32 %v551_v1, %v550_v23  ;;  %v2942_v22 = vld [vmem:[#allocation2 + $0x34] sm:$0xf] }
 0x16d   :  { %v510_v25 = vpop.f32.mrf.mxu3 }
 0x16e   :  { %553 = vadd.xlane.f32.xlu2 %v552_v24  ;;  %v2660_v25 = vld [vmem:[#allocation2 + $0x20] sm:$0xf] }
 0x174   :  { %1710 = vrot.lane.b32.xlu1 %v3286_v13, %s2992_s25  ;;  %v3580_v13 = vld [vmem:[%s4102_s0 + $0x24] sm:$0xff] }
 0x177   :  { %544 = vadd.xlane.f32.xlu0 %v543_v28 }
 0x17c   :  { %1676 = vrot.lane.b32.xlu1 %v2697_v29, %s2988_s7 }
 0x184   :  { %1642 = vrot.lane.b32.xlu1 %v3571_v30, %s2986_s22 }
 0x186   :  { %1369 = vrot.lane.b32.xlu2 %v3571_v30, %s2987_s23 }
 0x18b   :  { %1373 = vrot.lane.b32.xlu0 %v3580_v13, %s2987_s23 }
 0x18c   :  { %1648 = vrot.lane.b32.xlu1 %v2695_v32, %s2986_s22 }
 0x18e   :  { %1375 = vrot.lane.b32.xlu2 %v2624_v37, %s2987_s23 }
 0x193   :  { %1740 = vrot.lane.b32.xlu0 %v2705_v40, %s2991_s18 }
 0x194   :  { %2015 = vrot.lane.b32.xlu1 %v3580_v13, %s2993_s30  ;;  %v810_v51 = vpop.f32.mrf.mxu0 }
 0x195   :  { %2495 = vst.msk [vmem:[%s4105_s5 + $0x40] sm:$0xff] %vm266_vm11, %v810_v51  ;;  %v3684_v32 = vmul.f32 %v810_v51, %v3460_v6 }
 0x196   :  { %1742 = vrot.lane.b32.xlu2 %v3580_v13, %s2991_s18 }
 0x199   :  { %v3635_v49 = vpop.f32.mrf.mxu2  ;;  %v3637_v50 = vpop.f32.mrf.mxu3 }
 0x19a   :  { %v3677_v28 = vmul.f32 %v3635_v49, %v3448_v34  ;;  %v3681_v29 = vmul.f32 %v3637_v50, %v3450_v59 }
 0x19b   :  { %1706 = vrot.lane.b32.xlu0 %v3571_v30, %s2992_s25 }
 0x19c   :  { %1981 = vrot.lane.b32.xlu1 %v2772_v41, %s2991_s18  ;;  %v812_v63 = vpop.f32.mrf.mxu0  ;;  %v823_v37 = vmul.f32 %v3677_v28, %v3677_v28  ;;  %v824_v38 = vmul.f32 %v3681_v29, %v3681_v29 }
 0x19e   :  { %1708 = vrot.lane.b32.xlu2 %v2701_v0, %s2992_s25 }
 0x1a1   :  { %v786_v61 = vpop.f32.mrf.mxu2  ;;  %v799_v62 = vpop.f32.mrf.mxu3 }
 0x1a3   :  { %1712 = vrot.lane.b32.xlu0 %v2703_v43, %s2992_s25 }
 0x1a4   :  { %1947 = vrot.lane.b32.xlu1 %v3571_v30, %s2990_s17  ;;  %v3629_v46 = vpop.xlane.xlu0 %269 }
 0x1a6   :  { %1674 = vrot.lane.b32.xlu2 %v3571_v30, %s2988_s7  ;;  %v3641_v53 = vpop.xlane.xlu1 %278 }
 0x1ab   :  { %1678 = vrot.lane.b32.xlu0 %v3580_v13, %s2988_s7 }
 0x1ac   :  { %1953 = vrot.lane.b32.xlu1 %v2770_v44, %s2990_s17 }
 0x1ae   :  { %1680 = vrot.lane.b32.xlu2 %v2699_v45, %s2988_s7  ;;  %v825_v45 = vmul.f32 %v3684_v32, %v3684_v32 }
 0x1b0   :  { %v827_v51 = vsel %vm266_vm11, %v825_v45, 0.0 }
 0x1b3   :  { %1644 = vrot.lane.b32.xlu0 %v2693_v47, %s2986_s22  ;;  %v3694_v0 = vpop.f32.mrf.mxu1  ;;  %v826_v47 = vadd.f32 %v824_v38, %v823_v37 }
 0x1b4   :  { %1919 = vrot.lane.b32.xlu1 %v3580_v13, %s2988_s7 }
 0x1b6   :  { %1646 = vrot.lane.b32.xlu2 %v3580_v13, %s2986_s22 }
 0x1b7   :  { %v1402_v54 = vpop.permute.xlu0 %1401 }
 0x1b8   :  { %v1409_v52 = vrot.slane %v1402_v54, 4 }
 0x1ba   :  { %v1413_v35 = vsel %vm58_vm1, %v1409_v52, %v1410_v56  ;;  %v828_v52 = vadd.f32 %v827_v51, %v826_v47  ;;  %v818_v47 = vsel %vm266_vm11, %v3684_v32, 0.0  ;;  %v1089_v51 = vmul.f32 %v3694_v0, %v3448_v34 }
 0x1bb   :  { %v1414_v58 = vsel %vm337_vm5, %v1402_v54, %v1413_v35  ;;  %2011 = vrot.lane.b32.xlu0 %v3571_v30, %s2993_s30  ;;  %v3702_v54 = vpop.f32.mrf.mxu2  ;;  %v1061_v35 = vpop.f32.mrf.mxu1 }
 0x1bc   :  { %1421 = vst [vmem:[#allocation2 + $0x18] sm:$0xff] %v1414_v58  ;;  %v2764_v58 = vld [vmem:[%s4102_s0 + $0x20] sm:$0xf] }
 0x1be   :  { %v1440_v2 = vpop.permute.xlu1 %1439  ;;  %2013 = vrot.lane.b32.xlu2 %v2776_v60, %s2993_s30 }
 0x1bf   :  { %v1444_v4 = vrot.slane %v1440_v2, 4  ;;  %1456 = vst.msk [vmem:[#allocation2 + $0x44] sm:$0xf] %vm34_vm0, %v1440_v2  ;;  %v1408_v48 = vpop.permute.xlu0 %1407  ;;  %v1085_v2 = vpop.f32.mrf.mxu3 }
 0x1c0   :  { %1424 = vst.msk [vmem:[#allocation2 + $0x2c] sm:$0xf] %vm34_vm0, %v1408_v48  ;;  %v1412_v15 = vrot.slane %v1408_v48, 4 }
 0x1c1   :  { %v1447_v9 = vsel %vm58_vm1, %v1443_v3, %v1444_v4  ;;  %2550 = vst.msk [vmem:[%s4105_s5 + $0x58] sm:$0xff] %vm266_vm11, %v1085_v2 }
 0x1c2   :  { %v1448_v57 = vsel %vm126_vm4, %v1438_v31, %v1447_v9 }
 0x1c3   :  { %1455 = vst [vmem:[#allocation2 + $0x3c] sm:$0xff] %v1448_v57  ;;  %2017 = vrot.lane.b32.xlu0 %v2778_v8, %s2993_s30  ;;  %v2652_v36 = vld [vmem:[#allocation2 + $0x18] sm:$0xf]  ;;  %v2939_v40 = vld [vmem:[#allocation2 + $0x1c] sm:$0xf]  ;;  %v1074_v60 = vpop.f32.mrf.mxu2 }
 0x1c6   :  { %v1406_v12 = vpop.permute.xlu1 %1405  ;;  %1979 = vrot.lane.b32.xlu2 %v3571_v30, %s2991_s18  ;;  %v2944_v55 = vld [vmem:[#allocation2 + $0x40] sm:$0xf0] }
 0x1c7   :  { %v1411_v10 = vrot.slane %v1406_v12, 4  ;;  %v2673_v17 = vor.u32 %v2944_v55, %v2672_v14  ;;  %v2941_v20 = vld [vmem:[#allocation2 + $0x28] sm:$0xf0] }
 0x1c8   :  { %v2661_v27 = vor.u32 %v2941_v20, %v2660_v25  ;;  %v1087_v20 = vpop.f32.mrf.mxu3 }
 0x1c9   :  { %v1415_v18 = vsel %vm58_vm1, %v1411_v10, %v1412_v15  ;;  %1604 = vmatpush.bf16.msra.mxu1 %v2673_v17 }
 0x1ca   :  { %v1416_v21 = vsel %vm337_vm5, %v1406_v12, %v1415_v18  ;;  %v2943_v42 = vld [vmem:[#allocation2 + $0x38] sm:$0xf0]  ;;  %v2666_v1 = vld [vmem:[#allocation2 + $0x3c] sm:$0xf0] }
 0x1cb   :  { %1423 = vst [vmem:[#allocation2 + $0x24] sm:$0xff] %v1416_v21  ;;  %1983 = vrot.lane.b32.xlu0 %v3580_v13, %s2991_s18  ;;  %v2665_v23 = vor.u32 %v2943_v42, %v2664_v19  ;;  %v2669_v24 = vor.u32 %v2942_v22, %v2666_v1 }
 0x1cd   :  { %1578 = vmatpush.bf16.msrb.mxu3 %v2665_v23  ;;  %1591 = vmatpush.bf16.msra.mxu0 %v2669_v24 }
 0x1ce   :  { %1605 = vmatpush.bf16.msra.mxu1 %v2661_v27  ;;  %1985 = vrot.lane.b32.xlu2 %v2774_v26, %s2991_s18  ;;  %v1372_v31 = vpop.permute.xlu1 %1371 }
 0x1cf   :  { %1390 = vst.msk [vmem:[#allocation2 + $0x8] sm:$0xf] %vm34_vm0, %v1372_v31  ;;  %v3724_v4 = vpop.f32.mrf.mxu0  ;;  %v3730_v9 = vpop.f32.mrf.mxu1 }
 0x1d0   :  { %v3737_v12 = vmul.f32 %v3730_v9, %v3450_v59 }
 0x1d2   :  { %v2940_v39 = vld [vmem:[#allocation2 + $0x20] sm:$0xf0]  ;;  %v2654_v41 = vld [vmem:[#allocation2 + $0x24] sm:$0xf0]  ;;  %v1349_v20 = vmul.f32 %v3737_v12, %v3737_v12 }
 0x1d3   :  { %1949 = vrot.lane.b32.xlu0 %v2768_v33, %s2990_s17  ;;  %v2653_v43 = vor.u32 %v2940_v39, %v2652_v36  ;;  %v2657_v44 = vor.u32 %v2939_v40, %v2654_v41  ;;  %v1335_v14 = vpop.f32.mrf.mxu2 }
 0x1d4   :  { %v3743_v10 = vmul.f32 %v1335_v14, %v3460_v6  ;;  %2620 = vst.msk [vmem:[%s4105_s5 + $0x70] sm:$0xff] %vm266_vm11, %v1335_v14 }
 0x1d5   :  { %1579 = vmatpush.bf16.msrb.mxu3 %v2653_v43  ;;  %1592 = vmatpush.bf16.msra.mxu0 %v2657_v44  ;;  %v3766_v43 = vld [vmem:[%s4103_s1 + $0x4] sm:$0xf]  ;;  %v817_v44 = vadd.f32 %v3681_v29, %v3677_v28  ;;  %v1091_v28 = vmul.f32 %v1085_v2, %v3460_v6  ;;  %v1098_v29 = vmul.f32 %v1089_v51, %v1089_v51 }
 0x1d6   :  { %1951 = vrot.lane.b32.xlu2 %v3580_v13, %s2990_s17  ;;  %v3704_v56 = vpop.permute.xlu1 %1738  ;;  %v2766_v13 = vld [vmem:[%s4102_s0 + $0x2c] sm:$0xf]  ;;  %v1343_v18 = vsel %vm266_vm11, %v3743_v10, 0.0  ;;  %v2648_v24 = vld [vmem:[#allocation2 + $0x8] sm:$0xf] }
 0x1d7   :  { %v1311_v42 = vpop.f32.mrf.mxu0  ;;  %v1324_v22 = vpop.f32.mrf.mxu1  ;;  %v819_v60 = vadd.f32 %v818_v47, %v817_v44  ;;  %v1746_v32 = vrot.slane %v3704_v56, 4  ;;  %v1093_v2 = vsel %vm266_vm11, %v1091_v28, 0.0 }
 0x1db   :  { %1915 = vrot.lane.b32.xlu0 %v3571_v30, %s2988_s7  ;;  %v1378_v30 = vrot.slane %v1372_v31, 4  ;;  %v1337_v23 = vpop.f32.mrf.mxu2 }
 0x1de   :  { %829 = vadd.xlane.f32.xlu1 %v828_v52  ;;  %1917 = vrot.lane.b32.xlu2 %v2764_v58, %s2988_s7  ;;  %v1745_v63 = vpop.permute.xlu1 %1744  ;;  %v1090_v52 = vmul.f32 %v3702_v54, %v3450_v59 }
 0x1df   :  { %1761 = vst.msk [vmem:[#allocation2 + $0x5c] sm:$0xf] %vm34_vm0, %v1745_v63  ;;  %v1749_v25 = vrot.slane %v1745_v63, 4  ;;  %v1100_v63 = vmul.f32 %v1091_v28, %v1091_v28 }
 0x1e1   :  { %v554_v61 = vpop.xlane.xlu2 %553 }
 0x1e2   :  { %v3716_v62 = vadd.f32 %v554_v61, %v3641_v53  ;;  %v3728_v53 = vmul.f32 %v3724_v4, %v3448_v34 }
 0x1e3   :  { %1921 = vrot.lane.b32.xlu0 %v2766_v13, %s2988_s7  ;;  %v1099_v13 = vmul.f32 %v1090_v52, %v1090_v52 }
 0x1e4   :  { %v1342_v17 = vadd.f32 %v3737_v12, %v3728_v53 }
 0x1e6   :  { %v3739_v55 = vpop.permute.xlu1 %1710  ;;  %v1344_v19 = vadd.f32 %v1343_v18, %v1342_v17  ;;  %v1102_v17 = vsel %vm266_vm11, %v1100_v63, 0.0 }
 0x1e8   :  { %1345 = vadd.xlane.f32.xlu1 %v1344_v19  ;;  %v1348_v19 = vmul.f32 %v3728_v53, %v3728_v53 }
 0x1e9   :  { %v1370_v3 = vpop.permute.xlu2 %1369 }
 0x1ea   :  { %v545_v48 = vpop.xlane.xlu0 %544  ;;  %v1377_v8 = vrot.slane %v1370_v3, 4 }
 0x1eb   :  { %v3733_v57 = vadd.f32 %v545_v48, %v3629_v46 }
 0x1ec   :  { %v1381_v15 = vsel %vm58_vm1, %v1377_v8, %v1378_v30  ;;  %v1101_v8 = vadd.f32 %v1099_v13, %v1098_v29 }
 0x1ed   :  { %v1382_v46 = vsel %vm60_vm3, %v1370_v3, %v1381_v15  ;;  %v1092_v3 = vadd.f32 %v1090_v52, %v1089_v51 }
 0x1ee   :  { %1389 = vst [vmem:[#allocation2] sm:$0xff] %v1382_v46  ;;  %v3755_v1 = vpop.permute.xlu1 %1676 }
 0x1ef   :  { %1695 = vst.msk [vmem:[#allocation2 + $0x20] sm:$0xf] %vm34_vm0, %v3755_v1  ;;  %v1683_v46 = vrot.slane %v3755_v1, 4  ;;  %v1094_v23 = vadd.f32 %v1093_v2, %v1092_v3  ;;  %v1350_v1 = vmul.f32 %v3743_v10, %v3743_v10 }
 0x1f1   :  { %v1376_v21 = vpop.permute.xlu2 %1375  ;;  %v1352_v44 = vsel %vm266_vm11, %v1350_v1, 0.0 }
 0x1f2   :  { %1392 = vst.msk [vmem:[#allocation2 + $0x14] sm:$0xf] %vm34_vm0, %v1376_v21  ;;  %v1380_v37 = vrot.slane %v1376_v21, 4 }
 0x1f5   :  { %v2640_v15 = vld [vmem:[#allocation2] sm:$0xf]  ;;  %v2936_v42 = vld [vmem:[#allocation2 + $0x4] sm:$0xf] }
 0x1f6   :  { %v3759_v36 = vpop.permute.xlu1 %1642 }
 0x1f9   :  { %v1743_v26 = vpop.permute.xlu2 %1742  ;;  %v2938_v27 = vld [vmem:[#allocation2 + $0x10] sm:$0xf0] }
 0x1fa   :  { %v1748_v31 = vrot.slane %v1743_v26, 4  ;;  %v2649_v33 = vor.u32 %v2938_v27, %v2648_v24 }
 0x1fc   :  { %v1752_v38 = vsel %vm58_vm1, %v1748_v31, %v1749_v25  ;;  %1606 = vmatpush.bf16.msra.mxu1 %v2649_v33  ;;  %v2959_v31 = vld [vmem:[#allocation2 + $0x58] sm:$0xf0] }
 0x1fd   :  { %v1374_v39 = vpop.permute.xlu0 %1373  ;;  %v1753_v40 = vsel %vm678_vm8, %v1743_v26, %v1752_v38 }
 0x1fe   :  { %v1379_v41 = vrot.slane %v1374_v39, 4  ;;  %1760 = vst [vmem:[#allocation2 + $0x54] sm:$0xff] %v1753_v40  ;;  %v3782_v61 = vpop.permute.xlu1 %1648  ;;  %v1351_v40 = vadd.f32 %v1349_v20, %v1348_v19 }
 0x1ff   :  { %2688 = vmatmul.msk.bf16.vlgmr.msra.gmra.mxu1 %vm219_vm6, %v3766_v43  ;;  %1665 = vst.msk [vmem:[#allocation2 + $0x14] sm:$0xf] %vm34_vm0, %v3782_v61  ;;  %v1653_v2 = vrot.slane %v3782_v61, 4 }
 0x200   :  { %v1383_v45 = vsel %vm58_vm1, %v1379_v41, %v1380_v37  ;;  %v1353_v28 = vadd.f32 %v1352_v44, %v1351_v40 }
 0x201   :  { %v1384_v35 = vsel %vm60_vm3, %v1374_v39, %v1383_v45  ;;  %v1709_v58 = vpop.permute.xlu2 %1708 }
 0x202   :  { %1391 = vst [vmem:[#allocation2 + $0xc] sm:$0xff] %v1384_v35  ;;  %v1715_v53 = vrot.slane %v1709_v58, 4 }
 0x203   :  { %1727 = vst.msk [vmem:[#allocation2 + $0x38] sm:$0xf] %vm34_vm0, %v1709_v58 }
 0x205   :  { %v1741_v30 = vpop.permute.xlu0 %1740  ;;  %v2958_v45 = vld [vmem:[#allocation2 + $0x50] sm:$0xf0]  ;;  %v2749_v47 = vld [vmem:[#allocation2 + $0x54] sm:$0xf0] }
 0x206   :  { %v1747_v48 = vrot.slane %v1741_v30, 4  ;;  %1759 = vst.msk [vmem:[#allocation2 + $0x50] sm:$0xf] %vm34_vm0, %v1741_v30  ;;  %v3800_v33 = vpop.permute.xlu1 %2015  ;;  %v1716_v30 = vrot.slane %v3739_v55, 4 }
 0x207   :  { %820 = vadd.xlane.f32.xlu2 %v819_v60 }
 0x208   :  { %v1750_v14 = vsel %vm58_vm1, %v1746_v32, %v1747_v48 }
 0x209   :  { %v1751_v18 = vsel %vm678_vm8, %v3704_v56, %v1750_v14  ;;  %v2937_v21 = vld [vmem:[#allocation2 + $0x8] sm:$0xf0]  ;;  %v2642_v22 = vld [vmem:[#allocation2 + $0xc] sm:$0xf0]  ;;  %v1675_v24 = vpop.permute.xlu2 %1674  ;;  %v1103_v56 = vadd.f32 %v1102_v17, %v1101_v8 }
 0x20a   :  { %1758 = vst [vmem:[#allocation2 + $0x48] sm:$0xff] %v1751_v18  ;;  %v2641_v25 = vor.u32 %v2937_v21, %v2640_v15  ;;  %v2645_v26 = vor.u32 %v2936_v42, %v2642_v22  ;;  %v1682_v27 = vrot.slane %v1675_v24, 4  ;;  %v2743_v32 = vld [vmem:[#allocation2 + $0x38] sm:$0xf] }
 0x20c   :  { %1580 = vmatpush.bf16.msrb.mxu3 %v2641_v25  ;;  %1593 = vmatpush.bf16.msra.mxu0 %v2645_v26  ;;  %v1686_v12 = vsel %vm58_vm1, %v1682_v27, %v1683_v46 }
 0x20d   :  { %v1707_v37 = vpop.permute.xlu0 %1706  ;;  %1095 = vadd.xlane.f32.xlu0 %v1094_v23  ;;  %v2755_v38 = vld [vmem:[#allocation2 + $0x50] sm:$0xf]  ;;  %v1687_v39 = vsel %vm126_vm4, %v1675_v24, %v1686_v12  ;;  %v2731_v23 = vld [vmem:[#allocation2 + $0x20] sm:$0xf] }
 0x20e   :  { %v1714_v41 = vrot.slane %v1707_v37, 4  ;;  %v2756_v10 = vor.u32 %v2959_v31, %v2755_v38  ;;  %1694 = vst [vmem:[#allocation2 + $0x18] sm:$0xff] %v1687_v39  ;;  %v3812_v63 = vpop.permute.xlu1 %1981  ;;  %v1650_v38 = vrot.slane %v3759_v36, 4 }
 0x20f   :  { %2686 = vmatmul.msk.bf16.vlgmr.msrb.gmra.mxu3 %vm219_vm6, %v3766_v43  ;;  %1104 = vadd.xlane.f32.xlu2 %v1103_v56  ;;  %2000 = vst.msk [vmem:[#allocation2 + $0x38] sm:$0xf] %vm34_vm0, %v3812_v63  ;;  %v1988_v44 = vrot.slane %v3812_v63, 4 }
 0x210   :  { %v1718_v51 = vsel %vm58_vm1, %v1714_v41, %v1715_v53  ;;  %1876 = vmatpush.bf16.msrb.mxu0 %v2756_v10 }
 0x211   :  { %v1719_v52 = vsel %vm645_vm9, %v1707_v37, %v1718_v51  ;;  %v2747_v35 = vld [vmem:[#allocation2 + $0x48] sm:$0xf]  ;;  %v2957_v58 = vld [vmem:[#allocation2 + $0x4c] sm:$0xf]  ;;  %2687 = vmatmul.msk.bf16.vlgmr.msra.gmra.mxu0 %vm219_vm6, %v3766_v43  ;;  %v1681_v29 = vpop.permute.xlu2 %1680 }
 0x212   :  { %1726 = vst [vmem:[#allocation2 + $0x30] sm:$0xff] %v1719_v52  ;;  %v2748_v13 = vor.u32 %v2958_v45, %v2747_v35  ;;  %v2752_v60 = vor.u32 %v2957_v58, %v2749_v47  ;;  %v1685_v17 = vrot.slane %v1681_v29, 4 }
 0x213   :  { %1697 = vst.msk [vmem:[#allocation2 + $0x2c] sm:$0xf] %vm34_vm0, %v1681_v29 }
 0x214   :  { %1850 = vmatpush.bf16.msra.mxu2 %v2748_v13  ;;  %1863 = vmatpush.bf16.msra.mxu3 %v2752_v60  ;;  %v2950_v13 = vld [vmem:[#allocation2 + $0x10] sm:$0xf0] }
 0x215   :  { %v1713_v3 = vpop.permute.xlu0 %1712  ;;  %1354 = vadd.xlane.f32.xlu0 %v1353_v28  ;;  %v2723_v10 = vld [vmem:[#allocation2 + $0x18] sm:$0xf]  ;;  %v2951_v51 = vld [vmem:[#allocation2 + $0x1c] sm:$0xf] }
 0x216   :  { %v1717_v43 = vrot.slane %v1713_v3, 4  ;;  %1729 = vst.msk [vmem:[#allocation2 + $0x44] sm:$0xf] %vm34_vm0, %v1713_v3  ;;  %v3822_v46 = vpop.permute.xlu1 %1947 }
 0x218   :  { %v1720_v48 = vsel %vm58_vm1, %v1716_v30, %v1717_v43 }
 0x219   :  { %v1721_v8 = vsel %vm645_vm9, %v3739_v55, %v1720_v48  ;;  %v1647_v14 = vpop.permute.xlu2 %1646  ;;  %v2735_v55 = vld [vmem:[#allocation2 + $0x30] sm:$0xf]  ;;  %v2954_v26 = vld [vmem:[#allocation2 + $0x34] sm:$0xf] }
 0x21a   :  { %1728 = vst [vmem:[#allocation2 + $0x3c] sm:$0xff] %v1721_v8  ;;  %v1652_v15 = vrot.slane %v1647_v14, 4  ;;  %v2953_v61 = vld [vmem:[#allocation2 + $0x28] sm:$0xf0] }
 0x21b   :  { %v2732_v31 = vor.u32 %v2953_v61, %v2731_v23 }
 0x21c   :  { %v1656_v18 = vsel %vm58_vm1, %v1652_v15, %v1653_v2 }
 0x21d   :  { %v1679_v19 = vpop.permute.xlu0 %1678  ;;  %v2956_v20 = vld [vmem:[#allocation2 + $0x40] sm:$0xf0]  ;;  %v1657_v21 = vsel %vm93_vm2, %v1647_v14, %v1656_v18 }
 0x21e   :  { %v1684_v42 = vrot.slane %v1679_v19, 4  ;;  %v2744_v22 = vor.u32 %v2956_v20, %v2743_v32  ;;  %1664 = vst [vmem:[#allocation2 + $0xc] sm:$0xff] %v1657_v21  ;;  %v3829_v37 = vpop.permute.xlu1 %1953  ;;  %v2708_v21 = vld [vmem:[%s4103_s1 + $0x8] sm:$0xf] }
 0x21f   :  { %1970 = vst.msk [vmem:[#allocation2 + $0x2c] sm:$0xf] %vm34_vm0, %v3829_v37 }
 0x220   :  { %v1688_v24 = vsel %vm58_vm1, %v1684_v42, %v1685_v17  ;;  %1877 = vmatpush.bf16.msrb.mxu0 %v2744_v22  ;;  %v2021_v42 = vrot.slane %v3800_v33, 4 }
 0x221   :  { %v1689_v1 = vsel %vm126_vm4, %v1679_v19, %v1688_v24  ;;  %v2955_v25 = vld [vmem:[#allocation2 + $0x38] sm:$0xf0]  ;;  %v2737_v27 = vld [vmem:[#allocation2 + $0x3c] sm:$0xf0]  ;;  %v2014_v56 = vpop.permute.xlu2 %2013  ;;  %v1958_v24 = vrot.slane %v3829_v37, 4 }
 0x222   :  { %1696 = vst [vmem:[#allocation2 + $0x24] sm:$0xff] %v1689_v1  ;;  %v2736_v53 = vor.u32 %v2955_v25, %v2735_v55  ;;  %v2740_v12 = vor.u32 %v2954_v26, %v2737_v27  ;;  %v2020_v60 = vrot.slane %v2014_v56, 4 }
 0x223   :  { %2032 = vst.msk [vmem:[#allocation2 + $0x50] sm:$0xf] %vm34_vm0, %v2014_v56 }
 0x224   :  { %1851 = vmatpush.bf16.msra.mxu2 %v2736_v53  ;;  %1864 = vmatpush.bf16.msra.mxu3 %v2740_v12 }
 0x225   :  { %v1645_v39 = vpop.permute.xlu0 %1644  ;;  %1878 = vmatpush.bf16.msrb.mxu0 %v2732_v31  ;;  %v2949_v48 = vld [vmem:[#allocation2 + $0x8] sm:$0xf0]  ;;  %v2713_v2 = vld [vmem:[#allocation2 + $0xc] sm:$0xf0] }
 0x226   :  { %v1651_v40 = vrot.slane %v1645_v39, 4  ;;  %1663 = vst.msk [vmem:[#allocation2 + $0x8] sm:$0xf] %vm34_vm0, %v1645_v39 }
 0x228   :  { %v1654_v41 = vsel %vm58_vm1, %v1650_v38, %v1651_v40  ;;  %v2814_v40 = vld [vmem:[#allocation2 + $0x38] sm:$0xf] }
 0x229   :  { %v1655_v45 = vsel %vm93_vm2, %v3759_v36, %v1654_v41  ;;  %v2952_v47 = vld [vmem:[#allocation2 + $0x20] sm:$0xf0]  ;;  %v2725_v52 = vld [vmem:[#allocation2 + $0x24] sm:$0xf0]  ;;  %v1980_v35 = vpop.permute.xlu2 %1979 }
 0x22a   :  { %1662 = vst [vmem:[#allocation2] sm:$0xff] %v1655_v45  ;;  %v2724_v58 = vor.u32 %v2952_v47, %v2723_v10  ;;  %v2728_v28 = vor.u32 %v2951_v51, %v2725_v52  ;;  %v1987_v29 = vrot.slane %v1980_v35, 4  ;;  %v2826_v26 = vld [vmem:[#allocation2 + $0x50] sm:$0xf] }
 0x22c   :  { %1852 = vmatpush.bf16.msra.mxu2 %v2724_v58  ;;  %1865 = vmatpush.bf16.msra.mxu3 %v2728_v28  ;;  %v1991_v32 = vsel %vm58_vm1, %v1987_v29, %v1988_v44  ;;  %v1955_v28 = vrot.slane %v3822_v46, 4 }
 0x22d   :  { %v2012_v30 = vpop.permute.xlu0 %2011  ;;  %v2719_v3 = vld [vmem:[#allocation2 + $0x8] sm:$0xf]  ;;  %v1992_v63 = vsel %vm678_vm8, %v1980_v35, %v1991_v32 }
 0x22e   :  { %v2019_v43 = vrot.slane %v2012_v30, 4  ;;  %v2720_v36 = vor.u32 %v2950_v13, %v2719_v3  ;;  %1999 = vst [vmem:[#allocation2 + $0x30] sm:$0xff] %v1992_v63 }
 0x230   :  { %v2023_v8 = vsel %vm58_vm1, %v2019_v43, %v2020_v60  ;;  %1879 = vmatpush.bf16.msrb.mxu0 %v2720_v36 }
 0x231   :  { %v2024_v14 = vsel %vm953_vm10, %v2012_v30, %v2023_v8  ;;  %v2711_v15 = vld [vmem:[#allocation2] sm:$0xf]  ;;  %v2948_v17 = vld [vmem:[#allocation2 + $0x4] sm:$0xf]  ;;  %v1986_v18 = vpop.permute.xlu2 %1985 }
 0x232   :  { %2031 = vst [vmem:[#allocation2 + $0x48] sm:$0xff] %v2024_v14  ;;  %v2712_v19 = vor.u32 %v2949_v48, %v2711_v15  ;;  %v2716_v20 = vor.u32 %v2948_v17, %v2713_v2  ;;  %v1990_v27 = vrot.slane %v1986_v18, 4  ;;  %v2965_v2 = vld [vmem:[#allocation2 + $0x28] sm:$0xf0] }
 0x233   :  { %2002 = vst.msk [vmem:[#allocation2 + $0x44] sm:$0xf] %vm34_vm0, %v1986_v18  ;;  %2759 = vmatmul.msk.bf16.vlgmr.msrb.gmra.mxu0 %vm219_vm6, %v2708_v21 }
 0x234   :  { %1853 = vmatpush.bf16.msra.mxu2 %v2712_v19  ;;  %1866 = vmatpush.bf16.msra.mxu3 %v2716_v20 }
 0x235   :  { %v2018_v22 = vpop.permute.xlu0 %2017  ;;  %v2806_v32 = vld [vmem:[#allocation2 + $0x30] sm:$0xf]  ;;  %v2966_v63 = vld [vmem:[#allocation2 + $0x34] sm:$0xf] }
 0x236   :  { %v2022_v23 = vrot.slane %v2018_v22, 4  ;;  %2034 = vst.msk [vmem:[#allocation2 + $0x5c] sm:$0xf] %vm34_vm0, %v2018_v22 }
 0x237   :  { %2757 = vmatmul.msk.bf16.vlgmr.msra.gmra.mxu2 %vm219_vm6, %v2708_v21  ;;  %2758 = vmatmul.msk.bf16.vlgmr.msra.gmra.mxu3 %vm219_vm6, %v2708_v21 }
 0x238   :  { %v2025_v61 = vsel %vm58_vm1, %v2021_v42, %v2022_v23 }
 0x239   :  { %v2026_v55 = vsel %vm953_vm10, %v3800_v33, %v2025_v61  ;;  %v1952_v1 = vpop.permute.xlu2 %1951  ;;  %v2818_v33 = vld [vmem:[#allocation2 + $0x48] sm:$0xf]  ;;  %v2969_v45 = vld [vmem:[#allocation2 + $0x4c] sm:$0xf] }
 0x23a   :  { %2033 = vst [vmem:[#allocation2 + $0x54] sm:$0xff] %v2026_v55  ;;  %v1957_v25 = vrot.slane %v1952_v1, 4  ;;  %v2968_v41 = vld [vmem:[#allocation2 + $0x40] sm:$0xf0] }
 0x23b   :  { %v2815_v51 = vor.u32 %v2968_v41, %v2814_v40 }
 0x23c   :  { %v1961_v31 = vsel %vm58_vm1, %v1957_v25, %v1958_v24  ;;  %v1920_v24 = vpop.permute.xlu1 %1919 }
 0x23d   :  { %v1984_v56 = vpop.permute.xlu0 %1983  ;;  %v2971_v53 = vld [vmem:[#allocation2 + $0x58] sm:$0xf0]  ;;  %v1962_v12 = vsel %vm402_vm7, %v1952_v1, %v1961_v31  ;;  %v1925_v55 = vrot.slane %v1920_v24, 4 }
 0x23e   :  { %v1989_v38 = vrot.slane %v1984_v56, 4  ;;  %v2827_v39 = vor.u32 %v2971_v53, %v2826_v26  ;;  %1969 = vst [vmem:[#allocation2 + $0x24] sm:$0xff] %v1962_v12  ;;  %v2779_v12 = vld [vmem:[%s4103_s1 + $0xc] sm:$0xf] }
 0x240   :  { %v1993_v37 = vsel %vm58_vm1, %v1989_v38, %v1990_v27  ;;  %2149 = vmatpush.bf16.msrb.mxu3 %v2827_v39 }
 0x241   :  { %v1994_v10 = vsel %vm678_vm8, %v1984_v56, %v1993_v37  ;;  %v2970_v44 = vld [vmem:[#allocation2 + $0x50] sm:$0xf0]  ;;  %v2820_v47 = vld [vmem:[#allocation2 + $0x54] sm:$0xf0]  ;;  %v1918_v58 = vpop.permute.xlu2 %1917 }
 0x242   :  { %2001 = vst [vmem:[#allocation2 + $0x3c] sm:$0xff] %v1994_v10  ;;  %v2819_v52 = vor.u32 %v2970_v44, %v2818_v33  ;;  %v2823_v35 = vor.u32 %v2969_v45, %v2820_v47  ;;  %v1924_v8 = vrot.slane %v1918_v58, 4 }
 0x243   :  { %1936 = vst.msk [vmem:[#allocation2 + $0x8] sm:$0xf] %vm34_vm0, %v1918_v58 }
 0x244   :  { %2123 = vmatpush.bf16.msrb.mxu1 %v2819_v52  ;;  %2136 = vmatpush.bf16.msrb.mxu2 %v2823_v35 }
 0x245   :  { %v1950_v29 = vpop.permute.xlu0 %1949  ;;  %2150 = vmatpush.bf16.msrb.mxu3 %v2815_v51  ;;  %v2964_v19 = vld [vmem:[#allocation2 + $0x20] sm:$0xf0]  ;;  %v2796_v20 = vld [vmem:[#allocation2 + $0x24] sm:$0xf0] }
 0x246   :  { %v1956_v13 = vrot.slane %v1950_v29, 4  ;;  %1968 = vst.msk [vmem:[#allocation2 + $0x20] sm:$0xf] %vm34_vm0, %v1950_v29 }
 0x248   :  { %v1959_v60 = vsel %vm58_vm1, %v1955_v28, %v1956_v13 }
 0x249   :  { %v1960_v30 = vsel %vm402_vm7, %v3822_v46, %v1959_v60  ;;  %v2967_v3 = vld [vmem:[#allocation2 + $0x38] sm:$0xf0]  ;;  %v2808_v43 = vld [vmem:[#allocation2 + $0x3c] sm:$0xf0] }
 0x24a   :  { %1967 = vst [vmem:[#allocation2 + $0x18] sm:$0xff] %v1960_v30  ;;  %v2807_v36 = vor.u32 %v2967_v3, %v2806_v32  ;;  %v2811_v48 = vor.u32 %v2966_v63, %v2808_v43  ;;  %v2790_v31 = vld [vmem:[#allocation2 + $0x8] sm:$0xf] }
 0x24c   :  { %2124 = vmatpush.bf16.msrb.mxu1 %v2807_v36  ;;  %2137 = vmatpush.bf16.msrb.mxu2 %v2811_v48 }
 0x24d   :  { %v1916_v14 = vpop.permute.xlu0 %1915  ;;  %v2802_v15 = vld [vmem:[#allocation2 + $0x20] sm:$0xf] }
 0x24e   :  { %v1923_v17 = vrot.slane %v1916_v14, 4  ;;  %v2803_v18 = vor.u32 %v2965_v2, %v2802_v15 }
 0x250   :  { %v1927_v21 = vsel %vm58_vm1, %v1923_v17, %v1924_v8  ;;  %2151 = vmatpush.bf16.msrb.mxu3 %v2803_v18 }
 0x251   :  { %v1928_v46 = vsel %vm126_vm4, %v1916_v14, %v1927_v21  ;;  %v2794_v42 = vld [vmem:[#allocation2 + $0x18] sm:$0xf]  ;;  %v2963_v22 = vld [vmem:[#allocation2 + $0x1c] sm:$0xf] }
 0x252   :  { %1935 = vst [vmem:[#allocation2] sm:$0xff] %v1928_v46  ;;  %v2795_v23 = vor.u32 %v2964_v19, %v2794_v42  ;;  %v2799_v61 = vor.u32 %v2963_v22, %v2796_v20 }
 0x254   :  { %2125 = vmatpush.bf16.msrb.mxu1 %v2795_v23  ;;  %2138 = vmatpush.bf16.msrb.mxu2 %v2799_v61 }
 0x255   :  { %v1922_v1 = vpop.permute.xlu0 %1921 }
 0x256   :  { %v1926_v25 = vrot.slane %v1922_v1, 4  ;;  %1938 = vst.msk [vmem:[#allocation2 + $0x14] sm:$0xf] %vm34_vm0, %v1922_v1 }
 0x258   :  { %v1929_v26 = vsel %vm58_vm1, %v1925_v55, %v1926_v25 }
 0x259   :  { %v1930_v27 = vsel %vm126_vm4, %v1920_v24, %v1929_v26  ;;  %v2782_v38 = vld [vmem:[#allocation2] sm:$0xf]  ;;  %v2960_v40 = vld [vmem:[#allocation2 + $0x4] sm:$0xf] }
 0x25a   :  { %1937 = vst [vmem:[#allocation2 + $0xc] sm:$0xff] %v1930_v27 }
 0x25d   :  { %v2962_v56 = vld [vmem:[#allocation2 + $0x10] sm:$0xf0] }
 0x25e   :  { %v2791_v53 = vor.u32 %v2962_v56, %v2790_v31 }
 0x260   :  { %2152 = vmatpush.bf16.msrb.mxu3 %v2791_v53 }
 0x261   :  { %v2961_v39 = vld [vmem:[#allocation2 + $0x8] sm:$0xf0]  ;;  %v2784_v41 = vld [vmem:[#allocation2 + $0xc] sm:$0xf0] }
 0x262   :  { %v2783_v37 = vor.u32 %v2961_v39, %v2782_v38  ;;  %v2787_v33 = vor.u32 %v2960_v40, %v2784_v41 }
 0x263   :  { %2830 = vmatmul.msk.bf16.vlgmr.msrb.gmra.mxu3 %vm219_vm6, %v2779_v12 }
 0x264   :  { %2126 = vmatpush.bf16.msrb.mxu1 %v2783_v37  ;;  %2139 = vmatpush.bf16.msrb.mxu2 %v2787_v33 }
 0x267   :  { %2828 = vmatmul.msk.bf16.vlgmr.msrb.gmra.mxu1 %vm219_vm6, %v2779_v12  ;;  %2829 = vmatmul.msk.bf16.vlgmr.msrb.gmra.mxu2 %vm219_vm6, %v2779_v12 }
 0x27c   :  { %v1608_v10 = vpop.f32.mrf.mxu1 }
 0x27d   :  { %2691 = vst.msk [vmem:[%s4105_s5 + $0x88] sm:$0xff] %vm266_vm11, %v1608_v10  ;;  %v1614_v47 = vmul.f32 %v1608_v10, %v3460_v6 }
 0x27f   :  { %v1623_v35 = vmul.f32 %v1614_v47, %v1614_v47  ;;  %v1616_v29 = vsel %vm266_vm11, %v1614_v47, 0.0 }
 0x281   :  { %v1625_v32 = vsel %vm266_vm11, %v1623_v35, 0.0  ;;  %v830_v35 = vpop.xlane.xlu1 %829 }
 0x284   :  { %v1610_v44 = vpop.f32.mrf.mxu1 }
 0x28e   :  { %v3881_v45 = vpop.f32.mrf.mxu0 }
 0x28f   :  { %v1613_v51 = vmul.f32 %v3881_v45, %v3450_v59 }
 0x291   :  { %v1622_v28 = vmul.f32 %v1613_v51, %v1613_v51 }
 0x292   :  { %v3886_v52 = vpop.f32.mrf.mxu3 }
 0x293   :  { %v1612_v58 = vmul.f32 %v3886_v52, %v3448_v34 }
 0x295   :  { %v1621_v13 = vmul.f32 %v1612_v58, %v1612_v58  ;;  %v1615_v60 = vadd.f32 %v1613_v51, %v1612_v58  ;;  %v821_v51 = vpop.xlane.xlu2 %820  ;;  %v1096_v58 = vpop.xlane.xlu0 %1095 }
 0x296   :  { %v1597_v30 = vpop.f32.mrf.mxu0 }
 0x297   :  { %v1617_v3 = vadd.f32 %v1616_v29, %v1615_v60  ;;  %v1624_v63 = vadd.f32 %v1622_v28, %v1621_v13  ;;  %v1346_v29 = vpop.xlane.xlu1 %1345  ;;  %v822_v13 = vadd.f32 %v821_v51, %v3733_v57 }
 0x299   :  { %1618 = vadd.xlane.f32.xlu2 %v1617_v3  ;;  %v1626_v43 = vadd.f32 %v1625_v32, %v1624_v63  ;;  %v1097_v32 = vadd.f32 %v1096_v58, %v822_v13  ;;  %v831_v3 = vadd.f32 %v830_v35, %v3716_v62  ;;  %v2994_v63 = vmov 0  }
 0x29a   :  { %v1584_v36 = vpop.f32.mrf.mxu3  ;;  %2981 = vset.pattern.permute.xlu2 %v2994_v63  ;;  %2982 = vset.pattern.permute.xlu1 %v2994_v63 }
 0x29b   :  { %1627 = vadd.xlane.f32.xlu1 %v1626_v43  ;;  %2983 = vset.pattern.permute.xlu0 %v2994_v63  ;;  %v1347_v36 = vadd.f32 %v1346_v29, %v1097_v32 }
 0x29d   :  { %v1105_v28 = vpop.xlane.xlu2 %1104 }
 0x2b0   :  { %v1881_v48 = vpop.f32.mrf.mxu0 }
 0x2b1   :  { %2762 = vst.msk [vmem:[%s4105_s5 + $0xa0] sm:$0xff] %vm266_vm11, %v1881_v48  ;;  %v1887_v2 = vmul.f32 %v1881_v48, %v3460_v6  ;;  %v1106_v48 = vadd.f32 %v1105_v28, %v831_v3 }
 0x2b3   :  { %v1896_v17 = vmul.f32 %v1887_v2, %v1887_v2  ;;  %v1889_v20 = vsel %vm266_vm11, %v1887_v2, 0.0 }
 0x2b5   :  { %v1898_v22 = vsel %vm266_vm11, %v1896_v17, 0.0 }
 0x2b8   :  { %v1883_v8 = vpop.f32.mrf.mxu0 }
 0x2ba   :  { %v3897_v14 = vpop.f32.mrf.mxu2  ;;  %v3899_v15 = vpop.f32.mrf.mxu3 }
 0x2bb   :  { %v1885_v18 = vmul.f32 %v3897_v14, %v3448_v34  ;;  %v1886_v19 = vmul.f32 %v3899_v15, %v3450_v59 }
 0x2bd   :  { %v1894_v21 = vmul.f32 %v1885_v18, %v1885_v18  ;;  %v1895_v46 = vmul.f32 %v1886_v19, %v1886_v19  ;;  %v1888_v42 = vadd.f32 %v1886_v19, %v1885_v18 }
 0x2bf   :  { %v1890_v23 = vadd.f32 %v1889_v20, %v1888_v42  ;;  %v1897_v61 = vadd.f32 %v1895_v46, %v1894_v21 }
 0x2c1   :  { %1891 = vadd.xlane.f32.xlu0 %v1890_v23  ;;  %v1899_v24 = vadd.f32 %v1898_v22, %v1897_v61 }
 0x2c2   :  { %v1857_v55 = vpop.f32.mrf.mxu2  ;;  %v1870_v1 = vpop.f32.mrf.mxu3 }
 0x2c3   :  { %1900 = vadd.xlane.f32.xlu2 %v1899_v24 }
 0x2e4   :  { %v3907_v25 = vpop.f32.mrf.mxu1 }
 0x2e5   :  { %v2158_v27 = vmul.f32 %v3907_v25, %v3448_v34 }
 0x2e6   :  { %v2154_v26 = vpop.f32.mrf.mxu3 }
 0x2e7   :  { %v2160_v31 = vmul.f32 %v2154_v26, %v3460_v6  ;;  %2833 = vst.msk [vmem:[%s4105_s5 + $0xb8] sm:$0xff] %vm266_vm11, %v2154_v26  ;;  %v2167_v12 = vmul.f32 %v2158_v27, %v2158_v27 }
 0x2e9   :  { %v2169_v56 = vmul.f32 %v2160_v31, %v2160_v31  ;;  %v2162_v40 = vsel %vm266_vm11, %v2160_v31, 0.0 }
 0x2ea   :  { %v3916_v53 = vpop.f32.mrf.mxu2 }
 0x2eb   :  { %v2159_v38 = vmul.f32 %v3916_v53, %v3450_v59  ;;  %v2171_v6 = vsel %vm266_vm11, %v2169_v56, 0.0  ;;  %v1355_v59 = vpop.xlane.xlu0 %1354 }
 0x2ec   :  { %v2130_v39 = vpop.f32.mrf.mxu1  ;;  %v1356_v2 = vadd.f32 %v1355_v59, %v1106_v48 }
 0x2ed   :  { %v2168_v41 = vmul.f32 %v2159_v38, %v2159_v38  ;;  %v2161_v37 = vadd.f32 %v2159_v38, %v2158_v27 }
 0x2ee   :  { %v2156_v34 = vpop.f32.mrf.mxu3 }
 0x2ef   :  { %v2163_v33 = vadd.f32 %v2162_v40, %v2161_v37  ;;  %v2170_v10 = vadd.f32 %v2168_v41, %v2167_v12  ;;  %v2185_v12 = vld [vmem:[%s4106_s2] sm:$0xff] }
 0x2f0   :  { %v2198_v41 = vld [vmem:[%s4107_s3] sm:$0xff] }
 0x2f1   :  { %2164 = vadd.xlane.f32.xlu1 %v2163_v33  ;;  %v2172_v44 = vadd.f32 %v2171_v6, %v2170_v10  ;;  %v2213_v33 = vld [vmem:[%s4105_s5 + $0x10] sm:$0xff]  ;;  %v2836_v10 = vld [vmem:[%s4105_s5 + $0x28] sm:$0xff] }
 0x2f2   :  { %v2143_v47 = vpop.f32.mrf.mxu2 }
 0x2f3   :  { %2173 = vadd.xlane.f32.xlu0 %v2172_v44 }
 0x30c   :  { %v1619_v60 = vpop.xlane.xlu2 %1618 }
 0x30d   :  { %v1620_v8 = vadd.f32 %v1619_v60, %v1347_v36 }
 0x30e   :  { %v1628_v30 = vpop.xlane.xlu1 %1627 }
 0x30f   :  { %v1629_v18 = vadd.f32 %v1628_v30, %v1356_v2 }
 0x334   :  { %v1892_v43 = vpop.xlane.xlu0 %1891 }
 0x335   :  { %v1893_v19 = vadd.f32 %v1892_v43, %v1620_v8 }
 0x336   :  { %v1901_v17 = vpop.xlane.xlu2 %1900 }
 0x337   :  { %v1902_v21 = vadd.f32 %v1901_v17, %v1629_v18 }
 0x364   :  { %v2165_v20 = vpop.xlane.xlu1 %2164 }
 0x365   :  { %v2166_v57 = vadd.f32 %v2165_v20, %v1893_v19 }
 0x366   :  { %v2174_v46 = vpop.xlane.xlu0 %2173 }
 0x367   :  { %v2180_v42 = vmul.f32 0.00048828125, %v2166_v57  ;;  %v2175_v22 = vadd.f32 %v2174_v46, %v1902_v21 }
 0x369   :  { %v2182_v23 = vmul.f32 %v2180_v42, %v2180_v42  ;;  %v2181_v62 = vmul.f32 0.00048828125, %v2175_v22 }
 0x36b   :  { %v2183_v61 = vsub.f32 %v2181_v62, %v2182_v23 }
 0x36d   :  { %v2184_v24 = vmax.f32 %v2183_v61, 0.0 }
 0x36f   :  { %v2186_v55 = vadd.f32 1e-05, %v2184_v24 }
 0x371   :  { %2984 = vrsqrt.f32 %v2186_v55  ;;  %vm2193_vm13 = vweird.f32 %v2186_v55 }
 0x377   :  { %v2985_v1 = vpop.eup %2984 }
 0x378   :  { %v2188_v26 = vmul.f32 %v2985_v1, %v2186_v55  ;;  %vm2194_vm12 = vweird.f32 %v2985_v1 }
 0x379   :  { %vm2195_vm14 = vmor %vm2193_vm13, %vm2194_vm12 }
 0x37a   :  { %v2189_v27 = vmul.f32 %v2985_v1, %v2188_v26  ;;  %v2860_v26 = vld [vmem:[%s4105_s5 + $0x88] sm:$0xff] }
 0x37c   :  { %v2190_v31 = vmul.f32 0.5, %v2189_v27 }
 0x37e   :  { %v2191_v56 = vsub.f32 1.5, %v2190_v31 }
 0x380   :  { %v2192_v38 = vmul.f32 %v2985_v1, %v2191_v56 }
 0x382   :  { %v2196_v39 = vsel %vm2195_vm14, %v2985_v1, %v2192_v38 }
 0x383   :  { %v2197_v40 = vmul.f32 %v2196_v39, %v2185_v12 }
 0x385   :  { %2203 = vperm.xlu2 %2981, %v2197_v40   ;;  %v2199_v37 = vmul.f32 %v2197_v40, %v2180_v42  ;;  %v2854_v42 = vld [vmem:[%s4105_s5 + $0x70] sm:$0xff] }
 0x387   :  { %v2200_v34 = vsub.f32 %v2198_v41, %v2199_v37  ;;  %v2866_v41 = vld [vmem:[%s4105_s5 + $0xa0] sm:$0xff] }
 0x389   :  { %2208 = vperm.xlu1 %2982, %v2200_v34  }
 0x3df   :  { %v3930_v6 = vpop.permute.xlu2 %2203 }
 0x3e0   :  { %v2214_v44 = vmul.f32 %v3930_v6, %v3458_v5  ;;  %v2215_v47 = vmul.f32 %v3930_v6, %v3465_v11  ;;  %v2216_v51 = vmul.f32 %v2213_v33, %v3930_v6  ;;  %v2229_v35 = vmul.f32 %v3930_v6, %v3549_v16  ;;  %v2842_v5 = vld [vmem:[%s4105_s5 + $0x40] sm:$0xff] }
 0x3e1   :  { %v2230_v58 = vmul.f32 %v3930_v6, %v3539_v7  ;;  %v2231_v28 = vmul.f32 %v2836_v10, %v3930_v6  ;;  %v2244_v29 = vmul.f32 %v3930_v6, %v3635_v49  ;;  %v2245_v7 = vmul.f32 %v3930_v6, %v3637_v50  ;;  %v2848_v50 = vld [vmem:[%s4105_s5 + $0x58] sm:$0xff] }
 0x3e2   :  { %v2246_v32 = vmul.f32 %v2842_v5, %v3930_v6  ;;  %v2259_v48 = vmul.f32 %v3930_v6, %v3694_v0  ;;  %v2260_v17 = vmul.f32 %v3930_v6, %v3702_v54  ;;  %v2261_v20 = vmul.f32 %v2848_v50, %v3930_v6 }
 0x3e3   :  { %v2274_v57 = vmul.f32 %v3930_v6, %v3724_v4  ;;  %v2275_v22 = vmul.f32 %v3930_v6, %v3730_v9  ;;  %v2276_v62 = vmul.f32 %v2854_v42, %v3930_v6  ;;  %v2289_v55 = vmul.f32 %v3930_v6, %v3886_v52 }
 0x3e4   :  { %v2290_v27 = vmul.f32 %v3930_v6, %v3881_v45  ;;  %v2291_v56 = vmul.f32 %v2860_v26, %v3930_v6  ;;  %v2304_v39 = vmul.f32 %v3930_v6, %v3897_v14  ;;  %v2305_v37 = vmul.f32 %v3930_v6, %v3899_v15 }
 0x3e5   :  { %v2306_v33 = vmul.f32 %v2866_v41, %v3930_v6 }
 0x3fb   :  { %v3950_v59 = vpop.permute.xlu1 %2208 }
 0x3fc   :  { %v2217_v11 = vadd.f32 %v2214_v44, %v3950_v59  ;;  %v2218_v13 = vadd.f32 %v2215_v47, %v3950_v59  ;;  %v2219_v16 = vadd.f32 %v2216_v51, %v3950_v59  ;;  %v2232_v60 = vadd.f32 %v2229_v35, %v3950_v59  ;;  %v2872_v35 = vld [vmem:[%s4105_s5 + $0xb8] sm:$0xff] }
 0x3fd   :  { %v2233_v49 = vadd.f32 %v2230_v58, %v3950_v59  ;;  %v2234_v30 = vadd.f32 %v2231_v28, %v3950_v59  ;;  %v2247_v36 = vadd.f32 %v2244_v29, %v3950_v59  ;;  %v2248_v8 = vadd.f32 %v2245_v7, %v3950_v59 }
 0x3fe   :  { %v2220_v3 = vmax.f32 %v2217_v11, 0.0  ;;  %v2221_v63 = vmax.f32 %v2218_v13, 0.0  ;;  %v2222_v43 = vmax.f32 %v2219_v16, 0.0  ;;  %v2235_v2 = vmax.f32 %v2232_v60, 0.0 }
 0x3ff   :  { %v2236_v18 = vmax.f32 %v2233_v49, 0.0  ;;  %v2249_v19 = vadd.f32 %v2246_v32, %v3950_v59  ;;  %v2237_v0 = vmax.f32 %v2234_v30, 0.0  ;;  %v2262_v21 = vadd.f32 %v2259_v48, %v3950_v59 }
 0x400   :  { %2223 = vst [vmem:[%s4105_s5] sm:$0xff] %v2220_v3  ;;  %v2250_v54 = vmax.f32 %v2247_v36, 0.0  ;;  %v2263_v46 = vadd.f32 %v2260_v17, %v3950_v59  ;;  %v2251_v4 = vmax.f32 %v2248_v8, 0.0  ;;  %v2264_v23 = vadd.f32 %v2261_v20, %v3950_v59 }
 0x401   :  { %2224 = vst [vmem:[%s4105_s5 + $0x8] sm:$0xff] %v2221_v63  ;;  %v2252_v61 = vmax.f32 %v2249_v19, 0.0  ;;  %v2277_v24 = vadd.f32 %v2274_v57, %v3950_v59  ;;  %v2265_v9 = vmax.f32 %v2262_v21, 0.0  ;;  %v2278_v1 = vadd.f32 %v2275_v22, %v3950_v59 }
 0x402   :  { %2225 = vst.msk [vmem:[%s4105_s5 + $0x10] sm:$0xff] %vm266_vm11, %v2222_v43  ;;  %v2266_v52 = vmax.f32 %v2263_v46, 0.0  ;;  %v2279_v31 = vadd.f32 %v2276_v62, %v3950_v59  ;;  %v2267_v12 = vmax.f32 %v2264_v23, 0.0  ;;  %v2292_v38 = vadd.f32 %v2289_v55, %v3950_v59 }
 0x403   :  { %2837 = vst [vmem:[%s4105_s5 + $0x18] sm:$0xff] %v2235_v2  ;;  %v2280_v45 = vmax.f32 %v2277_v24, 0.0  ;;  %v2293_v40 = vadd.f32 %v2290_v27, %v3950_v59  ;;  %v2281_v14 = vmax.f32 %v2278_v1, 0.0  ;;  %v2294_v34 = vadd.f32 %v2291_v56, %v3950_v59 }
 0x404   :  { %2838 = vst [vmem:[%s4105_s5 + $0x20] sm:$0xff] %v2236_v18  ;;  %v2282_v10 = vmax.f32 %v2279_v31, 0.0  ;;  %v2307_v44 = vadd.f32 %v2304_v39, %v3950_v59  ;;  %v2319_v47 = vmul.f32 %v3930_v6, %v3907_v25  ;;  %v2295_v15 = vmax.f32 %v2292_v38, 0.0 }
 0x405   :  { %2839 = vst.msk [vmem:[%s4105_s5 + $0x28] sm:$0xff] %vm266_vm11, %v2237_v0  ;;  %v2308_v51 = vadd.f32 %v2305_v37, %v3950_v59  ;;  %v2320_v58 = vmul.f32 %v3930_v6, %v3916_v53  ;;  %v2296_v25 = vmax.f32 %v2293_v40, 0.0  ;;  %v2309_v28 = vadd.f32 %v2306_v33, %v3950_v59 }
 0x406   :  { %2843 = vst [vmem:[%s4105_s5 + $0x30] sm:$0xff] %v2250_v54  ;;  %v2321_v29 = vmul.f32 %v2872_v35, %v3930_v6  ;;  %v2297_v5 = vmax.f32 %v2294_v34, 0.0  ;;  %v2322_v11 = vadd.f32 %v2319_v47, %v3950_v59  ;;  %v2310_v53 = vmax.f32 %v2307_v44, 0.0 }
 0x407   :  { %2844 = vst [vmem:[%s4105_s5 + $0x38] sm:$0xff] %v2251_v4  ;;  %v2323_v13 = vadd.f32 %v2320_v58, %v3950_v59  ;;  %v2311_v6 = vmax.f32 %v2308_v51, 0.0  ;;  %v2312_v60 = vmax.f32 %v2309_v28, 0.0 }
 0x408   :  { %2845 = vst.msk [vmem:[%s4105_s5 + $0x40] sm:$0xff] %vm266_vm11, %v2252_v61  ;;  %v2324_v16 = vadd.f32 %v2321_v29, %v3950_v59  ;;  %v2325_v7 = vmax.f32 %v2322_v11, 0.0 }
 0x409   :  { %2849 = vst [vmem:[%s4105_s5 + $0x48] sm:$0xff] %v2265_v9  ;;  %v2326_v32 = vmax.f32 %v2323_v13, 0.0 }
 0x40a   :  { %2850 = vst [vmem:[%s4105_s5 + $0x50] sm:$0xff] %v2266_v52  ;;  %v2327_v59 = vmax.f32 %v2324_v16, 0.0 }
 0x40b   :  { %2851 = vst.msk [vmem:[%s4105_s5 + $0x58] sm:$0xff] %vm266_vm11, %v2267_v12 }
 0x40c   :  { %2855 = vst [vmem:[%s4105_s5 + $0x60] sm:$0xff] %v2280_v45 }
 0x40d   :  { %2856 = vst [vmem:[%s4105_s5 + $0x68] sm:$0xff] %v2281_v14 }
 0x40e   :  { %2857 = vst.msk [vmem:[%s4105_s5 + $0x70] sm:$0xff] %vm266_vm11, %v2282_v10 }
 0x40f   :  { %2861 = vst [vmem:[%s4105_s5 + $0x78] sm:$0xff] %v2295_v15 }
 0x410   :  { %2862 = vst [vmem:[%s4105_s5 + $0x80] sm:$0xff] %v2296_v25 }
 0x411   :  { %2863 = vst.msk [vmem:[%s4105_s5 + $0x88] sm:$0xff] %vm266_vm11, %v2297_v5 }
 0x412   :  { %2867 = vst [vmem:[%s4105_s5 + $0x90] sm:$0xff] %v2310_v53 }
 0x413   :  { %2868 = vst [vmem:[%s4105_s5 + $0x98] sm:$0xff] %v2311_v6 }
 0x414   :  { %2869 = vst.msk [vmem:[%s4105_s5 + $0xa0] sm:$0xff] %vm266_vm11, %v2312_v60 }
 0x415   :  { %2873 = vst [vmem:[%s4105_s5 + $0xa8] sm:$0xff] %v2325_v7 }
 0x416   :  { %2874 = vst [vmem:[%s4105_s5 + $0xb0] sm:$0xff] %v2326_v32 }
 0x417   :  { %2875 = vst.msk [vmem:[%s4105_s5 + $0xb8] sm:$0xff] %vm266_vm11, %v2327_v59 }

</bundles_post_ra>
